<compile_context>
chip_gen: v7x
topology: tpu7x:2x2x1
jax: 0.10.0
libtpu: 0.0.40
codegen_flags: <defaults>
</compile_context>

<pallas_src>
import functools

import jax
import jax.numpy as jnp
from jax import lax
from jax.experimental import pallas as pl
from jax.experimental.pallas import tpu as pltpu

XI = 1e-6                      # VAT finite-difference step
EPSILON = 3.5                  # adversarial radius
NORM_EPS = 1e-12               # F.normalize default eps
NEG_BIG = -1e9                 # class padding logit: exp() underflows to exactly 0
LANE = 128
SUBLANE = 8
VMEM_BUDGET_BYTES = 40 * 2**20   # fits v7x's 64 MiB VMEM with headroom
HIGHEST = lax.Precision.HIGHEST  # keep MXU f32 passes == XLA reference passes


def _round_up(x, m):
    return (x + m - 1) // m * m


def _cdiv(a, b):
    return -(-a // b)


# ---------------------------------------------------------------------------
# Pallas kernel: one (TB, Dp) batch tile of the full VAT forward.
# ---------------------------------------------------------------------------
def vat_kernel(d0_ref, ql_ref, w_ref, wt_ref, out_ref, *, inv_batch):
    d0 = d0_ref[...]          # [TB, Dp]  random direction (== randn_like(x))
    ql = ql_ref[...]          # [TB, CP]  clean logits (padded classes = NEG_BIG)
    W = w_ref[...]            # [Dp, CP]  model weight (padded rows/cols = 0)
    WT = wt_ref[...]          # [CP, Dp]  pre-transposed weight

    # Fused softmax / log-softmax of the clean logits (one max/exp/sum pass).
    m_q = jnp.max(ql, axis=1, keepdims=True)
    s_q = ql - m_q
    e_q = jnp.exp(s_q)
    z_q = jnp.sum(e_q, axis=1, keepdims=True)
    q = e_q / z_q                              # exact division: feeds the KL weights
    log_q = s_q - jnp.log(z_q)

    # --- generate_virtual_adversarial_perturbation (n_power = 1) ------------
    # d = XI * d0 / max(||d0||, eps).  Per-row scale folded into the matmul
    # output:  delta := model(x+d) - model(x) = d @ W = (d0 @ W) * row_scale.
    t = jnp.dot(d0, W, precision=HIGHEST, preferred_element_type=jnp.float32)
    ssq_d0 = jnp.sum(d0 * d0, axis=1, keepdims=True)
    scale_d = XI * lax.rsqrt(jnp.maximum(ssq_d0, jnp.float32(NORM_EPS * NORM_EPS)))
    delta = t * scale_d                                            # [TB, CP]

    # torch.autograd.grad(dist, d):  d(KL)/d(logit_m) = (softmax(ql+delta) - q)/B,
    # evaluated through the exact softmax JVP (see header): stable, equal to the
    # true difference to well below f32 resolution.
    qdelta = jnp.sum(q * delta, axis=1, keepdims=True)
    grad_logit = (q * (delta - qdelta)) * inv_batch                # [TB, CP]

    # Backprop through the linear model: plain MXU matmul with the
    # pre-transposed weight (lane-dense [TB, Dp] result, no in-kernel XLU).
    grad_d = jnp.dot(grad_logit, WT, precision=HIGHEST,
                     preferred_element_type=jnp.float32)           # [TB, Dp]

    # r_vadv = EPSILON * grad_d / max(||grad_d||, eps); scale folded into the
    # matmul output again, so no [TB, Dp] r_vadv temporary is materialized.
    # TODO(synk): v5e — this matmul tolerates the bf16x3 MXU variant
    # (precision=HIGH) for a double-digit % MXU-time cut; revalidate first.
    g = jnp.dot(grad_d, W, precision=HIGHEST,
                preferred_element_type=jnp.float32)                # [TB, CP]
    ssq_g = jnp.sum(grad_d * grad_d, axis=1, keepdims=True)
    scale_g = EPSILON * lax.rsqrt(jnp.maximum(ssq_g, jnp.float32(NORM_EPS * NORM_EPS)))

    # --- virtual_adversarial_loss -------------------------------------------
    logit_adv = ql + g * scale_g                                   # [TB, CP]
    m_a = jnp.max(logit_adv, axis=1, keepdims=True)
    s_a = logit_adv - m_a
    log_p = s_a - jnp.log(jnp.sum(jnp.exp(s_a), axis=1, keepdims=True))

    # Per-class partial sums over this batch tile, emitted as an (8, CP) block
    # (partial in row 0, zeros elsewhere) so every store is (8,128)-aligned.
    # Padded rows and padded classes contribute exactly 0.
    partial = jnp.sum(q * (log_q - log_p), axis=0, keepdims=True)  # (1, CP)
    rows = lax.broadcasted_iota(jnp.int32, out_ref.shape, 0)
    out_ref[...] = jnp.where(rows == 0, partial, jnp.float32(0.0))


# ---------------------------------------------------------------------------
# Wrapper helpers.
# ---------------------------------------------------------------------------
def prepare_vat_weights(W):
    """Pad the linear-model weight to lane-aligned [Dp, CP] and pre-transpose.

    Call ONCE per weight value (outside the per-step loss), so the padded copy
    and the transpose are not rebuilt on every VAT evaluation.  Padded rows /
    columns are zero, which is exactly neutral for every matmul in the kernel.
    """
    D, C = W.shape
    Dp, CP = _round_up(D, LANE), _round_up(C, LANE)
    w_pad = jnp.zeros((Dp, CP), jnp.float32).at[:D, :C].set(W.astype(jnp.float32))
    # TODO(synk): drop W^T entirely if lax.dot_general with contracting dims
    # ((1,),(1,)) lowers to an MXU matmul without a per-step XLU transpose.
    return w_pad, jnp.asarray(w_pad.T)


def _plan_batch_tiling(B, Dp, CP):
    """Pick (TB, Bp, per-step VMEM estimate) for the batch grid."""
    weights = 2 * Dp * CP * 4                               # W + W^T, single-buffered

    def step_bytes(tb):                                     # double-buffered streams
        return weights + 2 * (tb * (Dp + CP) + SUBLANE * CP) * 4

    Bp8 = _round_up(B, SUBLANE)
    if Bp8 <= 64:
        tb = Bp8                       # one tile; trivial row padding at most
    else:
        # >= 2 tiles so v7x megacore can shard the "parallel" axis; tiles up
        # to 512 rows to amortize per-grid-step overhead on v5e / v6e.
        n_tiles = max(2, _cdiv(Bp8, 512))
        tb = _round_up(_cdiv(Bp8, n_tiles), SUBLANE)
        while tb > SUBLANE and step_bytes(tb) > VMEM_BUDGET_BYTES:
            tb = _round_up(tb // 2, SUBLANE)
    bp = _round_up(B, tb)
    est = step_bytes(tb)
    if est > VMEM_BUDGET_BYTES:
        # TODO(synk): image-scale D needs a D-chunked inner 'arbitrary' grid
        # axis with f32 accumulators; fail loudly instead of letting Mosaic spill.
        raise ValueError(
            f"VAT per-step working set {est / 2**20:.1f} MiB exceeds the "
            f"{VMEM_BUDGET_BYTES / 2**20:.0f} MiB VMEM budget (Dp={Dp}).")
    return tb, bp, est


def _resident_spec(shape):
    # Constant-index (resident) weight blocks: single-buffer them so they do
    # not pay 2x VMEM for a DMA that never changes.  Fall back gracefully if
    # this JAX build lacks BlockSpec.pipeline_mode / pl.Buffered.
    try:
        return pl.BlockSpec(shape, lambda i: (0, 0), pipeline_mode=pl.Buffered(1))
    except (AttributeError, TypeError):
        return pl.BlockSpec(shape, lambda i: (0, 0))


@jax.jit
def vat_loss_pallas(d0_flat, q_logit, w_pad, wt_pad):
    """VAT.forward for the linear model on TPU via one Pallas kernel.

    d0_flat : [B, D]  the torch.randn_like(x) draw, flattened like x.view(B,-1)
    q_logit : [B, C]  clean logits `logit` = model(x)[1] (same model / weights)
    w_pad, wt_pad : outputs of prepare_vat_weights(W)
    """
    d0_flat = d0_flat.astype(jnp.float32)
    q_logit = q_logit.astype(jnp.float32)
    B, D = d0_flat.shape
    C = q_logit.shape[1]
    Dp, CP = w_pad.shape
    assert Dp >= D and CP >= C and wt_pad.shape == (CP, Dp)

    TB, Bp, est = _plan_batch_tiling(B, Dp, CP)
    num_tiles = Bp // TB

    # Only copy d0 if padding is actually required; when B % TB == 0 and the
    # feature axis is already lane-aligned, the [B, D] array streams straight
    # from HBM (the pad copy otherwise rivals the kernel's own d0 DMA traffic).
    if Bp == B and Dp == D:
        d0_p = d0_flat
    else:
        d0_p = jnp.zeros((Bp, Dp), jnp.float32).at[:B, :D].set(d0_flat)

    # q_logit is tiny; padded classes get NEG_BIG (softmax prob exactly 0),
    # padded rows are all-NEG_BIG (uniform softmax, zero KL contribution).
    ql_p = jnp.full((Bp, CP), NEG_BIG, jnp.float32).at[:B, :C].set(q_logit)

    vmem_limit = int(min(56 * 2**20, max(32 * 2**20, 2 * est)))

    partials = pl.pallas_call(
        # B is a static shape under jit, so baking 1/B does not add recompiles.
        functools.partial(vat_kernel, inv_batch=1.0 / B),
        out_shape=jax.ShapeDtypeStruct((num_tiles * SUBLANE, CP), jnp.float32),
        grid_spec=pltpu.PrefetchScalarGridSpec(
            num_scalar_prefetch=0,
            grid=(num_tiles,),
            in_specs=[
                pl.BlockSpec((TB, Dp), lambda i: (i, 0)),   # d0 tile (streamed)
                pl.BlockSpec((TB, CP), lambda i: (i, 0)),   # q_logit tile
                _resident_spec((Dp, CP)),                   # W   (resident, 1-buffered)
                _resident_spec((CP, Dp)),                   # W^T (resident, 1-buffered)
            ],
            out_specs=pl.BlockSpec((SUBLANE, CP), lambda i: (i, 0)),
        ),
        compiler_params=pltpu.CompilerParams(
            dimension_semantics=("parallel",),              # batch tiles independent
            vmem_limit_bytes=vmem_limit,
        ),
    )(d0_p, ql_p, w_pad, wt_pad)

    # Row 0 of each (8, CP) block holds that tile's per-class partial sum;
    # everything else is exactly zero, so a flat sum + /B finalizes the mean.
    return jnp.sum(partials) / B


# ---------------------------------------------------------------------------
# Pure-JAX reference with the same well-conditioned formulation (see header).
# ---------------------------------------------------------------------------
def _kl_div_with_logit(q_logit, p_logit):
    q = jax.nn.softmax(q_logit, axis=1)
    qlogq = jnp.mean(jnp.sum(q * jax.nn.log_softmax(q_logit, axis=1), axis=1))
    qlogp = jnp.mean(jnp.sum(q * jax.nn.log_softmax(p_logit, axis=1), axis=1))
    return qlogq - qlogp


def vat_loss_ref(d0_flat, q_logit, W):
    B = d0_flat.shape[0]
    q = jax.nn.softmax(q_logit, axis=1)

    ssq_d0 = jnp.sum(d0_flat * d0_flat, axis=1, keepdims=True)
    scale_d = XI * lax.rsqrt(jnp.maximum(ssq_d0, NORM_EPS * NORM_EPS))
    delta = jnp.dot(d0_flat, W, precision=HIGHEST) * scale_d       # d @ W

    qdelta = jnp.sum(q * delta, axis=1, keepdims=True)
    grad_logit = q * (delta - qdelta) / B                          # dKL/dlogit_m (JVP form)
    grad_d = jnp.dot(grad_logit, W.T, precision=HIGHEST)           # autograd wrt d

    g = jnp.dot(grad_d, W, precision=HIGHEST)
    ssq_g = jnp.sum(grad_d * grad_d, axis=1, keepdims=True)
    scale_g = EPSILON * lax.rsqrt(jnp.maximum(ssq_g, NORM_EPS * NORM_EPS))
    logit_adv = q_logit + g * scale_g                              # model(x + r_vadv)
    return _kl_div_with_logit(q_logit, logit_adv)


# ---------------------------------------------------------------------------
if __name__ == "__main__":
    key = jax.random.PRNGKey(0)
    kx, kd, kw, kb = jax.random.split(key, 4)

    B, C, H, Wd = 2, 4, 16, 16        # NCHW input of the wrapped model
    D = C * H * Wd                    # flattened feature dim = 1024
    NUM_CLASSES = 10

    x = jax.random.normal(kx, (B, C, H, Wd), dtype=jnp.float32)
    x_flat = x.reshape(B, D)                                   # == .view(B, -1)
    d0 = jax.random.normal(kd, (B, C, H, Wd), dtype=jnp.float32)   # randn_like(x)
    d0_flat = d0.reshape(B, D)

    # Deterministic linear-classifier "model":  model(x) = (feat, x @ W + b).
    Wm = jax.random.normal(kw, (D, NUM_CLASSES), dtype=jnp.float32) * 0.02
    bm = jax.random.normal(kb, (1, NUM_CLASSES), dtype=jnp.float32) * 0.01
    q_logit = x_flat @ Wm + bm        # the `logit` argument of VAT.forward

    w_pad, wt_pad = prepare_vat_weights(Wm)     # one-time weight prep
    loss = vat_loss_pallas(d0_flat, q_logit, w_pad, wt_pad)
    jax.block_until_ready(loss)

    loss_ref = vat_loss_ref(d0_flat, q_logit, Wm)
    assert bool(jnp.isfinite(loss)), loss
    assert jnp.allclose(loss, loss_ref, rtol=2e-3, atol=1e-6), (loss, loss_ref)

    print("KERNEL_OK")
</pallas_src>

<mosaic_0001>
module attributes {stable_mosaic.version = 11 : i64} {
  func.func @vat_kernel(%arg0: i32, %arg1: memref<8x1024xf32, #tpu.memory_space<vmem>>, %arg2: memref<8x128xf32, #tpu.memory_space<vmem>>, %arg3: memref<1024x128xf32, #tpu.memory_space<vmem>>, %arg4: memref<128x1024xf32, #tpu.memory_space<vmem>>, %arg5: memref<8x128xf32, #tpu.memory_space<vmem>>) attributes {dimension_semantics = [#tpu.dimension_semantics<parallel>], iteration_bounds = array<i64: 1>, scalar_prefetch = 0 : i64, scratch_operands = 0 : i64, tpu.core_type = #tpu.core_type<tc>, window_params = [{transform_indices = @transform_0, window_bounds = array<i64: 8, 1024>}, {transform_indices = @transform_1, window_bounds = array<i64: 8, 128>}, {pipeline_mode = #tpu.pipeline_mode<synchronous>, transform_indices = @transform_2, window_bounds = array<i64: 1024, 128>}, {pipeline_mode = #tpu.pipeline_mode<synchronous>, transform_indices = @transform_3, window_bounds = array<i64: 128, 1024>}, {transform_indices = @transform_4, window_bounds = array<i64: 8, 128>}]} {
    %c0 = arith.constant 0 : index
    %c0_0 = arith.constant 0 : index
    %0 = vector.load %arg1[%c0, %c0_0] : memref<8x1024xf32, #tpu.memory_space<vmem>>, vector<8x1024xf32>
    %c0_1 = arith.constant 0 : index
    %c0_2 = arith.constant 0 : index
    %1 = vector.load %arg2[%c0_1, %c0_2] : memref<8x128xf32, #tpu.memory_space<vmem>>, vector<8x128xf32>
    %c0_3 = arith.constant 0 : index
    %c0_4 = arith.constant 0 : index
    %2 = vector.load %arg3[%c0_3, %c0_4] : memref<1024x128xf32, #tpu.memory_space<vmem>>, vector<1024x128xf32>
    %c0_5 = arith.constant 0 : index
    %c0_6 = arith.constant 0 : index
    %3 = vector.load %arg4[%c0_5, %c0_6] : memref<128x1024xf32, #tpu.memory_space<vmem>>, vector<128x1024xf32>
    %cst = arith.constant dense<0xFF800000> : vector<8xf32>
    %4 = vector.multi_reduction <maximumf>, %1, %cst [1] : vector<8x128xf32> to vector<8xf32>
    %5 = vector.shape_cast %4 : vector<8xf32> to vector<8x1xf32>
    %6 = vector.broadcast %5 : vector<8x1xf32> to vector<8x128xf32>
    %7 = arith.subf %1, %6 : vector<8x128xf32>
    %8 = math.exp %7 : vector<8x128xf32>
    %cst_7 = arith.constant dense<0.000000e+00> : vector<8xf32>
    %9 = vector.multi_reduction <add>, %8, %cst_7 [1] : vector<8x128xf32> to vector<8xf32>
    %10 = vector.shape_cast %9 : vector<8xf32> to vector<8x1xf32>
    %11 = vector.broadcast %10 : vector<8x1xf32> to vector<8x128xf32>
    %12 = arith.divf %8, %11 : vector<8x128xf32>
    %13 = math.log %10 : vector<8x1xf32>
    %14 = vector.broadcast %13 : vector<8x1xf32> to vector<8x128xf32>
    %15 = arith.subf %7, %14 : vector<8x128xf32>
    %cst_8 = arith.constant dense<0.000000e+00> : vector<8x128xf32>
    %16 = tpu.matmul %0, %2, %cst_8 {dimension_numbers = #tpu.dot_dimension_numbers<[1], [0], [0], [1], [0, 0, 1, 1], [], []>, precision = #tpu.contract_precision<fp32>} : vector<8x1024xf32>, vector<1024x128xf32>, vector<8x128xf32> -> vector<8x128xf32>
    %17 = arith.mulf %0, %0 : vector<8x1024xf32>
    %cst_9 = arith.constant dense<0.000000e+00> : vector<8xf32>
    %18 = vector.multi_reduction <add>, %17, %cst_9 [1] : vector<8x1024xf32> to vector<8xf32>
    %19 = vector.shape_cast %18 : vector<8xf32> to vector<8x1xf32>
    %cst_10 = arith.constant 1.000000e-24 : f32
    %20 = vector.broadcast %cst_10 : f32 to vector<8x1xf32>
    %21 = arith.maximumf %19, %20 : vector<8x1xf32>
    %22 = math.rsqrt %21 : vector<8x1xf32>
    %cst_11 = arith.constant 9.99999997E-7 : f32
    %23 = vector.broadcast %cst_11 : f32 to vector<8x1xf32>
    %24 = arith.mulf %23, %22 : vector<8x1xf32>
    %25 = vector.broadcast %24 : vector<8x1xf32> to vector<8x128xf32>
    %26 = arith.mulf %16, %25 : vector<8x128xf32>
    %27 = arith.mulf %12, %26 : vector<8x128xf32>
    %cst_12 = arith.constant dense<0.000000e+00> : vector<8xf32>
    %28 = vector.multi_reduction <add>, %27, %cst_12 [1] : vector<8x128xf32> to vector<8xf32>
    %29 = vector.shape_cast %28 : vector<8xf32> to vector<8x1xf32>
    %30 = vector.broadcast %29 : vector<8x1xf32> to vector<8x128xf32>
    %31 = arith.subf %26, %30 : vector<8x128xf32>
    %32 = arith.mulf %12, %31 : vector<8x128xf32>
    %cst_13 = arith.constant 5.000000e-01 : f32
    %33 = vector.broadcast %cst_13 : f32 to vector<8x128xf32>
    %34 = arith.mulf %32, %33 : vector<8x128xf32>
    %cst_14 = arith.constant dense<0.000000e+00> : vector<8x1024xf32>
    %35 = tpu.matmul %34, %3, %cst_14 {dimension_numbers = #tpu.dot_dimension_numbers<[1], [0], [0], [1], [0, 0, 1, 1], [], []>, precision = #tpu.contract_precision<fp32>} : vector<8x128xf32>, vector<128x1024xf32>, vector<8x1024xf32> -> vector<8x1024xf32>
    %cst_15 = arith.constant dense<0.000000e+00> : vector<8x128xf32>
    %36 = tpu.matmul %35, %2, %cst_15 {dimension_numbers = #tpu.dot_dimension_numbers<[1], [0], [0], [1], [0, 0, 1, 1], [], []>, precision = #tpu.contract_precision<fp32>} : vector<8x1024xf32>, vector<1024x128xf32>, vector<8x128xf32> -> vector<8x128xf32>
    %37 = arith.mulf %35, %35 : vector<8x1024xf32>
    %cst_16 = arith.constant dense<0.000000e+00> : vector<8xf32>
    %38 = vector.multi_reduction <add>, %37, %cst_16 [1] : vector<8x1024xf32> to vector<8xf32>
    %39 = vector.shape_cast %38 : vector<8xf32> to vector<8x1xf32>
    %cst_17 = arith.constant 1.000000e-24 : f32
    %40 = vector.broadcast %cst_17 : f32 to vector<8x1xf32>
    %41 = arith.maximumf %39, %40 : vector<8x1xf32>
    %42 = math.rsqrt %41 : vector<8x1xf32>
    %cst_18 = arith.constant 3.500000e+00 : f32
    %43 = vector.broadcast %cst_18 : f32 to vector<8x1xf32>
    %44 = arith.mulf %43, %42 : vector<8x1xf32>
    %45 = vector.broadcast %44 : vector<8x1xf32> to vector<8x128xf32>
    %46 = arith.mulf %36, %45 : vector<8x128xf32>
    %47 = arith.addf %1, %46 : vector<8x128xf32>
    %cst_19 = arith.constant dense<0xFF800000> : vector<8xf32>
    %48 = vector.multi_reduction <maximumf>, %47, %cst_19 [1] : vector<8x128xf32> to vector<8xf32>
    %49 = vector.shape_cast %48 : vector<8xf32> to vector<8x1xf32>
    %50 = vector.broadcast %49 : vector<8x1xf32> to vector<8x128xf32>
    %51 = arith.subf %47, %50 : vector<8x128xf32>
    %52 = math.exp %51 : vector<8x128xf32>
    %cst_20 = arith.constant dense<0.000000e+00> : vector<8xf32>
    %53 = vector.multi_reduction <add>, %52, %cst_20 [1] : vector<8x128xf32> to vector<8xf32>
    %54 = vector.shape_cast %53 : vector<8xf32> to vector<8x1xf32>
    %55 = math.log %54 : vector<8x1xf32>
    %56 = vector.broadcast %55 : vector<8x1xf32> to vector<8x128xf32>
    %57 = arith.subf %51, %56 : vector<8x128xf32>
    %58 = arith.subf %15, %57 : vector<8x128xf32>
    %59 = arith.mulf %12, %58 : vector<8x128xf32>
    %cst_21 = arith.constant dense<0.000000e+00> : vector<128xf32>
    %60 = vector.multi_reduction <add>, %59, %cst_21 [0] : vector<8x128xf32> to vector<128xf32>
    %61 = vector.shape_cast %60 : vector<128xf32> to vector<1x128xf32>
    %62 = tpu.iota {dimensions = array<i32: 0>} : vector<8x128xi32>
    %c0_i32 = arith.constant 0 : i32
    %63 = vector.broadcast %c0_i32 : i32 to vector<8x128xi32>
    %64 = arith.cmpi eq, %62, %63 : vector<8x128xi32>
    %cst_22 = arith.constant 0.000000e+00 : f32
    %65 = vector.shape_cast %61 : vector<1x128xf32> to vector<1x128xf32>
    %66 = vector.broadcast %65 : vector<1x128xf32> to vector<8x128xf32>
    %67 = vector.broadcast %cst_22 : f32 to vector<8x128xf32>
    %68 = arith.select %64, %66, %67 : vector<8x128xi1>, vector<8x128xf32>
    %c0_23 = arith.constant 0 : index
    %c0_24 = arith.constant 0 : index
    %69 = vector.load %arg5[%c0_23, %c0_24] : memref<8x128xf32, #tpu.memory_space<vmem>>, vector<8x128xf32>
    tpu.vector_store %arg5[%c0_23, %c0_24], %68 {strides = array<i32>} : memref<8x128xf32, #tpu.memory_space<vmem>>, vector<8x128xf32>,
    return
  }
  func.func @transform_0(%arg0: i32) -> (i32, i32) {
    %c0_i32 = arith.constant 0 : i32
    %c0_i32_0 = arith.constant 0 : i32
    return %arg0, %c0_i32 : i32, i32
  }
  func.func @transform_1(%arg0: i32) -> (i32, i32) {
    %c0_i32 = arith.constant 0 : i32
    %c0_i32_0 = arith.constant 0 : i32
    return %arg0, %c0_i32 : i32, i32
  }
  func.func @transform_2(%arg0: i32) -> (i32, i32) {
    %c0_i32 = arith.constant 0 : i32
    %c0_i32_0 = arith.constant 0 : i32
    %c0_i32_1 = arith.constant 0 : i32
    return %c0_i32, %c0_i32_0 : i32, i32
  }
  func.func @transform_3(%arg0: i32) -> (i32, i32) {
    %c0_i32 = arith.constant 0 : i32
    %c0_i32_0 = arith.constant 0 : i32
    %c0_i32_1 = arith.constant 0 : i32
    return %c0_i32, %c0_i32_0 : i32, i32
  }
  func.func @transform_4(%arg0: i32) -> (i32, i32) {
    %c0_i32 = arith.constant 0 : i32
    %c0_i32_0 = arith.constant 0 : i32
    return %arg0, %c0_i32 : i32, i32
  }
}

</mosaic_0001>

<bundles_post_ra>
// kernel: vat_loss_pallas.1
= control target key start
LH: loop header
LB: loop body
LE: loop exit
PB: predicated region body
PF: predicated region fallthrough
CT: control target
= control target key end

     0   :  { %9 = vsyncpa [#allocation3], 0  ;;  %s19832_s0 = inlined_call_operand.vmem [shape: f32[8,1024], index: 0, kind: input, shape index: {}]   ;;  %s19833_s1 = inlined_call_operand.vmem [shape: f32[8,128], index: 1, kind: input, shape index: {}]   ;;  %s19834_s2 = inlined_call_operand.hbm [shape: f32[1024,128], index: 2, kind: input, shape index: {}]   ;;  %s19835_s3 = inlined_call_operand.hbm [shape: f32[128,1024], index: 3, kind: input, shape index: {}]   ;;  %s19836_s4 = inlined_call_operand.vmem [shape: f32[8,128], index: 4, kind: output, shape index: {}]  }
   0x1   :  { %10 = vsyncpa [#allocation5], 0  ;;  %s14816_s15 = smov [#allocation2]   ;;  %s14768_s19 = scalar_lea.hbm %s19834_s2, 16384 }
   0x2   :  { %s20_s16 = sshll.u32 %s14816_s15, 4  ;;  %p14769_p0 = scmp.ne.s32.totalorder %s19834_s2, %s14768_s19  ;;  %s21_s16 = int_to_ptr.vmem [resolvable:$true] %s20_s16 }
   0x3   :  { %p14772_p1 = scmp.lt.u32.totalorder %s14768_s19, %s19834_s2 }
   0x5   :  { %p14774_p2 = pnand %p14772_p1, %p14769_p0 }
   0x7   :  { %14777 = shalt.err (!%p14774_p2)
}
   0x8   :  { %s14778_s24 = scalar_lea.vmem %s21_s16, 16384  ;;  %p14783_p4 = scmp.lt.s32.totalorder %s21_s16, %s21_s16 }
   0x9   :  { %p14779_p3 = scmp.ne.s32.totalorder %s21_s16, %s14778_s24  ;;  %p14784_p5 = scmp.lt.s32.totalorder %s14778_s24, %s14778_s24 }
   0xb   :  { %p14785_p6 = por %p14784_p5, %p14783_p4 }
   0xd   :  { %p14786_p7 = pnand %p14785_p6, %p14779_p3 }
   0xf   :  { %14789 = shalt.err (!%p14786_p7)
}
  0x10   :  { %s14817_s25 = smov 128   ;;  %s14818_s26 = smov 8  }
  0x11   :  { %26 = dma.hbm_to_vmem [thread:$0]  %s19834_s2, 16384, %s21_s16, [#allocation3], %s14817_s25, %s14817_s25, %s14818_s26  }
  0x12   :  { %s14819_s29 = smov [#allocation4]   ;;  %s14790_s7 = scalar_lea.hbm %s19835_s3, 16384 }
  0x13   :  { %s32_s30 = sshll.u32 %s14819_s29, 4  ;;  %p14791_p8 = scmp.ne.s32.totalorder %s19835_s3, %s14790_s7  ;;  %s33_s30 = int_to_ptr.vmem [resolvable:$true] %s32_s30 }
  0x14   :  { %p14794_p9 = scmp.lt.u32.totalorder %s14790_s7, %s19835_s3 }
  0x16   :  { %p14796_p10 = pnand %p14794_p9, %p14791_p8 }
  0x18   :  { %14799 = shalt.err (!%p14796_p10)
}
  0x19   :  { %s14800_s12 = scalar_lea.vmem %s33_s30, 16384  ;;  %p14805_p12 = scmp.lt.s32.totalorder %s33_s30, %s33_s30 }
  0x1a   :  { %p14801_p11 = scmp.ne.s32.totalorder %s33_s30, %s14800_s12  ;;  %p14806_p13 = scmp.lt.s32.totalorder %s14800_s12, %s14800_s12 }
  0x1c   :  { %p14807_p0 = por %p14806_p13, %p14805_p12 }
  0x1e   :  { %p14808_p1 = pnand %p14807_p0, %p14801_p11 }
  0x20   :  { %14811 = shalt.err (!%p14808_p1)
}
  0x21   :  { %s14820_s2 = smov 1024   ;;  %s14821_s13 = smov 64  }
  0x22   :  { %38 = dma.hbm_to_vmem [thread:$0]  %s19835_s3, 16384, %s33_s30, [#allocation5], %s14820_s2, %s14820_s2, %s14821_s13  }
  0x23   :  { %14812 = dma.done.wait [#allocation3], 16384  }
  0x24   :  { %14813 = vsyncadd [#allocation3], 4294950912 }
  0x25   :  { %14814 = dma.done.wait [#allocation5], 16384  }
  0x26   :  { %14815 = vsyncadd [#allocation5], 4294950912  ;;  %v70_v0 = vld [vmem:[#allocation2 + $0x80] sm:$0xff]  ;;  %v71_v1 = vld [vmem:[#allocation2 + $0x88] sm:$0xff] }
  0x27   :  { %v54_v2 = vld [vmem:[#allocation2] sm:$0xff]  ;;  %v371_v3 = vand.u32 4294901760, %v70_v0  ;;  %v374_v4 = vand.u32 4294901760, %v71_v1  ;;  %v55_v5 = vld [vmem:[#allocation2 + $0x8] sm:$0xff]  ;;  %v72_v7 = vld [vmem:[#allocation2 + $0x90] sm:$0xff] }
  0x28   :  { %v323_v6 = vand.u32 4294901760, %v54_v2  ;;  %v73_v8 = vld [vmem:[#allocation2 + $0x98] sm:$0xff]  ;;  %v326_v9 = vand.u32 4294901760, %v55_v5  ;;  %v377_v10 = vand.u32 4294901760, %v72_v7  ;;  %v56_v12 = vld [vmem:[#allocation2 + $0x10] sm:$0xff]  ;;  %v14872_v14 = vld [vmem:[#allocation2 + $0xa0] sm:$0xff] }
  0x29   :  { %v380_v11 = vand.u32 4294901760, %v73_v8  ;;  %v57_v13 = vld [vmem:[#allocation2 + $0x18] sm:$0xff]  ;;  %v14874_v15 = vpack.c.bf16 %v374_v4, %v371_v3  ;;  %v329_v16 = vand.u32 4294901760, %v56_v12  ;;  %v14876_v18 = vld [vmem:[#allocation2 + $0xa8] sm:$0xff]  ;;  %v383_v19 = vand.u32 4294901760, %v14872_v14  ;;  %v14879_v20 = vld [vmem:[#allocation2 + $0x20] sm:$0xff] }
  0x2a   :  { %v332_v17 = vand.u32 4294901760, %v57_v13  ;;  %v14881_v21 = vld [vmem:[#allocation2 + $0x28] sm:$0xff]  ;;  %v14883_v22 = vpack.c.bf16 %v326_v9, %v323_v6  ;;  %v386_v24 = vand.u32 4294901760, %v14876_v18  ;;  %v14888_v25 = vsub.f32 %v70_v0, %v371_v3  ;;  %v14890_v26 = vld [vmem:[#allocation2 + $0xb0] sm:$0xff]  ;;  %v14892_v27 = vld [vmem:[#allocation2 + $0xb8] sm:$0xff] }
  0x2b   :  { %20657 = vst [vmem:[#allocation8_spill] sm:$0xff] %v14874_v15  ;;  %v14885_v23 = vpack.c.bf16 %v380_v11, %v377_v10  ;;  %12397 = vmatprep.subr.bf16.mxu0 %v14874_v15  ;;  %v14897_v29 = vsub.f32 %v71_v1, %v374_v4  ;;  %v335_v30 = vand.u32 4294901760, %v14879_v20  ;;  %v338_v31 = vand.u32 4294901760, %v14881_v21  ;;  %v14913_v36 = vld [vmem:[#allocation2 + $0x30] sm:$0xff]  ;;  %v14932_v45 = vld [vmem:[#allocation2 + $0x38] sm:$0xff]  ;;  %v14959_v58 = vld [vmem:[#allocation2 + $0xc0] sm:$0xff] }
  0x2c   :  { %20658 = vst [vmem:[#allocation9_spill] sm:$0xff] %v14883_v22  ;;  %v14895_v28 = vpack.c.bf16 %v332_v17, %v329_v16  ;;  %12399 = vmatpush3.bf16.msra.mxu0 %v14883_v22  ;;  %v14906_v32 = vpack.c.bf16 %v386_v24, %v383_v19  ;;  %v19850_v33 = vand.u32 4294901760, %v14888_v25  ;;  %v14909_v34 = vsub.f32 %v54_v2, %v323_v6  ;;  %v14966_v63 = vld [vmem:[#allocation2 + $0xc8] sm:$0xff]  ;;  %v14980_v4 = vld [vmem:[#allocation2 + $0x40] sm:$0xff] }
  0x2d   :  { %20659 = vst [vmem:[#allocation10_spill] sm:$0xff] %v14885_v23  ;;  %v14911_v35 = vsub.f32 %v55_v5, %v326_v9  ;;  %12401 = vmatprep.subr.bf16.mxu0 %v14885_v23  ;;  %v19847_v37 = vand.u32 4294901760, %v14897_v29  ;;  %v14921_v38 = vpack.c.bf16 %v338_v31, %v335_v30  ;;  %v389_v39 = vand.u32 4294901760, %v14890_v26  ;;  %v14982_v5 = vld [vmem:[#allocation2 + $0x48] sm:$0xff] }
  0x2e   :  { %20660 = vst [vmem:[#allocation11_spill] sm:$0xff] %v14895_v28  ;;  %20661 = vst [vmem:[#allocation12_spill] sm:$0xff] %v14906_v32  ;;  %v392_v40 = vand.u32 4294901760, %v14892_v27  ;;  %v550_v41 = vsub.f32 %v14888_v25, %v19850_v33  ;;  %v19846_v42 = vand.u32 4294901760, %v14909_v34  ;;  %v14930_v44 = vsub.f32 %v72_v7, %v377_v10 }
  0x2f   :  { %20662 = vst [vmem:[#allocation13_spill] sm:$0xff] %v14921_v38  ;;  %v19845_v43 = vand.u32 4294901760, %v14911_v35  ;;  %v557_v46 = vsub.f32 %v14897_v29, %v19847_v37  ;;  %v14943_v48 = vsub.f32 %v73_v8, %v380_v11  ;;  %v341_v49 = vand.u32 4294901760, %v14913_v36 }
  0x30   :  { %v14941_v47 = vpack.c.bf16 %v392_v40, %v389_v39  ;;  %12403 = vmatpush3.bf16.msra.mxu0 %v14895_v28  ;;  %v551_v50 = vand.u32 4294901760, %v550_v41  ;;  %v438_v51 = vsub.f32 %v14909_v34, %v19846_v42  ;;  %v19843_v53 = vand.u32 4294901760, %v14930_v44 }
  0x31   :  { %v445_v52 = vsub.f32 %v14911_v35, %v19845_v43  ;;  %12405 = vmatprep.subr.bf16.mxu0 %v14906_v32  ;;  %v558_v54 = vand.u32 4294901760, %v557_v46  ;;  %v19842_v55 = vand.u32 4294901760, %v14943_v48  ;;  %v344_v56 = vand.u32 4294901760, %v14932_v45 }
  0x32   :  { %20663 = vst [vmem:[#allocation14_spill] sm:$0xff] %v14941_v47  ;;  %v14957_v57 = vsub.f32 %v56_v12, %v329_v16  ;;  %v439_v59 = vand.u32 4294901760, %v438_v51  ;;  %v564_v61 = vsub.f32 %v14930_v44, %v19843_v53  ;;  %v14964_v62 = vsub.f32 %v57_v13, %v332_v17  ;;  %v15013_v51 = vld [vmem:[#allocation2 + $0xd8] sm:$0xff]  ;;  %v53_v53 = vld [vmem:[%s19833_s1] sm:$0xff] }
  0x33   :  { %v446_v60 = vand.u32 4294901760, %v445_v52  ;;  %v14968_v0 = vpack.c.bf16 %v558_v54, %v551_v50  ;;  %v571_v1 = vsub.f32 %v14943_v48, %v19842_v55  ;;  %v14977_v2 = vpack.c.bf16 %v344_v56, %v341_v49  ;;  %v15011_v50 = vld [vmem:[#allocation2 + $0xd0] sm:$0xff]  ;;  %v15096_v55 = vld [vmem:[#allocation2 + $0xe8] sm:$0xff]  ;;  %310 = vmax.xlane.f32.xlu0 %v53_v53 }
  0x34   :  { %v19840_v3 = vand.u32 4294901760, %v14957_v57  ;;  %12407 = vmatpush3.bf16.msra.mxu0 %v14921_v38  ;;  %v565_v7 = vand.u32 4294901760, %v564_v61  ;;  %v19838_v8 = vand.u32 4294901760, %v14964_v62  ;;  %v395_v9 = vand.u32 4294901760, %v14959_v58 }
  0x35   :  { %20664 = vst [vmem:[#allocation15_spill] sm:$0xff] %v14968_v0  ;;  %20665 = vst [vmem:[#allocation16_spill] sm:$0xff] %v14977_v2  ;;  %v14985_v6 = vpack.c.bf16 %v446_v60, %v439_v59  ;;  %12429 = vmatprep.subr.bf16.mxu1 %v14968_v0  ;;  %12409 = vmatprep.subr.bf16.mxu0 %v14941_v47  ;;  %v572_v10 = vand.u32 4294901760, %v571_v1  ;;  %v398_v12 = vand.u32 4294901760, %v14966_v63  ;;  %v347_v41 = vand.u32 4294901760, %v14980_v4 }
  0x36   :  { %v452_v11 = vsub.f32 %v14957_v57, %v19840_v3  ;;  %v14998_v13 = vsub.f32 %v14872_v14, %v383_v19  ;;  %v459_v16 = vsub.f32 %v14964_v62, %v19838_v8  ;;  %v15007_v17 = vsub.f32 %v14876_v18, %v386_v24 }
  0x37   :  { %20666 = vst [vmem:[#allocation17_spill] sm:$0xff] %v14985_v6  ;;  %12431 = vmatpush3.bf16.msra.mxu1 %v14985_v6  ;;  %v350_v46 = vand.u32 4294901760, %v14982_v5  ;;  %v15015_v14 = vpack.c.bf16 %v572_v10, %v565_v7  ;;  %v15021_v52 = vpack.c.bf16 %v398_v12, %v395_v9  ;;  %v15035_v60 = vsub.f32 %v14879_v20, %v335_v30 }
  0x38   :  { %v453_v19 = vand.u32 4294901760, %v452_v11  ;;  %v19837_v18 = vand.u32 4294901760, %v14998_v13  ;;  %12411 = vmatpush3.bf16.msra.mxu0 %v14977_v2  ;;  %v460_v24 = vand.u32 4294901760, %v459_v16  ;;  %v19839_v54 = vand.u32 4294901760, %v15007_v17  ;;  %v15049_v11 = vld [vmem:[#allocation2 + $0x50] sm:$0xff] }
  0x39   :  { %20667 = vst [vmem:[#allocation18_spill] sm:$0xff] %v15015_v14  ;;  %20668 = vst [vmem:[#allocation19_spill] sm:$0xff] %v15021_v52  ;;  %v15030_v59 = vpack.c.bf16 %v350_v46, %v347_v41  ;;  %12433 = vmatprep.subr.bf16.mxu1 %v15015_v14  ;;  %12413 = vmatprep.subr.bf16.mxu0 %v15021_v52  ;;  %v15045_v1 = vsub.f32 %v14881_v21, %v338_v31  ;;  %v19859_v7 = vand.u32 4294901760, %v15011_v50  ;;  %v15062_v21 = vld [vmem:[#allocation2 + $0x58] sm:$0xff] }
  0x3a   :  { %v578_v61 = vsub.f32 %v14998_v13, %v19837_v18  ;;  %v19855_v10 = vand.u32 4294901760, %v15013_v51  ;;  %v15051_v20 = vpack.c.bf16 %v460_v24, %v453_v19  ;;  %v585_v30 = vsub.f32 %v15007_v17, %v19839_v54 }
  0x3b   :  { %20669 = vst [vmem:[#allocation20_spill] sm:$0xff] %v15030_v59  ;;  %v19841_v16 = vand.u32 4294901760, %v15035_v60  ;;  %v15060_v18 = vsub.f32 %v14890_v26, %v389_v39  ;;  %v19844_v8 = vand.u32 4294901760, %v15045_v1  ;;  %v15074_v24 = vsub.f32 %v14892_v27, %v392_v40 }
  0x3c   :  { %20670 = vst [vmem:[#allocation21_spill] sm:$0xff] %v15051_v20  ;;  %v579_v31 = vand.u32 4294901760, %v578_v61  ;;  %v15069_v19 = vpack.c.bf16 %v19855_v10, %v19859_v7  ;;  %12435 = vmatpush3.bf16.msra.mxu1 %v15051_v20  ;;  %v586_v26 = vand.u32 4294901760, %v585_v30  ;;  %12415 = vmatpush3.bf16.msra.mxu0 %v15030_v59  ;;  %v19852_v54 = vand.u32 4294901760, %v15049_v11 }
  0x3d   :  { %v466_v39 = vsub.f32 %v15035_v60, %v19841_v16  ;;  %v19849_v61 = vand.u32 4294901760, %v15060_v18  ;;  %v473_v3 = vsub.f32 %v15045_v1, %v19844_v8  ;;  %v19848_v27 = vand.u32 4294901760, %v15074_v24  ;;  %v15094_v16 = vld [vmem:[#allocation2 + $0xe0] sm:$0xff] }
  0x3e   :  { %20671 = vst [vmem:[#allocation22_spill] sm:$0xff] %v15069_v19  ;;  %12417 = vmatprep.subr.bf16.mxu0 %v15069_v19  ;;  %v19851_v40 = vand.u32 4294901760, %v15062_v21  ;;  %v15092_v30 = vsub.f32 %v14913_v36, %v341_v49  ;;  %v15101_v8 = vpack.c.bf16 %v586_v26, %v579_v31  ;;  %v15109_v36 = vsub.f32 %v14932_v45, %v344_v56 }
  0x3f   :  { %v467_v43 = vand.u32 4294901760, %v466_v39  ;;  %v592_v42 = vsub.f32 %v15060_v18, %v19849_v61  ;;  %v474_v49 = vand.u32 4294901760, %v473_v3  ;;  %v599_v37 = vsub.f32 %v15074_v24, %v19848_v27  ;;  %v15121_v39 = vld [vmem:[#allocation2 + $0x60] sm:$0xff]  ;;  %v15127_v27 = vld [vmem:[#allocation2 + $0x68] sm:$0xff] }
  0x40   :  { %20672 = vst [vmem:[#allocation23_spill] sm:$0xff] %v15101_v8  ;;  %v15118_v31 = vpack.c.bf16 %v19851_v40, %v19852_v54  ;;  %v19853_v26 = vand.u32 4294901760, %v15092_v30  ;;  %12437 = vmatprep.subr.bf16.mxu1 %v15101_v8  ;;  %v19854_v53 = vand.u32 4294901760, %v15109_v36  ;;  %v19857_v56 = vand.u32 4294901760, %v15094_v16 }
  0x41   :  { %v593_v45 = vand.u32 4294901760, %v592_v42  ;;  %v19856_v3 = vand.u32 4294901760, %v15096_v55  ;;  %v15129_v61 = vpack.c.bf16 %v474_v49, %v467_v43  ;;  %v600_v33 = vand.u32 4294901760, %v599_v37 }
  0x42   :  { %20673 = vst [vmem:[#allocation24_spill] sm:$0xff] %v15118_v31  ;;  %12419 = vmatpush3.bf16.msra.mxu0 %v15118_v31  ;;  %v480_v40 = vsub.f32 %v15092_v30, %v19853_v26  ;;  %v15138_v42 = vsub.f32 %v14959_v58, %v395_v9  ;;  %v487_v54 = vsub.f32 %v15109_v36, %v19854_v53  ;;  %v19862_v49 = vand.u32 4294901760, %v15121_v39  ;;  %v15155_v26 = vld [vmem:[#allocation2 + $0xf0] sm:$0xff]  ;;  %v15157_v58 = vld [vmem:[#allocation2 + $0xf8] sm:$0xff] }
  0x43   :  { %20674 = vst [vmem:[#allocation25_spill] sm:$0xff] %v15129_v61  ;;  %v15147_v37 = vpack.c.bf16 %v19856_v3, %v19857_v56  ;;  %v15152_v43 = vsub.f32 %v14966_v63, %v398_v12  ;;  %12439 = vmatpush3.bf16.msra.mxu1 %v15129_v61  ;;  %v15160_v9 = vpack.c.bf16 %v600_v33, %v593_v45  ;;  %v19861_v3 = vand.u32 4294901760, %v15127_v27  ;;  %v15188_v45 = vld [vmem:[#allocation2 + $0x70] sm:$0xff] }
  0x44   :  { %v481_v53 = vand.u32 4294901760, %v480_v40  ;;  %v19858_v10 = vand.u32 4294901760, %v15138_v42  ;;  %v488_v56 = vand.u32 4294901760, %v487_v54  ;;  %v15169_v12 = vsub.f32 %v14980_v4, %v347_v41 }
  0x45   :  { %20675 = vst [vmem:[#allocation26_spill] sm:$0xff] %v15147_v37  ;;  %20676 = vst [vmem:[#allocation27_spill] sm:$0xff] %v15160_v9  ;;  %12421 = vmatprep.subr.bf16.mxu0 %v15147_v37  ;;  %v19863_v63 = vand.u32 4294901760, %v15152_v43  ;;  %v15174_v33 = vsub.f32 %v14982_v5, %v350_v46  ;;  %12441 = vmatprep.subr.bf16.mxu1 %v15160_v9  ;;  %v15184_v40 = vpack.c.bf16 %v19861_v3, %v19862_v49  ;;  %v15197_v9 = vld [vmem:[#allocation2 + $0x78] sm:$0xff] }
  0x46   :  { %v606_v54 = vsub.f32 %v15138_v42, %v19858_v10  ;;  %v19866_v4 = vand.u32 4294901760, %v15155_v26  ;;  %v19865_v41 = vand.u32 4294901760, %v15157_v58  ;;  %v15190_v5 = vpack.c.bf16 %v488_v56, %v481_v53 }
  0x47   :  { %20677 = vst [vmem:[#allocation28_spill] sm:$0xff] %v15184_v40  ;;  %v613_v46 = vsub.f32 %v15152_v43, %v19863_v63  ;;  %v19868_v10 = vand.u32 4294901760, %v15169_v12  ;;  %12423 = vmatpush3.bf16.msra.mxu0 %v15184_v40  ;;  %v20680_v53 = vand.u32 4294901760, %v15011_v50  ;;  %v20681_v63 = vand.u32 4294901760, %v15013_v51 }
  0x48   :  { %20678 = vst [vmem:[#allocation29_spill] sm:$0xff] %v15190_v5  ;;  %v607_v3 = vand.u32 4294901760, %v606_v54  ;;  %v15204_v49 = vpack.c.bf16 %v19865_v41, %v19866_v4  ;;  %12443 = vmatpush3.bf16.msra.mxu1 %v15190_v5  ;;  %v20682_v41 = vand.u32 4294901760, %v15174_v33  ;;  %v20685_v20 = vand.u32 4294901760, %v15062_v21 }
  0x49   :  { %v15209_v56 = vsub.f32 %v15011_v50, %v20680_v53  ;;  %v15214_v7 = vsub.f32 %v15013_v51, %v20681_v63  ;;  %v614_v54 = vand.u32 4294901760, %v613_v46  ;;  %v494_v61 = vsub.f32 %v15169_v12, %v19868_v10  ;;  %v46_v10 = vld [vmem:[%s19832_s0 + $0x8] sm:$0xff] }
  0x4a   :  { %20679 = vst [vmem:[#allocation30_spill] sm:$0xff] %v15204_v49  ;;  %v501_v4 = vsub.f32 %v15174_v33, %v20682_v41  ;;  %12425 = vmatprep.subr.bf16.mxu0 %v15204_v49  ;;  %v20683_v46 = vand.u32 4294901760, %v15049_v11  ;;  %v15241_v50 = vsub.f32 %v15062_v21, %v20685_v20  ;;  %v20688_v14 = vand.u32 4294901760, %v15188_v45 }
  0x4b   :  { %v15236_v41 = vpack.c.bf16 %v614_v54, %v607_v3  ;;  %v495_v8 = vand.u32 4294901760, %v494_v61  ;;  %v20686_v63 = vand.u32 4294901760, %v15209_v56  ;;  %v20689_v3 = vand.u32 4294901760, %v15197_v9 }
  0x4c   :  { %v15231_v53 = vsub.f32 %v15049_v11, %v20683_v46  ;;  %v502_v5 = vand.u32 4294901760, %v501_v4  ;;  %v20687_v11 = vand.u32 4294901760, %v15214_v7  ;;  %v19877_v21 = vand.u32 4294901760, %v15241_v50 }
  0x4d   :  { %20684 = vst [vmem:[#allocation31_spill] sm:$0xff] %v15236_v41  ;;  %v620_v51 = vsub.f32 %v15209_v56, %v20686_v63  ;;  %v15253_v54 = vpack.c.bf16 %v20689_v3, %v20688_v14  ;;  %12445 = vmatprep.subr.bf16.mxu1 %v15236_v41  ;;  %v15260_v4 = vand.u32 4294901760, %v46_v10  ;;  %v45_v63 = vld [vmem:[%s19832_s0] sm:$0xff]  ;;  %v20693_v3 = vand.u32 4294901760, %v15094_v16 }
  0x4e   :  { %v627_v46 = vsub.f32 %v15214_v7, %v20687_v11  ;;  %v19874_v61 = vand.u32 4294901760, %v15231_v53  ;;  %v15257_v20 = vpack.c.bf16 %v502_v5, %v495_v8  ;;  %v515_v5 = vsub.f32 %v15241_v50, %v19877_v21 }
  0x4f   :  { %20690 = vst [vmem:[#allocation32_spill] sm:$0xff] %v15253_v54  ;;  %20692 = vst [vmem:[#allocation34_spill] sm:$0xff] %v15260_v4  ;;  %v621_v11 = vand.u32 4294901760, %v620_v51  ;;  %12427 = vmatpush3.bf16.msra.mxu0 %v15253_v54  ;;  %v15272_v8 = vsub.f32 %v15094_v16, %v20693_v3  ;;  %v15279_v51 = vsub.f32 %v46_v10, %v15260_v4  ;;  %v15293_v0 = vand.u32 4294901760, %v45_v63 }
  0x50   :  { %20691 = vst [vmem:[#allocation33_spill] sm:$0xff] %v15257_v20  ;;  %v628_v6 = vand.u32 4294901760, %v627_v46  ;;  %v508_v14 = vsub.f32 %v15231_v53, %v19874_v61  ;;  %12447 = vmatpush3.bf16.msra.mxu1 %v15257_v20  ;;  %v20694_v46 = vand.u32 4294901760, %v15096_v55  ;;  %v15288_v61 = vpack.c.bf16 %v14897_v29, %v14888_v25  ;;  %659 = vmatprep.mubr.f32.mxu1 %v15260_v4 }
  0x51   :  { %v19881_v20 = vand.u32 4294901760, %v15272_v8  ;;  %v516_v10 = vand.u32 4294901760, %v515_v5  ;;  %v19883_v21 = vand.u32 4294901760, %v15279_v51  ;;  %v20699_v5 = vand.u32 4294901760, %v15127_v27 }
  0x52   :  { %v15284_v41 = vsub.f32 %v15096_v55, %v20694_v46  ;;  %20695 = vst [vmem:[#allocation35_spill] sm:$0xff] %v15288_v61  ;;  %v15290_v16 = vpack.c.bf16 %v628_v6, %v621_v11  ;;  %v509_v3 = vand.u32 4294901760, %v508_v14  ;;  %12461 = vmatprep.subr.bf16.mxu0 %v15288_v61  ;;  %v15304_v6 = vsub.f32 %v45_v63, %v15293_v0 }
  0x53   :  { %v634_v55 = vsub.f32 %v15272_v8, %v19881_v20  ;;  %v20698_v11 = vand.u32 4294901760, %v15121_v39  ;;  %v15314_v46 = vsub.f32 %v15127_v27, %v20699_v5  ;;  %v421_v61 = vsub.f32 %v15279_v51, %v19883_v21 }
  0x54   :  { %20696 = vst [vmem:[#allocation36_spill] sm:$0xff] %v15290_v16  ;;  %12449 = vmatprep.subr.bf16.mxu1 %v15290_v16  ;;  %20697 = vst [vmem:[#allocation37_spill] sm:$0xff] %v15304_v6  ;;  %v15316_v54 = vpack.c.bf16 %v516_v10, %v509_v3  ;;  %v20701_v20 = vand.u32 4294901760, %v15284_v41  ;;  %v15326_v16 = vpack.c.bf16 %v14911_v35, %v14909_v34  ;;  %v20703_v21 = vand.u32 4294901760, %v15155_v26 }
  0x55   :  { %v15309_v14 = vsub.f32 %v15121_v39, %v20698_v11  ;;  %v635_v39 = vand.u32 4294901760, %v634_v55  ;;  %v19888_v11 = vand.u32 4294901760, %v15304_v6  ;;  %v422_v10 = vand.u32 4294901760, %v421_v61 }
  0x56   :  { %20700 = vst [vmem:[#allocation38_spill] sm:$0xff] %v15316_v54  ;;  %v641_v63 = vsub.f32 %v15284_v41, %v20701_v20  ;;  %20702 = vst [vmem:[#allocation39_spill] sm:$0xff] %v15326_v16  ;;  %12451 = vmatpush3.bf16.msra.mxu1 %v15316_v54  ;;  %v15335_v49 = vsub.f32 %v15155_v26, %v20703_v21  ;;  %v20704_v20 = vand.u32 4294901760, %v15157_v58  ;;  %v20705_v61 = vand.u32 4294901760, %v15314_v46 }
  0x57   :  { %v19890_v27 = vand.u32 4294901760, %v15309_v14  ;;  %v427_v55 = vsub.f32 %v15304_v6, %v19888_v11  ;;  %v15353_v26 = vpack.c.bf16 %v14943_v48, %v14930_v44  ;;  %423 = vmatprep.mubr.f32.mxu0 %v422_v10  ;;  %v20708_v11 = vand.u32 4294901760, %v15188_v45 }
  0x58   :  { %v642_v5 = vand.u32 4294901760, %v641_v63  ;;  %v15340_v40 = vsub.f32 %v15157_v58, %v20704_v20  ;;  %v529_v63 = vsub.f32 %v15314_v46, %v20705_v61  ;;  %v19900_v58 = vand.u32 4294901760, %v15335_v49 }
  0x59   :  { %v522_v3 = vsub.f32 %v15309_v14, %v19890_v27  ;;  %20706 = vst [vmem:[#allocation40_spill] sm:$0xff] %v15353_v26  ;;  %v15362_v54 = vsub.f32 %v15188_v45, %v20708_v11  ;;  %v428_v27 = vand.u32 4294901760, %v427_v55  ;;  %v20709_v61 = vand.u32 4294901760, %v15197_v9 }
  0x5a   :  { %v15355_v21 = vpack.c.bf16 %v642_v5, %v635_v39  ;;  %v19899_v20 = vand.u32 4294901760, %v15340_v40  ;;  %v530_v37 = vand.u32 4294901760, %v529_v63  ;;  %v648_v39 = vsub.f32 %v15335_v49, %v19900_v58 }
  0x5b   :  { %v523_v4 = vand.u32 4294901760, %v522_v3  ;;  %v15367_v6 = vsub.f32 %v15197_v9, %v20709_v61  ;;  %v19897_v45 = vand.u32 4294901760, %v15362_v54  ;;  %429 = vmatmul.mubr.f32.vlgmr.msra.gmra.mrb[0].mxu0 %v428_v27  ;;  %v15386_v63 = vpack.c.bf16 %v14964_v62, %v14957_v57 }
  0x5c   :  { %20707 = vst [vmem:[#allocation41_spill] sm:$0xff] %v15355_v21  ;;  %12453 = vmatprep.subr.bf16.mxu1 %v15355_v21  ;;  %v655_v10 = vsub.f32 %v15340_v40, %v19899_v20  ;;  %12463 = vmatpush3.bf16.msra.mxu0 %v15326_v16  ;;  %v649_v9 = vand.u32 4294901760, %v648_v39  ;;  %v20717_v20 = vand.u32 4294901760, %v14897_v29  ;;  %v20727_v29 = vand.u32 4294901760, %v14964_v62 }
  0x5d   :  { %v15377_v11 = vpack.c.bf16 %v530_v37, %v523_v4  ;;  %v19898_v3 = vand.u32 4294901760, %v15367_v6  ;;  %v536_v55 = vsub.f32 %v15362_v54, %v19897_v45  ;;  %20711 = vst [vmem:[#allocation43_spill] sm:$0xff] %v15386_v63  ;;  %796 = vmatprep.mubr.f32.mxu0 %v15279_v51  ;;  %12465 = vmatprep.subr.bf16.mxu0 %v15353_v26  ;;  %v20724_v26 = vand.u32 4294901760, %v14943_v48 }
  0x5e   :  { %v656_v5 = vand.u32 4294901760, %v655_v10  ;;  %v15396_v4 = vpack.c.bf16 %v15007_v17, %v14998_v13  ;;  %v15404_v10 = vpack.c.bf16 %v15045_v1, %v15035_v60  ;;  %v15408_v45 = vpack.c.bf16 %v15074_v24, %v15060_v18 }
  0x5f   :  { %20710 = vst [vmem:[#allocation42_spill] sm:$0xff] %v15377_v11  ;;  %12455 = vmatpush3.bf16.msra.mxu1 %v15377_v11  ;;  %v543_v37 = vsub.f32 %v15367_v6, %v19898_v3  ;;  %v537_v61 = vand.u32 4294901760, %v536_v55  ;;  %v20716_v3 = vand.u32 4294901760, %v14888_v25  ;;  %v20720_v55 = vand.u32 4294901760, %v14909_v34  ;;  %v15670_v11 = vld [vmem:[#allocation2 + $0x1c0] sm:$0xff] }
  0x60   :  { %20712 = vst [vmem:[#allocation44_spill] sm:$0xff] %v15396_v4  ;;  %v15398_v27 = vpack.c.bf16 %v656_v5, %v649_v9  ;;  %12467 = vmatpush3.bf16.msra.mxu0 %v15386_v63  ;;  %20714 = vst [vmem:[#allocation46_spill] sm:$0xff] %v15404_v10  ;;  %v20723_v63 = vand.u32 4294901760, %v14930_v44  ;;  %v20726_v25 = vand.u32 4294901760, %v14957_v57  ;;  %v20730_v34 = vand.u32 4294901760, %v15007_v17 }
  0x61   :  { %v544_v39 = vand.u32 4294901760, %v543_v37  ;;  %20715 = vst [vmem:[#allocation47_spill] sm:$0xff] %v15408_v45  ;;  %v15414_v9 = vpack.c.bf16 %v20717_v20, %v20716_v3  ;;  %12469 = vmatprep.subr.bf16.mxu0 %v15396_v4  ;;  %v20721_v37 = vand.u32 4294901760, %v14911_v35  ;;  %v20729_v3 = vand.u32 4294901760, %v14998_v13 }
  0x62   :  { %20713 = vst [vmem:[#allocation45_spill] sm:$0xff] %v15398_v27  ;;  %12457 = vmatprep.subr.bf16.mxu1 %v15398_v27  ;;  %v15429_v16 = vpack.c.bf16 %v20724_v26, %v20723_v63  ;;  %v15435_v20 = vpack.c.bf16 %v20727_v29, %v20726_v25  ;;  %v20732_v35 = vand.u32 4294901760, %v15035_v60  ;;  %v20733_v44 = vand.u32 4294901760, %v15045_v1 }
  0x63   :  { %20718 = vst [vmem:[#allocation48_spill] sm:$0xff] %v15414_v9  ;;  %v15416_v5 = vpack.c.bf16 %v544_v39, %v537_v61  ;;  %v15423_v58 = vpack.c.bf16 %v20721_v37, %v20720_v55  ;;  %v15441_v61 = vpack.c.bf16 %v20730_v34, %v20729_v3  ;;  %v20735_v48 = vand.u32 4294901760, %v15060_v18  ;;  %v20757_v3 = vld [vmem:[#allocation37_spill] sm:$0xff]  ;;  %v20758_v34 = vld [vmem:[#allocation26_spill] sm:$0xff] }
  0x64   :  { %20725 = vst [vmem:[#allocation51_spill] sm:$0xff] %v15429_v16  ;;  %20728 = vst [vmem:[#allocation52_spill] sm:$0xff] %v15435_v20  ;;  %v15447_v39 = vpack.c.bf16 %v20733_v44, %v20732_v35  ;;  %v20736_v57 = vand.u32 4294901760, %v15074_v24  ;;  %v20738_v62 = vand.u32 4294901760, %v15092_v30  ;;  %v20739_v13 = vand.u32 4294901760, %v15109_v36  ;;  %12471 = vmatpush3.bf16.msra.mxu0 %v15404_v10  ;;  %v102_v35 = vld [vmem:[#allocation2 + $0x180] sm:$0xff] }
  0x65   :  { %20719 = vst [vmem:[#allocation49_spill] sm:$0xff] %v15416_v5  ;;  %20722 = vst [vmem:[#allocation50_spill] sm:$0xff] %v15423_v58  ;;  %12459 = vmatpush3.bf16.msra.mxu1 %v15416_v5  ;;  %v20741_v17 = vand.u32 4294901760, %v15138_v42  ;;  %v20742_v60 = vand.u32 4294901760, %v15152_v43  ;;  %v20744_v18 = vand.u32 4294901760, %v15169_v12  ;;  %v20745_v24 = vand.u32 4294901760, %v15174_v33  ;;  %12473 = vmatprep.subr.bf16.mxu0 %v15408_v45 }
  0x66   :  { %20731 = vst [vmem:[#allocation53_spill] sm:$0xff] %v15441_v61  ;;  %20734 = vst [vmem:[#allocation54_spill] sm:$0xff] %v15447_v39  ;;  %v15453_v26 = vpack.c.bf16 %v20736_v57, %v20735_v48  ;;  %v15459_v63 = vpack.c.bf16 %v20739_v13, %v20738_v62  ;;  %12493 = vmatprep.subr.bf16.mxu1 %v14874_v15  ;;  %v15478_v37 = vpack.c.bf16 %v15109_v36, %v15092_v30  ;;  %v103_v44 = vld [vmem:[#allocation2 + $0x188] sm:$0xff]  ;;  %v20759_v48 = vld [vmem:[#allocation34_spill] sm:$0xff] }
  0x67   :  { %v15466_v1 = vpack.c.bf16 %v20742_v60, %v20741_v17  ;;  %v15472_v55 = vpack.c.bf16 %v20745_v24, %v20744_v18  ;;  %v15483_v25 = vpack.c.bf16 %v15152_v43, %v15138_v42  ;;  %v20749_v29 = vand.u32 4294901760, %v15279_v51  ;;  %v20760_v57 = vld [vmem:[#allocation28_spill] sm:$0xff]  ;;  %v20761_v17 = vld [vmem:[#allocation30_spill] sm:$0xff]  ;;  %v87_v18 = vld [vmem:[#allocation2 + $0x108] sm:$0xff] }
  0x68   :  { %20737 = vst [vmem:[#allocation55_spill] sm:$0xff] %v15453_v26  ;;  %20740 = vst [vmem:[#allocation56_spill] sm:$0xff] %v15459_v63  ;;  %661 = vmatmul.mubr.f32.vlgmr.msra.gmra.mrb[0].mxu1 %v15293_v0  ;;  %12475 = vmatpush3.bf16.msra.mxu0 %v15478_v37  ;;  %v15493_v30 = vpack.c.bf16 %v15174_v33, %v15169_v12  ;;  %v15498_v36 = vpack.c.bf16 %v15214_v7, %v15209_v56  ;;  %v1233_v62 = vand.u32 4294901760, %v102_v35  ;;  %v86_v60 = vld [vmem:[#allocation2 + $0x100] sm:$0xff]  ;;  %v104_v24 = vld [vmem:[#allocation2 + $0x190] sm:$0xff] }
  0x69   :  { %20743 = vst [vmem:[#allocation57_spill] sm:$0xff] %v15466_v1  ;;  %20746 = vst [vmem:[#allocation58_spill] sm:$0xff] %v15472_v55  ;;  %12495 = vmatpush3.bf16.msra.mxu1 %v14883_v22  ;;  %903 = vmatprep.mubr.f32.mxu1 %v20749_v29  ;;  %v15505_v42 = vpack.c.bf16 %v15241_v50, %v15231_v53  ;;  %v15510_v43 = vpack.c.bf16 %v15284_v41, %v15272_v8  ;;  %v1236_v13 = vand.u32 4294901760, %v103_v44  ;;  %v20762_v29 = vld [vmem:[#allocation32_spill] sm:$0xff] }
  0x6a   :  { %20747 = vst [vmem:[#allocation59_spill] sm:$0xff] %v15478_v37  ;;  %20748 = vst [vmem:[#allocation60_spill] sm:$0xff] %v15483_v25  ;;  %12497 = vmatprep.subr.bf16.mxu1 %v14885_v23  ;;  %12477 = vmatprep.subr.bf16.mxu0 %v15483_v25  ;;  %v15517_v12 = vpack.c.bf16 %v15314_v46, %v15309_v14  ;;  %v15522_v33 = vpack.c.bf16 %v15340_v40, %v15335_v49 }
  0x6b   :  { %20750 = vst [vmem:[#allocation61_spill] sm:$0xff] %v15493_v30  ;;  %20751 = vst [vmem:[#allocation62_spill] sm:$0xff] %v15498_v36  ;;  %v15529_v51 = vpack.c.bf16 %v15367_v6, %v15362_v54 }
  0x6c   :  { %12479 = vmatpush3.bf16.msra.mxu0 %v15493_v30  ;;  %20752 = vst [vmem:[#allocation63_spill] sm:$0xff] %v15505_v42  ;;  %20753 = vst [vmem:[#allocation64_spill] sm:$0xff] %v15510_v43  ;;  %v20768_v30 = vand.u32 4294901760, %v15241_v50 }
  0x6d   :  { %12499 = vmatpush3.bf16.msra.mxu1 %v14895_v28  ;;  %12481 = vmatprep.subr.bf16.mxu0 %v15498_v36  ;;  %20754 = vst [vmem:[#allocation65_spill] sm:$0xff] %v15517_v12  ;;  %20755 = vst [vmem:[#allocation66_spill] sm:$0xff] %v15522_v33  ;;  %v20765_v36 = vand.u32 4294901760, %v15214_v7  ;;  %v106_v7 = vld [vmem:[#allocation2 + $0x1a0] sm:$0xff] }
  0x6e   :  { %12501 = vmatprep.subr.bf16.mxu1 %v14906_v32  ;;  %20756 = vst [vmem:[#allocation67_spill] sm:$0xff] %v15529_v51 }
  0x70   :  { %12483 = vmatpush3.bf16.msra.mxu0 %v15505_v42  ;;  %v20764_v42 = vand.u32 4294901760, %v15209_v56  ;;  %v48_v56 = vld [vmem:[%s19832_s0 + $0x18] sm:$0xff] }
  0x71   :  { %12503 = vmatpush3.bf16.msra.mxu1 %v14921_v38  ;;  %12485 = vmatprep.subr.bf16.mxu0 %v15510_v43  ;;  %v89_v43 = vld [vmem:[#allocation2 + $0x118] sm:$0xff] }
  0x72   :  { %12505 = vmatprep.subr.bf16.mxu1 %v14941_v47 }
  0x74   :  { %12487 = vmatpush3.bf16.msra.mxu0 %v15517_v12  ;;  %v1239_v12 = vand.u32 4294901760, %v104_v24 }
  0x75   :  { %12507 = vmatpush3.bf16.msra.mxu1 %v14977_v2  ;;  %12489 = vmatprep.subr.bf16.mxu0 %v15522_v33  ;;  %v15549_v33 = vsub.f32 %v103_v44, %v1236_v13  ;;  %v20767_v44 = vand.u32 4294901760, %v15231_v53  ;;  %v107_v53 = vld [vmem:[#allocation2 + $0x1a8] sm:$0xff] }
  0x76   :  { %12509 = vmatprep.subr.bf16.mxu1 %v15021_v52 }
  0x77   :  { %v15566_v25 = vpack.c.bf16 %v20768_v30, %v20767_v44 }
  0x78   :  { %12491 = vmatpush3.bf16.msra.mxu0 %v15529_v51  ;;  %v15547_v51 = vsub.f32 %v102_v35, %v1233_v62  ;;  %v15560_v35 = vpack.c.bf16 %v20765_v36, %v20764_v42  ;;  %v1194_v42 = vand.u32 4294901760, %v89_v43 }
  0x79   :  { %12511 = vmatpush3.bf16.msra.mxu1 %v15030_v59  ;;  %12525 = vmatprep.subr.bf16.mxu0 %v15414_v9  ;;  %v1188_v9 = vand.u32 4294901760, %v87_v18  ;;  %20769 = vst [vmem:[#allocation34_spill] sm:$0xff] %v15566_v25 }
  0x7a   :  { %12513 = vmatprep.subr.bf16.mxu1 %v15069_v19  ;;  %20766 = vst [vmem:[#allocation37_spill] sm:$0xff] %v15560_v35  ;;  %v15643_v10 = vsub.f32 %v89_v43, %v1194_v42 }
  0x7b   :  { %799 = vmatmul.mubr.f32.vlgmr.msra.gmra.mrb[2].mxu0 %v20757_v3 }
  0x7c   :  { %12527 = vmatpush3.bf16.msra.mxu0 %v15423_v58  ;;  %1073 = vmatprep.mubr.f32.mxu0 %v20759_v48  ;;  %v1185_v58 = vand.u32 4294901760, %v86_v60 }
  0x7d   :  { %12515 = vmatpush3.bf16.msra.mxu1 %v15118_v31  ;;  %12529 = vmatprep.subr.bf16.mxu0 %v15429_v16  ;;  %v105_v16 = vld [vmem:[#allocation2 + $0x198] sm:$0xff] }
  0x7e   :  { %12517 = vmatprep.subr.bf16.mxu1 %v20758_v34 }
  0x80   :  { %12531 = vmatpush3.bf16.msra.mxu0 %v15435_v20  ;;  %v88_v20 = vld [vmem:[#allocation2 + $0x110] sm:$0xff] }
  0x81   :  { %12519 = vmatpush3.bf16.msra.mxu1 %v20760_v57  ;;  %12533 = vmatprep.subr.bf16.mxu0 %v15441_v61  ;;  %v20763_v61 = vand.u32 4294901760, %v20757_v3  ;;  %v1242_v3 = vand.u32 4294901760, %v105_v16  ;;  %v1191_v36 = vand.u32 4294901760, %v88_v20 }
  0x82   :  { %12521 = vmatprep.subr.bf16.mxu1 %v20761_v17 }
  0x83   :  { %v15614_v45 = vsub.f32 %v105_v16, %v1242_v3  ;;  %v15631_v16 = vpack.c.bf16 %v1242_v3, %v1239_v12 }
  0x84   :  { %12535 = vmatpush3.bf16.msra.mxu0 %v15447_v39  ;;  %v20770_v39 = vand.u32 4294901760, %v15272_v8  ;;  %v15581_v8 = vsub.f32 %v86_v60, %v1185_v58  ;;  %v20776_v60 = vand.u32 4294901760, %v15335_v49  ;;  %v91_v49 = vld [vmem:[#allocation2 + $0x128] sm:$0xff] }
  0x85   :  { %12523 = vmatpush3.bf16.msra.mxu1 %v20762_v29  ;;  %12537 = vmatprep.subr.bf16.mxu0 %v15453_v26  ;;  %v20771_v26 = vand.u32 4294901760, %v15284_v41  ;;  %v15583_v41 = vsub.f32 %v87_v18, %v1188_v9  ;;  %v20777_v18 = vand.u32 4294901760, %v15340_v40  ;;  %v20785_v40 = vand.u32 4294901760, %v15547_v51  ;;  %20787 = vst [vmem:[#allocation75_spill] sm:$0xff] %v15631_v16 }
  0x86   :  { %12557 = vmatprep.subr.bf16.mxu1 %v14874_v15  ;;  %v20790_v4 = vand.u32 4294901760, %v15581_v8 }
  0x87   :  { %v15572_v37 = vpack.c.bf16 %v20771_v26, %v20770_v39  ;;  %v20773_v39 = vand.u32 4294901760, %v15309_v14  ;;  %v20774_v26 = vand.u32 4294901760, %v15314_v46  ;;  %v15600_v44 = vpack.c.bf16 %v20777_v18, %v20776_v60 }
  0x88   :  { %907 = vmatmul.mubr.f32.vlgmr.msra.gmra.mrb[2].mxu1 %v20763_v61  ;;  %12539 = vmatpush3.bf16.msra.mxu0 %v15459_v63  ;;  %v20779_v61 = vand.u32 4294901760, %v15362_v54  ;;  %v20780_v14 = vand.u32 4294901760, %v15367_v6  ;;  %v15608_v46 = vpack.c.bf16 %v1236_v13, %v1233_v62  ;;  %v90_v63 = vld [vmem:[#allocation2 + $0x120] sm:$0xff]  ;;  %v1412_v54 = vsub.f32 %v15547_v51, %v20785_v40  ;;  %v15641_v13 = vld [vmem:[#allocation2 + $0x138] sm:$0xff] }
  0x89   :  { %20772 = vst [vmem:[#allocation68_spill] sm:$0xff] %v15572_v37  ;;  %12559 = vmatpush3.bf16.msra.mxu1 %v14883_v22  ;;  %1177 = vmatprep.mubr.f32.mxu1 %v20759_v48  ;;  %v15591_v30 = vpack.c.bf16 %v20774_v26, %v20773_v39  ;;  %v15593_v48 = vsub.f32 %v104_v24, %v1239_v12  ;;  %20778 = vst [vmem:[#allocation70_spill] sm:$0xff] %v15600_v44  ;;  %v15610_v39 = vand.u32 4294901760, %v48_v56 }
  0x8a   :  { %12561 = vmatprep.subr.bf16.mxu1 %v14885_v23  ;;  %12541 = vmatprep.subr.bf16.mxu0 %v15466_v1  ;;  %v15606_v50 = vpack.c.bf16 %v20780_v14, %v20779_v61  ;;  %20782 = vst [vmem:[#allocation72_spill] sm:$0xff] %v15608_v46  ;;  %v15612_v24 = vpack.c.bf16 %v1188_v9, %v1185_v58  ;;  %v1245_v26 = vand.u32 4294901760, %v106_v7  ;;  %v1248_v1 = vand.u32 4294901760, %v107_v53  ;;  %v15625_v9 = vld [vmem:[#allocation2 + $0x1b0] sm:$0xff]  ;;  %v15627_v61 = vld [vmem:[#allocation2 + $0x1b8] sm:$0xff]  ;;  %v15764_v23 = vld [vmem:[#allocation2 + $0x1e0] sm:$0xff] }
  0x8b   :  { %20775 = vst [vmem:[#allocation69_spill] sm:$0xff] %v15591_v30  ;;  %20783 = vst [vmem:[#allocation73_spill] sm:$0xff] %v15610_v39  ;;  %v20786_v6 = vand.u32 4294901760, %v15549_v33  ;;  %v15633_v60 = vpack.c.bf16 %v1194_v42, %v1191_v36  ;;  %v15636_v14 = vsub.f32 %v88_v20, %v1191_v36  ;;  %v1197_v40 = vand.u32 4294901760, %v90_v63  ;;  %v15639_v58 = vld [vmem:[#allocation2 + $0x130] sm:$0xff] }
  0x8c   :  { %20781 = vst [vmem:[#allocation71_spill] sm:$0xff] %v15606_v50  ;;  %20784 = vst [vmem:[#allocation74_spill] sm:$0xff] %v15612_v24  ;;  %12543 = vmatpush3.bf16.msra.mxu0 %v15472_v55  ;;  %v15646_v55 = vsub.f32 %v48_v56, %v15610_v39  ;;  %v15648_v12 = vpack.c.bf16 %v1248_v1, %v1245_v26  ;;  %v1251_v3 = vand.u32 4294901760, %v15625_v9  ;;  %v1254_v20 = vand.u32 4294901760, %v15627_v61 }
  0x8d   :  { %12563 = vmatpush3.bf16.msra.mxu1 %v14895_v28  ;;  %v1419_v62 = vsub.f32 %v15549_v33, %v20786_v6  ;;  %20788 = vst [vmem:[#allocation76_spill] sm:$0xff] %v15633_v60  ;;  %12545 = vmatprep.subr.bf16.mxu0 %v15560_v35  ;;  %v1200_v6 = vand.u32 4294901760, %v91_v49  ;;  %v1413_v18 = vand.u32 4294901760, %v1412_v54  ;;  %v1300_v43 = vsub.f32 %v15581_v8, %v20790_v4 }
  0x8e   :  { %12565 = vmatprep.subr.bf16.mxu1 %v14906_v32  ;;  %20789 = vst [vmem:[#allocation77_spill] sm:$0xff] %v15648_v12  ;;  %v20791_v42 = vand.u32 4294901760, %v15583_v41  ;;  %v20792_v5 = vand.u32 4294901760, %v15593_v48  ;;  %v1203_v27 = vand.u32 4294901760, %v15639_v58  ;;  %v1206_v54 = vand.u32 4294901760, %v15641_v13 }
  0x8f   :  { %v1420_v35 = vand.u32 4294901760, %v1419_v62  ;;  %v15674_v21 = vsub.f32 %v107_v53, %v1248_v1  ;;  %v15682_v32 = vsub.f32 %v90_v63, %v1197_v40  ;;  %v15684_v62 = vsub.f32 %v91_v49, %v1200_v6  ;;  %v111_v53 = vld [vmem:[#allocation2 + $0x1c8] sm:$0xff] }
  0x90   :  { %v1307_v56 = vsub.f32 %v15583_v41, %v20791_v42  ;;  %12547 = vmatpush3.bf16.msra.mxu0 %v15566_v25  ;;  %v1426_v36 = vsub.f32 %v15593_v48, %v20792_v5  ;;  %v15672_v42 = vsub.f32 %v106_v7, %v1245_v26  ;;  %v20794_v5 = vand.u32 4294901760, %v15614_v45 }
  0x91   :  { %12567 = vmatpush3.bf16.msra.mxu1 %v14921_v38  ;;  %12549 = vmatprep.subr.bf16.mxu0 %v15572_v37  ;;  %20795 = vst [vmem:[#allocation79_spill] sm:$0xff] %v15684_v62  ;;  %v15687_v4 = vpack.c.bf16 %v1420_v35, %v1413_v18  ;;  %v1301_v7 = vand.u32 4294901760, %v1300_v43  ;;  %v15689_v1 = vpack.c.bf16 %v1254_v20, %v1251_v3  ;;  %v20799_v63 = vand.u32 4294901760, %v15636_v14  ;;  %v15699_v35 = vld [vmem:[#allocation2 + $0x140] sm:$0xff] }
  0x92   :  { %12569 = vmatprep.subr.bf16.mxu1 %v14941_v47  ;;  %v15677_v47 = vpack.c.bf16 %v1200_v6, %v1197_v40  ;;  %v1433_v38 = vsub.f32 %v15614_v45, %v20794_v5  ;;  %v1308_v26 = vand.u32 4294901760, %v1307_v56  ;;  %v1427_v25 = vand.u32 4294901760, %v1426_v36  ;;  %v15707_v56 = vld [vmem:[#allocation2 + $0x148] sm:$0xff] }
  0x93   :  { %20796 = vst [vmem:[#allocation80_spill] sm:$0xff] %v15687_v4  ;;  %20797 = vst [vmem:[#allocation81_spill] sm:$0xff] %v15689_v1  ;;  %v15693_v37 = vpack.c.bf16 %v1206_v54, %v1203_v27  ;;  %v1314_v49 = vsub.f32 %v15636_v14, %v20799_v63  ;;  %v1257_v40 = vand.u32 4294901760, %v15670_v11  ;;  %v20800_v18 = vand.u32 4294901760, %v15643_v10 }
  0x94   :  { %20793 = vst [vmem:[#allocation78_spill] sm:$0xff] %v15677_v47  ;;  %12551 = vmatpush3.bf16.msra.mxu0 %v15591_v30  ;;  %v20801_v5 = vand.u32 4294901760, %v15646_v55  ;;  %v1434_v30 = vand.u32 4294901760, %v1433_v38  ;;  %v15715_v28 = vpack.c.bf16 %v1308_v26, %v1301_v7  ;;  %v15719_v36 = vsub.f32 %v15625_v9, %v1251_v3 }
  0x95   :  { %12571 = vmatpush3.bf16.msra.mxu1 %v14977_v2  ;;  %20798 = vst [vmem:[#allocation82_spill] sm:$0xff] %v15693_v37  ;;  %12553 = vmatprep.subr.bf16.mxu0 %v15600_v44  ;;  %v1321_v6 = vsub.f32 %v15643_v10, %v20800_v18  ;;  %v1209_v18 = vand.u32 4294901760, %v15699_v35  ;;  %v15722_v43 = vsub.f32 %v15627_v61, %v1254_v20  ;;  %v1315_v38 = vand.u32 4294901760, %v1314_v49  ;;  %v112_v44 = vld [vmem:[#allocation2 + $0x1d0] sm:$0xff]  ;;  %v113_v2 = vld [vmem:[#allocation2 + $0x1d8] sm:$0xff] }
  0x96   :  { %12573 = vmatprep.subr.bf16.mxu1 %v15021_v52  ;;  %v1283_v63 = vsub.f32 %v15646_v55, %v20801_v5  ;;  %v1260_v52 = vand.u32 4294901760, %v111_v53  ;;  %20802 = vst [vmem:[#allocation83_spill] sm:$0xff] %v15715_v28  ;;  %v1212_v5 = vand.u32 4294901760, %v15707_v56  ;;  %v15728_v7 = vsub.f32 %v15639_v58, %v1203_v27 }
  0x97   :  { %20803 = vst [vmem:[#allocation84_spill] sm:$0xff] %v15722_v43  ;;  %v15731_v26 = vsub.f32 %v15641_v13, %v1206_v54  ;;  %v1322_v9 = vand.u32 4294901760, %v1321_v6  ;;  %v20806_v61 = vand.u32 4294901760, %v15672_v42  ;;  %v20807_v20 = vand.u32 4294901760, %v15674_v21 }
  0x98   :  { %12555 = vmatpush3.bf16.msra.mxu0 %v15606_v50  ;;  %20804 = vst [vmem:[#allocation85_spill] sm:$0xff] %v15728_v7  ;;  %v1284_v50 = vand.u32 4294901760, %v1283_v63  ;;  %v20810_v27 = vand.u32 4294901760, %v15682_v32  ;;  %v20811_v58 = vand.u32 4294901760, %v15684_v62  ;;  %v1263_v6 = vand.u32 4294901760, %v112_v44 }
  0x99   :  { %12575 = vmatpush3.bf16.msra.mxu1 %v15030_v59  ;;  %20805 = vst [vmem:[#allocation86_spill] sm:$0xff] %v15731_v26  ;;  %12589 = vmatprep.subr.bf16.mxu0 %v15608_v46  ;;  %v1440_v3 = vsub.f32 %v15672_v42, %v20806_v61  ;;  %v1447_v49 = vsub.f32 %v15674_v21, %v20807_v20  ;;  %v1266_v61 = vand.u32 4294901760, %v113_v2  ;;  %v15756_v20 = vld [vmem:[#allocation2 + $0x158] sm:$0xff] }
  0x9a   :  { %12577 = vmatprep.subr.bf16.mxu1 %v15069_v19  ;;  %v15740_v19 = vpack.c.bf16 %v1434_v30, %v1427_v25  ;;  %v15742_v59 = vpack.c.bf16 %v1260_v52, %v1257_v40  ;;  %v1328_v13 = vsub.f32 %v15682_v32, %v20810_v27  ;;  %v1335_v54 = vsub.f32 %v15684_v62, %v20811_v58  ;;  %v15754_v30 = vld [vmem:[#allocation2 + $0x150] sm:$0xff] }
  0x9b   :  { %1075 = vmatmul.mubr.f32.vlgmr.msra.gmra.mrb[4].mxu0 %v15293_v0  ;;  %v15760_v27 = vpack.c.bf16 %v1212_v5, %v1209_v18  ;;  %v15767_v63 = vsub.f32 %v15670_v11, %v1257_v40  ;;  %v15770_v25 = vpack.c.bf16 %v1322_v9, %v1315_v38  ;;  %v1441_v22 = vand.u32 4294901760, %v1440_v3 }
  0x9c   :  { %20808 = vst [vmem:[#allocation87_spill] sm:$0xff] %v15740_v19  ;;  %20809 = vst [vmem:[#allocation88_spill] sm:$0xff] %v15742_v59  ;;  %12591 = vmatpush3.bf16.msra.mxu0 %v15612_v24  ;;  %v1448_v15 = vand.u32 4294901760, %v1447_v49  ;;  %v15774_v24 = vsub.f32 %v111_v53, %v1260_v52  ;;  %1285 = vmatprep.mubr.f32.mxu0 %v1284_v50  ;;  %v1329_v46 = vand.u32 4294901760, %v1328_v13  ;;  %v1336_v58 = vand.u32 4294901760, %v1335_v54 }
  0x9d   :  { %12579 = vmatpush3.bf16.msra.mxu1 %v15118_v31  ;;  %20812 = vst [vmem:[#allocation89_spill] sm:$0xff] %v15760_v27  ;;  %12593 = vmatprep.subr.bf16.mxu0 %v15631_v16  ;;  %20813 = vst [vmem:[#allocation90_spill] sm:$0xff] %v15770_v25  ;;  %v1215_v31 = vand.u32 4294901760, %v15754_v30  ;;  %v1218_v62 = vand.u32 4294901760, %v15756_v20  ;;  %v15779_v11 = vpack.c.bf16 %v1266_v61, %v1263_v6  ;;  %v20815_v40 = vand.u32 4294901760, %v15719_v36 }
  0x9e   :  { %12581 = vmatprep.subr.bf16.mxu1 %v20758_v34  ;;  %v15772_v34 = vld [vmem:[#allocation2 + $0x1e8] sm:$0xff]  ;;  %v20816_v9 = vand.u32 4294901760, %v15722_v43  ;;  %v1269_v50 = vand.u32 4294901760, %v15764_v23  ;;  %v20817_v53 = vand.u32 4294901760, %v15728_v7  ;;  %v20818_v49 = vand.u32 4294901760, %v15731_v26 }
  0x9f   :  { %20814 = vst [vmem:[#allocation91_spill] sm:$0xff] %v15779_v11  ;;  %v1454_v38 = vsub.f32 %v15719_v36, %v20815_v40  ;;  %v1272_v54 = vand.u32 4294901760, %v15772_v34  ;;  %v15804_v16 = vsub.f32 %v15707_v56, %v1212_v5  ;;  %v15814_v40 = vsub.f32 %v113_v2, %v1266_v61  ;;  %v47_v56 = vld [vmem:[%s19832_s0 + $0x10] sm:$0xff]  ;;  %v15829_v5 = vld [vmem:[#allocation2 + $0x1f8] sm:$0xff] }
  0xa0   :  { %v1461_v52 = vsub.f32 %v15722_v43, %v20816_v9  ;;  %12595 = vmatpush3.bf16.msra.mxu0 %v15633_v60  ;;  %v1342_v3 = vsub.f32 %v15728_v7, %v20817_v53  ;;  %v1349_v13 = vsub.f32 %v15731_v26, %v20818_v49  ;;  %v99_v9 = vld [vmem:[#allocation2 + $0x168] sm:$0xff]  ;;  %v15801_v60 = vsub.f32 %v15699_v35, %v1209_v18  ;;  %v15827_v18 = vld [vmem:[#allocation2 + $0x1f0] sm:$0xff] }
  0xa1   :  { %12583 = vmatpush3.bf16.msra.mxu1 %v20760_v57  ;;  %v98_v57 = vld [vmem:[#allocation2 + $0x160] sm:$0xff]  ;;  %12597 = vmatprep.subr.bf16.mxu0 %v15648_v12  ;;  %v15806_v53 = vsub.f32 %v112_v44, %v1263_v6  ;;  %v15808_v7 = vpack.c.bf16 %v1448_v15, %v1441_v22  ;;  %v15810_v49 = vpack.c.bf16 %v1336_v58, %v1329_v46  ;;  %v1455_v12 = vand.u32 4294901760, %v1454_v38 }
  0xa2   :  { %12585 = vmatprep.subr.bf16.mxu1 %v20761_v17  ;;  %v15812_v26 = vpack.c.bf16 %v1218_v62, %v1215_v31  ;;  %v1462_v17 = vand.u32 4294901760, %v1461_v52  ;;  %v1221_v43 = vand.u32 4294901760, %v98_v57  ;;  %v1224_v35 = vand.u32 4294901760, %v99_v9 }
  0xa3   :  { %20819 = vst [vmem:[#allocation92_spill] sm:$0xff] %v15808_v7  ;;  %20820 = vst [vmem:[#allocation93_spill] sm:$0xff] %v15810_v49  ;;  %v1343_v15 = vand.u32 4294901760, %v1342_v3  ;;  %v1350_v22 = vand.u32 4294901760, %v1349_v13  ;;  %v15822_v44 = vpack.c.bf16 %v1272_v54, %v1269_v50  ;;  %v20823_v2 = vand.u32 4294901760, %v15767_v63 }
  0xa4   :  { %20821 = vst [vmem:[#allocation94_spill] sm:$0xff] %v15812_v26  ;;  %12599 = vmatpush3.bf16.msra.mxu0 %v15677_v47  ;;  %v20824_v6 = vand.u32 4294901760, %v15774_v24  ;;  %v15841_v13 = vsub.f32 %v15754_v30, %v1215_v31  ;;  %v15851_v58 = vpack.c.bf16 %v1224_v35, %v1221_v43  ;;  %v1275_v52 = vand.u32 4294901760, %v15827_v18  ;;  %v100_v30 = vld [vmem:[#allocation2 + $0x170] sm:$0xff] }
  0xa5   :  { %12587 = vmatpush3.bf16.msra.mxu1 %v20762_v29  ;;  %20822 = vst [vmem:[#allocation95_spill] sm:$0xff] %v15822_v44  ;;  %v1468_v46 = vsub.f32 %v15767_v63, %v20823_v2  ;;  %12601 = vmatprep.subr.bf16.mxu0 %v15689_v1  ;;  %v15844_v2 = vsub.f32 %v15756_v20, %v1218_v62  ;;  %v101_v20 = vld [vmem:[#allocation2 + $0x178] sm:$0xff]  ;;  %v20828_v38 = vand.u32 4294901760, %v15801_v60 }
  0xa6   :  { %12621 = vmatprep.subr.bf16.mxu1 %v15687_v4  ;;  %v1475_v61 = vsub.f32 %v15774_v24, %v20824_v6  ;;  %v15846_v4 = vand.u32 4294901760, %v47_v56  ;;  %v15849_v6 = vpack.c.bf16 %v1462_v17, %v1455_v12  ;;  %20826 = vst [vmem:[#allocation97_spill] sm:$0xff] %v15851_v58  ;;  %v15858_v31 = vpack.c.bf16 %v1350_v22, %v1343_v15 }
  0xa7   :  { %v1469_v62 = vand.u32 4294901760, %v1468_v46  ;;  %v15861_v17 = vsub.f32 %v15764_v23, %v1269_v50  ;;  %v15864_v12 = vsub.f32 %v15772_v34, %v1272_v54  ;;  %v20830_v22 = vand.u32 4294901760, %v15806_v53 }
  0xa8   :  { %1179 = vmatmul.mubr.f32.vlgmr.msra.gmra.mrb[4].mxu1 %v15293_v0  ;;  %20825 = vst [vmem:[#allocation96_spill] sm:$0xff] %v15849_v6  ;;  %v1278_v0 = vand.u32 4294901760, %v15829_v5  ;;  %12603 = vmatpush3.bf16.msra.mxu0 %v15693_v37  ;;  %20827 = vst [vmem:[#allocation98_spill] sm:$0xff] %v15858_v31  ;;  %v1476_v3 = vand.u32 4294901760, %v1475_v61  ;;  %v20831_v23 = vand.u32 4294901760, %v15814_v40  ;;  %v15882_v61 = vsub.f32 %v47_v56, %v15846_v4 }
  0xa9   :  { %12623 = vmatpush3.bf16.msra.mxu1 %v15715_v28  ;;  %1521 = vmatprep.mubr.f32.mxu1 %v15610_v39  ;;  %v20829_v28 = vand.u32 4294901760, %v15804_v16  ;;  %v1482_v46 = vsub.f32 %v15806_v53, %v20830_v22  ;;  %v1230_v29 = vand.u32 4294901760, %v101_v20  ;;  %v15887_v39 = vsub.f32 %v99_v9, %v1224_v35 }
  0xaa   :  { %12625 = vmatprep.subr.bf16.mxu1 %v15740_v19  ;;  %12605 = vmatprep.subr.bf16.mxu0 %v15742_v59  ;;  %v1356_v19 = vsub.f32 %v15801_v60, %v20828_v38  ;;  %v1489_v34 = vsub.f32 %v15814_v40, %v20831_v23  ;;  %v1227_v38 = vand.u32 4294901760, %v100_v30  ;;  %v15894_v54 = vsub.f32 %v15827_v18, %v1275_v52 }
  0xab   :  { %v1363_v15 = vsub.f32 %v15804_v16, %v20829_v28  ;;  %v15885_v28 = vsub.f32 %v98_v57, %v1221_v43  ;;  %v15897_v56 = vsub.f32 %v15829_v5, %v1278_v0  ;;  %v15900_v57 = vpack.c.bf16 %v1476_v3, %v1469_v62 }
  0xac   :  { %12607 = vmatpush3.bf16.msra.mxu0 %v15760_v27  ;;  %v1357_v43 = vand.u32 4294901760, %v1356_v19  ;;  %v1483_v35 = vand.u32 4294901760, %v1482_v46  ;;  %v1490_v50 = vand.u32 4294901760, %v1489_v34  ;;  %v20834_v23 = vand.u32 4294901760, %v15844_v2 }
  0xad   :  { %12627 = vmatpush3.bf16.msra.mxu1 %v15770_v25  ;;  %12609 = vmatprep.subr.bf16.mxu0 %v15779_v11  ;;  %20832 = vst [vmem:[#allocation99_spill] sm:$0xff] %v15900_v57  ;;  %v1364_v9 = vand.u32 4294901760, %v1363_v15  ;;  %v15912_v19 = vsub.f32 %v100_v30, %v1227_v38  ;;  %v15914_v62 = vsub.f32 %v101_v20, %v1230_v29  ;;  %v20836_v46 = vand.u32 4294901760, %v15864_v12 }
  0xae   :  { %12629 = vmatprep.subr.bf16.mxu1 %v15808_v7  ;;  %v20833_v7 = vand.u32 4294901760, %v15841_v13  ;;  %v1377_v18 = vsub.f32 %v15844_v2, %v20834_v23  ;;  %v15929_v20 = vpack.c.bf16 %v1278_v0, %v1275_v52  ;;  %v15931_v5 = vpack.c.bf16 %v1230_v29, %v1227_v38 }
  0xaf   :  { %v1503_v34 = vsub.f32 %v15864_v12, %v20836_v46  ;;  %v15927_v30 = vpack.c.bf16 %v1364_v9, %v1357_v43  ;;  %v15933_v25 = vpack.c.bf16 %v1490_v50, %v1483_v35  ;;  %v20842_v3 = vand.u32 4294901760, %v15885_v28 }
  0xb0   :  { %v1370_v22 = vsub.f32 %v15841_v13, %v20833_v7  ;;  %12611 = vmatpush3.bf16.msra.mxu0 %v15812_v26  ;;  %v20835_v7 = vand.u32 4294901760, %v15861_v17  ;;  %20838 = vst [vmem:[#allocation101_spill] sm:$0xff] %v15929_v20  ;;  %20839 = vst [vmem:[#allocation102_spill] sm:$0xff] %v15931_v5  ;;  %v20843_v43 = vand.u32 4294901760, %v15887_v39  ;;  %v19993_v29 = vand.u32 4294901760, %v15912_v19 }
  0xb1   :  { %12631 = vmatpush3.bf16.msra.mxu1 %v15810_v49  ;;  %12613 = vmatprep.subr.bf16.mxu0 %v15822_v44  ;;  %20837 = vst [vmem:[#allocation100_spill] sm:$0xff] %v15927_v30  ;;  %20840 = vst [vmem:[#allocation103_spill] sm:$0xff] %v15933_v25  ;;  %v20841_v49 = vand.u32 4294901760, %v15882_v61  ;;  %v1384_v23 = vsub.f32 %v15885_v28, %v20842_v3  ;;  %v19992_v0 = vand.u32 4294901760, %v15914_v62  ;;  %v20844_v38 = vand.u32 4294901760, %v15894_v54 }
  0xb2   :  { %12633 = vmatprep.subr.bf16.mxu1 %v15849_v6  ;;  %v1496_v15 = vsub.f32 %v15861_v17, %v20835_v7  ;;  %v1371_v6 = vand.u32 4294901760, %v1370_v22  ;;  %v1378_v7 = vand.u32 4294901760, %v1377_v18  ;;  %v1391_v52 = vsub.f32 %v15887_v39, %v20843_v43 }
  0xb3   :  { %v1289_v46 = vsub.f32 %v15882_v61, %v20841_v49  ;;  %v1504_v49 = vand.u32 4294901760, %v1503_v34  ;;  %v1510_v22 = vsub.f32 %v15894_v54, %v20844_v38  ;;  %v20845_v9 = vand.u32 4294901760, %v15897_v56 }
  0xb4   :  { %12615 = vmatpush3.bf16.msra.mxu0 %v15851_v58  ;;  %v1497_v50 = vand.u32 4294901760, %v1496_v15  ;;  %v15958_v18 = vpack.c.bf16 %v15549_v33, %v15547_v51  ;;  %v15960_v3 = vpack.c.bf16 %v1378_v7, %v1371_v6  ;;  %v1385_v15 = vand.u32 4294901760, %v1384_v23 }
  0xb5   :  { %12635 = vmatpush3.bf16.msra.mxu1 %v15858_v31  ;;  %v1517_v35 = vsub.f32 %v15897_v56, %v20845_v9  ;;  %12617 = vmatprep.subr.bf16.mxu0 %v15929_v20  ;;  %v1290_v43 = vand.u32 4294901760, %v1289_v46  ;;  %v1392_v34 = vand.u32 4294901760, %v1391_v52  ;;  %v1398_v38 = vsub.f32 %v15912_v19, %v19993_v29  ;;  %v16285_v31 = vld [vmem:[#allocation2 + $0x2c0] sm:$0xff] }
  0xb6   :  { %12637 = vmatprep.subr.bf16.mxu1 %v15900_v57  ;;  %20846 = vst [vmem:[#allocation104_spill] sm:$0xff] %v15958_v18  ;;  %20847 = vst [vmem:[#allocation105_spill] sm:$0xff] %v15960_v3  ;;  %v1405_v9 = vsub.f32 %v15914_v62, %v19992_v0  ;;  %v15971_v57 = vpack.c.bf16 %v1504_v49, %v1497_v50  ;;  %v15975_v6 = vpack.c.bf16 %v15583_v41, %v15581_v8 }
  0xb7   :  { %v1511_v23 = vand.u32 4294901760, %v1510_v22  ;;  %v1518_v7 = vand.u32 4294901760, %v1517_v35  ;;  %v15980_v46 = vpack.c.bf16 %v15614_v45, %v15593_v48  ;;  %v15983_v52 = vpack.c.bf16 %v1392_v34, %v1385_v15  ;;  %v20856_v15 = vld [vmem:[#allocation79_spill] sm:$0xff] }
  0xb8   :  { %12619 = vmatpush3.bf16.msra.mxu0 %v15931_v5  ;;  %20848 = vst [vmem:[#allocation106_spill] sm:$0xff] %v15971_v57  ;;  %20849 = vst [vmem:[#allocation107_spill] sm:$0xff] %v15975_v6  ;;  %v1399_v0 = vand.u32 4294901760, %v1398_v38  ;;  %v1406_v50 = vand.u32 4294901760, %v1405_v9  ;;  %v15991_v22 = vpack.c.bf16 %v15643_v10, %v15636_v14  ;;  %v15996_v35 = vpack.c.bf16 %v15674_v21, %v15672_v42  ;;  %v20858_v38 = vld [vmem:[#allocation84_spill] sm:$0xff] }
  0xb9   :  { %12639 = vmatpush3.bf16.msra.mxu1 %v15927_v30  ;;  %12653 = vmatprep.subr.bf16.mxu0 %v15958_v18  ;;  %20850 = vst [vmem:[#allocation108_spill] sm:$0xff] %v15980_v46  ;;  %20851 = vst [vmem:[#allocation109_spill] sm:$0xff] %v15983_v52  ;;  %v15987_v49 = vpack.c.bf16 %v1518_v7, %v1511_v23  ;;  %v16006_v34 = vpack.c.bf16 %v20856_v15, %v15682_v32  ;;  %v20860_v23 = vld [vmem:[#allocation72_spill] sm:$0xff]  ;;  %v20862_v7 = vld [vmem:[#allocation86_spill] sm:$0xff] }
  0xba   :  { %12641 = vmatprep.subr.bf16.mxu1 %v15933_v25  ;;  %20853 = vst [vmem:[#allocation111_spill] sm:$0xff] %v15991_v22  ;;  %20854 = vst [vmem:[#allocation112_spill] sm:$0xff] %v15996_v35  ;;  %v16011_v9 = vpack.c.bf16 %v20858_v38, %v15719_v36  ;;  %v16023_v29 = vpack.c.bf16 %v15774_v24, %v15767_v63  ;;  %v20871_v18 = vld [vmem:[#allocation77_spill] sm:$0xff] }
  0xbb   :  { %1291 = vmatmul.mubr.f32.vlgmr.msra.gmra.mrb[6].mxu0 %v1290_v43  ;;  %20852 = vst [vmem:[#allocation110_spill] sm:$0xff] %v15987_v49  ;;  %v16000_v43 = vpack.c.bf16 %v1406_v50, %v1399_v0  ;;  %20857 = vst [vmem:[#allocation79_spill] sm:$0xff] %v16006_v34  ;;  %v20861_v0 = vld [vmem:[#allocation85_spill] sm:$0xff] }
  0xbc   :  { %12655 = vmatpush3.bf16.msra.mxu0 %v15975_v6  ;;  %1658 = vmatprep.mubr.f32.mxu0 %v15646_v55  ;;  %20859 = vst [vmem:[#allocation84_spill] sm:$0xff] %v16011_v9  ;;  %v16018_v50 = vpack.c.bf16 %v20862_v7, %v20861_v0  ;;  %20864 = vst [vmem:[#allocation86_spill] sm:$0xff] %v16023_v29  ;;  %v20870_v6 = vld [vmem:[#allocation76_spill] sm:$0xff] }
  0xbd   :  { %12643 = vmatpush3.bf16.msra.mxu1 %v15960_v3  ;;  %12657 = vmatprep.subr.bf16.mxu0 %v15980_v46  ;;  %20855 = vst [vmem:[#allocation113_spill] sm:$0xff] %v16000_v43  ;;  %v20867_v46 = vld [vmem:[#allocation75_spill] sm:$0xff] }
  0xbe   :  { %12645 = vmatprep.subr.bf16.mxu1 %v15971_v57  ;;  %20863 = vst [vmem:[#allocation85_spill] sm:$0xff] %v16018_v50 }
  0xc0   :  { %12659 = vmatpush3.bf16.msra.mxu0 %v15991_v22  ;;  %v20866_v22 = vand.u32 4294901760, %v15646_v55  ;;  %v16045_v55 = vpack.c.bf16 %v15844_v2, %v15841_v13 }
  0xc1   :  { %12647 = vmatpush3.bf16.msra.mxu1 %v15983_v52  ;;  %12661 = vmatprep.subr.bf16.mxu0 %v15996_v35  ;;  %v20865_v35 = vld [vmem:[#allocation74_spill] sm:$0xff] }
  0xc2   :  { %12649 = vmatprep.subr.bf16.mxu1 %v15987_v49  ;;  %20872 = vst [vmem:[#allocation116_spill] sm:$0xff] %v16045_v55  ;;  %v20881_v49 = vand.u32 4294901760, %v15583_v41  ;;  %v20887_v41 = vand.u32 4294901760, %v15636_v14 }
  0xc4   :  { %12663 = vmatpush3.bf16.msra.mxu0 %v16006_v34  ;;  %v16033_v34 = vpack.c.bf16 %v15804_v16, %v15801_v60 }
  0xc5   :  { %12651 = vmatpush3.bf16.msra.mxu1 %v16000_v43  ;;  %12665 = vmatprep.subr.bf16.mxu0 %v16011_v9  ;;  %v16038_v9 = vpack.c.bf16 %v15814_v40, %v15806_v53  ;;  %v311_v43 = vpop.xlane.xlu0 %310 }
  0xc6   :  { %12685 = vmatprep.subr.bf16.mxu1 %v20860_v23  ;;  %20868 = vst [vmem:[#allocation114_spill] sm:$0xff] %v16033_v34 }
  0xc7   :  { %20869 = vst [vmem:[#allocation115_spill] sm:$0xff] %v16038_v9 }
  0xc8   :  { %1523 = vmatmul.mubr.f32.vlgmr.msra.gmra.mrb[6].mxu1 %v15846_v4  ;;  %12667 = vmatpush3.bf16.msra.mxu0 %v16018_v50 }
  0xc9   :  { %12687 = vmatpush3.bf16.msra.mxu1 %v20865_v35  ;;  %1765 = vmatprep.mubr.f32.mxu1 %v20866_v22  ;;  %v16050_v22 = vpack.c.bf16 %v15864_v12, %v15861_v17 }
  0xca   :  { %12689 = vmatprep.subr.bf16.mxu1 %v20867_v46  ;;  %12669 = vmatprep.subr.bf16.mxu0 %v16023_v29  ;;  %v16057_v29 = vpack.c.bf16 %v15887_v39, %v15885_v28 }
  0xcb   :  { %20873 = vst [vmem:[#allocation117_spill] sm:$0xff] %v16050_v22 }
  0xcc   :  { %12671 = vmatpush3.bf16.msra.mxu0 %v16033_v34  ;;  %20874 = vst [vmem:[#allocation118_spill] sm:$0xff] %v16057_v29  ;;  %v16062_v34 = vpack.c.bf16 %v15897_v56, %v15894_v54 }
  0xcd   :  { %12691 = vmatpush3.bf16.msra.mxu1 %v20870_v6  ;;  %12673 = vmatprep.subr.bf16.mxu0 %v16038_v9  ;;  %v16069_v9 = vpack.c.bf16 %v15914_v62, %v15912_v19 }
  0xce   :  { %12693 = vmatprep.subr.bf16.mxu1 %v20871_v18  ;;  %20875 = vst [vmem:[#allocation119_spill] sm:$0xff] %v16062_v34 }
  0xcf   :  { %20876 = vst [vmem:[#allocation120_spill] sm:$0xff] %v16069_v9 }
  0xd0   :  { %12675 = vmatpush3.bf16.msra.mxu0 %v16045_v55  ;;  %v20877_v55 = vand.u32 4294901760, %v15547_v51  ;;  %v14761_v51 = vld [vmem:[%s19833_s1] sm:$0xff] }
  0xd1   :  { %12695 = vmatpush3.bf16.msra.mxu1 %v15677_v47  ;;  %12677 = vmatprep.subr.bf16.mxu0 %v16050_v22  ;;  %v20878_v22 = vand.u32 4294901760, %v15549_v33  ;;  %v16090_v33 = vsub.f32 %v14761_v51, %v311_v43  ;;  %v20890_v43 = vand.u32 4294901760, %v15672_v42  ;;  %v20891_v51 = vand.u32 4294901760, %v15674_v21  ;;  %v118_v42 = vld [vmem:[#allocation2 + $0x200] sm:$0xff]  ;;  %v119_v21 = vld [vmem:[#allocation2 + $0x208] sm:$0xff] }
  0xd2   :  { %12697 = vmatprep.subr.bf16.mxu1 %v15689_v1 }
  0xd3   :  { %v16076_v50 = vpack.c.bf16 %v20878_v22, %v20877_v55  ;;  %20883 = vst [vmem:[#allocation123_spill] sm:$0xff] %v16090_v33  ;;  %v20884_v55 = vand.u32 4294901760, %v15593_v48  ;;  %v20885_v22 = vand.u32 4294901760, %v15614_v45  ;;  %v134_v48 = vld [vmem:[#allocation2 + $0x280] sm:$0xff]  ;;  %v135_v45 = vld [vmem:[#allocation2 + $0x288] sm:$0xff] }
  0xd4   :  { %12679 = vmatpush3.bf16.msra.mxu0 %v16057_v29  ;;  %v20880_v29 = vand.u32 4294901760, %v15581_v8  ;;  %v313_v8 = vmul.f32 1.442695, %v16090_v33  ;;  %v2095_v14 = vand.u32 4294901760, %v134_v48  ;;  %v2098_v33 = vand.u32 4294901760, %v135_v45 }
  0xd5   :  { %12699 = vmatpush3.bf16.msra.mxu1 %v15693_v37  ;;  %12681 = vmatprep.subr.bf16.mxu0 %v16062_v34  ;;  %20879 = vst [vmem:[#allocation121_spill] sm:$0xff] %v16076_v50  ;;  %v16097_v34 = vpack.c.bf16 %v20885_v22, %v20884_v55  ;;  %v16115_v55 = vpack.c.bf16 %v20891_v51, %v20890_v43  ;;  %v20893_v22 = vld [vmem:[#allocation73_spill] sm:$0xff]  ;;  %v20898_v43 = vand.u32 4294901760, %v20858_v38  ;;  %v20901_v38 = vand.u32 4294901760, %v20862_v7 }
  0xd6   :  { %12701 = vmatprep.subr.bf16.mxu1 %v15742_v59  ;;  %v16085_v52 = vpack.c.bf16 %v20881_v49, %v20880_v29  ;;  %v20888_v29 = vand.u32 4294901760, %v15643_v10  ;;  %14747 = vpow2.f32 %v313_v8  ;;  %v20894_v10 = vand.u32 4294901760, %v15682_v32  ;;  %v137_v32 = vld [vmem:[#allocation2 + $0x298] sm:$0xff] }
  0xd7   :  { %20886 = vst [vmem:[#allocation124_spill] sm:$0xff] %v16097_v34  ;;  %20892 = vst [vmem:[#allocation126_spill] sm:$0xff] %v16115_v55  ;;  %v20895_v8 = vand.u32 4294901760, %v20856_v15  ;;  %v16137_v15 = vsub.f32 %v135_v45, %v2098_v33  ;;  %v20906_v45 = vand.u32 4294901760, %v15801_v60  ;;  %v20915_v60 = vand.u32 4294901760, %v15844_v2 }
  0xd8   :  { %12683 = vmatpush3.bf16.msra.mxu0 %v16069_v9  ;;  %20882 = vst [vmem:[#allocation122_spill] sm:$0xff] %v16085_v52  ;;  %v16108_v49 = vpack.c.bf16 %v20888_v29, %v20887_v41  ;;  %v20897_v29 = vand.u32 4294901760, %v15719_v36  ;;  %v20900_v36 = vand.u32 4294901760, %v20861_v0  ;;  %v120_v0 = vld [vmem:[#allocation2 + $0x210] sm:$0xff]  ;;  %v121_v9 = vld [vmem:[#allocation2 + $0x218] sm:$0xff] }
  0xd9   :  { %12703 = vmatpush3.bf16.msra.mxu1 %v15760_v27  ;;  %12717 = vmatprep.subr.bf16.mxu0 %v16076_v50  ;;  %v16125_v41 = vpack.c.bf16 %v20895_v8, %v20894_v10  ;;  %v16135_v50 = vsub.f32 %v134_v48, %v2095_v14  ;;  %v20904_v48 = vand.u32 4294901760, %v15774_v24 }
  0xda   :  { %12705 = vmatprep.subr.bf16.mxu1 %v15779_v11  ;;  %20889 = vst [vmem:[#allocation125_spill] sm:$0xff] %v16108_v49  ;;  %v16132_v51 = vpack.c.bf16 %v20898_v43, %v20897_v29  ;;  %v16145_v10 = vpack.c.bf16 %v20901_v38, %v20900_v36  ;;  %v20903_v29 = vand.u32 4294901760, %v15767_v63  ;;  %v20910_v36 = vand.u32 4294901760, %v15882_v61 }
  0xdb   :  { %1661 = vmatmul.mubr.f32.vlgmr.msra.gmra.mrb[8].mxu0 %v15882_v61  ;;  %20896 = vst [vmem:[#allocation73_spill] sm:$0xff] %v16125_v41  ;;  %v20911_v38 = vand.u32 4294901760, %v15806_v53  ;;  %v20912_v63 = vand.u32 4294901760, %v15814_v40  ;;  %v2104_v61 = vand.u32 4294901760, %v137_v32  ;;  %v16184_v53 = vld [vmem:[#allocation2 + $0x2a8] sm:$0xff] }
  0xdc   :  { %12719 = vmatpush3.bf16.msra.mxu0 %v16085_v52  ;;  %1935 = vmatprep.mubr.f32.mxu0 %v20893_v22  ;;  %20899 = vst [vmem:[#allocation127_spill] sm:$0xff] %v16132_v51  ;;  %v2050_v52 = vand.u32 4294901760, %v119_v21  ;;  %20902 = vst [vmem:[#allocation128_spill] sm:$0xff] %v16145_v10  ;;  %v16152_v43 = vpack.c.bf16 %v20904_v48, %v20903_v29  ;;  %v20914_v29 = vand.u32 4294901760, %v15841_v13  ;;  %v20918_v48 = vand.u32 4294901760, %v15864_v12  ;;  %v50_v40 = vld [vmem:[%s19832_s0 + $0x28] sm:$0xff] }
  0xdd   :  { %12707 = vmatpush3.bf16.msra.mxu1 %v15812_v26  ;;  %12721 = vmatprep.subr.bf16.mxu0 %v16097_v34  ;;  %v136_v34 = vld [vmem:[#allocation2 + $0x290] sm:$0xff]  ;;  %v16168_v24 = vpack.c.bf16 %v20912_v63, %v20911_v38  ;;  %v20920_v38 = vand.u32 4294901760, %v15885_v28  ;;  %v20921_v63 = vand.u32 4294901760, %v15887_v39  ;;  %v2110_v28 = vand.u32 4294901760, %v16184_v53  ;;  %v122_v13 = vld [vmem:[#allocation2 + $0x220] sm:$0xff] }
  0xde   :  { %12709 = vmatprep.subr.bf16.mxu1 %v15822_v44  ;;  %v2101_v8 = vand.u32 4294901760, %v136_v34  ;;  %20905 = vst [vmem:[#allocation129_spill] sm:$0xff] %v16152_v43  ;;  %v16195_v12 = vsub.f32 %v119_v21, %v2050_v52  ;;  %v2056_v21 = vand.u32 4294901760, %v121_v9  ;;  %v16216_v39 = vand.u32 4294901760, %v50_v40 }
  0xdf   :  { %20913 = vst [vmem:[#allocation132_spill] sm:$0xff] %v16168_v24 }
  0xe0   :  { %12723 = vmatpush3.bf16.msra.mxu0 %v16108_v49  ;;  %v2047_v49 = vand.u32 4294901760, %v118_v42  ;;  %v16160_v7 = vpop.eup %14747  ;;  %20926 = vst [vmem:[#allocation137_spill] sm:$0xff] %v16216_v39  ;;  %v16260_v57 = vsub.f32 %v121_v9, %v2056_v21  ;;  %v20938_v9 = vand.u32 4294901760, %v16195_v12 }
  0xe1   :  { %12711 = vmatpush3.bf16.msra.mxu1 %v15851_v58  ;;  %12725 = vmatprep.subr.bf16.mxu0 %v16115_v55  ;;  %v20907_v55 = vand.u32 4294901760, %v15804_v16  ;;  %20909 = vst [vmem:[#allocation131_spill] sm:$0xff] %v16160_v7  ;;  %v16174_v16 = vpack.c.bf16 %v20915_v60, %v20914_v29  ;;  %v16203_v29 = vpack.c.bf16 %v20921_v63, %v20920_v38  ;;  %v20924_v60 = vand.u32 4294901760, %v15897_v56 }
  0xe2   :  { %12713 = vmatprep.subr.bf16.mxu1 %v15929_v20  ;;  %315 = vadd.xlane.f32.xlu1 %v16160_v7  ;;  %v20928_v56 = vand.u32 4294901760, %v15914_v62  ;;  %v16227_v63 = vpack.c.bf16 %v2050_v52, %v2047_v49  ;;  %v16242_v52 = vld [vmem:[#allocation2 + $0x2b8] sm:$0xff] }
  0xe3   :  { %20916 = vst [vmem:[#allocation133_spill] sm:$0xff] %v16174_v16  ;;  %20922 = vst [vmem:[#allocation135_spill] sm:$0xff] %v16203_v29  ;;  %v16258_v62 = vld [vmem:[#allocation2 + $0x238] sm:$0xff] }
  0xe4   :  { %12727 = vmatpush3.bf16.msra.mxu0 %v16125_v41  ;;  %v16158_v41 = vpack.c.bf16 %v20907_v55, %v20906_v45  ;;  %v20917_v55 = vand.u32 4294901760, %v15861_v17  ;;  %v16193_v17 = vsub.f32 %v118_v42, %v2047_v49  ;;  %v2053_v42 = vand.u32 4294901760, %v120_v0  ;;  %20931 = vst [vmem:[#allocation140_spill] sm:$0xff] %v16227_v63 }
  0xe5   :  { %12715 = vmatpush3.bf16.msra.mxu1 %v15931_v5  ;;  %12729 = vmatprep.subr.bf16.mxu0 %v16132_v51  ;;  %v123_v51 = vld [vmem:[#allocation2 + $0x228] sm:$0xff]  ;;  %v16246_v49 = vpack.c.bf16 %v2104_v61, %v2101_v8 }
  0xe6   :  { %12749 = vmatprep.subr.bf16.mxu1 %v20860_v23  ;;  %20908 = vst [vmem:[#allocation130_spill] sm:$0xff] %v16158_v41  ;;  %v16180_v45 = vpack.c.bf16 %v20918_v48, %v20917_v55  ;;  %v16211_v48 = vsub.f32 %v136_v34, %v2101_v8  ;;  %v16225_v34 = vpack.c.bf16 %v2098_v33, %v2095_v14  ;;  %v16240_v14 = vld [vmem:[#allocation2 + $0x2b0] sm:$0xff]  ;;  %v20937_v3 = vand.u32 4294901760, %v16193_v17 }
  0xe7   :  { %20934 = vst [vmem:[#allocation141_spill] sm:$0xff] %v16246_v49  ;;  %v16256_v33 = vld [vmem:[#allocation2 + $0x230] sm:$0xff]  ;;  %v16263_v8 = vsub.f32 %v50_v40, %v16216_v39  ;;  %v2169_v40 = vsub.f32 %v16195_v12, %v20938_v9 }
  0xe8   :  { %1769 = vmatmul.mubr.f32.vlgmr.msra.gmra.mrb[8].mxu1 %v20910_v36  ;;  %20919 = vst [vmem:[#allocation134_spill] sm:$0xff] %v16180_v45  ;;  %v16182_v36 = vld [vmem:[#allocation2 + $0x2a0] sm:$0xff]  ;;  %12731 = vmatpush3.bf16.msra.mxu0 %v16145_v10  ;;  %20930 = vst [vmem:[#allocation139_spill] sm:$0xff] %v16225_v34  ;;  %v20933_v10 = vand.u32 4294901760, %v16137_v15  ;;  %v2162_v25 = vsub.f32 %v16193_v17, %v20937_v3  ;;  %v2065_v30 = vand.u32 4294901760, %v16256_v33 }
  0xe9   :  { %12751 = vmatpush3.bf16.msra.mxu1 %v20865_v35  ;;  %2039 = vmatprep.mubr.f32.mxu1 %v20893_v22  ;;  %v20923_v22 = vand.u32 4294901760, %v15894_v54  ;;  %v2107_v2 = vand.u32 4294901760, %v16182_v36  ;;  %v20927_v54 = vand.u32 4294901760, %v15912_v19  ;;  %v16381_v35 = vld [vmem:[#allocation2 + $0x2e0] sm:$0xff] }
  0xea   :  { %12753 = vmatprep.subr.bf16.mxu1 %v20867_v46  ;;  %12733 = vmatprep.subr.bf16.mxu0 %v16152_v43  ;;  %v2281_v19 = vsub.f32 %v16137_v15, %v20933_v10  ;;  %v16252_v10 = vpack.c.bf16 %v2056_v21, %v2053_v42  ;;  %v20939_v21 = vand.u32 4294901760, %v16211_v48 }
  0xeb   :  { %v16209_v55 = vpack.c.bf16 %v20924_v60, %v20923_v22  ;;  %v16223_v38 = vpack.c.bf16 %v20928_v56, %v20927_v54  ;;  %v16229_v22 = vsub.f32 %v137_v32, %v2104_v61  ;;  %v20932_v60 = vand.u32 4294901760, %v16135_v50 }
  0xec   :  { %12735 = vmatpush3.bf16.msra.mxu0 %v16158_v41  ;;  %v2059_v32 = vand.u32 4294901760, %v122_v13  ;;  %v16249_v56 = vsub.f32 %v120_v0, %v2053_v42  ;;  %20935 = vst [vmem:[#allocation142_spill] sm:$0xff] %v16252_v10  ;;  %v2062_v61 = vand.u32 4294901760, %v123_v51  ;;  %v2113_v54 = vand.u32 4294901760, %v16240_v14 }
  0xed   :  { %20925 = vst [vmem:[#allocation136_spill] sm:$0xff] %v16209_v55  ;;  %20929 = vst [vmem:[#allocation138_spill] sm:$0xff] %v16223_v38  ;;  %12755 = vmatpush3.bf16.msra.mxu1 %v20870_v6  ;;  %v2274_v43 = vsub.f32 %v16135_v50, %v20932_v60  ;;  %12737 = vmatprep.subr.bf16.mxu0 %v16168_v24  ;;  %v16254_v60 = vpack.c.bf16 %v2110_v28, %v2107_v2  ;;  %v2116_v0 = vand.u32 4294901760, %v16242_v52 }
  0xee   :  { %12757 = vmatprep.subr.bf16.mxu1 %v20871_v18  ;;  %v2282_v41 = vand.u32 4294901760, %v2281_v19  ;;  %v2288_v24 = vsub.f32 %v16211_v48, %v20939_v21  ;;  %v16288_v9 = vsub.f32 %v16182_v36, %v2107_v2  ;;  %v16299_v18 = vsub.f32 %v122_v13, %v2059_v32 }
  0xef   :  { %20936 = vst [vmem:[#allocation143_spill] sm:$0xff] %v16254_v60  ;;  %v2275_v42 = vand.u32 4294901760, %v2274_v43  ;;  %v2068_v43 = vand.u32 4294901760, %v16258_v62  ;;  %v2163_v36 = vand.u32 4294901760, %v2162_v25  ;;  %v2170_v2 = vand.u32 4294901760, %v2169_v40 }
  0xf0   :  { %12739 = vmatpush3.bf16.msra.mxu0 %v16174_v16  ;;  %v16291_v16 = vsub.f32 %v16184_v53, %v2110_v28  ;;  %v16306_v53 = vpack.c.bf16 %v2116_v0, %v2113_v54  ;;  %v143_v28 = vld [vmem:[#allocation2 + $0x2c8] sm:$0xff]  ;;  %v2289_v21 = vand.u32 4294901760, %v2288_v24  ;;  %v2119_v13 = vand.u32 4294901760, %v16285_v31 }
  0xf1   :  { %12759 = vmatpush3.bf16.msra.mxu1 %v15677_v47  ;;  %12741 = vmatprep.subr.bf16.mxu0 %v16180_v45  ;;  %v20941_v47 = vand.u32 4294901760, %v16229_v22  ;;  %v16301_v45 = vsub.f32 %v123_v51, %v2062_v61  ;;  %v16304_v3 = vpack.c.bf16 %v2282_v41, %v2275_v42  ;;  %v16310_v6 = vpack.c.bf16 %v2068_v43, %v2065_v30  ;;  %v16316_v41 = vld [vmem:[#allocation2 + $0x240] sm:$0xff]  ;;  %v16324_v42 = vld [vmem:[#allocation2 + $0x248] sm:$0xff] }
  0xf2   :  { %12761 = vmatprep.subr.bf16.mxu1 %v15689_v1  ;;  %v16294_v1 = vpack.c.bf16 %v2062_v61, %v2059_v32  ;;  %20944 = vst [vmem:[#allocation147_spill] sm:$0xff] %v16306_v53  ;;  %v20947_v25 = vand.u32 4294901760, %v16260_v57  ;;  %v20948_v40 = vand.u32 4294901760, %v16263_v8  ;;  %v16332_v46 = vpack.c.bf16 %v2170_v2, %v2163_v36 }
  0xf3   :  { %v2295_v19 = vsub.f32 %v16229_v22, %v20941_v47  ;;  %20942 = vst [vmem:[#allocation145_spill] sm:$0xff] %v16301_v45  ;;  %20943 = vst [vmem:[#allocation146_spill] sm:$0xff] %v16304_v3  ;;  %v20946_v47 = vand.u32 4294901760, %v16249_v56  ;;  %v16336_v24 = vsub.f32 %v16240_v14, %v2113_v54  ;;  %v16339_v61 = vsub.f32 %v16242_v52, %v2116_v0 }
  0xf4   :  { %20940 = vst [vmem:[#allocation144_spill] sm:$0xff] %v16294_v1  ;;  %12743 = vmatpush3.bf16.msra.mxu0 %v16203_v29  ;;  %20945 = vst [vmem:[#allocation148_spill] sm:$0xff] %v16310_v6  ;;  %v2183_v32 = vsub.f32 %v16260_v57, %v20947_v25  ;;  %v2071_v25 = vand.u32 4294901760, %v16316_v41  ;;  %v16345_v36 = vsub.f32 %v16256_v33, %v2065_v30  ;;  %v20953_v52 = vand.u32 4294901760, %v16288_v9 }
  0xf5   :  { %12763 = vmatpush3.bf16.msra.mxu1 %v15693_v37  ;;  %v2176_v51 = vsub.f32 %v16249_v56, %v20946_v47  ;;  %12745 = vmatprep.subr.bf16.mxu0 %v16209_v55  ;;  %v2145_v47 = vsub.f32 %v16263_v8, %v20948_v40  ;;  %v2296_v29 = vand.u32 4294901760, %v2295_v19  ;;  %20949 = vst [vmem:[#allocation149_spill] sm:$0xff] %v16332_v46  ;;  %20950 = vst [vmem:[#allocation150_spill] sm:$0xff] %v16339_v61  ;;  %v144_v55 = vld [vmem:[#allocation2 + $0x2d0] sm:$0xff]  ;;  %v145_v37 = vld [vmem:[#allocation2 + $0x2d8] sm:$0xff] }
  0xf6   :  { %12765 = vmatprep.subr.bf16.mxu1 %v15742_v59  ;;  %v2122_v59 = vand.u32 4294901760, %v143_v28  ;;  %v2074_v40 = vand.u32 4294901760, %v16324_v42  ;;  %20951 = vst [vmem:[#allocation151_spill] sm:$0xff] %v16345_v36  ;;  %v16348_v2 = vsub.f32 %v16258_v62, %v2068_v43  ;;  %v2184_v14 = vand.u32 4294901760, %v2183_v32 }
  0xf7   :  { %v2177_v19 = vand.u32 4294901760, %v2176_v51  ;;  %v2302_v54 = vsub.f32 %v16288_v9, %v20953_v52  ;;  %v20954_v0 = vand.u32 4294901760, %v16291_v16  ;;  %v20957_v30 = vand.u32 4294901760, %v16299_v18 }
  0xf8   :  { %12747 = vmatpush3.bf16.msra.mxu0 %v16223_v38  ;;  %20952 = vst [vmem:[#allocation152_spill] sm:$0xff] %v16348_v2  ;;  %v2146_v38 = vand.u32 4294901760, %v2145_v47  ;;  %v20958_v33 = vand.u32 4294901760, %v16301_v45  ;;  %v2125_v32 = vand.u32 4294901760, %v144_v55  ;;  %v2128_v52 = vand.u32 4294901760, %v145_v37 }
  0xf9   :  { %12767 = vmatpush3.bf16.msra.mxu1 %v15760_v27  ;;  %12781 = vmatprep.subr.bf16.mxu0 %v16225_v34  ;;  %v2309_v51 = vsub.f32 %v16291_v16, %v20954_v0  ;;  %v16359_v27 = vpack.c.bf16 %v2122_v59, %v2119_v13  ;;  %v2190_v62 = vsub.f32 %v16299_v18, %v20957_v30  ;;  %v16373_v0 = vld [vmem:[#allocation2 + $0x258] sm:$0xff]  ;;  %v2303_v23 = vand.u32 4294901760, %v2302_v54 }
  0xfa   :  { %12769 = vmatprep.subr.bf16.mxu1 %v15779_v11  ;;  %v16357_v11 = vpack.c.bf16 %v2296_v29, %v2289_v21  ;;  %v2197_v43 = vsub.f32 %v16301_v45, %v20958_v33  ;;  %v16371_v21 = vld [vmem:[#allocation2 + $0x250] sm:$0xff]  ;;  %v16377_v30 = vpack.c.bf16 %v2074_v40, %v2071_v25  ;;  %v16384_v47 = vsub.f32 %v16285_v31, %v2119_v13 }
  0xfb   :  { %20956 = vst [vmem:[#allocation154_spill] sm:$0xff] %v16359_v27  ;;  %1937 = vmatmul.mubr.f32.vlgmr.msra.gmra.mrb[10].mxu0 %v15846_v4  ;;  %v16387_v29 = vpack.c.bf16 %v2184_v14, %v2177_v19  ;;  %v2310_v7 = vand.u32 4294901760, %v2309_v51  ;;  %v2191_v34 = vand.u32 4294901760, %v2190_v62  ;;  %v2080_v45 = vand.u32 4294901760, %v16373_v0 }
  0xfc   :  { %20955 = vst [vmem:[#allocation153_spill] sm:$0xff] %v16357_v11  ;;  %12783 = vmatpush3.bf16.msra.mxu0 %v16227_v63  ;;  %20959 = vst [vmem:[#allocation155_spill] sm:$0xff] %v16377_v30  ;;  %v16391_v63 = vsub.f32 %v143_v28, %v2122_v59  ;;  %2147 = vmatprep.mubr.f32.mxu0 %v2146_v38  ;;  %v2198_v33 = vand.u32 4294901760, %v2197_v43  ;;  %v16396_v31 = vpack.c.bf16 %v2128_v52, %v2125_v32 }
  0xfd   :  { %12771 = vmatpush3.bf16.msra.mxu1 %v15812_v26  ;;  %12785 = vmatprep.subr.bf16.mxu0 %v16246_v49  ;;  %20960 = vst [vmem:[#allocation156_spill] sm:$0xff] %v16387_v29  ;;  %v2077_v26 = vand.u32 4294901760, %v16371_v21  ;;  %v20962_v13 = vand.u32 4294901760, %v16336_v24  ;;  %v20963_v14 = vand.u32 4294901760, %v16339_v61  ;;  %v2131_v38 = vand.u32 4294901760, %v16381_v35 }
  0xfe   :  { %12773 = vmatprep.subr.bf16.mxu1 %v15822_v44  ;;  %v16389_v44 = vld [vmem:[#allocation2 + $0x2e8] sm:$0xff]  ;;  %20961 = vst [vmem:[#allocation157_spill] sm:$0xff] %v16396_v31  ;;  %v20964_v28 = vand.u32 4294901760, %v16345_v36  ;;  %v20965_v51 = vand.u32 4294901760, %v16348_v2  ;;  %v16421_v49 = vsub.f32 %v16324_v42, %v2074_v40  ;;  %v16437_v42 = vld [vmem:[%s19832_s0 + $0x20] sm:$0xff]  ;;  %v16448_v40 = vld [vmem:[#allocation2 + $0x2f8] sm:$0xff] }
  0xff   :  { %v2316_v19 = vsub.f32 %v16336_v24, %v20962_v13  ;;  %v2323_v59 = vsub.f32 %v16339_v61, %v20963_v14  ;;  %v2134_v43 = vand.u32 4294901760, %v16389_v44  ;;  %v131_v14 = vld [vmem:[#allocation2 + $0x268] sm:$0xff]  ;;  %v16431_v13 = vsub.f32 %v145_v37, %v2128_v52  ;;  %20969 = vst [vmem:[#allocation161_spill] sm:$0xff] %v16437_v42 }
 0x100   :  { %12787 = vmatpush3.bf16.msra.mxu0 %v16252_v10  ;;  %v2204_v54 = vsub.f32 %v16345_v36, %v20964_v28  ;;  %v2211_v62 = vsub.f32 %v16348_v2, %v20965_v51  ;;  %v16418_v10 = vsub.f32 %v16316_v41, %v2071_v25  ;;  %v16423_v28 = vsub.f32 %v144_v55, %v2125_v32  ;;  %v16446_v25 = vld [vmem:[#allocation2 + $0x2f0] sm:$0xff] }
 0x101   :  { %12775 = vmatpush3.bf16.msra.mxu1 %v15851_v58  ;;  %v130_v58 = vld [vmem:[#allocation2 + $0x260] sm:$0xff]  ;;  %12789 = vmatprep.subr.bf16.mxu0 %v16254_v60  ;;  %v16425_v36 = vpack.c.bf16 %v2310_v7, %v2303_v23  ;;  %v16427_v51 = vpack.c.bf16 %v2198_v33, %v2191_v34  ;;  %v16429_v2 = vpack.c.bf16 %v2080_v45, %v2077_v26  ;;  %v2317_v60 = vand.u32 4294901760, %v2316_v19 }
 0x102   :  { %12777 = vmatprep.subr.bf16.mxu1 %v15929_v20  ;;  %v2324_v20 = vand.u32 4294901760, %v2323_v59  ;;  %v2083_v61 = vand.u32 4294901760, %v130_v58  ;;  %v2086_v41 = vand.u32 4294901760, %v131_v14  ;;  %v2205_v23 = vand.u32 4294901760, %v2204_v54 }
 0x103   :  { %20966 = vst [vmem:[#allocation158_spill] sm:$0xff] %v16425_v36  ;;  %20967 = vst [vmem:[#allocation159_spill] sm:$0xff] %v16427_v51  ;;  %v2212_v7 = vand.u32 4294901760, %v2211_v62  ;;  %v16441_v55 = vpack.c.bf16 %v2134_v43, %v2131_v38  ;;  %v20971_v37 = vand.u32 4294901760, %v16384_v47  ;;  %v20972_v32 = vand.u32 4294901760, %v16391_v63 }
 0x104   :  { %20968 = vst [vmem:[#allocation160_spill] sm:$0xff] %v16429_v2  ;;  %12791 = vmatpush3.bf16.msra.mxu0 %v16294_v1  ;;  %v20082_v33 = vand.u32 4294901760, %v16418_v10  ;;  %v16460_v62 = vsub.f32 %v16371_v21, %v2077_v26  ;;  %v16471_v19 = vpack.c.bf16 %v2086_v41, %v2083_v61  ;;  %v2137_v59 = vand.u32 4294901760, %v16446_v25  ;;  %v132_v21 = vld [vmem:[#allocation2 + $0x270] sm:$0xff] }
 0x105   :  { %12779 = vmatpush3.bf16.msra.mxu1 %v15931_v5  ;;  %20970 = vst [vmem:[#allocation162_spill] sm:$0xff] %v16441_v55  ;;  %v2330_v34 = vsub.f32 %v16384_v47, %v20971_v37  ;;  %12793 = vmatprep.subr.bf16.mxu0 %v16306_v53  ;;  %v2337_v52 = vsub.f32 %v16391_v63, %v20972_v32 }
 0x106   :  { %12813 = vmatprep.subr.bf16.mxu1 %v16304_v3  ;;  %v16463_v37 = vsub.f32 %v16373_v0, %v2080_v45  ;;  %v16466_v3 = vand.u32 4294901760, %v16437_v42  ;;  %v16469_v32 = vpack.c.bf16 %v2324_v20, %v2317_v60  ;;  %20974 = vst [vmem:[#allocation164_spill] sm:$0xff] %v16471_v19  ;;  %v16478_v26 = vpack.c.bf16 %v2212_v7, %v2205_v23  ;;  %v133_v0 = vld [vmem:[#allocation2 + $0x278] sm:$0xff] }
 0x107   :  { %v2331_v45 = vand.u32 4294901760, %v2330_v34  ;;  %v16481_v20 = vsub.f32 %v16381_v35, %v2131_v38  ;;  %v16484_v60 = vsub.f32 %v16389_v44, %v2134_v43  ;;  %v2338_v54 = vand.u32 4294901760, %v2337_v52 }
 0x108   :  { %2041 = vmatmul.mubr.f32.vlgmr.msra.gmra.mrb[10].mxu1 %v15846_v4  ;;  %20973 = vst [vmem:[#allocation163_spill] sm:$0xff] %v16469_v32  ;;  %v2140_v4 = vand.u32 4294901760, %v16448_v40  ;;  %12795 = vmatpush3.bf16.msra.mxu0 %v16310_v6  ;;  %20975 = vst [vmem:[#allocation165_spill] sm:$0xff] %v16478_v26  ;;  %v20977_v7 = vand.u32 4294901760, %v16423_v28  ;;  %v20978_v35 = vand.u32 4294901760, %v16431_v13  ;;  %v16503_v52 = vsub.f32 %v16437_v42, %v16466_v3 }
 0x109   :  { %12815 = vmatpush3.bf16.msra.mxu1 %v16332_v46  ;;  %2383 = vmatprep.mubr.f32.mxu1 %v16216_v39  ;;  %v20976_v46 = vand.u32 4294901760, %v16421_v49  ;;  %v16506_v5 = vsub.f32 %v130_v58, %v2083_v61  ;;  %v16508_v39 = vsub.f32 %v131_v14, %v2086_v41  ;;  %v16515_v43 = vsub.f32 %v16446_v25, %v2137_v59 }
 0x10a   :  { %12817 = vmatprep.subr.bf16.mxu1 %v16357_v11  ;;  %12797 = vmatprep.subr.bf16.mxu0 %v16359_v27  ;;  %v2218_v11 = vsub.f32 %v16418_v10, %v20082_v33  ;;  %v2344_v34 = vsub.f32 %v16423_v28, %v20977_v7  ;;  %v2351_v44 = vsub.f32 %v16431_v13, %v20978_v35  ;;  %v2089_v33 = vand.u32 4294901760, %v132_v21 }
 0x10b   :  { %v2225_v23 = vsub.f32 %v16421_v49, %v20976_v46  ;;  %v2092_v46 = vand.u32 4294901760, %v133_v0  ;;  %v16518_v38 = vsub.f32 %v16448_v40, %v2140_v4  ;;  %v16521_v58 = vpack.c.bf16 %v2338_v54, %v2331_v45 }
 0x10c   :  { %12799 = vmatpush3.bf16.msra.mxu0 %v16377_v30  ;;  %v2219_v61 = vand.u32 4294901760, %v2218_v11  ;;  %v2345_v41 = vand.u32 4294901760, %v2344_v34  ;;  %v20981_v35 = vand.u32 4294901760, %v16463_v37  ;;  %v16533_v11 = vsub.f32 %v132_v21, %v2089_v33 }
 0x10d   :  { %12819 = vmatpush3.bf16.msra.mxu1 %v16387_v29  ;;  %12801 = vmatprep.subr.bf16.mxu0 %v16396_v31  ;;  %20979 = vst [vmem:[#allocation166_spill] sm:$0xff] %v16521_v58  ;;  %v2226_v14 = vand.u32 4294901760, %v2225_v23  ;;  %v20980_v29 = vand.u32 4294901760, %v16460_v62  ;;  %v16535_v45 = vsub.f32 %v133_v0, %v2092_v46  ;;  %v20983_v34 = vand.u32 4294901760, %v16484_v60 }
 0x10e   :  { %12821 = vmatprep.subr.bf16.mxu1 %v16425_v36  ;;  %v2352_v36 = vand.u32 4294901760, %v2351_v44  ;;  %v2239_v25 = vsub.f32 %v16463_v37, %v20981_v35  ;;  %v16550_v0 = vpack.c.bf16 %v2140_v4, %v2137_v59  ;;  %v16552_v40 = vpack.c.bf16 %v2092_v46, %v2089_v33 }
 0x10f   :  { %v2232_v7 = vsub.f32 %v16460_v62, %v20980_v29  ;;  %v20982_v29 = vand.u32 4294901760, %v16481_v20  ;;  %v2365_v44 = vsub.f32 %v16484_v60, %v20983_v34  ;;  %v16548_v21 = vpack.c.bf16 %v2226_v14, %v2219_v61 }
 0x110   :  { %12803 = vmatpush3.bf16.msra.mxu0 %v16429_v2  ;;  %20985 = vst [vmem:[#allocation168_spill] sm:$0xff] %v16550_v0  ;;  %20986 = vst [vmem:[#allocation169_spill] sm:$0xff] %v16552_v40  ;;  %v16554_v42 = vpack.c.bf16 %v2352_v36, %v2345_v41  ;;  %v20989_v54 = vand.u32 4294901760, %v16506_v5  ;;  %v20990_v61 = vand.u32 4294901760, %v16508_v39  ;;  %v20094_v33 = vand.u32 4294901760, %v16533_v11 }
 0x111   :  { %12823 = vmatpush3.bf16.msra.mxu1 %v16427_v51  ;;  %v2358_v23 = vsub.f32 %v16481_v20, %v20982_v29  ;;  %12805 = vmatprep.subr.bf16.mxu0 %v16441_v55  ;;  %20984 = vst [vmem:[#allocation167_spill] sm:$0xff] %v16548_v21  ;;  %v2240_v29 = vand.u32 4294901760, %v2239_v25  ;;  %v20988_v51 = vand.u32 4294901760, %v16503_v52  ;;  %v20093_v36 = vand.u32 4294901760, %v16535_v45 }
 0x112   :  { %12825 = vmatprep.subr.bf16.mxu1 %v16469_v32  ;;  %20987 = vst [vmem:[#allocation170_spill] sm:$0xff] %v16554_v42  ;;  %v2233_v32 = vand.u32 4294901760, %v2232_v7  ;;  %v2246_v35 = vsub.f32 %v16506_v5, %v20989_v54  ;;  %v2253_v59 = vsub.f32 %v16508_v39, %v20990_v61  ;;  %v20991_v46 = vand.u32 4294901760, %v16515_v43 }
 0x113   :  { %v2151_v34 = vsub.f32 %v16503_v52, %v20988_v51  ;;  %v2359_v4 = vand.u32 4294901760, %v2358_v23  ;;  %v2366_v51 = vand.u32 4294901760, %v2365_v44  ;;  %v20992_v14 = vand.u32 4294901760, %v16518_v38 }
 0x114   :  { %12807 = vmatpush3.bf16.msra.mxu0 %v16471_v19  ;;  %v2372_v7 = vsub.f32 %v16515_v43, %v20991_v46  ;;  %v16579_v25 = vpack.c.bf16 %v16137_v15, %v16135_v50  ;;  %v16581_v54 = vpack.c.bf16 %v2240_v29, %v2233_v32  ;;  %v2247_v23 = vand.u32 4294901760, %v2246_v35 }
 0x115   :  { %12827 = vmatpush3.bf16.msra.mxu1 %v16478_v26  ;;  %v2379_v41 = vsub.f32 %v16518_v38, %v20992_v14  ;;  %12809 = vmatprep.subr.bf16.mxu0 %v16550_v0  ;;  %v2152_v61 = vand.u32 4294901760, %v2151_v34  ;;  %v2254_v44 = vand.u32 4294901760, %v2253_v59  ;;  %v2260_v46 = vsub.f32 %v16533_v11, %v20094_v33  ;;  %v172_v26 = vld [vmem:[#allocation2 + $0x3b0] sm:$0xff] }
 0x116   :  { %12829 = vmatprep.subr.bf16.mxu1 %v16521_v58  ;;  %20993 = vst [vmem:[#allocation171_spill] sm:$0xff] %v16579_v25  ;;  %20994 = vst [vmem:[#allocation172_spill] sm:$0xff] %v16581_v54  ;;  %v2267_v14 = vsub.f32 %v16535_v45, %v20093_v36  ;;  %v16592_v58 = vpack.c.bf16 %v2366_v51, %v2359_v4  ;;  %v16596_v32 = vpack.c.bf16 %v16195_v12, %v16193_v17 }
 0x117   :  { %v2373_v35 = vand.u32 4294901760, %v2372_v7  ;;  %v2380_v29 = vand.u32 4294901760, %v2379_v41  ;;  %v16601_v34 = vpack.c.bf16 %v16229_v22, %v16211_v48  ;;  %v16604_v59 = vpack.c.bf16 %v2254_v44, %v2247_v23  ;;  %v21003_v23 = vld [vmem:[#allocation145_spill] sm:$0xff] }
 0x118   :  { %12811 = vmatpush3.bf16.msra.mxu0 %v16552_v40  ;;  %20995 = vst [vmem:[#allocation173_spill] sm:$0xff] %v16592_v58  ;;  %20996 = vst [vmem:[#allocation174_spill] sm:$0xff] %v16596_v32  ;;  %v2261_v36 = vand.u32 4294901760, %v2260_v46  ;;  %v2268_v4 = vand.u32 4294901760, %v2267_v14  ;;  %v16612_v7 = vpack.c.bf16 %v16260_v57, %v16249_v56  ;;  %v16617_v41 = vpack.c.bf16 %v16291_v16, %v16288_v9  ;;  %v21005_v46 = vld [vmem:[#allocation150_spill] sm:$0xff] }
 0x119   :  { %12831 = vmatpush3.bf16.msra.mxu1 %v16548_v21  ;;  %12845 = vmatprep.subr.bf16.mxu0 %v16579_v25  ;;  %20997 = vst [vmem:[#allocation175_spill] sm:$0xff] %v16601_v34  ;;  %20998 = vst [vmem:[#allocation176_spill] sm:$0xff] %v16604_v59  ;;  %v16608_v51 = vpack.c.bf16 %v2380_v29, %v2373_v35  ;;  %v16627_v44 = vpack.c.bf16 %v21003_v23, %v16299_v18  ;;  %v21007_v35 = vld [vmem:[#allocation139_spill] sm:$0xff]  ;;  %v21009_v29 = vld [vmem:[#allocation152_spill] sm:$0xff] }
 0x11a   :  { %12833 = vmatprep.subr.bf16.mxu1 %v16554_v42  ;;  %21000 = vst [vmem:[#allocation178_spill] sm:$0xff] %v16612_v7  ;;  %21001 = vst [vmem:[#allocation179_spill] sm:$0xff] %v16617_v41  ;;  %v16632_v14 = vpack.c.bf16 %v21005_v46, %v16336_v24  ;;  %v16644_v33 = vpack.c.bf16 %v16391_v63, %v16384_v47  ;;  %v21018_v25 = vld [vmem:[#allocation143_spill] sm:$0xff]  ;;  %v16720_v42 = vld [vmem:[#allocation2 + $0x300] sm:$0xff] }
 0x11b   :  { %2153 = vmatmul.mubr.f32.vlgmr.msra.gmra.mrb[12].mxu0 %v2152_v61  ;;  %20999 = vst [vmem:[#allocation177_spill] sm:$0xff] %v16608_v51  ;;  %v16621_v61 = vpack.c.bf16 %v2268_v4, %v2261_v36  ;;  %21004 = vst [vmem:[#allocation145_spill] sm:$0xff] %v16627_v44  ;;  %v21008_v36 = vld [vmem:[#allocation151_spill] sm:$0xff] }
 0x11c   :  { %12847 = vmatpush3.bf16.msra.mxu0 %v16596_v32  ;;  %2520 = vmatprep.mubr.f32.mxu0 %v16263_v8  ;;  %21006 = vst [vmem:[#allocation150_spill] sm:$0xff] %v16632_v14  ;;  %v16639_v4 = vpack.c.bf16 %v21009_v29, %v21008_v36  ;;  %21011 = vst [vmem:[#allocation152_spill] sm:$0xff] %v16644_v33  ;;  %v21017_v32 = vld [vmem:[#allocation142_spill] sm:$0xff] }
 0x11d   :  { %12835 = vmatpush3.bf16.msra.mxu1 %v16581_v54  ;;  %12849 = vmatprep.subr.bf16.mxu0 %v16601_v34  ;;  %21002 = vst [vmem:[#allocation180_spill] sm:$0xff] %v16621_v61  ;;  %v21014_v34 = vld [vmem:[#allocation141_spill] sm:$0xff] }
 0x11e   :  { %12837 = vmatprep.subr.bf16.mxu1 %v16592_v58  ;;  %21010 = vst [vmem:[#allocation151_spill] sm:$0xff] %v16639_v4 }
 0x120   :  { %12851 = vmatpush3.bf16.msra.mxu0 %v16612_v7  ;;  %v21013_v7 = vand.u32 4294901760, %v16263_v8  ;;  %v16666_v8 = vpack.c.bf16 %v16463_v37, %v16460_v62 }
 0x121   :  { %12839 = vmatpush3.bf16.msra.mxu1 %v16604_v59  ;;  %12853 = vmatprep.subr.bf16.mxu0 %v16617_v41  ;;  %v21012_v41 = vld [vmem:[#allocation140_spill] sm:$0xff]  ;;  %v16702_v59 = vld [vmem:[#allocation2 + $0x388] sm:$0xff] }
 0x122   :  { %12841 = vmatprep.subr.bf16.mxu1 %v16608_v51  ;;  %21019 = vst [vmem:[#allocation183_spill] sm:$0xff] %v16666_v8  ;;  %v16699_v51 = vld [vmem:[#allocation2 + $0x380] sm:$0xff] }
 0x124   :  { %12855 = vmatpush3.bf16.msra.mxu0 %v16627_v44  ;;  %v16654_v44 = vpack.c.bf16 %v16421_v49, %v16418_v10 }
 0x125   :  { %12843 = vmatpush3.bf16.msra.mxu1 %v16621_v61  ;;  %12857 = vmatprep.subr.bf16.mxu0 %v16632_v14  ;;  %v16659_v14 = vpack.c.bf16 %v16431_v13, %v16423_v28 }
 0x126   :  { %12877 = vmatprep.subr.bf16.mxu1 %v21007_v35  ;;  %21015 = vst [vmem:[#allocation181_spill] sm:$0xff] %v16654_v44 }
 0x127   :  { %21016 = vst [vmem:[#allocation182_spill] sm:$0xff] %v16659_v14 }
 0x128   :  { %2385 = vmatmul.mubr.f32.vlgmr.msra.gmra.mrb[12].mxu1 %v16466_v3  ;;  %12859 = vmatpush3.bf16.msra.mxu0 %v16639_v4 }
 0x129   :  { %12879 = vmatpush3.bf16.msra.mxu1 %v21012_v41  ;;  %2627 = vmatprep.mubr.f32.mxu1 %v21013_v7  ;;  %v16671_v7 = vpack.c.bf16 %v16484_v60, %v16481_v20 }
 0x12a   :  { %12881 = vmatprep.subr.bf16.mxu1 %v21014_v34  ;;  %12861 = vmatprep.subr.bf16.mxu0 %v16644_v33 }
 0x12b   :  { %21020 = vst [vmem:[#allocation184_spill] sm:$0xff] %v16671_v7 }
 0x12c   :  { %12863 = vmatpush3.bf16.msra.mxu0 %v16654_v44  ;;  %v16678_v44 = vpack.c.bf16 %v16508_v39, %v16506_v5 }
 0x12d   :  { %12883 = vmatpush3.bf16.msra.mxu1 %v21017_v32  ;;  %12865 = vmatprep.subr.bf16.mxu0 %v16659_v14  ;;  %v16683_v14 = vpack.c.bf16 %v16518_v38, %v16515_v43 }
 0x12e   :  { %12885 = vmatprep.subr.bf16.mxu1 %v21018_v25  ;;  %v10748_v33 = vpop.f32.mrb[0].mxu0  ;;  %21021 = vst [vmem:[#allocation185_spill] sm:$0xff] %v16678_v44 }
 0x12f   :  { %v10749_v4 = vpop.f32.mrb[1].mxu0  ;;  %21022 = vst [vmem:[#allocation186_spill] sm:$0xff] %v16683_v14 }
 0x130   :  { %12867 = vmatpush3.bf16.msra.mxu0 %v16666_v8  ;;  %v10750_v61 = vadd.f32 %v10749_v4, %v10748_v33  ;;  %v16690_v8 = vpack.c.bf16 %v16535_v45, %v16533_v11  ;;  %v21024_v33 = vand.u32 4294901760, %v16135_v50  ;;  %v21025_v4 = vand.u32 4294901760, %v16137_v15 }
 0x131   :  { %12887 = vmatpush3.bf16.msra.mxu1 %v16294_v1  ;;  %12869 = vmatprep.subr.bf16.mxu0 %v16671_v7  ;;  %v21030_v15 = vand.u32 4294901760, %v16211_v48  ;;  %v21033_v48 = vand.u32 4294901760, %v16249_v56 }
 0x132   :  { %12889 = vmatprep.subr.bf16.mxu1 %v16306_v53  ;;  %21023 = vst [vmem:[#allocation187_spill] sm:$0xff] %v16690_v8  ;;  %v16697_v7 = vpack.c.bf16 %v21025_v4, %v21024_v33  ;;  %v21031_v33 = vand.u32 4294901760, %v16229_v22  ;;  %v21034_v22 = vand.u32 4294901760, %v16260_v57  ;;  %v21040_v57 = vand.u32 4294901760, %v16699_v51 }
 0x134   :  { %12871 = vmatpush3.bf16.msra.mxu0 %v16678_v44  ;;  %21026 = vst [vmem:[#allocation188_spill] sm:$0xff] %v16697_v7  ;;  %v21027_v44 = vand.u32 4294901760, %v16193_v17  ;;  %v16717_v4 = vpack.c.bf16 %v21031_v33, %v21030_v15  ;;  %v20118_v15 = vand.u32 4294901760, %v16720_v42  ;;  %v16750_v56 = vsub.f32 %v16699_v51, %v21040_v57 }
 0x135   :  { %12891 = vmatpush3.bf16.msra.mxu1 %v16310_v6  ;;  %12873 = vmatprep.subr.bf16.mxu0 %v16683_v14  ;;  %v21028_v14 = vand.u32 4294901760, %v16195_v12 }
 0x136   :  { %12893 = vmatprep.subr.bf16.mxu1 %v16359_v27  ;;  %21032 = vst [vmem:[#allocation190_spill] sm:$0xff] %v16717_v4 }
 0x137   :  { %v16710_v58 = vpack.c.bf16 %v21028_v14, %v21027_v44  ;;  %v16733_v14 = vpack.c.bf16 %v21034_v22, %v21033_v48  ;;  %v21041_v48 = vand.u32 4294901760, %v16702_v59 }
 0x138   :  { %12875 = vmatpush3.bf16.msra.mxu0 %v16690_v8  ;;  %v16722_v8 = vld [vmem:[#allocation2 + $0x308] sm:$0xff] }
 0x139   :  { %12895 = vmatpush3.bf16.msra.mxu1 %v16377_v30  ;;  %21029 = vst [vmem:[#allocation189_spill] sm:$0xff] %v16710_v58  ;;  %12909 = vmatprep.subr.bf16.mxu0 %v16697_v7  ;;  %21035 = vst [vmem:[#allocation191_spill] sm:$0xff] %v16733_v14  ;;  %v20120_v33 = vand.u32 4294901760, %v16722_v8  ;;  %v21058_v7 = vand.u32 4294901760, %v16503_v52 }
 0x13a   :  { %12897 = vmatprep.subr.bf16.mxu1 %v16396_v31 }
 0x13b   :  { %v10783_v50 = vpop.f32.mrb[0].mxu1  ;;  %2523 = vmatmul.mubr.f32.vlgmr.msra.gmra.mrb[14].mxu0 %v16503_v52  ;;  %v16778_v57 = vsub.f32 %v16722_v8, %v20120_v33  ;;  %v14762_v33 = vld [vmem:[%s19832_s0 + $0x8] sm:$0xff] }
 0x13c   :  { %v10784_v17 = vpop.f32.mrb[1].mxu1  ;;  %12911 = vmatpush3.bf16.msra.mxu0 %v16710_v58  ;;  %v21039_v58 = vld [vmem:[#allocation137_spill] sm:$0xff] }
 0x13d   :  { %v10785_v44 = vadd.f32 %v10784_v17, %v10783_v50  ;;  %12899 = vmatpush3.bf16.msra.mxu1 %v16429_v2  ;;  %12913 = vmatprep.subr.bf16.mxu0 %v16717_v4  ;;  %v21036_v50 = vand.u32 4294901760, %v16288_v9  ;;  %v21037_v17 = vand.u32 4294901760, %v16291_v16  ;;  %v21042_v16 = vand.u32 4294901760, %v16299_v18 }
 0x13e   :  { %12901 = vmatprep.subr.bf16.mxu1 %v16441_v55  ;;  %2797 = vmatprep.mubr.f32.mxu0 %v21039_v58  ;;  %v21043_v9 = vand.u32 4294901760, %v21003_v23  ;;  %v21045_v18 = vand.u32 4294901760, %v16336_v24  ;;  %v21046_v23 = vand.u32 4294901760, %v21005_v46  ;;  %v21048_v24 = vand.u32 4294901760, %v21008_v36 }
 0x13f   :  { %v16737_v12 = vadd.f32 %v10785_v44, %v10750_v61  ;;  %v16744_v54 = vpack.c.bf16 %v21037_v17, %v21036_v50  ;;  %v16755_v61 = vsub.f32 %v16702_v59, %v21041_v48  ;;  %v16758_v44 = vld [vmem:[#allocation2 + $0x390] sm:$0xff]  ;;  %v16768_v50 = vld [vmem:[#allocation2 + $0x398] sm:$0xff]  ;;  %v16773_v17 = vsub.f32 %v16720_v42, %v20118_v15 }
 0x140   :  { %12915 = vmatpush3.bf16.msra.mxu0 %v16733_v14  ;;  %v16766_v22 = vpack.c.bf16 %v21043_v9, %v21042_v16  ;;  %v16785_v48 = vpack.c.bf16 %v21046_v23, %v21045_v18  ;;  %v2966_v14 = vand.u32 4294901760, %v16768_v50  ;;  %v21049_v46 = vand.u32 4294901760, %v21009_v29  ;;  %v152_v23 = vld [vmem:[#allocation2 + $0x310] sm:$0xff]  ;;  %v153_v15 = vld [vmem:[#allocation2 + $0x318] sm:$0xff] }
 0x141   :  { %21038 = vst [vmem:[#allocation192_spill] sm:$0xff] %v16744_v54  ;;  %12903 = vmatpush3.bf16.msra.mxu1 %v16471_v19  ;;  %12917 = vmatprep.subr.bf16.mxu0 %v16744_v54  ;;  %v16795_v54 = vmul.f32 %v14762_v33, %v14762_v33  ;;  %v14763_v33 = vld [vmem:[%s19832_s0] sm:$0xff]  ;;  %v21052_v36 = vand.u32 4294901760, %v16391_v63  ;;  %v21057_v4 = vand.u32 4294901760, %v16750_v56  ;;  %v21060_v63 = vand.u32 4294901760, %v16431_v13  ;;  %v16855_v13 = vld [vmem:[%s19832_s0 + $0x38] sm:$0xff] }
 0x142   :  { %12905 = vmatprep.subr.bf16.mxu1 %v16550_v0  ;;  %21044 = vst [vmem:[#allocation137_spill] sm:$0xff] %v16766_v22  ;;  %21047 = vst [vmem:[#allocation193_spill] sm:$0xff] %v16785_v48  ;;  %v16803_v18 = vpack.c.bf16 %v21049_v46, %v21048_v24  ;;  %v16810_v16 = vmul.f32 %v14763_v33, %v14763_v33  ;;  %v21054_v24 = vand.u32 4294901760, %v16418_v10  ;;  %v21055_v46 = vand.u32 4294901760, %v16421_v49 }
 0x143   :  { %v3136_v33 = vsub.f32 %v16750_v56, %v21057_v4  ;;  %v21062_v10 = vand.u32 4294901760, %v16460_v62  ;;  %v21063_v49 = vand.u32 4294901760, %v16463_v37  ;;  %v21065_v4 = vand.u32 4294901760, %v16755_v61  ;;  %21067 = vst [vmem:[#allocation199_spill] sm:$0xff] %v16855_v13 }
 0x144   :  { %12919 = vmatpush3.bf16.msra.mxu0 %v16766_v22  ;;  %21050 = vst [vmem:[#allocation194_spill] sm:$0xff] %v16803_v18  ;;  %v21051_v22 = vand.u32 4294901760, %v16384_v47  ;;  %v16823_v9 = vpack.c.bf16 %v21055_v46, %v21054_v24  ;;  %v21059_v47 = vand.u32 4294901760, %v16423_v28  ;;  %v170_v24 = vld [vmem:[#allocation2 + $0x3a0] sm:$0xff]  ;;  %v16842_v46 = vld [vmem:[#allocation2 + $0x3a8] sm:$0xff]  ;;  %v21068_v62 = vand.u32 4294901760, %v16481_v20 }
 0x145   :  { %12907 = vmatpush3.bf16.msra.mxu1 %v16552_v40  ;;  %12921 = vmatprep.subr.bf16.mxu0 %v16785_v48  ;;  %v3143_v52 = vsub.f32 %v16755_v61, %v21065_v4  ;;  %v21069_v37 = vand.u32 4294901760, %v16484_v60  ;;  %v2915_v4 = vand.u32 4294901760, %v152_v23  ;;  %v16871_v48 = vld [vmem:[#allocation2 + $0x328] sm:$0xff]  ;;  %v16874_v21 = vsub.f32 %v16768_v50, %v2966_v14 }
 0x146   :  { %12941 = vmatprep.subr.bf16.mxu1 %v21007_v35  ;;  %v16817_v29 = vpack.c.bf16 %v21052_v36, %v21051_v22  ;;  %21056 = vst [vmem:[#allocation196_spill] sm:$0xff] %v16823_v9  ;;  %v16834_v22 = vpack.c.bf16 %v21060_v63, %v21059_v47  ;;  %v16840_v36 = vpack.c.bf16 %v21063_v49, %v21062_v10  ;;  %v21071_v63 = vand.u32 4294901760, %v16506_v5 }
 0x147   :  { %v16862_v47 = vpack.c.bf16 %v21069_v37, %v21068_v62  ;;  %v21072_v10 = vand.u32 4294901760, %v16508_v39  ;;  %v21074_v20 = vand.u32 4294901760, %v16515_v43  ;;  %v21075_v5 = vand.u32 4294901760, %v16518_v38 }
 0x148   :  { %21053 = vst [vmem:[#allocation195_spill] sm:$0xff] %v16817_v29  ;;  %2631 = vmatmul.mubr.f32.vlgmr.msra.gmra.mrb[14].mxu1 %v21058_v7  ;;  %21061 = vst [vmem:[#allocation197_spill] sm:$0xff] %v16834_v22  ;;  %v21066_v7 = vand.u32 4294901760, %v16758_v44  ;;  %12923 = vmatpush3.bf16.msra.mxu0 %v16803_v18  ;;  %v2918_v60 = vand.u32 4294901760, %v153_v15  ;;  %v21077_v62 = vand.u32 4294901760, %v16773_v17  ;;  %v21078_v37 = vand.u32 4294901760, %v16778_v57 }
 0x149   :  { %21064 = vst [vmem:[#allocation198_spill] sm:$0xff] %v16840_v36  ;;  %12943 = vmatpush3.bf16.msra.mxu1 %v21012_v41  ;;  %21070 = vst [vmem:[#allocation200_spill] sm:$0xff] %v16862_v47  ;;  %v16868_v49 = vpack.c.bf16 %v21072_v10, %v21071_v63  ;;  %2901 = vmatprep.mubr.f32.mxu1 %v21039_v58  ;;  %v16882_v39 = vpack.c.bf16 %v21075_v5, %v21074_v20  ;;  %v2969_v63 = vand.u32 4294901760, %v170_v24 }
 0x14a   :  { %v16850_v28 = vsub.f32 %v16758_v44, %v21066_v7  ;;  %v154_v7 = vld [vmem:[#allocation2 + $0x320] sm:$0xff]  ;;  %12945 = vmatprep.subr.bf16.mxu1 %v21014_v34  ;;  %v3024_v58 = vsub.f32 %v16773_v17, %v21077_v62  ;;  %v3031_v50 = vsub.f32 %v16778_v57, %v21078_v37  ;;  %12925 = vmatprep.subr.bf16.mxu0 %v16817_v29  ;;  %v2972_v10 = vand.u32 4294901760, %v16842_v46 }
 0x14b   :  { %21073 = vst [vmem:[#allocation201_spill] sm:$0xff] %v16868_v49  ;;  %21076 = vst [vmem:[#allocation202_spill] sm:$0xff] %v16882_v39  ;;  %v3137_v18 = vand.u32 4294901760, %v3136_v33  ;;  %v16893_v43 = vand.u32 4294901760, %v16855_v13  ;;  %v3144_v38 = vand.u32 4294901760, %v3143_v52  ;;  %v2921_v20 = vand.u32 4294901760, %v154_v7 }
 0x14c   :  { %v2924_v5 = vand.u32 4294901760, %v16871_v48  ;;  %v21080_v62 = vand.u32 4294901760, %v16533_v11  ;;  %v21081_v37 = vand.u32 4294901760, %v16535_v45  ;;  %v21083_v34 = vand.u32 4294901760, %v16699_v51  ;;  %12927 = vmatpush3.bf16.msra.mxu0 %v16823_v9 }
 0x14d   :  { %21079 = vst [vmem:[#allocation203_spill] sm:$0xff] %v16893_v43  ;;  %12947 = vmatpush3.bf16.msra.mxu1 %v21017_v32  ;;  %v21084_v33 = vand.u32 4294901760, %v16702_v59  ;;  %v16911_v35 = vsub.f32 %v152_v23, %v2915_v4  ;;  %v21086_v11 = vand.u32 4294901760, %v16720_v42  ;;  %v21087_v45 = vand.u32 4294901760, %v16722_v8  ;;  %v173_v59 = vld [vmem:[#allocation2 + $0x3b8] sm:$0xff]  ;;  %12929 = vmatprep.subr.bf16.mxu0 %v16834_v22 }
 0x14e   :  { %v16902_v29 = vpack.c.bf16 %v21081_v37, %v21080_v62  ;;  %12949 = vmatprep.subr.bf16.mxu1 %v21018_v25  ;;  %v3025_v37 = vand.u32 4294901760, %v3024_v58  ;;  %v3032_v51 = vand.u32 4294901760, %v3031_v50  ;;  %v21089_v23 = vand.u32 4294901760, %v16758_v44  ;;  %v10818_v8 = vpop.f32.mrb[2].mxu0  ;;  %v156_v44 = vld [vmem:[#allocation2 + $0x330] sm:$0xff] }
 0x14f   :  { %v16908_v41 = vpack.c.bf16 %v21084_v33, %v21083_v34  ;;  %v16919_v62 = vpack.c.bf16 %v21087_v45, %v21086_v11  ;;  %v16921_v34 = vsub.f32 %v153_v15, %v2918_v60  ;;  %v16928_v52 = vpack.c.bf16 %v2918_v60, %v2915_v4  ;;  %v10819_v4 = vpop.f32.mrb[3].mxu0 }
 0x150   :  { %21082 = vst [vmem:[#allocation204_spill] sm:$0xff] %v16902_v29  ;;  %v16926_v33 = vpack.c.bf16 %v2966_v14, %v21089_v23  ;;  %v16930_v9 = vpack.c.bf16 %v2972_v10, %v2969_v63  ;;  %v16934_v42 = vsub.f32 %v16855_v13, %v16893_v43  ;;  %v16936_v58 = vpack.c.bf16 %v3144_v38, %v3137_v18  ;;  %v157_v14 = vld [vmem:[#allocation2 + $0x338] sm:$0xff] }
 0x151   :  { %21085 = vst [vmem:[#allocation205_spill] sm:$0xff] %v16908_v41  ;;  %21088 = vst [vmem:[#allocation206_spill] sm:$0xff] %v16919_v62  ;;  %v16938_v50 = vpack.c.bf16 %v2924_v5, %v2921_v20  ;;  %v21096_v15 = vand.u32 4294901760, %v16850_v28  ;;  %v16943_v45 = vsub.f32 %v170_v24, %v2969_v63  ;;  %12951 = vmatpush3.bf16.msra.mxu1 %v16294_v1  ;;  %v2975_v60 = vand.u32 4294901760, %v172_v26  ;;  %v16955_v63 = vld [vmem:[#allocation2 + $0x3c0] sm:$0xff]  ;;  %v16957_v1 = vld [vmem:[#allocation2 + $0x3c8] sm:$0xff] }
 0x152   :  { %21090 = vst [vmem:[#allocation207_spill] sm:$0xff] %v16926_v33  ;;  %21091 = vst [vmem:[#allocation208_spill] sm:$0xff] %v16928_v52  ;;  %v2978_v23 = vand.u32 4294901760, %v173_v59  ;;  %v21097_v22 = vand.u32 4294901760, %v16874_v21  ;;  %v10820_v25 = vadd.f32 %v10819_v4, %v10818_v8  ;;  %12953 = vmatprep.subr.bf16.mxu1 %v16306_v53  ;;  %12931 = vmatpush3.bf16.msra.mxu0 %v16840_v36  ;;  %v2930_v38 = vand.u32 4294901760, %v157_v14  ;;  %v16963_v8 = vld [vmem:[#allocation2 + $0x340] sm:$0xff] }
 0x153   :  { %21092 = vst [vmem:[#allocation209_spill] sm:$0xff] %v16930_v9  ;;  %21093 = vst [vmem:[#allocation210_spill] sm:$0xff] %v16934_v42  ;;  %v3150_v11 = vsub.f32 %v16850_v28, %v21096_v15  ;;  %v16952_v15 = vpack.c.bf16 %v3032_v51, %v3025_v37  ;;  %v16960_v32 = vsub.f32 %v16842_v46, %v2972_v10  ;;  %12933 = vmatprep.subr.bf16.mxu0 %v16862_v47  ;;  %v16965_v4 = vld [vmem:[#allocation2 + $0x348] sm:$0xff] }
 0x154   :  { %21094 = vst [vmem:[#allocation211_spill] sm:$0xff] %v16936_v58  ;;  %21095 = vst [vmem:[#allocation212_spill] sm:$0xff] %v16938_v50  ;;  %v3157_v18 = vsub.f32 %v16874_v21, %v21097_v22  ;;  %v2927_v22 = vand.u32 4294901760, %v156_v44  ;;  %v16967_v36 = vsub.f32 %v154_v7, %v2921_v20  ;;  %v20148_v37 = vand.u32 4294901760, %v16934_v42 }
 0x155   :  { %21098 = vst [vmem:[#allocation213_spill] sm:$0xff] %v16952_v15  ;;  %21099 = vst [vmem:[#allocation214_spill] sm:$0xff] %v16960_v32  ;;  %v16971_v51 = vadd.f32 %v10820_v25, %v16737_v12  ;;  %v3151_v24 = vand.u32 4294901760, %v3150_v11  ;;  %v16975_v46 = vsub.f32 %v16871_v48, %v2924_v5  ;;  %12955 = vmatpush3.bf16.msra.mxu1 %v16310_v6  ;;  %v21101_v47 = vand.u32 4294901760, %v16911_v35  ;;  %v17008_v48 = vld [vmem:[#allocation2 + $0x3d0] sm:$0xff] }
 0x156   :  { %21100 = vst [vmem:[#allocation215_spill] sm:$0xff] %v16967_v36  ;;  %v3158_v10 = vand.u32 4294901760, %v3157_v18  ;;  %v2981_v7 = vand.u32 4294901760, %v16955_v63  ;;  %v2984_v20 = vand.u32 4294901760, %v16957_v1  ;;  %12957 = vmatprep.subr.bf16.mxu1 %v16359_v27  ;;  %12935 = vmatpush3.bf16.msra.mxu0 %v16868_v49  ;;  %v21102_v25 = vand.u32 4294901760, %v16921_v34  ;;  %v17015_v18 = vld [vmem:[#allocation2 + $0x3d8] sm:$0xff] }
 0x157   :  { %v3038_v13 = vsub.f32 %v16911_v35, %v21101_v47  ;;  %12937 = vmatprep.subr.bf16.mxu0 %v16882_v39  ;;  %v16992_v47 = vpack.c.bf16 %v2978_v23, %v2975_v60  ;;  %v16995_v53 = vsub.f32 %v172_v26, %v2975_v60  ;;  %v3007_v49 = vsub.f32 %v16934_v42, %v20148_v37 }
 0x158   :  { %v3045_v12 = vsub.f32 %v16921_v34, %v21102_v25  ;;  %v17000_v27 = vpack.c.bf16 %v2930_v38, %v2927_v22  ;;  %v21105_v25 = vand.u32 4294901760, %v16943_v45  ;;  %v17010_v39 = vsub.f32 %v173_v59, %v2978_v23 }
 0x159   :  { %21103 = vst [vmem:[#allocation216_spill] sm:$0xff] %v16992_v47  ;;  %12959 = vmatpush3.bf16.msra.mxu1 %v16377_v30  ;;  %v17013_v26 = vpack.c.bf16 %v3158_v10, %v3151_v24  ;;  %v3039_v60 = vand.u32 4294901760, %v3038_v13  ;;  %v17017_v37 = vsub.f32 %v156_v44, %v2927_v22  ;;  %v17019_v6 = vsub.f32 %v157_v14, %v2930_v38 }
 0x15a   :  { %21104 = vst [vmem:[#allocation217_spill] sm:$0xff] %v17000_v27  ;;  %v17005_v5 = vsub.f32 %v16943_v45, %v21105_v25  ;;  %21106 = vst [vmem:[#allocation218_spill] sm:$0xff] %v17010_v39  ;;  %12961 = vmatprep.subr.bf16.mxu1 %v16396_v31  ;;  %12939 = vmatpush3.bf16.msra.mxu0 %v16902_v29  ;;  %v3046_v25 = vand.u32 4294901760, %v3045_v12  ;;  %v17023_v11 = vpack.c.bf16 %v2984_v20, %v2981_v7  ;;  %v17040_v29 = vld [vmem:[#allocation2 + $0x350] sm:$0xff] }
 0x15b   :  { %21107 = vst [vmem:[#allocation219_spill] sm:$0xff] %v17013_v26  ;;  %21108 = vst [vmem:[#allocation220_spill] sm:$0xff] %v17017_v37  ;;  %v21111_v59 = vand.u32 4294901760, %v16960_v32  ;;  %v21112_v24 = vand.u32 4294901760, %v16963_v8  ;;  %v21113_v13 = vand.u32 4294901760, %v16965_v4  ;;  %v10853_v44 = vpop.f32.mrb[2].mxu1  ;;  %12973 = vmatprep.subr.bf16.mxu0 %v16908_v41 }
 0x15c   :  { %21109 = vst [vmem:[#allocation221_spill] sm:$0xff] %v17019_v6  ;;  %21110 = vst [vmem:[#allocation222_spill] sm:$0xff] %v17023_v11  ;;  %v21115_v14 = vand.u32 4294901760, %v16967_v36  ;;  %v2987_v22 = vand.u32 4294901760, %v17008_v48  ;;  %v10854_v31 = vpop.f32.mrb[3].mxu1  ;;  %v3165_v30 = vand.u32 4294901760, %v17005_v5 }
 0x15d   :  { %v3171_v23 = vsub.f32 %v16960_v32, %v21111_v59  ;;  %v17032_v10 = vpack.c.bf16 %v21113_v13, %v21112_v24  ;;  %v3008_v59 = vand.u32 4294901760, %v3007_v49  ;;  %v21116_v24 = vand.u32 4294901760, %v16975_v46  ;;  %v17048_v32 = vld [vmem:[#allocation2 + $0x358] sm:$0xff]  ;;  %12963 = vmatpush3.bf16.msra.mxu1 %v16429_v2  ;;  %2799 = vmatmul.mubr.f32.vlgmr.msra.gmra.mrb[16].mxu0 %v16466_v3  ;;  %v17054_v5 = vld [vmem:[#allocation2 + $0x3e0] sm:$0xff] }
 0x15e   :  { %v3052_v38 = vsub.f32 %v16967_v36, %v21115_v14  ;;  %v2990_v41 = vand.u32 4294901760, %v17015_v18  ;;  %v10855_v14 = vadd.f32 %v10854_v31, %v10853_v44  ;;  %v17056_v36 = vld [vmem:[#allocation2 + $0x3e8] sm:$0xff]  ;;  %12965 = vmatprep.subr.bf16.mxu1 %v16441_v55  ;;  %12975 = vmatpush3.bf16.msra.mxu0 %v16919_v62  ;;  %v17063_v31 = vpack.c.bf16 %v3046_v25, %v3039_v60 }
 0x15f   :  { %21114 = vst [vmem:[#allocation223_spill] sm:$0xff] %v17032_v10  ;;  %v3059_v13 = vsub.f32 %v16975_v46, %v21116_v24  ;;  %v17059_v24 = vsub.f32 %v16955_v63, %v2981_v7  ;;  %v3172_v44 = vand.u32 4294901760, %v3171_v23  ;;  %v2939_v42 = vand.u32 4294901760, %v17040_v29  ;;  %12977 = vmatprep.subr.bf16.mxu0 %v16926_v33  ;;  %3009 = vmatprep.mubr.f32.mxu0 %v3008_v59  ;;  %v17092_v33 = vld [vmem:[#allocation2 + $0x360] sm:$0xff] }
 0x160   :  { %21117 = vst [vmem:[#allocation224_spill] sm:$0xff] %v17063_v31  ;;  %v17067_v49 = vsub.f32 %v16957_v1, %v2984_v20  ;;  %v17070_v12 = vadd.f32 %v10855_v14, %v16971_v51  ;;  %v3053_v2 = vand.u32 4294901760, %v3052_v38  ;;  %v21118_v63 = vand.u32 4294901760, %v16995_v53 }
 0x161   :  { %v2942_v55 = vand.u32 4294901760, %v17048_v32  ;;  %v3060_v60 = vand.u32 4294901760, %v3059_v13  ;;  %v21119_v25 = vand.u32 4294901760, %v17010_v39  ;;  %v2993_v1 = vand.u32 4294901760, %v17054_v5  ;;  %12967 = vmatpush3.bf16.msra.mxu1 %v16471_v19  ;;  %v17097_v19 = vld [vmem:[#allocation2 + $0x368] sm:$0xff] }
 0x162   :  { %v3178_v7 = vsub.f32 %v16995_v53, %v21118_v63  ;;  %v2996_v51 = vand.u32 4294901760, %v17056_v36  ;;  %v17083_v20 = vpack.c.bf16 %v2990_v41, %v2987_v22  ;;  %v21121_v38 = vand.u32 4294901760, %v17017_v37  ;;  %12969 = vmatprep.subr.bf16.mxu1 %v16550_v0  ;;  %12979 = vmatpush3.bf16.msra.mxu0 %v16928_v52 }
 0x163   :  { %v3185_v23 = vsub.f32 %v17010_v39, %v21119_v25  ;;  %v21122_v63 = vand.u32 4294901760, %v17019_v6  ;;  %v21123_v62 = vand.u32 4294901760, %v16963_v8  ;;  %v17110_v13 = vsub.f32 %v17008_v48, %v2987_v22  ;;  %12981 = vmatprep.subr.bf16.mxu0 %v16930_v9 }
 0x164   :  { %21120 = vst [vmem:[#allocation225_spill] sm:$0xff] %v17083_v20  ;;  %v3066_v14 = vsub.f32 %v17017_v37, %v21121_v38  ;;  %v21124_v37 = vand.u32 4294901760, %v16965_v4  ;;  %v17113_v0 = vpack.c.bf16 %v3172_v44, %v3165_v30  ;;  %v3179_v25 = vand.u32 4294901760, %v3178_v7  ;;  %v181_v44 = vld [vmem:[#allocation2 + $0x3f8] sm:$0xff] }
 0x165   :  { %v3073_v59 = vsub.f32 %v17019_v6, %v21122_v63  ;;  %v17102_v38 = vsub.f32 %v16963_v8, %v21123_v62  ;;  %v17115_v52 = vpack.c.bf16 %v2942_v55, %v2939_v42  ;;  %v17118_v6 = vsub.f32 %v17015_v18, %v2990_v41  ;;  %12971 = vmatpush3.bf16.msra.mxu1 %v16552_v40  ;;  %v180_v18 = vld [vmem:[#allocation2 + $0x3f0] sm:$0xff] }
 0x166   :  { %v17107_v63 = vsub.f32 %v16965_v4, %v21124_v37  ;;  %21125 = vst [vmem:[#allocation226_spill] sm:$0xff] %v17113_v0  ;;  %v17120_v62 = vpack.c.bf16 %v3060_v60, %v3053_v2  ;;  %v3186_v8 = vand.u32 4294901760, %v3185_v23  ;;  %v17122_v39 = vpack.c.bf16 %v2996_v51, %v2993_v1  ;;  %v17128_v37 = vld [vmem:[%s19832_s0 + $0x30] sm:$0xff]  ;;  %13005 = vmatprep.subr.bf16.mxu1 %v16936_v58 }
 0x167   :  { %21126 = vst [vmem:[#allocation227_spill] sm:$0xff] %v17115_v52  ;;  %v2945_v4 = vand.u32 4294901760, %v17092_v33  ;;  %v3067_v30 = vand.u32 4294901760, %v3066_v14  ;;  %v3074_v48 = vand.u32 4294901760, %v3073_v59  ;;  %v21129_v22 = vand.u32 4294901760, %v17059_v24  ;;  %12983 = vmatpush3.bf16.msra.mxu0 %v16938_v50 }
 0x168   :  { %21127 = vst [vmem:[#allocation228_spill] sm:$0xff] %v17120_v62  ;;  %21128 = vst [vmem:[#allocation229_spill] sm:$0xff] %v17122_v39  ;;  %v2948_v2 = vand.u32 4294901760, %v17097_v19  ;;  %v21130_v7 = vand.u32 4294901760, %v17067_v49  ;;  %12985 = vmatprep.subr.bf16.mxu0 %v16992_v47  ;;  %v17146_v40 = vsub.f32 %v17040_v29, %v2939_v42  ;;  %v17149_v58 = vsub.f32 %v17048_v32, %v2942_v55 }
 0x169   :  { %v3192_v41 = vsub.f32 %v17059_v24, %v21129_v22  ;;  %v20193_v22 = vand.u32 4294901760, %v17118_v6  ;;  %v17152_v50 = vand.u32 4294901760, %v17128_v37  ;;  %2903 = vmatmul.mubr.f32.vlgmr.msra.gmra.mrb[16].mxu1 %v16466_v3  ;;  %v3002_v23 = vand.u32 4294901760, %v181_v44 }
 0x16a   :  { %v3199_v60 = vsub.f32 %v17067_v49, %v21130_v7  ;;  %v2999_v7 = vand.u32 4294901760, %v180_v18  ;;  %v17156_v14 = vsub.f32 %v17054_v5, %v2993_v1  ;;  %v17159_v59 = vsub.f32 %v17056_v36, %v2996_v51  ;;  %13007 = vmatpush3.bf16.msra.mxu1 %v16952_v15  ;;  %3245 = vmatprep.mubr.f32.mxu1 %v16893_v43 }
 0x16b   :  { %v17162_v29 = vpack.c.bf16 %v3186_v8, %v3179_v25  ;;  %v17164_v42 = vpack.c.bf16 %v3074_v48, %v3067_v30  ;;  %v3193_v55 = vand.u32 4294901760, %v3192_v41  ;;  %v17166_v32 = vpack.c.bf16 %v2948_v2, %v2945_v4  ;;  %13009 = vmatprep.subr.bf16.mxu1 %v17013_v26  ;;  %12987 = vmatpush3.bf16.msra.mxu0 %v17000_v27  ;;  %v164_v30 = vld [vmem:[#allocation2 + $0x370] sm:$0xff]  ;;  %v165_v48 = vld [vmem:[#allocation2 + $0x378] sm:$0xff] }
 0x16c   :  { %v3200_v3 = vand.u32 4294901760, %v3199_v60  ;;  %v21134_v5 = vand.u32 4294901760, %v17102_v38  ;;  %v21135_v1 = vand.u32 4294901760, %v17107_v63  ;;  %v21136_v25 = vand.u32 4294901760, %v17110_v13  ;;  %12989 = vmatprep.subr.bf16.mxu0 %v17023_v11 }
 0x16d   :  { %21131 = vst [vmem:[#allocation230_spill] sm:$0xff] %v17162_v29  ;;  %21132 = vst [vmem:[#allocation231_spill] sm:$0xff] %v17164_v42  ;;  %v3213_v41 = vsub.f32 %v17118_v6, %v20193_v22  ;;  %v17188_v26 = vsub.f32 %v17128_v37, %v17152_v50  ;;  %v17195_v43 = vsub.f32 %v17092_v33, %v2945_v4  ;;  %v2951_v22 = vand.u32 4294901760, %v164_v30 }
 0x16e   :  { %21133 = vst [vmem:[#allocation232_spill] sm:$0xff] %v17166_v32  ;;  %v3080_v36 = vsub.f32 %v17102_v38, %v21134_v5  ;;  %v3087_v51 = vsub.f32 %v17107_v63, %v21135_v1  ;;  %v3206_v8 = vsub.f32 %v17110_v13, %v21136_v25  ;;  %v17190_v1 = vpack.c.bf16 %v3002_v23, %v2999_v7 }
 0x16f   :  { %13011 = vmatpush3.bf16.msra.mxu1 %v17063_v31  ;;  %v2954_v11 = vand.u32 4294901760, %v165_v48  ;;  %v17199_v60 = vsub.f32 %v17097_v19, %v2948_v2  ;;  %v17201_v5 = vsub.f32 %v180_v18, %v2999_v7  ;;  %12991 = vmatpush3.bf16.msra.mxu0 %v17032_v10  ;;  %v17205_v15 = vsub.f32 %v181_v44, %v3002_v23  ;;  %v10888_v7 = vpop.f32.mrb[4].mxu0 }
 0x170   :  { %21137 = vst [vmem:[#allocation233_spill] sm:$0xff] %v17190_v1  ;;  %13013 = vmatprep.subr.bf16.mxu1 %v17113_v0  ;;  %v3081_v27 = vand.u32 4294901760, %v3080_v36  ;;  %v3088_v25 = vand.u32 4294901760, %v3087_v51  ;;  %v3207_v47 = vand.u32 4294901760, %v3206_v8  ;;  %12993 = vmatprep.subr.bf16.mxu0 %v17083_v20  ;;  %v3214_v33 = vand.u32 4294901760, %v3213_v41  ;;  %v10889_v41 = vpop.f32.mrb[5].mxu0 }
 0x171   :  { %v21138_v4 = vand.u32 4294901760, %v17146_v40  ;;  %v21139_v19 = vand.u32 4294901760, %v17149_v58  ;;  %v17215_v0 = vpack.c.bf16 %v3200_v3, %v3193_v55  ;;  %v21141_v36 = vand.u32 4294901760, %v17156_v14 }
 0x172   :  { %v21142_v23 = vand.u32 4294901760, %v17159_v59  ;;  %v17227_v18 = vsub.f32 %v164_v30, %v2951_v22  ;;  %v17229_v55 = vsub.f32 %v165_v48, %v2954_v11  ;;  %v10890_v3 = vadd.f32 %v10889_v41, %v10888_v7 }
 0x173   :  { %v3094_v31 = vsub.f32 %v17146_v40, %v21138_v4  ;;  %v3101_v2 = vsub.f32 %v17149_v58, %v21139_v19  ;;  %21140 = vst [vmem:[#allocation234_spill] sm:$0xff] %v17215_v0  ;;  %v3220_v44 = vsub.f32 %v17156_v14, %v21141_v36  ;;  %13015 = vmatpush3.bf16.msra.mxu1 %v17120_v62  ;;  %v20204_v8 = vand.u32 4294901760, %v17205_v15 }
 0x174   :  { %v3227_v51 = vsub.f32 %v17159_v59, %v21142_v23  ;;  %13017 = vmatprep.subr.bf16.mxu1 %v17162_v29  ;;  %12995 = vmatpush3.bf16.msra.mxu0 %v17115_v52  ;;  %v17233_v36 = vpack.c.bf16 %v3088_v25, %v3081_v27  ;;  %v17235_v23 = vpack.c.bf16 %v2954_v11, %v2951_v22  ;;  %v21146_v48 = vand.u32 4294901760, %v17188_v26 }
 0x175   :  { %12997 = vmatprep.subr.bf16.mxu0 %v17122_v39  ;;  %v17239_v4 = vpack.c.bf16 %v3214_v33, %v3207_v47  ;;  %v3095_v19 = vand.u32 4294901760, %v3094_v31  ;;  %v3102_v30 = vand.u32 4294901760, %v3101_v2  ;;  %v1077_v41 = vadd.f32 %v10890_v3, %v17070_v12 }
 0x176   :  { %21143 = vst [vmem:[#allocation235_spill] sm:$0xff] %v17233_v36  ;;  %21144 = vst [vmem:[#allocation236_spill] sm:$0xff] %v17235_v23  ;;  %v3013_v7 = vsub.f32 %v17188_v26, %v21146_v48  ;;  %v3221_v29 = vand.u32 4294901760, %v3220_v44  ;;  %v3228_v62 = vand.u32 4294901760, %v3227_v51  ;;  %v21147_v27 = vand.u32 4294901760, %v17195_v43  ;;  %v14764_v44 = vld [vmem:[%s19832_s0 + $0x10] sm:$0xff] }
 0x177   :  { %21145 = vst [vmem:[#allocation237_spill] sm:$0xff] %v17239_v4  ;;  %13019 = vmatpush3.bf16.msra.mxu1 %v17164_v42  ;;  %v21148_v22 = vand.u32 4294901760, %v17199_v60  ;;  %v21149_v31 = vand.u32 4294901760, %v17201_v5  ;;  %v20206_v33 = vand.u32 4294901760, %v17227_v18  ;;  %v3241_v2 = vsub.f32 %v17205_v15, %v20204_v8 }
 0x178   :  { %v3108_v11 = vsub.f32 %v17195_v43, %v21147_v27  ;;  %13021 = vmatprep.subr.bf16.mxu1 %v17215_v0  ;;  %12999 = vmatpush3.bf16.msra.mxu0 %v17166_v32  ;;  %v3772_v51 = vmul.f32 %v14764_v44, %v14764_v44  ;;  %v3778_v3 = vadd.f32 %v16795_v54, %v16810_v16  ;;  %v14765_v44 = vld [vmem:[%s19832_s0 + $0x18] sm:$0xff]  ;;  %v21154_v0 = vand.u32 4294901760, %v17229_v55 }
 0x179   :  { %v3115_v47 = vsub.f32 %v17199_v60, %v21148_v22  ;;  %v3234_v25 = vsub.f32 %v17201_v5, %v21149_v31  ;;  %13001 = vmatprep.subr.bf16.mxu0 %v17190_v1  ;;  %v17268_v48 = vpack.c.bf16 %v3102_v30, %v3095_v19  ;;  %v17272_v27 = vpack.c.bf16 %v16755_v61, %v16750_v56 }
 0x17a   :  { %v17276_v22 = vpack.c.bf16 %v16778_v57, %v16773_v17  ;;  %v3014_v31 = vand.u32 4294901760, %v3013_v7  ;;  %v17278_v8 = vpack.c.bf16 %v3228_v62, %v3221_v29  ;;  %v3773_v54 = vmul.f32 %v14765_v44, %v14765_v44  ;;  %v21155_v44 = vld [vmem:[#allocation161_spill] sm:$0xff] }
 0x17b   :  { %21150 = vst [vmem:[#allocation238_spill] sm:$0xff] %v17268_v48  ;;  %21151 = vst [vmem:[#allocation239_spill] sm:$0xff] %v17272_v27  ;;  %v3779_v16 = vadd.f32 %v3778_v3, %v3772_v51  ;;  %13023 = vmatpush3.bf16.msra.mxu1 %v17233_v36  ;;  %v3109_v19 = vand.u32 4294901760, %v3108_v11  ;;  %v3116_v30 = vand.u32 4294901760, %v3115_v47  ;;  %v3122_v12 = vsub.f32 %v17227_v18, %v20206_v33  ;;  %v10923_v11 = vpop.f32.mrb[4].mxu1 }
 0x17c   :  { %21152 = vst [vmem:[#allocation240_spill] sm:$0xff] %v17276_v22  ;;  %21153 = vst [vmem:[#allocation241_spill] sm:$0xff] %v17278_v8  ;;  %v3129_v7 = vsub.f32 %v17229_v55, %v21154_v0  ;;  %13025 = vmatprep.subr.bf16.mxu1 %v17239_v4  ;;  %13003 = vmatpush3.bf16.msra.mxu0 %v17235_v23  ;;  %v3235_v62 = vand.u32 4294901760, %v3234_v25  ;;  %v3242_v29 = vand.u32 4294901760, %v3241_v2  ;;  %v10924_v33 = vpop.f32.mrb[5].mxu1  ;;  %v14766_v25 = vld [vmem:[%s19832_s0 + $0x28] sm:$0xff] }
 0x17d   :  { %v3774_v51 = vmul.f32 %v21155_v44, %v21155_v44  ;;  %v3780_v3 = vadd.f32 %v3779_v16, %v3773_v54  ;;  %13037 = vmatprep.subr.bf16.mxu0 %v17272_v27  ;;  %v17297_v47 = vpack.c.bf16 %v16874_v21, %v16850_v28  ;;  %v17301_v0 = vpack.c.bf16 %v16921_v34, %v16911_v35 }
 0x17e   :  { %v3775_v2 = vmul.f32 %v14766_v25, %v14766_v25  ;;  %v10925_v44 = vadd.f32 %v10924_v33, %v10923_v11  ;;  %v17307_v54 = vpack.c.bf16 %v3116_v30, %v3109_v19  ;;  %v3123_v16 = vand.u32 4294901760, %v3122_v12  ;;  %v21160_v33 = vld [vmem:[#allocation214_spill] sm:$0xff]  ;;  %v21163_v12 = vld [vmem:[#allocation199_spill] sm:$0xff] }
 0x17f   :  { %21156 = vst [vmem:[#allocation161_spill] sm:$0xff] %v17297_v47  ;;  %21157 = vst [vmem:[#allocation242_spill] sm:$0xff] %v17301_v0  ;;  %v3781_v4 = vadd.f32 %v3780_v3, %v3774_v51  ;;  %13027 = vmatpush3.bf16.msra.mxu1 %v17268_v48  ;;  %3015 = vmatmul.mubr.f32.vlgmr.msra.gmra.mrb[18].mxu0 %v3014_v31  ;;  %v3130_v27 = vand.u32 4294901760, %v3129_v7  ;;  %v17311_v36 = vpack.c.bf16 %v3242_v29, %v3235_v62  ;;  %v21162_v19 = vld [vmem:[#allocation210_spill] sm:$0xff] }
 0x180   :  { %21158 = vst [vmem:[#allocation243_spill] sm:$0xff] %v17307_v54  ;;  %13029 = vmatprep.subr.bf16.mxu1 %v17278_v8  ;;  %13039 = vmatpush3.bf16.msra.mxu0 %v17276_v22  ;;  %v3776_v42 = vmul.f32 %v17128_v37, %v17128_v37  ;;  %v1181_v25 = vadd.f32 %v10925_v44, %v1077_v41  ;;  %v21165_v37 = vld [vmem:[#allocation215_spill] sm:$0xff]  ;;  %v21167_v29 = vld [vmem:[#allocation218_spill] sm:$0xff]  ;;  %v21175_v44 = vand.u32 4294901760, %v21162_v19 }
 0x181   :  { %21159 = vst [vmem:[#allocation244_spill] sm:$0xff] %v17311_v36  ;;  %v3782_v23 = vadd.f32 %v3781_v4, %v3775_v2  ;;  %13041 = vmatprep.subr.bf16.mxu0 %v17297_v47  ;;  %v17318_v31 = vpack.c.bf16 %v21160_v33, %v16943_v45  ;;  %3382 = vmatprep.mubr.f32.mxu0 %v21162_v19  ;;  %v21174_v2 = vld [vmem:[#allocation206_spill] sm:$0xff] }
 0x182   :  { %v3777_v30 = vmul.f32 %v21163_v12, %v21163_v12  ;;  %v17324_v62 = vpack.c.bf16 %v3130_v27, %v3123_v16  ;;  %v17330_v4 = vpack.c.bf16 %v16975_v46, %v21165_v37  ;;  %v17335_v51 = vpack.c.bf16 %v21167_v29, %v16995_v53  ;;  %v21171_v27 = vld [vmem:[#allocation221_spill] sm:$0xff]  ;;  %v21176_v16 = vld [vmem:[#allocation207_spill] sm:$0xff]  ;;  %v21187_v47 = vld [vmem:[#allocation222_spill] sm:$0xff] }
 0x183   :  { %21161 = vst [vmem:[#allocation214_spill] sm:$0xff] %v17318_v31  ;;  %v3783_v7 = vadd.f32 %v3782_v23, %v3776_v42  ;;  %13031 = vmatpush3.bf16.msra.mxu1 %v17307_v54  ;;  %v21169_v42 = vld [vmem:[#allocation205_spill] sm:$0xff]  ;;  %v21170_v23 = vld [vmem:[#allocation220_spill] sm:$0xff]  ;;  %v17347_v11 = vpack.c.bf16 %v17067_v49, %v17059_v24  ;;  %v17357_v12 = vpack.c.bf16 %v17107_v63, %v17102_v38  ;;  %v224_v54 = vld [vmem:[#allocation4 + $0x150] sm:$0xff] }
 0x184   :  { %21164 = vst [vmem:[#allocation210_spill] sm:$0xff] %v17324_v62  ;;  %13033 = vmatprep.subr.bf16.mxu1 %v17311_v36  ;;  %13043 = vmatpush3.bf16.msra.mxu0 %v17301_v0  ;;  %21166 = vst [vmem:[#allocation199_spill] sm:$0xff] %v17330_v4  ;;  %v17342_v3 = vpack.c.bf16 %v21171_v27, %v21170_v23  ;;  %v17369_v19 = vpack.c.bf16 %v17149_v58, %v17146_v40  ;;  %v21186_v0 = vld [vmem:[#allocation217_spill] sm:$0xff] }
 0x185   :  { %v3784_v41 = vadd.f32 %v3783_v7, %v3777_v30  ;;  %13045 = vmatprep.subr.bf16.mxu0 %v17318_v31  ;;  %21168 = vst [vmem:[#allocation215_spill] sm:$0xff] %v17335_v51  ;;  %21173 = vst [vmem:[#allocation220_spill] sm:$0xff] %v17347_v11  ;;  %v17362_v30 = vpack.c.bf16 %v17118_v6, %v17110_v13  ;;  %v21179_v7 = vld [vmem:[#allocation208_spill] sm:$0xff] }
 0x186   :  { %21172 = vst [vmem:[#allocation218_spill] sm:$0xff] %v17342_v3  ;;  %21177 = vst [vmem:[#allocation221_spill] sm:$0xff] %v17357_v12 }
 0x187   :  { %3785 = vadd.xlane.f32.xlu0 %v3784_v41  ;;  %13035 = vmatpush3.bf16.msra.mxu1 %v17324_v62  ;;  %21178 = vst [vmem:[#allocation245_spill] sm:$0xff] %v17362_v30  ;;  %21180 = vst [vmem:[#allocation246_spill] sm:$0xff] %v17369_v19  ;;  %v17374_v41 = vpack.c.bf16 %v17159_v59, %v17156_v14 }
 0x188   :  { %13069 = vmatprep.subr.bf16.mxu1 %v21169_v42  ;;  %13047 = vmatpush3.bf16.msra.mxu0 %v17330_v4  ;;  %v21183_v4 = vld [vmem:[#allocation216_spill] sm:$0xff] }
 0x189   :  { %13049 = vmatprep.subr.bf16.mxu0 %v17335_v51  ;;  %21181 = vst [vmem:[#allocation247_spill] sm:$0xff] %v17374_v41 }
 0x18a   :  { %3247 = vmatmul.mubr.f32.vlgmr.msra.gmra.mrb[18].mxu1 %v17152_v50 }
 0x18b   :  { %13071 = vmatpush3.bf16.msra.mxu1 %v21174_v2  ;;  %3489 = vmatprep.mubr.f32.mxu1 %v21175_v44 }
 0x18c   :  { %13073 = vmatprep.subr.bf16.mxu1 %v21176_v16  ;;  %13051 = vmatpush3.bf16.msra.mxu0 %v17342_v3 }
 0x18d   :  { %13053 = vmatprep.subr.bf16.mxu0 %v17347_v11  ;;  %v21182_v11 = vld [vmem:[#allocation212_spill] sm:$0xff] }
 0x18e   :  { %v10958_v44 = vpop.f32.mrb[6].mxu0 }
 0x18f   :  { %13075 = vmatpush3.bf16.msra.mxu1 %v21179_v7  ;;  %v10959_v3 = vpop.f32.mrb[7].mxu0 }
 0x190   :  { %13077 = vmatprep.subr.bf16.mxu1 %v16930_v9  ;;  %13055 = vmatpush3.bf16.msra.mxu0 %v17357_v12  ;;  %v10960_v51 = vadd.f32 %v10959_v3, %v10958_v44  ;;  %v17381_v12 = vpack.c.bf16 %v17199_v60, %v17195_v43  ;;  %v17393_v3 = vpack.c.bf16 %v17229_v55, %v17227_v18  ;;  %v21189_v44 = vand.u32 4294901760, %v16750_v56 }
 0x191   :  { %13057 = vmatprep.subr.bf16.mxu0 %v17362_v30  ;;  %v17386_v30 = vpack.c.bf16 %v17205_v15, %v17201_v5  ;;  %v21195_v56 = vand.u32 4294901760, %v16850_v28 }
 0x192   :  { %21184 = vst [vmem:[#allocation248_spill] sm:$0xff] %v17381_v12  ;;  %v1293_v31 = vadd.f32 %v10960_v51, %v1181_v25  ;;  %21188 = vst [vmem:[#allocation250_spill] sm:$0xff] %v17393_v3  ;;  %v21192_v25 = vand.u32 4294901760, %v16773_v17  ;;  %v21193_v51 = vand.u32 4294901760, %v16778_v57  ;;  %v21198_v17 = vand.u32 4294901760, %v16911_v35 }
 0x193   :  { %13079 = vmatpush3.bf16.msra.mxu1 %v21182_v11  ;;  %21185 = vst [vmem:[#allocation249_spill] sm:$0xff] %v17386_v30  ;;  %v21199_v57 = vand.u32 4294901760, %v16921_v34  ;;  %v21205_v35 = vand.u32 4294901760, %v21165_v37  ;;  %v21206_v34 = vand.u32 4294901760, %v16975_v46  ;;  %v21212_v37 = vand.u32 4294901760, %v21170_v23 }
 0x194   :  { %13081 = vmatprep.subr.bf16.mxu1 %v21183_v4  ;;  %13059 = vmatpush3.bf16.msra.mxu0 %v17369_v19  ;;  %v21213_v46 = vand.u32 4294901760, %v21171_v27  ;;  %v21219_v23 = vand.u32 4294901760, %v17102_v38  ;;  %v21220_v27 = vand.u32 4294901760, %v17107_v63  ;;  %v21225_v38 = vand.u32 4294901760, %v17146_v40 }
 0x195   :  { %13061 = vmatprep.subr.bf16.mxu0 %v17374_v41  ;;  %v21190_v41 = vand.u32 4294901760, %v16755_v61  ;;  %v21196_v61 = vand.u32 4294901760, %v16874_v21  ;;  %v21201_v21 = vand.u32 4294901760, %v16943_v45  ;;  %v21208_v45 = vand.u32 4294901760, %v16995_v53 }
 0x196   :  { %v21215_v53 = vand.u32 4294901760, %v17059_v24  ;;  %v17478_v24 = vpack.c.bf16 %v21220_v27, %v21219_v23  ;;  %v21226_v63 = vand.u32 4294901760, %v17149_v58  ;;  %v21231_v40 = vand.u32 4294901760, %v17195_v43 }
 0x197   :  { %13083 = vmatpush3.bf16.msra.mxu1 %v21186_v0  ;;  %v17400_v19 = vpack.c.bf16 %v21190_v41, %v21189_v44  ;;  %v17416_v41 = vpack.c.bf16 %v21196_v61, %v21195_v56  ;;  %v21204_v56 = vld [vmem:[#allocation203_spill] sm:$0xff]  ;;  %v21211_v61 = vld [vmem:[#allocation236_spill] sm:$0xff]  ;;  %v21232_v58 = vand.u32 4294901760, %v17199_v60  ;;  %v21237_v43 = vand.u32 4294901760, %v17227_v18 }
 0x198   :  { %13085 = vmatprep.subr.bf16.mxu1 %v21187_v47  ;;  %13063 = vmatpush3.bf16.msra.mxu0 %v17381_v12  ;;  %v17409_v12 = vpack.c.bf16 %v21193_v51, %v21192_v25  ;;  %v17426_v25 = vpack.c.bf16 %v21199_v57, %v21198_v17  ;;  %v21218_v57 = vand.u32 4294901760, %v17188_v26  ;;  %21221 = vst [vmem:[#allocation259_spill] sm:$0xff] %v17478_v24  ;;  %v21238_v60 = vand.u32 4294901760, %v17229_v55 }
 0x199   :  { %13065 = vmatprep.subr.bf16.mxu0 %v17386_v30  ;;  %21191 = vst [vmem:[#allocation251_spill] sm:$0xff] %v17400_v19  ;;  %21197 = vst [vmem:[#allocation253_spill] sm:$0xff] %v17416_v41 }
 0x19a   :  { %21194 = vst [vmem:[#allocation252_spill] sm:$0xff] %v17409_v12  ;;  %21200 = vst [vmem:[#allocation254_spill] sm:$0xff] %v17426_v25 }
 0x19b   :  { %13087 = vmatpush3.bf16.msra.mxu1 %v17032_v10  ;;  %v10993_v22 = vpop.f32.mrb[6].mxu1 }
 0x19c   :  { %13089 = vmatprep.subr.bf16.mxu1 %v17083_v20  ;;  %13067 = vmatpush3.bf16.msra.mxu0 %v17393_v3  ;;  %v10994_v44 = vpop.f32.mrb[7].mxu1 }
 0x19d   :  { %13101 = vmatprep.subr.bf16.mxu0 %v17400_v19  ;;  %v10995_v30 = vadd.f32 %v10994_v44, %v10993_v22  ;;  %v21202_v22 = vand.u32 4294901760, %v21160_v33  ;;  %v21209_v33 = vand.u32 4294901760, %v21167_v29  ;;  %v17459_v44 = vpack.c.bf16 %v21213_v46, %v21212_v37  ;;  %v216_v19 = vld [vmem:[#allocation4 + $0x110] sm:$0xff] }
 0x19e   :  { %v21216_v29 = vand.u32 4294901760, %v17067_v49  ;;  %v21222_v49 = vand.u32 4294901760, %v17110_v13  ;;  %v21228_v13 = vand.u32 4294901760, %v17156_v14  ;;  %v21234_v14 = vand.u32 4294901760, %v17201_v5 }
 0x19f   :  { %13091 = vmatpush3.bf16.msra.mxu1 %v17115_v52  ;;  %3385 = vmatmul.mubr.f32.vlgmr.msra.gmra.mrb[20].mxu0 %v17188_v26  ;;  %v1525_v28 = vadd.f32 %v10995_v30, %v1293_v31  ;;  %v17433_v51 = vpack.c.bf16 %v21202_v22, %v21201_v21  ;;  %v17443_v31 = vpack.c.bf16 %v21206_v34, %v21205_v35  ;;  %v21223_v26 = vand.u32 4294901760, %v17118_v6 }
 0x1a0   :  { %13093 = vmatprep.subr.bf16.mxu1 %v17122_v39  ;;  %13103 = vmatpush3.bf16.msra.mxu0 %v17409_v12  ;;  %v17450_v30 = vpack.c.bf16 %v21209_v33, %v21208_v45  ;;  %21214 = vst [vmem:[#allocation257_spill] sm:$0xff] %v17459_v44  ;;  %v17466_v17 = vpack.c.bf16 %v21216_v29, %v21215_v53  ;;  %v21229_v6 = vand.u32 4294901760, %v17159_v59  ;;  %v21235_v59 = vand.u32 4294901760, %v17205_v15 }
 0x1a1   :  { %13105 = vmatprep.subr.bf16.mxu0 %v17416_v41  ;;  %21203 = vst [vmem:[#allocation255_spill] sm:$0xff] %v17433_v51  ;;  %3659 = vmatprep.mubr.f32.mxu0 %v21204_v56  ;;  %21207 = vst [vmem:[#allocation203_spill] sm:$0xff] %v17443_v31  ;;  %v17485_v21 = vpack.c.bf16 %v21223_v26, %v21222_v49  ;;  %v17494_v22 = vpack.c.bf16 %v21226_v63, %v21225_v38 }
 0x1a2   :  { %21210 = vst [vmem:[#allocation256_spill] sm:$0xff] %v17450_v30  ;;  %21217 = vst [vmem:[#allocation258_spill] sm:$0xff] %v17466_v17  ;;  %v17510_v33 = vpack.c.bf16 %v21232_v58, %v21231_v40  ;;  %v17517_v37 = vpack.c.bf16 %v21235_v59, %v21234_v14  ;;  %v17526_v53 = vpack.c.bf16 %v21238_v60, %v21237_v43 }
 0x1a3   :  { %13095 = vmatpush3.bf16.msra.mxu1 %v17166_v32  ;;  %21224 = vst [vmem:[#allocation260_spill] sm:$0xff] %v17485_v21  ;;  %21227 = vst [vmem:[#allocation261_spill] sm:$0xff] %v17494_v22 }
 0x1a4   :  { %13097 = vmatprep.subr.bf16.mxu1 %v17190_v1  ;;  %13107 = vmatpush3.bf16.msra.mxu0 %v17426_v25  ;;  %21233 = vst [vmem:[#allocation263_spill] sm:$0xff] %v17510_v33  ;;  %21236 = vst [vmem:[#allocation264_spill] sm:$0xff] %v17517_v37  ;;  %v225_v25 = vld [vmem:[#allocation4 + $0x158] sm:$0xff] }
 0x1a5   :  { %13109 = vmatprep.subr.bf16.mxu0 %v17433_v51  ;;  %21239 = vst [vmem:[#allocation265_spill] sm:$0xff] %v17526_v53 }
 0x1a7   :  { %13099 = vmatpush3.bf16.msra.mxu1 %v21211_v61 }
 0x1a8   :  { %13133 = vmatprep.subr.bf16.mxu1 %v21169_v42  ;;  %13111 = vmatpush3.bf16.msra.mxu0 %v17443_v31 }
 0x1a9   :  { %13113 = vmatprep.subr.bf16.mxu0 %v17450_v30 }
 0x1aa   :  { %3493 = vmatmul.mubr.f32.vlgmr.msra.gmra.mrb[20].mxu1 %v21218_v57 }
 0x1ab   :  { %13135 = vmatpush3.bf16.msra.mxu1 %v21174_v2  ;;  %3763 = vmatprep.mubr.f32.mxu1 %v21204_v56  ;;  %v17501_v56 = vpack.c.bf16 %v21229_v6, %v21228_v13 }
 0x1ac   :  { %13137 = vmatprep.subr.bf16.mxu1 %v21176_v16  ;;  %13115 = vmatpush3.bf16.msra.mxu0 %v17459_v44 }
 0x1ad   :  { %13117 = vmatprep.subr.bf16.mxu0 %v17466_v17  ;;  %21230 = vst [vmem:[#allocation262_spill] sm:$0xff] %v17501_v56  ;;  %v217_v17 = vld [vmem:[#allocation4 + $0x118] sm:$0xff] }
 0x1ae   :  { %v11028_v35 = vpop.f32.mrb[8].mxu0 }
 0x1af   :  { %13139 = vmatpush3.bf16.msra.mxu1 %v21179_v7  ;;  %v11029_v34 = vpop.f32.mrb[9].mxu0 }
 0x1b0   :  { %13141 = vmatprep.subr.bf16.mxu1 %v16930_v9  ;;  %13119 = vmatpush3.bf16.msra.mxu0 %v17478_v24  ;;  %v11030_v45 = vadd.f32 %v11029_v34, %v11028_v35  ;;  %v223_v24 = vld [vmem:[#allocation4 + $0x148] sm:$0xff]  ;;  %v249_v9 = vld [vmem:[#allocation4 + $0x218] sm:$0xff] }
 0x1b1   :  { %13121 = vmatprep.subr.bf16.mxu0 %v17485_v21  ;;  %v215_v21 = vld [vmem:[#allocation4 + $0x108] sm:$0xff] }
 0x1b2   :  { %v1663_v46 = vadd.f32 %v11030_v45, %v1525_v28 }
 0x1b3   :  { %13143 = vmatpush3.bf16.msra.mxu1 %v21182_v11 }
 0x1b4   :  { %13145 = vmatprep.subr.bf16.mxu1 %v21183_v4  ;;  %13123 = vmatpush3.bf16.msra.mxu0 %v17494_v22 }
 0x1b5   :  { %13125 = vmatprep.subr.bf16.mxu0 %v17501_v56  ;;  %v200_v56 = vld [vmem:[#allocation4 + $0x90] sm:$0xff] }
 0x1b7   :  { %13147 = vmatpush3.bf16.msra.mxu1 %v21186_v0 }
 0x1b8   :  { %13149 = vmatprep.subr.bf16.mxu1 %v21187_v47  ;;  %13127 = vmatpush3.bf16.msra.mxu0 %v17510_v33  ;;  %v247_v47 = vld [vmem:[#allocation4 + $0x208] sm:$0xff] }
 0x1b9   :  { %13129 = vmatprep.subr.bf16.mxu0 %v17517_v37  ;;  %v198_v37 = vld [vmem:[#allocation4 + $0x80] sm:$0xff] }
 0x1ba   :  { %v3807_v33 = vand.u32 4294901760, %v198_v37 }
 0x1bb   :  { %13151 = vmatpush3.bf16.msra.mxu1 %v17032_v10  ;;  %v11063_v15 = vpop.f32.mrb[8].mxu1  ;;  %v240_v10 = vld [vmem:[#allocation4 + $0x1d0] sm:$0xff] }
 0x1bc   :  { %13153 = vmatprep.subr.bf16.mxu1 %v17083_v20  ;;  %13131 = vmatpush3.bf16.msra.mxu0 %v17526_v53  ;;  %v11064_v5 = vpop.f32.mrb[9].mxu1  ;;  %v232_v20 = vld [vmem:[#allocation4 + $0x190] sm:$0xff] }
 0x1bd   :  { %v11065_v28 = vadd.f32 %v11064_v5, %v11063_v15 }
 0x1bf   :  { %13155 = vmatpush3.bf16.msra.mxu1 %v17115_v52  ;;  %3661 = vmatmul.mubr.f32.vlgmr.msra.gmra.mrb[22].mxu0 %v17152_v50  ;;  %v1771_v18 = vadd.f32 %v11065_v28, %v1663_v46  ;;  %v183_v28 = vld [vmem:[#allocation4 + $0x8] sm:$0xff] }
 0x1c0   :  { %13157 = vmatprep.subr.bf16.mxu1 %v17122_v39  ;;  %v241_v39 = vld [vmem:[#allocation4 + $0x1d8] sm:$0xff] }
 0x1c3   :  { %13159 = vmatpush3.bf16.msra.mxu1 %v17166_v32  ;;  %v239_v32 = vld [vmem:[#allocation4 + $0x1c8] sm:$0xff] }
 0x1c4   :  { %13161 = vmatprep.subr.bf16.mxu1 %v17190_v1 }
 0x1c7   :  { %13163 = vmatpush3.bf16.msra.mxu1 %v21211_v61 }
 0x1ca   :  { %3765 = vmatmul.mubr.f32.vlgmr.msra.gmra.mrb[22].mxu1 %v17152_v50 }
 0x1ce   :  { %v11098_v55 = vpop.f32.mrb[10].mxu0 }
 0x1cf   :  { %v11099_v29 = vpop.f32.mrb[11].mxu0 }
 0x1d0   :  { %v11100_v57 = vadd.f32 %v11099_v29, %v11098_v55  ;;  %v185_v55 = vld [vmem:[#allocation4 + $0x18] sm:$0xff]  ;;  %v3797_v29 = vand.u32 4294901760, %v183_v28 }
 0x1d2   :  { %v1939_v23 = vadd.f32 %v11100_v57, %v1771_v18  ;;  %v191_v18 = vld [vmem:[#allocation4 + $0x48] sm:$0xff] }
 0x1d3   :  { %v3801_v57 = vand.u32 4294901760, %v191_v18 }
 0x1db   :  { %v11133_v27 = vpop.f32.mrb[10].mxu1 }
 0x1dc   :  { %v11134_v49 = vpop.f32.mrb[11].mxu1 }
 0x1dd   :  { %v11135_v26 = vadd.f32 %v11134_v49, %v11133_v27  ;;  %v4652_v27 = vand.u32 4294901760, %v185_v55  ;;  %v182_v49 = vld [vmem:[#allocation4] sm:$0xff] }
 0x1df   :  { %v2043_v38 = vadd.f32 %v11135_v26, %v1939_v23  ;;  %v193_v23 = vld [vmem:[#allocation4 + $0x58] sm:$0xff]  ;;  %v190_v26 = vld [vmem:[#allocation4 + $0x40] sm:$0xff] }
 0x1ee   :  { %v11168_v63 = vpop.f32.mrb[12].mxu0 }
 0x1ef   :  { %v11169_v13 = vpop.f32.mrb[13].mxu0 }
 0x1f0   :  { %v11170_v6 = vadd.f32 %v11169_v13, %v11168_v63  ;;  %v3799_v63 = vand.u32 4294901760, %v182_v49  ;;  %v3803_v13 = vand.u32 4294901760, %v190_v26 }
 0x1f2   :  { %v2155_v35 = vadd.f32 %v11170_v6, %v2043_v38  ;;  %v4656_v38 = vand.u32 4294901760, %v193_v23  ;;  %v184_v6 = vld [vmem:[#allocation4 + $0x10] sm:$0xff]  ;;  %v17555_v53 = vsub.f32 %v182_v49, %v3799_v63 }
 0x1f3   :  { %v208_v49 = vld [vmem:[#allocation4 + $0xd0] sm:$0xff] }
 0x1f4   :  { %21243 = vst [vmem:[#allocation269_spill] sm:$0xff] %v17555_v53 }
 0x1fb   :  { %v11203_v34 = vpop.f32.mrb[12].mxu1 }
 0x1fc   :  { %v11204_v45 = vpop.f32.mrb[13].mxu1 }
 0x1fd   :  { %v11205_v40 = vadd.f32 %v11204_v45, %v11203_v34  ;;  %v199_v34 = vld [vmem:[#allocation4 + $0x88] sm:$0xff]  ;;  %v17541_v45 = vpack.c.bf16 %v3801_v57, %v3797_v29 }
 0x1ff   :  { %v2387_v58 = vadd.f32 %v11205_v40, %v2155_v35  ;;  %v192_v35 = vld [vmem:[#allocation4 + $0x50] sm:$0xff]  ;;  %21240 = vst [vmem:[#allocation266_spill] sm:$0xff] %v17541_v45  ;;  %v17543_v40 = vsub.f32 %v183_v28, %v3797_v29  ;;  %13165 = vmatprep.subr.bf16.mxu0 %v17541_v45  ;;  %v17558_v28 = vsub.f32 %v190_v26, %v3803_v13 }
 0x200   :  { %v4658_v29 = vand.u32 4294901760, %v192_v35 }
 0x202   :  { %v17566_v26 = vsub.f32 %v192_v35, %v4658_v29 }
 0x204   :  { %21246 = vst [vmem:[#allocation272_spill] sm:$0xff] %v17566_v26 }
 0x20e   :  { %v11238_v14 = vpop.f32.mrb[14].mxu0 }
 0x20f   :  { %v11239_v59 = vpop.f32.mrb[15].mxu0 }
 0x210   :  { %v11240_v46 = vadd.f32 %v11239_v59, %v11238_v14  ;;  %v17547_v14 = vsub.f32 %v185_v55, %v4652_v27  ;;  %v207_v59 = vld [vmem:[#allocation4 + $0xc8] sm:$0xff]  ;;  %v3805_v55 = vand.u32 4294901760, %v199_v34 }
 0x212   :  { %v2525_v50 = vadd.f32 %v11240_v46, %v2387_v58  ;;  %v17545_v58 = vsub.f32 %v191_v18, %v3801_v57  ;;  %v201_v46 = vld [vmem:[#allocation4 + $0x98] sm:$0xff]  ;;  %v4654_v18 = vand.u32 4294901760, %v184_v6  ;;  %v206_v57 = vld [vmem:[#allocation4 + $0xc0] sm:$0xff] }
 0x213   :  { %v3811_v35 = vand.u32 4294901760, %v206_v57 }
 0x214   :  { %v17564_v22 = vsub.f32 %v184_v6, %v4654_v18 }
 0x216   :  { %21245 = vst [vmem:[#allocation271_spill] sm:$0xff] %v17564_v22 }
 0x21b   :  { %v11273_v43 = vpop.f32.mrb[14].mxu1 }
 0x21c   :  { %v11274_v60 = vpop.f32.mrb[15].mxu1 }
 0x21d   :  { %v11275_v15 = vadd.f32 %v11274_v60, %v11273_v43  ;;  %v17549_v43 = vpack.c.bf16 %v4656_v38, %v4652_v27  ;;  %v17551_v60 = vsub.f32 %v193_v23, %v4656_v38  ;;  %v3809_v27 = vand.u32 4294901760, %v207_v59 }
 0x21e   :  { %v4660_v23 = vand.u32 4294901760, %v201_v46 }
 0x21f   :  { %v17539_v5 = vadd.f32 %v11275_v15, %v2525_v50  ;;  %v209_v50 = vld [vmem:[#allocation4 + $0xd8] sm:$0xff]  ;;  %21241 = vst [vmem:[#allocation267_spill] sm:$0xff] %v17549_v43  ;;  %v17553_v15 = vpack.c.bf16 %v3803_v13, %v3799_v63  ;;  %13357 = vmatprep.subr.bf16.mxu1 %v17549_v43  ;;  %v17562_v63 = vpack.c.bf16 %v4658_v29, %v4654_v18  ;;  %v4666_v29 = vand.u32 4294901760, %v208_v49 }
 0x220   :  { %v4664_v38 = vand.u32 4294901760, %v209_v50  ;;  %v17568_v13 = vsub.f32 %v199_v34, %v3805_v55  ;;  %v17570_v44 = vpack.c.bf16 %v3809_v27, %v3805_v55  ;;  %v17572_v30 = vsub.f32 %v207_v59, %v3809_v27 }
 0x221   :  { %21242 = vst [vmem:[#allocation268_spill] sm:$0xff] %v17553_v15  ;;  %13167 = vmatpush1.bf16.msra.mxu0 %v17553_v15  ;;  %21244 = vst [vmem:[#allocation270_spill] sm:$0xff] %v17562_v63  ;;  %v17576_v51 = vsub.f32 %v201_v46, %v4660_v23  ;;  %13359 = vmatpush1.bf16.msra.mxu1 %v17562_v63  ;;  %v17581_v18 = vsub.f32 %v198_v37, %v3807_v33  ;;  %v4662_v34 = vand.u32 4294901760, %v200_v56  ;;  %v222_v37 = vld [vmem:[#allocation4 + $0x140] sm:$0xff]  ;;  %v264_v63 = vld [vmem:[#allocation4 + $0x290] sm:$0xff] }
 0x222   :  { %21247 = vst [vmem:[#allocation273_spill] sm:$0xff] %v17568_v13  ;;  %21248 = vst [vmem:[#allocation274_spill] sm:$0xff] %v17570_v44  ;;  %v17574_v31 = vpack.c.bf16 %v4664_v38, %v4660_v23  ;;  %v17579_v6 = vsub.f32 %v209_v50, %v4664_v38  ;;  %13169 = vmatprep.subr.bf16.mxu0 %v17570_v44  ;;  %v3813_v59 = vand.u32 4294901760, %v215_v21  ;;  %v3817_v55 = vand.u32 4294901760, %v223_v24  ;;  %v214_v38 = vld [vmem:[#allocation4 + $0x100] sm:$0xff]  ;;  %v272_v15 = vld [vmem:[#allocation4 + $0x2d0] sm:$0xff] }
 0x223   :  { %21249 = vst [vmem:[#allocation275_spill] sm:$0xff] %v17572_v30  ;;  %21251 = vst [vmem:[#allocation277_spill] sm:$0xff] %v17576_v51  ;;  %v4668_v27 = vand.u32 4294901760, %v217_v17  ;;  %v17585_v46 = vpack.c.bf16 %v3811_v35, %v3807_v33  ;;  %v17587_v23 = vsub.f32 %v206_v57, %v3811_v35  ;;  %v17589_v12 = vsub.f32 %v200_v56, %v4662_v34  ;;  %v231_v33 = vld [vmem:[#allocation4 + $0x188] sm:$0xff] }
 0x224   :  { %21250 = vst [vmem:[#allocation276_spill] sm:$0xff] %v17574_v31  ;;  %21252 = vst [vmem:[#allocation278_spill] sm:$0xff] %v17579_v6  ;;  %13361 = vmatprep.subr.bf16.mxu1 %v17574_v31  ;;  %v4672_v50 = vand.u32 4294901760, %v225_v25  ;;  %v17591_v62 = vpack.c.bf16 %v4666_v29, %v4662_v34  ;;  %v17593_v61 = vsub.f32 %v208_v49, %v4666_v29  ;;  %v3819_v34 = vand.u32 4294901760, %v222_v37 }
 0x225   :  { %21253 = vst [vmem:[#allocation279_spill] sm:$0xff] %v17581_v18  ;;  %21254 = vst [vmem:[#allocation280_spill] sm:$0xff] %v17585_v46  ;;  %v17595_v36 = vpack.c.bf16 %v3817_v55, %v3813_v59  ;;  %v17597_v1 = vsub.f32 %v215_v21, %v3813_v59  ;;  %13171 = vmatpush1.bf16.msra.mxu0 %v17585_v46  ;;  %v17600_v56 = vsub.f32 %v223_v24, %v3817_v55  ;;  %v233_v59 = vld [vmem:[#allocation4 + $0x198] sm:$0xff] }
 0x226   :  { %21255 = vst [vmem:[#allocation281_spill] sm:$0xff] %v17587_v23  ;;  %21256 = vst [vmem:[#allocation282_spill] sm:$0xff] %v17589_v12  ;;  %v17602_v35 = vpack.c.bf16 %v4672_v50, %v4668_v27  ;;  %v17604_v8 = vsub.f32 %v217_v17, %v4668_v27  ;;  %13363 = vmatpush1.bf16.msra.mxu1 %v17591_v62  ;;  %v17608_v49 = vsub.f32 %v225_v25, %v4672_v50  ;;  %v230_v17 = vld [vmem:[#allocation4 + $0x180] sm:$0xff] }
 0x227   :  { %21257 = vst [vmem:[#allocation283_spill] sm:$0xff] %v17591_v62  ;;  %21258 = vst [vmem:[#allocation284_spill] sm:$0xff] %v17593_v61  ;;  %13173 = vmatprep.subr.bf16.mxu0 %v17595_v36  ;;  %v3815_v21 = vand.u32 4294901760, %v214_v38  ;;  %v4670_v29 = vand.u32 4294901760, %v216_v19  ;;  %v3821_v24 = vand.u32 4294901760, %v231_v33  ;;  %v3825_v55 = vand.u32 4294901760, %v239_v32 }
 0x228   :  { %21259 = vst [vmem:[#allocation285_spill] sm:$0xff] %v17595_v36  ;;  %21260 = vst [vmem:[#allocation286_spill] sm:$0xff] %v17597_v1  ;;  %13365 = vmatprep.subr.bf16.mxu1 %v17602_v35  ;;  %v238_v27 = vld [vmem:[#allocation4 + $0x1c0] sm:$0xff]  ;;  %v17616_v25 = vsub.f32 %v222_v37, %v3819_v34  ;;  %v4680_v37 = vand.u32 4294901760, %v241_v39  ;;  %v4694_v45 = vand.u32 4294901760, %v264_v63  ;;  %v303_v1 = vld [vmem:[#allocation4 + $0x3c8] sm:$0xff] }
 0x229   :  { %21261 = vst [vmem:[#allocation287_spill] sm:$0xff] %v17600_v56  ;;  %21262 = vst [vmem:[#allocation288_spill] sm:$0xff] %v17602_v35  ;;  %v17612_v48 = vpack.c.bf16 %v3819_v34, %v3815_v21  ;;  %v17614_v52 = vsub.f32 %v214_v38, %v3815_v21  ;;  %v17618_v50 = vsub.f32 %v216_v19, %v4670_v29  ;;  %v4676_v38 = vand.u32 4294901760, %v233_v59  ;;  %v295_v56 = vld [vmem:[#allocation4 + $0x388] sm:$0xff] }
 0x22a   :  { %21263 = vst [vmem:[#allocation289_spill] sm:$0xff] %v17604_v8  ;;  %21264 = vst [vmem:[#allocation290_spill] sm:$0xff] %v17608_v49  ;;  %v17624_v0 = vpack.c.bf16 %v3825_v55, %v3821_v24  ;;  %v17626_v4 = vsub.f32 %v231_v33, %v3821_v24  ;;  %v17629_v11 = vsub.f32 %v239_v32, %v3825_v55  ;;  %v3823_v21 = vand.u32 4294901760, %v230_v17  ;;  %v257_v55 = vld [vmem:[#allocation4 + $0x258] sm:$0xff] }
 0x22b   :  { %21265 = vst [vmem:[#allocation291_spill] sm:$0xff] %v17612_v48  ;;  %21266 = vst [vmem:[#allocation292_spill] sm:$0xff] %v17614_v52  ;;  %13175 = vmatpush1.bf16.msra.mxu0 %v17612_v48  ;;  %v3827_v19 = vand.u32 4294901760, %v238_v27  ;;  %v4678_v34 = vand.u32 4294901760, %v232_v20  ;;  %v17633_v7 = vpack.c.bf16 %v4680_v37, %v4676_v38  ;;  %v17635_v33 = vsub.f32 %v233_v59, %v4676_v38 }
 0x22c   :  { %21267 = vst [vmem:[#allocation293_spill] sm:$0xff] %v17616_v25  ;;  %21268 = vst [vmem:[#allocation294_spill] sm:$0xff] %v17618_v50  ;;  %13177 = vmatprep.subr.bf16.mxu0 %v17624_v0  ;;  %v17637_v24 = vsub.f32 %v241_v39, %v4680_v37  ;;  %v17639_v32 = vsub.f32 %v230_v17, %v3823_v21  ;;  %v4684_v39 = vand.u32 4294901760, %v249_v9  ;;  %v288_v50 = vld [vmem:[#allocation4 + $0x350] sm:$0xff]  ;;  %v3853_v61 = vand.u32 4294901760, %v295_v56 }
 0x22d   :  { %21271 = vst [vmem:[#allocation297_spill] sm:$0xff] %v17624_v0  ;;  %21272 = vst [vmem:[#allocation298_spill] sm:$0xff] %v17626_v4  ;;  %v17641_v16 = vpack.c.bf16 %v3827_v19, %v3823_v21  ;;  %v17643_v2 = vsub.f32 %v238_v27, %v3827_v19  ;;  %v17647_v0 = vsub.f32 %v232_v20, %v4678_v34  ;;  %v4688_v27 = vand.u32 4294901760, %v257_v55 }
 0x22e   :  { %21273 = vst [vmem:[#allocation299_spill] sm:$0xff] %v17629_v11  ;;  %21274 = vst [vmem:[#allocation300_spill] sm:$0xff] %v17633_v7  ;;  %v17660_v19 = vsub.f32 %v249_v9, %v4684_v39  ;;  %v4706_v52 = vand.u32 4294901760, %v288_v50  ;;  %v3857_v12 = vand.u32 4294901760, %v303_v1 }
 0x22f   :  { %21275 = vst [vmem:[#allocation301_spill] sm:$0xff] %v17635_v33  ;;  %21276 = vst [vmem:[#allocation302_spill] sm:$0xff] %v17637_v24  ;;  %13179 = vmatpush1.bf16.msra.mxu0 %v17641_v16  ;;  %v286_v24 = vld [vmem:[#allocation4 + $0x340] sm:$0xff] }
 0x230   :  { %v11308_v41 = vpop.f32.mrb[16].mxu0  ;;  %21277 = vst [vmem:[#allocation303_spill] sm:$0xff] %v17639_v32  ;;  %21278 = vst [vmem:[#allocation304_spill] sm:$0xff] %v17641_v16  ;;  %v3851_v4 = vand.u32 4294901760, %v286_v24 }
 0x231   :  { %v11309_v3 = vpop.f32.mrb[17].mxu0  ;;  %21279 = vst [vmem:[#allocation305_spill] sm:$0xff] %v17643_v2  ;;  %21281 = vst [vmem:[#allocation307_spill] sm:$0xff] %v17647_v0  ;;  %v289_v2 = vld [vmem:[#allocation4 + $0x358] sm:$0xff] }
 0x232   :  { %v11310_v57 = vadd.f32 %v11309_v3, %v11308_v41  ;;  %v4674_v41 = vand.u32 4294901760, %v224_v54  ;;  %21286 = vst [vmem:[#allocation312_spill] sm:$0xff] %v17660_v19  ;;  %v279_v19 = vld [vmem:[#allocation4 + $0x308] sm:$0xff]  ;;  %v4704_v33 = vand.u32 4294901760, %v289_v2 }
 0x234   :  { %v2801_v3 = vadd.f32 %v11310_v57, %v17539_v5  ;;  %v17620_v5 = vpack.c.bf16 %v4674_v41, %v4670_v29  ;;  %v17622_v57 = vsub.f32 %v224_v54, %v4674_v41  ;;  %v4682_v29 = vand.u32 4294901760, %v240_v10  ;;  %v255_v54 = vld [vmem:[#allocation4 + $0x248] sm:$0xff] }
 0x235   :  { %v3829_v41 = vand.u32 4294901760, %v247_v47  ;;  %v3833_v59 = vand.u32 4294901760, %v255_v54 }
 0x236   :  { %21269 = vst [vmem:[#allocation295_spill] sm:$0xff] %v17620_v5  ;;  %21270 = vst [vmem:[#allocation296_spill] sm:$0xff] %v17622_v57  ;;  %13367 = vmatpush1.bf16.msra.mxu1 %v17620_v5  ;;  %v17645_v42 = vpack.c.bf16 %v4682_v29, %v4678_v34  ;;  %v17650_v48 = vsub.f32 %v240_v10, %v4682_v29  ;;  %v17662_v34 = vpack.c.bf16 %v4688_v27, %v4684_v39  ;;  %v280_v57 = vld [vmem:[#allocation4 + $0x310] sm:$0xff] }
 0x237   :  { %13369 = vmatprep.subr.bf16.mxu1 %v17633_v7  ;;  %v17652_v38 = vsub.f32 %v247_v47, %v3829_v41  ;;  %v17656_v21 = vpack.c.bf16 %v3833_v59, %v3829_v41  ;;  %v17658_v20 = vsub.f32 %v255_v54, %v3833_v59  ;;  %v17664_v10 = vsub.f32 %v257_v55, %v4688_v27 }
 0x238   :  { %21280 = vst [vmem:[#allocation306_spill] sm:$0xff] %v17645_v42  ;;  %21282 = vst [vmem:[#allocation308_spill] sm:$0xff] %v17650_v48  ;;  %v3845_v48 = vand.u32 4294901760, %v279_v19  ;;  %v4702_v25 = vand.u32 4294901760, %v280_v57 }
 0x239   :  { %21283 = vst [vmem:[#allocation309_spill] sm:$0xff] %v17652_v38  ;;  %21284 = vst [vmem:[#allocation310_spill] sm:$0xff] %v17656_v21  ;;  %13181 = vmatprep.subr.bf16.mxu0 %v17656_v21  ;;  %v281_v38 = vld [vmem:[#allocation4 + $0x318] sm:$0xff] }
 0x23a   :  { %13371 = vmatpush1.bf16.msra.mxu1 %v17645_v42  ;;  %21285 = vst [vmem:[#allocation311_spill] sm:$0xff] %v17658_v20  ;;  %21287 = vst [vmem:[#allocation313_spill] sm:$0xff] %v17662_v34  ;;  %v287_v20 = vld [vmem:[#allocation4 + $0x348] sm:$0xff]  ;;  %v4700_v32 = vand.u32 4294901760, %v281_v38 }
 0x23b   :  { %21288 = vst [vmem:[#allocation314_spill] sm:$0xff] %v17664_v10  ;;  %13373 = vmatprep.subr.bf16.mxu1 %v17662_v34  ;;  %v3849_v0 = vand.u32 4294901760, %v287_v20 }
 0x23c   :  { %v11343_v5 = vpop.f32.mrb[16].mxu1  ;;  %v17707_v49 = vpack.c.bf16 %v4704_v33, %v4700_v32 }
 0x23d   :  { %v11344_v17 = vpop.f32.mrb[17].mxu1 }
 0x23e   :  { %v11345_v37 = vadd.f32 %v11344_v17, %v11343_v5  ;;  %21300 = vst [vmem:[#allocation324_spill] sm:$0xff] %v17707_v49 }
 0x240   :  { %v2905_v47 = vadd.f32 %v11345_v37, %v2801_v3  ;;  %v3786_v37 = vpop.xlane.xlu0 %3785 }
 0x241   :  { %v3787_v21 = vmax.f32 %v3786_v37, 1e-24 }
 0x243   :  { %14749 = vrsqrt.f32 %v3787_v21  ;;  %v17678_v21 = vld [vmem:[#allocation4 + $0x200] sm:$0xff] }
 0x252   :  { %v11378_v29 = vpop.f32.mrb[18].mxu0 }
 0x253   :  { %v11379_v16 = vpop.f32.mrb[19].mxu0 }
 0x254   :  { %v11380_v42 = vadd.f32 %v11379_v16, %v11378_v29  ;;  %v17668_v16 = vpop.xlane.xlu1 %315 }
 0x255   :  { %21289 = vst [vmem:[#allocation315_spill] sm:$0xff] %v17668_v16  ;;  %14751 = vrcp.f32 %v17668_v16 }
 0x256   :  { %v3017_v7 = vadd.f32 %v11380_v42, %v2905_v47 }
 0x25d   :  { %v11413_v5 = vpop.f32.mrb[18].mxu1 }
 0x25e   :  { %v11414_v41 = vpop.f32.mrb[19].mxu1 }
 0x25f   :  { %v11415_v17 = vadd.f32 %v11414_v41, %v11413_v5 }
 0x261   :  { %v3249_v54 = vadd.f32 %v11415_v17, %v3017_v7  ;;  %v14750_v7 = vpop.eup %14749 }
 0x262   :  { %v3789_v5 = vmul.f32 1e-06, %v14750_v7  ;;  %v14752_v41 = vpop.eup %14751  ;;  %v271_v7 = vld [vmem:[#allocation4 + $0x2c8] sm:$0xff] }
 0x272   :  { %v11448_v59 = vpop.f32.mrb[20].mxu0 }
 0x273   :  { %v11449_v9 = vpop.f32.mrb[21].mxu0 }
 0x274   :  { %v11450_v35 = vadd.f32 %v11449_v9, %v11448_v59  ;;  %v3831_v9 = vand.u32 4294901760, %v17678_v21 }
 0x276   :  { %v3387_v39 = vadd.f32 %v11450_v35, %v3249_v54 }
 0x27d   :  { %v11483_v36 = vpop.f32.mrb[20].mxu1 }
 0x27e   :  { %v11484_v55 = vpop.f32.mrb[21].mxu1 }
 0x27f   :  { %v11485_v27 = vadd.f32 %v11484_v55, %v11483_v36  ;;  %v21290_v36 = vld [vmem:[#allocation131_spill] sm:$0xff]  ;;  %v256_v55 = vld [vmem:[#allocation4 + $0x250] sm:$0xff] }
 0x280   :  { %v17672_v54 = vmul.f32 %v14752_v41, %v21290_v36  ;;  %v273_v41 = vld [vmem:[#allocation4 + $0x2d8] sm:$0xff]  ;;  %v262_v36 = vld [vmem:[#allocation4 + $0x280] sm:$0xff] }
 0x281   :  { %v3495_v3 = vadd.f32 %v11485_v27, %v3387_v39  ;;  %v4696_v16 = vand.u32 4294901760, %v273_v41  ;;  %v3839_v31 = vand.u32 4294901760, %v262_v36 }
 0x282   :  { %21291 = vst [vmem:[#allocation131_spill] sm:$0xff] %v17672_v54 }
 0x283   :  { %v17732_v26 = vsub.f32 %v273_v41, %v4696_v16 }
 0x285   :  { %21309 = vst [vmem:[#allocation333_spill] sm:$0xff] %v17732_v26 }
 0x292   :  { %v11518_v34 = vpop.f32.mrb[22].mxu0 }
 0x293   :  { %v11519_v62 = vpop.f32.mrb[23].mxu0 }
 0x294   :  { %v11520_v46 = vadd.f32 %v11519_v62, %v11518_v34  ;;  %v17680_v34 = vld [vmem:[#allocation4 + $0x240] sm:$0xff] }
 0x295   :  { %v3835_v39 = vand.u32 4294901760, %v17680_v34 }
 0x296   :  { %v3663_v42 = vadd.f32 %v11520_v46, %v3495_v3  ;;  %v17682_v46 = vld [vmem:[#allocation4 + $0x210] sm:$0xff]  ;;  %v4690_v3 = vand.u32 4294901760, %v256_v55 }
 0x297   :  { %v4686_v27 = vand.u32 4294901760, %v17682_v46  ;;  %v17687_v37 = vpack.c.bf16 %v3835_v39, %v3831_v9  ;;  %v17718_v18 = vsub.f32 %v17680_v34, %v3835_v39  ;;  %v305_v39 = vld [vmem:[#allocation4 + $0x3d8] sm:$0xff] }
 0x298   :  { %v17723_v51 = vsub.f32 %v256_v55, %v4690_v3  ;;  %v17744_v55 = vsub.f32 %v279_v19, %v3845_v48  ;;  %v20357_v19 = vand.u32 4294901760, %v17545_v58 }
 0x299   :  { %21293 = vst [vmem:[#allocation317_spill] sm:$0xff] %v17687_v37  ;;  %13183 = vmatpush1.bf16.msra.mxu0 %v17687_v37  ;;  %21304 = vst [vmem:[#allocation328_spill] sm:$0xff] %v17718_v18  ;;  %v17721_v6 = vsub.f32 %v17682_v46, %v4686_v27  ;;  %v17739_v46 = vsub.f32 %v264_v63, %v4694_v45  ;;  %v17758_v63 = vsub.f32 %v288_v50, %v4706_v52 }
 0x29a   :  { %21306 = vst [vmem:[#allocation330_spill] sm:$0xff] %v17723_v51  ;;  %21310 = vst [vmem:[#allocation334_spill] sm:$0xff] %v17744_v55  ;;  %v3920_v41 = vsub.f32 %v17545_v58, %v20357_v19 }
 0x29b   :  { %21305 = vst [vmem:[#allocation329_spill] sm:$0xff] %v17721_v6  ;;  %21315 = vst [vmem:[#allocation339_spill] sm:$0xff] %v17758_v63 }
 0x29d   :  { %v11553_v47 = vpop.f32.mrb[22].mxu1 }
 0x29e   :  { %v11554_v29 = vpop.f32.mrb[23].mxu1 }
 0x29f   :  { %v11555_v35 = vadd.f32 %v11554_v29, %v11553_v47  ;;  %v265_v47 = vld [vmem:[#allocation4 + $0x298] sm:$0xff]  ;;  %v17689_v29 = vpack.c.bf16 %v4690_v3, %v4686_v27  ;;  %v17746_v27 = vsub.f32 %v287_v20, %v3849_v0  ;;  %v17748_v3 = vsub.f32 %v281_v38, %v4700_v32 }
 0x2a0   :  { %v17764_v32 = vsub.f32 %v303_v1, %v3857_v12 }
 0x2a1   :  { %v3767_v17 = vadd.f32 %v11555_v35, %v3663_v42  ;;  %v263_v42 = vld [vmem:[#allocation4 + $0x288] sm:$0xff]  ;;  %21294 = vst [vmem:[#allocation318_spill] sm:$0xff] %v17689_v29  ;;  %v3841_v35 = vand.u32 4294901760, %v271_v7  ;;  %13375 = vmatpush1.bf16.msra.mxu1 %v17689_v29  ;;  %v278_v29 = vld [vmem:[#allocation4 + $0x300] sm:$0xff]  ;;  %21311 = vst [vmem:[#allocation335_spill] sm:$0xff] %v17748_v3 }
 0x2a2   :  { %v3847_v11 = vand.u32 4294901760, %v278_v29 }
 0x2a3   :  { %v17674_v59 = vmul.f32 %v3789_v5, %v3767_v17  ;;  %v3837_v5 = vand.u32 4294901760, %v263_v42  ;;  %v4692_v17 = vand.u32 4294901760, %v265_v47 }
 0x2a4   :  { %v17709_v8 = vpack.c.bf16 %v3851_v4, %v3847_v11 }
 0x2a5   :  { %21292 = vst [vmem:[#allocation316_spill] sm:$0xff] %v17674_v59  ;;  %v3791_v62 = vmul.f32 %v17674_v59, %v17672_v54  ;;  %v17693_v43 = vpack.c.bf16 %v3841_v35, %v3837_v5  ;;  %v4698_v54 = vand.u32 4294901760, %v272_v15  ;;  %v17695_v59 = vpack.c.bf16 %v4696_v16, %v4692_v17 }
 0x2a6   :  { %21301 = vst [vmem:[#allocation325_spill] sm:$0xff] %v17709_v8  ;;  %v17726_v30 = vsub.f32 %v263_v42, %v3837_v5  ;;  %v17730_v13 = vsub.f32 %v265_v47, %v4692_v17  ;;  %v17750_v16 = vsub.f32 %v289_v2, %v4704_v33  ;;  %v294_v42 = vld [vmem:[#allocation4 + $0x380] sm:$0xff]  ;;  %v4712_v2 = vand.u32 4294901760, %v305_v39 }
 0x2a7   :  { %3792 = vadd.xlane.f32.xlu1 %v3791_v62  ;;  %v270_v62 = vld [vmem:[#allocation4 + $0x2c0] sm:$0xff]  ;;  %21295 = vst [vmem:[#allocation319_spill] sm:$0xff] %v17693_v43  ;;  %21296 = vst [vmem:[#allocation320_spill] sm:$0xff] %v17695_v59  ;;  %13185 = vmatprep.subr.bf16.mxu0 %v17693_v43  ;;  %v17700_v37 = vpack.c.bf16 %v4698_v54, %v4694_v45  ;;  %v17705_v43 = vpack.c.bf16 %v3849_v0, %v3845_v48  ;;  %v3855_v38 = vand.u32 4294901760, %v294_v42 }
 0x2a8   :  { %v3843_v44 = vand.u32 4294901760, %v270_v62  ;;  %13377 = vmatprep.subr.bf16.mxu1 %v17695_v59  ;;  %v297_v59 = vld [vmem:[#allocation4 + $0x398] sm:$0xff]  ;;  %21307 = vst [vmem:[#allocation331_spill] sm:$0xff] %v17726_v30  ;;  %21312 = vst [vmem:[#allocation336_spill] sm:$0xff] %v17750_v16  ;;  %v17754_v45 = vsub.f32 %v286_v24, %v3851_v4  ;;  %v17760_v48 = vpack.c.bf16 %v3857_v12, %v3853_v61  ;;  %v20360_v12 = vmov 0.0  }
 0x2a9   :  { %21298 = vst [vmem:[#allocation322_spill] sm:$0xff] %v17700_v37  ;;  %13379 = vmatpush1.bf16.msra.mxu1 %v17700_v37  ;;  %21299 = vst [vmem:[#allocation323_spill] sm:$0xff] %v17705_v43  ;;  %v4708_v23 = vand.u32 4294901760, %v297_v59  ;;  %v17715_v37 = vsub.f32 %v17678_v21, %v3831_v9  ;;  %v17735_v21 = vsub.f32 %v262_v36, %v3839_v31  ;;  %3893 = vmatprep.mubr.f32.mxu0 %v20360_v12  ;;  %v21325_v36 = vld [vmem:[#allocation272_spill] sm:$0xff] }
 0x2aa   :  { %v17697_v10 = vpack.c.bf16 %v3843_v44, %v3839_v31  ;;  %13381 = vmatprep.subr.bf16.mxu1 %v17707_v49  ;;  %v17737_v34 = vsub.f32 %v270_v62, %v3843_v44  ;;  %v17741_v9 = vsub.f32 %v272_v15, %v4698_v54  ;;  %v302_v31 = vld [vmem:[#allocation4 + $0x3c0] sm:$0xff]  ;;  %v17752_v44 = vsub.f32 %v278_v29, %v3847_v11  ;;  %v304_v54 = vld [vmem:[#allocation4 + $0x3d0] sm:$0xff] }
 0x2ab   :  { %21303 = vst [vmem:[#allocation327_spill] sm:$0xff] %v17715_v37  ;;  %21314 = vst [vmem:[#allocation338_spill] sm:$0xff] %v17754_v45  ;;  %v17756_v15 = vsub.f32 %v280_v57, %v4702_v25  ;;  %v17762_v0 = vsub.f32 %v295_v56, %v3853_v61  ;;  %v17766_v33 = vsub.f32 %v297_v59, %v4708_v23  ;;  %v3859_v20 = vand.u32 4294901760, %v302_v31 }
 0x2ac   :  { %21297 = vst [vmem:[#allocation321_spill] sm:$0xff] %v17697_v10  ;;  %13187 = vmatpush1.bf16.msra.mxu0 %v17697_v10  ;;  %v17712_v10 = vpack.c.bf16 %v4706_v52, %v4702_v25  ;;  %21313 = vst [vmem:[#allocation337_spill] sm:$0xff] %v17752_v44  ;;  %v17769_v4 = vpack.c.bf16 %v4712_v2, %v4708_v23  ;;  %v17771_v25 = vsub.f32 %v305_v39, %v4712_v2 }
 0x2ad   :  { %13189 = vmatprep.subr.bf16.mxu0 %v17705_v43  ;;  %v17728_v43 = vsub.f32 %v271_v7, %v3841_v35  ;;  %v296_v7 = vld [vmem:[#allocation4 + $0x390] sm:$0xff]  ;;  %21316 = vst [vmem:[#allocation340_spill] sm:$0xff] %v17760_v48  ;;  %v4714_v52 = vand.u32 4294901760, %v304_v54  ;;  %v17773_v50 = vpack.c.bf16 %v3859_v20, %v3855_v38  ;;  %v17775_v57 = vsub.f32 %v294_v42, %v3855_v38 }
 0x2ae   :  { %21302 = vst [vmem:[#allocation326_spill] sm:$0xff] %v17712_v10  ;;  %13383 = vmatpush1.bf16.msra.mxu1 %v17712_v10  ;;  %v4710_v11 = vand.u32 4294901760, %v296_v7  ;;  %21317 = vst [vmem:[#allocation341_spill] sm:$0xff] %v17769_v4  ;;  %v17777_v61 = vsub.f32 %v302_v31, %v3859_v20  ;;  %v20359_v24 = vand.u32 4294901760, %v17543_v40  ;;  %4748 = vmatprep.mubr.f32.mxu1 %v20360_v12  ;;  %v20356_v59 = vand.u32 4294901760, %v17547_v14  ;;  %v21326_v12 = vld [vmem:[#allocation273_spill] sm:$0xff] }
 0x2af   :  { %21308 = vst [vmem:[#allocation332_spill] sm:$0xff] %v17728_v43  ;;  %21318 = vst [vmem:[#allocation342_spill] sm:$0xff] %v17771_v25  ;;  %13385 = vmatprep.subr.bf16.mxu1 %v17769_v4  ;;  %v17785_v23 = vsub.f32 %v304_v54, %v4714_v52  ;;  %v20355_v47 = vand.u32 4294901760, %v17551_v60  ;;  %v20358_v29 = vand.u32 4294901760, %v17555_v53  ;;  %v20364_v5 = vand.u32 4294901760, %v17558_v28  ;;  %v21329_v4 = vld [vmem:[#allocation277_spill] sm:$0xff] }
 0x2b0   :  { %13191 = vmatpush1.bf16.msra.mxu0 %v17709_v8  ;;  %21319 = vst [vmem:[#allocation343_spill] sm:$0xff] %v17773_v50  ;;  %21320 = vst [vmem:[#allocation344_spill] sm:$0xff] %v17775_v57  ;;  %v17779_v1 = vsub.f32 %v296_v7, %v4710_v11  ;;  %v17783_v56 = vpack.c.bf16 %v4714_v52, %v4710_v11  ;;  %v3908_v35 = vsub.f32 %v17543_v40, %v20359_v24  ;;  %v21336_v8 = vld [vmem:[#allocation286_spill] sm:$0xff] }
 0x2b1   :  { %13193 = vmatprep.subr.bf16.mxu0 %v17760_v48  ;;  %21321 = vst [vmem:[#allocation345_spill] sm:$0xff] %v17777_v61  ;;  %21324 = vst [vmem:[#allocation348_spill] sm:$0xff] %v17785_v23  ;;  %v20369_v17 = vand.u32 4294901760, %v17564_v22  ;;  %v20375_v62 = vand.u32 4294901760, %v21325_v36  ;;  %v4763_v39 = vsub.f32 %v17547_v14, %v20356_v59  ;;  %v4775_v42 = vsub.f32 %v17551_v60, %v20355_v47 }
 0x2b2   :  { %21322 = vst [vmem:[#allocation346_spill] sm:$0xff] %v17779_v1  ;;  %21323 = vst [vmem:[#allocation347_spill] sm:$0xff] %v17783_v56  ;;  %13387 = vmatpush1.bf16.msra.mxu1 %v17783_v56  ;;  %v3914_v31 = vsub.f32 %v17555_v53, %v20358_v29  ;;  %v3926_v7 = vsub.f32 %v17558_v28, %v20364_v5  ;;  %v3909_v54 = vand.u32 4294901760, %v3908_v35  ;;  %v3921_v2 = vand.u32 4294901760, %v3920_v41  ;;  %v21328_v41 = vld [vmem:[#allocation275_spill] sm:$0xff] }
 0x2b3   :  { %v4769_v38 = vsub.f32 %v17564_v22, %v20369_v17  ;;  %v4781_v20 = vsub.f32 %v21325_v36, %v20375_v62  ;;  %v4764_v11 = vand.u32 4294901760, %v4763_v39  ;;  %v4776_v52 = vand.u32 4294901760, %v4775_v42  ;;  %v21331_v42 = vld [vmem:[#allocation278_spill] sm:$0xff]  ;;  %v21388_v36 = vld [vmem:[#allocation293_spill] sm:$0xff]  ;;  %v21396_v22 = vld [vmem:[#allocation327_spill] sm:$0xff] }
 0x2b4   :  { %13195 = vmatpush1.bf16.msra.mxu0 %v17773_v50  ;;  %v3915_v47 = vand.u32 4294901760, %v3914_v31  ;;  %v3927_v59 = vand.u32 4294901760, %v3926_v7  ;;  %v13196_v19 = vpack.c.bf16 %v3921_v2, %v3909_v54  ;;  %v20373_v56 = vand.u32 4294901760, %v21326_v12  ;;  %v21332_v7 = vld [vmem:[#allocation279_spill] sm:$0xff] }
 0x2b5   :  { %v4770_v29 = vand.u32 4294901760, %v4769_v38  ;;  %v4782_v24 = vand.u32 4294901760, %v4781_v20  ;;  %v13388_v5 = vpack.c.bf16 %v4776_v52, %v4764_v11  ;;  %v20372_v50 = vand.u32 4294901760, %v21328_v41  ;;  %v21335_v11 = vld [vmem:[#allocation284_spill] sm:$0xff] }
 0x2b6   :  { %v17823_v35 = vpack.c.bf16 %v3927_v59, %v3915_v47  ;;  %v20374_v17 = vand.u32 4294901760, %v21329_v4  ;;  %13197 = vmatprep.subr.bf16.mxu0 %v13196_v19  ;;  %v3932_v39 = vsub.f32 %v21326_v12, %v20373_v56  ;;  %v20378_v31 = vand.u32 4294901760, %v21331_v42  ;;  %v21333_v19 = vld [vmem:[#allocation281_spill] sm:$0xff]  ;;  %v21398_v12 = vld [vmem:[#allocation316_spill] sm:$0xff] }
 0x2b7   :  { %v17827_v48 = vpack.c.bf16 %v4782_v24, %v4770_v29  ;;  %v20381_v54 = vand.u32 4294901760, %v21332_v7  ;;  %13389 = vmatprep.subr.bf16.mxu1 %v13388_v5  ;;  %v3944_v59 = vsub.f32 %v21328_v41, %v20372_v50  ;;  %v20385_v24 = vand.u32 4294901760, %v21333_v19  ;;  %v21334_v29 = vld [vmem:[#allocation282_spill] sm:$0xff]  ;;  %v21390_v41 = vld [vmem:[#allocation296_spill] sm:$0xff] }
 0x2b8   :  { %21327 = vst [vmem:[#allocation349_spill] sm:$0xff] %v17823_v35  ;;  %v4787_v47 = vsub.f32 %v21329_v4, %v20374_v17  ;;  %v20386_v2 = vand.u32 4294901760, %v21334_v29  ;;  %v3933_v38 = vand.u32 4294901760, %v3932_v39  ;;  %v4799_v20 = vsub.f32 %v21331_v42, %v20378_v31  ;;  %v21391_v4 = vld [vmem:[#allocation298_spill] sm:$0xff]  ;;  %v21392_v42 = vld [vmem:[#allocation299_spill] sm:$0xff] }
 0x2b9   :  { %21330 = vst [vmem:[#allocation350_spill] sm:$0xff] %v17827_v48  ;;  %v3938_v5 = vsub.f32 %v21332_v7, %v20381_v54  ;;  %v20388_v52 = vand.u32 4294901760, %v21335_v11  ;;  %v3945_v50 = vand.u32 4294901760, %v3944_v59  ;;  %v3950_v17 = vsub.f32 %v21333_v19, %v20385_v24  ;;  %v21338_v48 = vld [vmem:[#allocation287_spill] sm:$0xff] }
 0x2ba   :  { %v4788_v56 = vand.u32 4294901760, %v4787_v47  ;;  %v4793_v39 = vsub.f32 %v21334_v29, %v20386_v2  ;;  %v4800_v62 = vand.u32 4294901760, %v4799_v20  ;;  %v20389_v54 = vand.u32 4294901760, %v21336_v8  ;;  %v21395_v19 = vld [vmem:[#allocation303_spill] sm:$0xff] }
 0x2bb   :  { %v3939_v10 = vand.u32 4294901760, %v3938_v5  ;;  %v4805_v31 = vsub.f32 %v21335_v11, %v20388_v52  ;;  %v17859_v49 = vpack.c.bf16 %v3945_v50, %v3933_v38  ;;  %v3951_v59 = vand.u32 4294901760, %v3950_v17  ;;  %v21340_v5 = vld [vmem:[#allocation289_spill] sm:$0xff]  ;;  %v21342_v38 = vld [vmem:[#allocation290_spill] sm:$0xff] }
 0x2bc   :  { %v4794_v47 = vand.u32 4294901760, %v4793_v39  ;;  %v20390_v35 = vand.u32 4294901760, %v21338_v48  ;;  %v17862_v7 = vpack.c.bf16 %v4800_v62, %v4788_v56  ;;  %v3956_v20 = vsub.f32 %v21336_v8, %v20389_v54  ;;  %v21343_v39 = vld [vmem:[#allocation292_spill] sm:$0xff] }
 0x2bd   :  { %21337 = vst [vmem:[#allocation351_spill] sm:$0xff] %v17859_v49  ;;  %v4806_v24 = vand.u32 4294901760, %v4805_v31  ;;  %v20391_v2 = vand.u32 4294901760, %v21340_v5  ;;  %v17868_v29 = vpack.c.bf16 %v3951_v59, %v3939_v10  ;;  %v20395_v17 = vand.u32 4294901760, %v21342_v38  ;;  %v21345_v31 = vld [vmem:[#allocation293_spill] sm:$0xff] }
 0x2be   :  { %21339 = vst [vmem:[#allocation352_spill] sm:$0xff] %v17862_v7  ;;  %v3968_v50 = vsub.f32 %v21338_v48, %v20390_v35  ;;  %v20396_v52 = vand.u32 4294901760, %v21343_v39  ;;  %v3957_v56 = vand.u32 4294901760, %v3956_v20  ;;  %v20397_v54 = vand.u32 4294901760, %v21345_v31  ;;  %v21346_v35 = vld [vmem:[#allocation294_spill] sm:$0xff]  ;;  %v21347_v20 = vld [vmem:[#allocation296_spill] sm:$0xff] }
 0x2bf   :  { %21341 = vst [vmem:[#allocation353_spill] sm:$0xff] %v17868_v29  ;;  %v17875_v49 = vpack.c.bf16 %v4806_v24, %v4794_v47  ;;  %v4811_v62 = vsub.f32 %v21340_v5, %v20391_v2  ;;  %v4823_v10 = vsub.f32 %v21342_v38, %v20395_v17  ;;  %v20402_v29 = vand.u32 4294901760, %v21346_v35 }
 0x2c0   :  { %v3969_v7 = vand.u32 4294901760, %v3968_v50  ;;  %v3962_v59 = vsub.f32 %v21343_v39, %v20396_v52  ;;  %v3974_v47 = vsub.f32 %v21345_v31, %v20397_v54  ;;  %v20403_v2 = vand.u32 4294901760, %v21347_v20  ;;  %v21350_v31 = vld [vmem:[#allocation299_spill] sm:$0xff] }
 0x2c1   :  { %21344 = vst [vmem:[#allocation354_spill] sm:$0xff] %v17875_v49  ;;  %v4812_v24 = vand.u32 4294901760, %v4811_v62  ;;  %v21348_v49 = vld [vmem:[#allocation298_spill] sm:$0xff]  ;;  %v4824_v48 = vand.u32 4294901760, %v4823_v10  ;;  %v4817_v17 = vsub.f32 %v21346_v35, %v20402_v29  ;;  %v20407_v39 = vand.u32 4294901760, %v21350_v31 }
 0x2c2   :  { %v20404_v5 = vand.u32 4294901760, %v21348_v49  ;;  %v17893_v50 = vpack.c.bf16 %v3969_v7, %v3957_v56  ;;  %v3963_v8 = vand.u32 4294901760, %v3962_v59  ;;  %v3975_v52 = vand.u32 4294901760, %v3974_v47  ;;  %v21352_v56 = vld [vmem:[#allocation301_spill] sm:$0xff]  ;;  %v21353_v59 = vld [vmem:[#allocation302_spill] sm:$0xff] }
 0x2c3   :  { %v4829_v62 = vsub.f32 %v21347_v20, %v20403_v2  ;;  %v17905_v38 = vpack.c.bf16 %v4824_v48, %v4812_v24  ;;  %v4818_v7 = vand.u32 4294901760, %v4817_v17  ;;  %v20409_v10 = vand.u32 4294901760, %v21352_v56  ;;  %v21355_v17 = vld [vmem:[#allocation303_spill] sm:$0xff] }
 0x2c4   :  { %21349 = vst [vmem:[#allocation355_spill] sm:$0xff] %v17893_v50  ;;  %v3980_v54 = vsub.f32 %v21348_v49, %v20404_v5  ;;  %v20410_v50 = vand.u32 4294901760, %v21353_v59  ;;  %v17909_v11 = vpack.c.bf16 %v3975_v52, %v3963_v8  ;;  %v3992_v2 = vsub.f32 %v21350_v31, %v20407_v39 }
 0x2c5   :  { %21351 = vst [vmem:[#allocation356_spill] sm:$0xff] %v17905_v38  ;;  %v4830_v47 = vand.u32 4294901760, %v4829_v62  ;;  %v4835_v5 = vsub.f32 %v21352_v56, %v20409_v10  ;;  %v20412_v24 = vand.u32 4294901760, %v21355_v17  ;;  %v21356_v38 = vld [vmem:[#allocation305_spill] sm:$0xff] }
 0x2c6   :  { %21354 = vst [vmem:[#allocation357_spill] sm:$0xff] %v17909_v11  ;;  %v3981_v29 = vand.u32 4294901760, %v3980_v54  ;;  %v4847_v48 = vsub.f32 %v21353_v59, %v20410_v50  ;;  %v20416_v49 = vand.u32 4294901760, %v21356_v38  ;;  %v3993_v52 = vand.u32 4294901760, %v3992_v2  ;;  %v21358_v54 = vld [vmem:[#allocation307_spill] sm:$0xff]  ;;  %v21359_v11 = vld [vmem:[#allocation308_spill] sm:$0xff] }
 0x2c7   :  { %v17922_v8 = vpack.c.bf16 %v4830_v47, %v4818_v7  ;;  %v20417_v62 = vand.u32 4294901760, %v21358_v54  ;;  %v20418_v20 = vand.u32 4294901760, %v21359_v11  ;;  %v4836_v39 = vand.u32 4294901760, %v4835_v5  ;;  %v21361_v5 = vld [vmem:[#allocation309_spill] sm:$0xff] }
 0x2c8   :  { %v4848_v31 = vand.u32 4294901760, %v4847_v48  ;;  %v3986_v10 = vsub.f32 %v21355_v17, %v20412_v24  ;;  %v3998_v50 = vsub.f32 %v21356_v38, %v20416_v49  ;;  %v17932_v59 = vpack.c.bf16 %v3993_v52, %v3981_v29  ;;  %v21363_v17 = vld [vmem:[#allocation311_spill] sm:$0xff]  ;;  %v21364_v52 = vld [vmem:[#allocation312_spill] sm:$0xff] }
 0x2c9   :  { %21357 = vst [vmem:[#allocation305_spill] sm:$0xff] %v17922_v8  ;;  %v4841_v2 = vsub.f32 %v21358_v54, %v20417_v62  ;;  %v4853_v7 = vsub.f32 %v21359_v11, %v20418_v20  ;;  %v20419_v47 = vand.u32 4294901760, %v21361_v5  ;;  %v20420_v56 = vand.u32 4294901760, %v21363_v17 }
 0x2ca   :  { %21360 = vst [vmem:[#allocation307_spill] sm:$0xff] %v17932_v59  ;;  %v17941_v48 = vpack.c.bf16 %v4848_v31, %v4836_v39  ;;  %v3987_v8 = vand.u32 4294901760, %v3986_v10  ;;  %v3999_v24 = vand.u32 4294901760, %v3998_v50  ;;  %v20421_v62 = vand.u32 4294901760, %v21364_v52  ;;  %v21366_v39 = vld [vmem:[#allocation314_spill] sm:$0xff] }
 0x2cb   :  { %v4842_v35 = vand.u32 4294901760, %v4841_v2  ;;  %v4854_v49 = vand.u32 4294901760, %v4853_v7  ;;  %v4004_v29 = vsub.f32 %v21361_v5, %v20419_v47  ;;  %v4016_v20 = vsub.f32 %v21363_v17, %v20420_v56 }
 0x2cc   :  { %21362 = vst [vmem:[#allocation308_spill] sm:$0xff] %v17941_v48  ;;  %v17948_v59 = vpack.c.bf16 %v3999_v24, %v3987_v8  ;;  %v20422_v31 = vand.u32 4294901760, %v21366_v39  ;;  %v20423_v50 = vand.u32 4294901760, %v17715_v37  ;;  %v4859_v7 = vsub.f32 %v21364_v52, %v20421_v62 }
 0x2cd   :  { %v17955_v10 = vpack.c.bf16 %v4854_v49, %v4842_v35  ;;  %v4005_v2 = vand.u32 4294901760, %v4004_v29  ;;  %v20424_v47 = vand.u32 4294901760, %v17718_v18  ;;  %v4017_v48 = vand.u32 4294901760, %v4016_v20 }
 0x2ce   :  { %21365 = vst [vmem:[#allocation309_spill] sm:$0xff] %v17948_v59  ;;  %v4871_v24 = vsub.f32 %v21366_v39, %v20422_v31  ;;  %v4010_v8 = vsub.f32 %v17715_v37, %v20423_v50  ;;  %v20429_v56 = vand.u32 4294901760, %v17721_v6  ;;  %v4860_v49 = vand.u32 4294901760, %v4859_v7 }
 0x2cf   :  { %21367 = vst [vmem:[#allocation311_spill] sm:$0xff] %v17955_v10  ;;  %v4022_v35 = vsub.f32 %v17718_v18, %v20424_v47  ;;  %v20430_v29 = vand.u32 4294901760, %v17723_v51  ;;  %v20431_v62 = vand.u32 4294901760, %v17726_v30  ;;  %v17973_v20 = vpack.c.bf16 %v4017_v48, %v4005_v2 }
 0x2d0   :  { %v4872_v10 = vand.u32 4294901760, %v4871_v24  ;;  %v4011_v59 = vand.u32 4294901760, %v4010_v8  ;;  %v4865_v31 = vsub.f32 %v17721_v6, %v20429_v56  ;;  %v20432_v18 = vand.u32 4294901760, %v17728_v43 }
 0x2d1   :  { %21368 = vst [vmem:[#allocation312_spill] sm:$0xff] %v17973_v20  ;;  %v4023_v50 = vand.u32 4294901760, %v4022_v35  ;;  %v4877_v7 = vsub.f32 %v17723_v51, %v20430_v29  ;;  %v4028_v47 = vsub.f32 %v17726_v30, %v20431_v62  ;;  %v20433_v2 = vand.u32 4294901760, %v17730_v13 }
 0x2d2   :  { %v17985_v37 = vpack.c.bf16 %v4872_v10, %v4860_v49  ;;  %v4866_v48 = vand.u32 4294901760, %v4865_v31  ;;  %v20434_v24 = vand.u32 4294901760, %v17732_v26  ;;  %v4040_v29 = vsub.f32 %v17728_v43, %v20432_v18 }
 0x2d3   :  { %v17989_v8 = vpack.c.bf16 %v4023_v50, %v4011_v59  ;;  %v4878_v35 = vand.u32 4294901760, %v4877_v7  ;;  %v4029_v56 = vand.u32 4294901760, %v4028_v47  ;;  %v4883_v62 = vsub.f32 %v17730_v13, %v20433_v2 }
 0x2d4   :  { %21369 = vst [vmem:[#allocation314_spill] sm:$0xff] %v17985_v37  ;;  %v4895_v31 = vsub.f32 %v17732_v26, %v20434_v24  ;;  %v20435_v10 = vand.u32 4294901760, %v17735_v21  ;;  %v20436_v49 = vand.u32 4294901760, %v17737_v34  ;;  %v4041_v50 = vand.u32 4294901760, %v4040_v29 }
 0x2d5   :  { %21370 = vst [vmem:[#allocation358_spill] sm:$0xff] %v17989_v8  ;;  %v18002_v59 = vpack.c.bf16 %v4878_v35, %v4866_v48  ;;  %v20437_v47 = vand.u32 4294901760, %v17739_v46  ;;  %v20438_v7 = vand.u32 4294901760, %v17741_v9  ;;  %v4884_v18 = vand.u32 4294901760, %v4883_v62 }
 0x2d6   :  { %v4896_v8 = vand.u32 4294901760, %v4895_v31  ;;  %v4034_v2 = vsub.f32 %v17735_v21, %v20435_v10  ;;  %v4046_v24 = vsub.f32 %v17737_v34, %v20436_v49  ;;  %v18012_v37 = vpack.c.bf16 %v4041_v50, %v4029_v56 }
 0x2d7   :  { %21371 = vst [vmem:[#allocation359_spill] sm:$0xff] %v18002_v59  ;;  %v4889_v29 = vsub.f32 %v17739_v46, %v20437_v47  ;;  %v4901_v48 = vsub.f32 %v17741_v9, %v20438_v7  ;;  %v20439_v62 = vand.u32 4294901760, %v17744_v55  ;;  %v20440_v59 = vand.u32 4294901760, %v17746_v27 }
 0x2d8   :  { %21372 = vst [vmem:[#allocation360_spill] sm:$0xff] %v18012_v37  ;;  %v18021_v35 = vpack.c.bf16 %v4896_v8, %v4884_v18  ;;  %v4035_v31 = vand.u32 4294901760, %v4034_v2  ;;  %v4047_v10 = vand.u32 4294901760, %v4046_v24  ;;  %v20441_v50 = vand.u32 4294901760, %v17748_v3 }
 0x2d9   :  { %v4890_v20 = vand.u32 4294901760, %v4889_v29  ;;  %v4902_v49 = vand.u32 4294901760, %v4901_v48  ;;  %v4052_v56 = vsub.f32 %v17744_v55, %v20439_v62  ;;  %v4064_v7 = vsub.f32 %v17746_v27, %v20440_v59 }
 0x2da   :  { %21373 = vst [vmem:[#allocation361_spill] sm:$0xff] %v18021_v35  ;;  %v18028_v47 = vpack.c.bf16 %v4047_v10, %v4035_v31  ;;  %v20442_v18 = vand.u32 4294901760, %v17750_v16  ;;  %v20443_v2 = vand.u32 4294901760, %v17752_v44  ;;  %v4907_v29 = vsub.f32 %v17748_v3, %v20441_v50 }
 0x2db   :  { %v18035_v24 = vpack.c.bf16 %v4902_v49, %v4890_v20  ;;  %v4053_v8 = vand.u32 4294901760, %v4052_v56  ;;  %v20444_v48 = vand.u32 4294901760, %v17754_v45  ;;  %v4065_v62 = vand.u32 4294901760, %v4064_v7 }
 0x2dc   :  { %21374 = vst [vmem:[#allocation362_spill] sm:$0xff] %v18028_v47  ;;  %v4919_v10 = vsub.f32 %v17750_v16, %v20442_v18  ;;  %v4058_v31 = vsub.f32 %v17752_v44, %v20443_v2  ;;  %v20445_v59 = vand.u32 4294901760, %v17756_v15  ;;  %v4908_v20 = vand.u32 4294901760, %v4907_v29  ;;  %v21399_v16 = vld [vmem:[#allocation131_spill] sm:$0xff] }
 0x2dd   :  { %21375 = vst [vmem:[#allocation363_spill] sm:$0xff] %v18035_v24  ;;  %v4070_v49 = vsub.f32 %v17754_v45, %v20444_v48  ;;  %v20446_v56 = vand.u32 4294901760, %v17758_v63  ;;  %v20447_v50 = vand.u32 4294901760, %v17762_v0  ;;  %v18053_v7 = vpack.c.bf16 %v4065_v62, %v4053_v8 }
 0x2de   :  { %v4920_v24 = vand.u32 4294901760, %v4919_v10  ;;  %v4059_v47 = vand.u32 4294901760, %v4058_v31  ;;  %v4913_v18 = vsub.f32 %v17756_v15, %v20445_v59  ;;  %v20448_v35 = vand.u32 4294901760, %v17764_v32 }
 0x2df   :  { %v4071_v2 = vand.u32 4294901760, %v4070_v49  ;;  %v4925_v29 = vsub.f32 %v17758_v63, %v20446_v56  ;;  %v4076_v48 = vsub.f32 %v17762_v0, %v20447_v50  ;;  %v20449_v8 = vand.u32 4294901760, %v17766_v33 }
 0x2e0   :  { %v18065_v37 = vpack.c.bf16 %v4920_v24, %v4908_v20  ;;  %v4914_v62 = vand.u32 4294901760, %v4913_v18  ;;  %v20450_v10 = vand.u32 4294901760, %v17771_v25  ;;  %v4088_v56 = vsub.f32 %v17764_v32, %v20448_v35 }
 0x2e1   :  { %v18069_v31 = vpack.c.bf16 %v4071_v2, %v4059_v47  ;;  %v4926_v49 = vand.u32 4294901760, %v4925_v29  ;;  %v4077_v59 = vand.u32 4294901760, %v4076_v48  ;;  %v4931_v50 = vsub.f32 %v17766_v33, %v20449_v8 }
 0x2e2   :  { %21376 = vst [vmem:[#allocation364_spill] sm:$0xff] %v18065_v37  ;;  %v4943_v18 = vsub.f32 %v17771_v25, %v20450_v10  ;;  %v20451_v24 = vand.u32 4294901760, %v17775_v57  ;;  %v20452_v20 = vand.u32 4294901760, %v17777_v61  ;;  %v4089_v2 = vand.u32 4294901760, %v4088_v56 }
 0x2e3   :  { %21377 = vst [vmem:[#allocation365_spill] sm:$0xff] %v18069_v31  ;;  %v18082_v47 = vpack.c.bf16 %v4926_v49, %v4914_v62  ;;  %v20453_v48 = vand.u32 4294901760, %v17779_v1  ;;  %v20454_v29 = vand.u32 4294901760, %v17785_v23  ;;  %v4932_v35 = vand.u32 4294901760, %v4931_v50  ;;  %v21384_v50 = vld [vmem:[#allocation287_spill] sm:$0xff] }
 0x2e4   :  { %v4944_v31 = vand.u32 4294901760, %v4943_v18  ;;  %v4082_v8 = vsub.f32 %v17775_v57, %v20451_v24  ;;  %v4094_v10 = vsub.f32 %v17777_v61, %v20452_v20  ;;  %v18092_v37 = vpack.c.bf16 %v4089_v2, %v4077_v59 }
 0x2e5   :  { %21378 = vst [vmem:[#allocation366_spill] sm:$0xff] %v18082_v47  ;;  %v4937_v56 = vsub.f32 %v17779_v1, %v20453_v48  ;;  %v4949_v62 = vsub.f32 %v17785_v23, %v20454_v29  ;;  %v21385_v48 = vld [vmem:[#allocation289_spill] sm:$0xff]  ;;  %v21419_v1 = vld [vmem:[#allocation312_spill] sm:$0xff] }
 0x2e6   :  { %21379 = vst [vmem:[#allocation367_spill] sm:$0xff] %v18092_v37  ;;  %v18102_v49 = vpack.c.bf16 %v4944_v31, %v4932_v35  ;;  %v4083_v18 = vand.u32 4294901760, %v4082_v8  ;;  %v4095_v24 = vand.u32 4294901760, %v4094_v10  ;;  %v21383_v37 = vld [vmem:[#allocation286_spill] sm:$0xff]  ;;  %v21397_v35 = vld [vmem:[#allocation328_spill] sm:$0xff]  ;;  %v21409_v29 = vld [vmem:[#allocation353_spill] sm:$0xff] }
 0x2e7   :  { %v4938_v59 = vand.u32 4294901760, %v4937_v56  ;;  %v4950_v2 = vand.u32 4294901760, %v4949_v62  ;;  %v21381_v56 = vld [vmem:[#allocation282_spill] sm:$0xff]  ;;  %v21382_v62 = vld [vmem:[#allocation284_spill] sm:$0xff] }
 0x2e8   :  { %v18110_v47 = vpack.c.bf16 %v4095_v24, %v4083_v18  ;;  %v21386_v24 = vld [vmem:[#allocation290_spill] sm:$0xff] }
 0x2e9   :  { %v18118_v31 = vpack.c.bf16 %v4950_v2, %v4938_v59  ;;  %v21393_v59 = vld [vmem:[#allocation301_spill] sm:$0xff]  ;;  %v21394_v2 = vld [vmem:[#allocation302_spill] sm:$0xff] }
 0x334   :  { %v3793_v55 = vpop.xlane.xlu1 %3792 }
 0x335   :  { %v3794_v3 = vsub.f32 %v21398_v12, %v3793_v55  ;;  %v21404_v55 = vld [vmem:[#allocation349_spill] sm:$0xff]  ;;  %v21406_v12 = vld [vmem:[#allocation351_spill] sm:$0xff] }
 0x337   :  { %v3795_v10 = vmul.f32 %v3794_v3, %v21399_v16  ;;  %v21405_v3 = vld [vmem:[#allocation350_spill] sm:$0xff]  ;;  %v21411_v16 = vld [vmem:[#allocation355_spill] sm:$0xff] }
 0x339   :  { %v3796_v44 = vmul.f32 0.5, %v3795_v10  ;;  %v21408_v10 = vmov 0.0  }
 0x33b   :  { %v18172_v45 = vand.u32 4294901760, %v3796_v44 }
 0x33d   :  { %21400 = vst [vmem:[#allocation282_spill] sm:$0xff] %v18172_v45  ;;  %v18175_v8 = vsub.f32 %v3796_v44, %v18172_v45  ;;  %v21407_v44 = vld [vmem:[#allocation352_spill] sm:$0xff] }
 0x33f   :  { %21401 = vst [vmem:[#allocation284_spill] sm:$0xff] %v18175_v8  ;;  %v18178_v20 = vand.u32 4294901760, %v18175_v8 }
 0x341   :  { %21402 = vst [vmem:[#allocation286_spill] sm:$0xff] %v18178_v20  ;;  %v3897_v18 = vsub.f32 %v18175_v8, %v18178_v20  ;;  %v21412_v20 = vld [vmem:[#allocation356_spill] sm:$0xff]  ;;  %v21418_v8 = vld [vmem:[#allocation311_spill] sm:$0xff] }
 0x343   :  { %v18182_v53 = vand.u32 4294901760, %v3897_v18  ;;  %v21410_v18 = vld [vmem:[#allocation354_spill] sm:$0xff] }
 0x345   :  { %21403 = vst [vmem:[#allocation287_spill] sm:$0xff] %v18182_v53  ;;  %3899 = vmatmul.mubr.f32.vlgmr.msra.gmra.mrb[24].mxu0 %v18182_v53  ;;  %4754 = vmatmul.mubr.f32.vlgmr.msra.gmra.mrb[24].mxu1 %v18182_v53  ;;  %v21413_v53 = vld [vmem:[#allocation357_spill] sm:$0xff] }
 0x346   :  { %13199 = vmatpush1.bf16.msra.mxu0 %v21404_v55  ;;  %13391 = vmatpush1.bf16.msra.mxu1 %v21405_v3  ;;  %v21414_v55 = vld [vmem:[#allocation305_spill] sm:$0xff]  ;;  %v21415_v3 = vld [vmem:[#allocation307_spill] sm:$0xff] }
 0x347   :  { %13201 = vmatprep.subr.bf16.mxu0 %v21406_v12  ;;  %13393 = vmatprep.subr.bf16.mxu1 %v21407_v44  ;;  %v21416_v12 = vld [vmem:[#allocation308_spill] sm:$0xff]  ;;  %v21417_v44 = vld [vmem:[#allocation309_spill] sm:$0xff] }
 0x348   :  { %4129 = vmatprep.mubr.f32.mxu0 %v21408_v10  ;;  %4984 = vmatprep.mubr.f32.mxu1 %v21408_v10 }
 0x34a   :  { %13203 = vmatpush1.bf16.msra.mxu0 %v21409_v29  ;;  %13395 = vmatpush1.bf16.msra.mxu1 %v21410_v18  ;;  %v21420_v29 = vld [vmem:[#allocation314_spill] sm:$0xff] }
 0x34b   :  { %13205 = vmatprep.subr.bf16.mxu0 %v21411_v16  ;;  %13397 = vmatprep.subr.bf16.mxu1 %v21412_v20  ;;  %v21421_v18 = vld [vmem:[#allocation358_spill] sm:$0xff]  ;;  %v21422_v16 = vld [vmem:[#allocation359_spill] sm:$0xff]  ;;  %v21423_v20 = vld [vmem:[#allocation360_spill] sm:$0xff] }
 0x34e   :  { %13207 = vmatpush1.bf16.msra.mxu0 %v21413_v53  ;;  %13399 = vmatpush1.bf16.msra.mxu1 %v21414_v55  ;;  %v21424_v53 = vld [vmem:[#allocation361_spill] sm:$0xff]  ;;  %v21425_v55 = vld [vmem:[#allocation362_spill] sm:$0xff] }
 0x34f   :  { %13209 = vmatprep.subr.bf16.mxu0 %v21415_v3  ;;  %13401 = vmatprep.subr.bf16.mxu1 %v21416_v12  ;;  %v21426_v3 = vld [vmem:[#allocation363_spill] sm:$0xff]  ;;  %v21427_v12 = vld [vmem:[#allocation364_spill] sm:$0xff] }
 0x352   :  { %13211 = vmatpush1.bf16.msra.mxu0 %v21417_v44  ;;  %13403 = vmatpush1.bf16.msra.mxu1 %v21418_v8  ;;  %v21428_v8 = vld [vmem:[#allocation365_spill] sm:$0xff]  ;;  %v21430_v44 = vld [vmem:[#allocation367_spill] sm:$0xff] }
 0x353   :  { %13213 = vmatprep.subr.bf16.mxu0 %v21419_v1  ;;  %13405 = vmatprep.subr.bf16.mxu1 %v21420_v29  ;;  %v21429_v1 = vld [vmem:[#allocation366_spill] sm:$0xff]  ;;  %v21431_v29 = vpack.c.bf16 %v17545_v58, %v17543_v40 }
 0x356   :  { %13215 = vmatpush1.bf16.msra.mxu0 %v21421_v18  ;;  %13407 = vmatpush1.bf16.msra.mxu1 %v21422_v16  ;;  %v21433_v18 = vld [vmem:[#allocation269_spill] sm:$0xff] }
 0x357   :  { %13217 = vmatprep.subr.bf16.mxu0 %v21423_v20  ;;  %13409 = vmatprep.subr.bf16.mxu1 %v21424_v53  ;;  %v21434_v16 = vpack.c.bf16 %v17558_v28, %v21433_v18  ;;  %v21439_v53 = vld [vmem:[#allocation273_spill] sm:$0xff] }
 0x35a   :  { %13219 = vmatpush1.bf16.msra.mxu0 %v21425_v55  ;;  %13411 = vmatpush1.bf16.msra.mxu1 %v21426_v3  ;;  %v21441_v3 = vld [vmem:[#allocation278_spill] sm:$0xff] }
 0x35b   :  { %13221 = vmatprep.subr.bf16.mxu0 %v18053_v7  ;;  %13413 = vmatprep.subr.bf16.mxu1 %v21427_v12  ;;  %v21432_v7 = vpack.c.bf16 %v17551_v60, %v17547_v14  ;;  %v21442_v12 = vld [vmem:[#allocation277_spill] sm:$0xff] }
 0x35e   :  { %13223 = vmatpush1.bf16.msra.mxu0 %v21428_v8  ;;  %13415 = vmatpush1.bf16.msra.mxu1 %v21429_v1  ;;  %v21443_v8 = vpack.c.bf16 %v21441_v3, %v21442_v12  ;;  %v21444_v1 = vld [vmem:[#allocation281_spill] sm:$0xff] }
 0x35f   :  { %13225 = vmatprep.subr.bf16.mxu0 %v21430_v44  ;;  %13417 = vmatprep.subr.bf16.mxu1 %v18102_v49  ;;  %v21435_v49 = vld [vmem:[#allocation272_spill] sm:$0xff]  ;;  %v21445_v44 = vld [vmem:[#allocation279_spill] sm:$0xff] }
 0x362   :  { %13227 = vmatpush1.bf16.msra.mxu0 %v18110_v47  ;;  %13419 = vmatpush1.bf16.msra.mxu1 %v18118_v31  ;;  %v21436_v47 = vld [vmem:[#allocation271_spill] sm:$0xff] }
 0x363   :  { %13229 = vmatprep.subr.bf16.mxu0 %v21431_v29  ;;  %13421 = vmatprep.subr.bf16.mxu1 %v21432_v7  ;;  %v21437_v20 = vpack.c.bf16 %v21435_v49, %v21436_v47  ;;  %v21438_v31 = vld [vmem:[#allocation275_spill] sm:$0xff]  ;;  %v21446_v29 = vpack.c.bf16 %v21444_v1, %v21445_v44  ;;  %v21447_v7 = vpack.c.bf16 %v21382_v62, %v21381_v56 }
 0x364   :  { %v21440_v55 = vpack.c.bf16 %v21438_v31, %v21439_v53 }
 0x365   :  { %4131 = vmatmul.mubr.f32.vlgmr.msra.gmra.mrb[24].mxu0 %v18172_v45  ;;  %4986 = vmatmul.mubr.f32.vlgmr.msra.gmra.mrb[24].mxu1 %v18172_v45  ;;  %v21452_v45 = vld [vmem:[#allocation294_spill] sm:$0xff] }
 0x366   :  { %13231 = vmatpush1.bf16.msra.mxu0 %v21434_v16  ;;  %13423 = vmatpush1.bf16.msra.mxu1 %v21437_v20  ;;  %v21448_v16 = vpack.c.bf16 %v21384_v50, %v21383_v37  ;;  %v21449_v20 = vpack.c.bf16 %v21386_v24, %v21385_v48  ;;  %v21453_v1 = vpack.c.bf16 %v21390_v41, %v21452_v45 }
 0x367   :  { %13233 = vmatprep.subr.bf16.mxu0 %v21440_v55  ;;  %13425 = vmatprep.subr.bf16.mxu1 %v21443_v8  ;;  %v21450_v55 = vld [vmem:[#allocation292_spill] sm:$0xff] }
 0x368   :  { %4265 = vmatprep.mubr.f32.mxu0 %v21408_v10  ;;  %5120 = vmatprep.mubr.f32.mxu1 %v21408_v10  ;;  %v21451_v8 = vpack.c.bf16 %v21388_v36, %v21450_v55 }
 0x36a   :  { %13235 = vmatpush1.bf16.msra.mxu0 %v21446_v29  ;;  %13427 = vmatpush1.bf16.msra.mxu1 %v21447_v7  ;;  %v21454_v29 = vpack.c.bf16 %v21392_v42, %v21391_v4  ;;  %v21455_v7 = vpack.c.bf16 %v21394_v2, %v21393_v59 }
 0x36b   :  { %13237 = vmatprep.subr.bf16.mxu0 %v21448_v16  ;;  %13429 = vmatprep.subr.bf16.mxu1 %v21449_v20  ;;  %v21456_v16 = vpack.c.bf16 %v21356_v38, %v21395_v19  ;;  %v21457_v20 = vpack.c.bf16 %v21359_v11, %v21358_v54 }
 0x36e   :  { %13239 = vmatpush1.bf16.msra.mxu0 %v21451_v8  ;;  %13431 = vmatpush1.bf16.msra.mxu1 %v21453_v1  ;;  %v21458_v8 = vpack.c.bf16 %v21363_v17, %v21361_v5  ;;  %v21459_v1 = vpack.c.bf16 %v21366_v39, %v21364_v52 }
 0x36f   :  { %13241 = vmatprep.subr.bf16.mxu0 %v21454_v29  ;;  %13433 = vmatprep.subr.bf16.mxu1 %v21455_v7  ;;  %v21460_v29 = vpack.c.bf16 %v21397_v35, %v21396_v22  ;;  %v21461_v7 = vpack.c.bf16 %v17723_v51, %v17721_v6  ;;  %v21469_v6 = vld [vmem:[#allocation335_spill] sm:$0xff] }
 0x372   :  { %13243 = vmatpush1.bf16.msra.mxu0 %v21456_v16  ;;  %13435 = vmatpush1.bf16.msra.mxu1 %v21457_v20  ;;  %v21462_v16 = vpack.c.bf16 %v17728_v43, %v17726_v30  ;;  %v21463_v20 = vpack.c.bf16 %v17732_v26, %v17730_v13  ;;  %v21472_v30 = vld [vmem:[#allocation337_spill] sm:$0xff] }
 0x373   :  { %13245 = vmatprep.subr.bf16.mxu0 %v21458_v8  ;;  %13437 = vmatprep.subr.bf16.mxu1 %v21459_v1  ;;  %v21464_v8 = vpack.c.bf16 %v17737_v34, %v17735_v21  ;;  %v21465_v1 = vpack.c.bf16 %v17741_v9, %v17739_v46 }
 0x376   :  { %13247 = vmatpush1.bf16.msra.mxu0 %v21460_v29  ;;  %13439 = vmatpush1.bf16.msra.mxu1 %v21461_v7  ;;  %v21466_v29 = vld [vmem:[#allocation334_spill] sm:$0xff]  ;;  %v21468_v7 = vld [vmem:[#allocation336_spill] sm:$0xff] }
 0x377   :  { %13249 = vmatprep.subr.bf16.mxu0 %v21462_v16  ;;  %13441 = vmatprep.subr.bf16.mxu1 %v21463_v20  ;;  %v21467_v51 = vpack.c.bf16 %v17746_v27, %v21466_v29  ;;  %v21470_v43 = vpack.c.bf16 %v21468_v7, %v21469_v6  ;;  %v21471_v16 = vld [vmem:[#allocation338_spill] sm:$0xff]  ;;  %v21474_v20 = vpack.c.bf16 %v17758_v63, %v17756_v15  ;;  %v21481_v63 = vld [vmem:[#allocation267_spill] sm:$0xff] }
 0x378   :  { %v21473_v26 = vpack.c.bf16 %v21471_v16, %v21472_v30 }
 0x37a   :  { %13251 = vmatpush1.bf16.msra.mxu0 %v21464_v8  ;;  %13443 = vmatpush1.bf16.msra.mxu1 %v21465_v1  ;;  %v21475_v8 = vpack.c.bf16 %v17764_v32, %v17762_v0  ;;  %v21476_v1 = vpack.c.bf16 %v17771_v25, %v17766_v33  ;;  %v21484_v25 = vld [vmem:[#allocation270_spill] sm:$0xff] }
 0x37b   :  { %13253 = vmatprep.subr.bf16.mxu0 %v21467_v51  ;;  %13445 = vmatprep.subr.bf16.mxu1 %v21470_v43  ;;  %v21477_v51 = vpack.c.bf16 %v17777_v61, %v17775_v57  ;;  %v21478_v43 = vld [vmem:[#allocation346_spill] sm:$0xff]  ;;  %v21486_v61 = vld [vmem:[#allocation276_spill] sm:$0xff]  ;;  %v21515_v57 = vld [vmem:[#allocation343_spill] sm:$0xff] }
 0x37c   :  { %v21479_v16 = vpack.c.bf16 %v17785_v23, %v21478_v43  ;;  %v21496_v23 = vld [vmem:[#allocation306_spill] sm:$0xff] }
 0x37d   :  { %v21497_v43 = vld [vmem:[#allocation310_spill] sm:$0xff] }
 0x37e   :  { %13255 = vmatpush1.bf16.msra.mxu0 %v21473_v26  ;;  %13447 = vmatpush1.bf16.msra.mxu1 %v21474_v20  ;;  %v21480_v26 = vld [vmem:[#allocation266_spill] sm:$0xff]  ;;  %v21482_v20 = vld [vmem:[#allocation284_spill] sm:$0xff] }
 0x37f   :  { %13257 = vmatprep.subr.bf16.mxu0 %v21475_v8  ;;  %13449 = vmatprep.subr.bf16.mxu1 %v21476_v1  ;;  %v21483_v8 = vld [vmem:[#allocation268_spill] sm:$0xff]  ;;  %v21485_v1 = vld [vmem:[#allocation274_spill] sm:$0xff] }
 0x382   :  { %13259 = vmatpush1.bf16.msra.mxu0 %v21477_v51  ;;  %13451 = vmatpush1.bf16.msra.mxu1 %v21479_v16  ;;  %v21487_v16 = vld [vmem:[#allocation280_spill] sm:$0xff]  ;;  %v21488_v51 = vld [vmem:[#allocation283_spill] sm:$0xff] }
 0x383   :  { %13261 = vmatprep.subr.bf16.mxu0 %v21480_v26  ;;  %13453 = vmatprep.subr.bf16.mxu1 %v21481_v63  ;;  %v21489_v63 = vld [vmem:[#allocation285_spill] sm:$0xff]  ;;  %v21490_v26 = vld [vmem:[#allocation288_spill] sm:$0xff] }
 0x385   :  { %4268 = vmatmul.mubr.f32.vlgmr.msra.gmra.mrb[24].mxu0 %v21482_v20  ;;  %5123 = vmatmul.mubr.f32.vlgmr.msra.gmra.mrb[24].mxu1 %v21482_v20  ;;  %v21491_v20 = vld [vmem:[#allocation291_spill] sm:$0xff] }
 0x386   :  { %13263 = vmatpush1.bf16.msra.mxu0 %v21483_v8  ;;  %13455 = vmatpush1.bf16.msra.mxu1 %v21484_v25  ;;  %v21492_v8 = vld [vmem:[#allocation295_spill] sm:$0xff]  ;;  %v21493_v25 = vld [vmem:[#allocation297_spill] sm:$0xff] }
 0x387   :  { %13265 = vmatprep.subr.bf16.mxu0 %v21485_v1  ;;  %13457 = vmatprep.subr.bf16.mxu1 %v21486_v61  ;;  %v21494_v1 = vld [vmem:[#allocation300_spill] sm:$0xff] }
 0x388   :  { %4370 = vmatprep.mubr.f32.mxu0 %v21408_v10  ;;  %5225 = vmatprep.mubr.f32.mxu1 %v21408_v10  ;;  %v21495_v61 = vld [vmem:[#allocation304_spill] sm:$0xff] }
 0x38a   :  { %13267 = vmatpush1.bf16.msra.mxu0 %v21487_v16  ;;  %13459 = vmatpush1.bf16.msra.mxu1 %v21488_v51  ;;  %v21498_v16 = vld [vmem:[#allocation313_spill] sm:$0xff] }
 0x38b   :  { %13269 = vmatprep.subr.bf16.mxu0 %v21489_v63  ;;  %13461 = vmatprep.subr.bf16.mxu1 %v21490_v26  ;;  %v21499_v51 = vld [vmem:[#allocation317_spill] sm:$0xff]  ;;  %v21500_v63 = vld [vmem:[#allocation318_spill] sm:$0xff]  ;;  %v21501_v26 = vld [vmem:[#allocation319_spill] sm:$0xff] }
 0x38e   :  { %13271 = vmatpush1.bf16.msra.mxu0 %v21491_v20  ;;  %13463 = vmatpush1.bf16.msra.mxu1 %v21492_v8  ;;  %v21502_v20 = vld [vmem:[#allocation320_spill] sm:$0xff]  ;;  %v21503_v8 = vld [vmem:[#allocation321_spill] sm:$0xff] }
 0x38f   :  { %13273 = vmatprep.subr.bf16.mxu0 %v21493_v25  ;;  %13465 = vmatprep.subr.bf16.mxu1 %v21494_v1  ;;  %v21504_v25 = vld [vmem:[#allocation322_spill] sm:$0xff]  ;;  %v21505_v1 = vld [vmem:[#allocation323_spill] sm:$0xff] }
 0x392   :  { %13275 = vmatpush1.bf16.msra.mxu0 %v21495_v61  ;;  %13467 = vmatpush1.bf16.msra.mxu1 %v21496_v23  ;;  %v21506_v61 = vld [vmem:[#allocation324_spill] sm:$0xff]  ;;  %v21507_v23 = vld [vmem:[#allocation325_spill] sm:$0xff] }
 0x393   :  { %13277 = vmatprep.subr.bf16.mxu0 %v21497_v43  ;;  %13469 = vmatprep.subr.bf16.mxu1 %v21498_v16  ;;  %v21508_v43 = vld [vmem:[#allocation326_spill] sm:$0xff]  ;;  %v21509_v16 = vld [vmem:[#allocation340_spill] sm:$0xff] }
 0x396   :  { %13279 = vmatpush1.bf16.msra.mxu0 %v21499_v51  ;;  %13471 = vmatpush1.bf16.msra.mxu1 %v21500_v63  ;;  %v21510_v51 = vld [vmem:[#allocation341_spill] sm:$0xff] }
 0x397   :  { %13281 = vmatprep.subr.bf16.mxu0 %v21501_v26  ;;  %13473 = vmatprep.subr.bf16.mxu1 %v21502_v20  ;;  %v21511_v26 = vand.u32 4294901760, %v17543_v40  ;;  %v21512_v20 = vand.u32 4294901760, %v17545_v58  ;;  %v21520_v40 = vand.u32 4294901760, %v21435_v49 }
 0x399   :  { %v13292_v63 = vpack.c.bf16 %v21512_v20, %v21511_v26  ;;  %v21523_v26 = vand.u32 4294901760, %v21442_v12  ;;  %v21524_v20 = vand.u32 4294901760, %v21441_v3  ;;  %v21531_v3 = vand.u32 4294901760, %v21383_v37 }
 0x39a   :  { %13283 = vmatpush1.bf16.msra.mxu0 %v21503_v8  ;;  %13475 = vmatpush1.bf16.msra.mxu1 %v21504_v25  ;;  %v21513_v8 = vand.u32 4294901760, %v17547_v14  ;;  %v21514_v25 = vand.u32 4294901760, %v17551_v60  ;;  %v21521_v14 = vand.u32 4294901760, %v21439_v53  ;;  %v21522_v60 = vand.u32 4294901760, %v21438_v31 }
 0x39b   :  { %13285 = vmatprep.subr.bf16.mxu0 %v21505_v1  ;;  %13477 = vmatprep.subr.bf16.mxu1 %v21506_v61  ;;  %v21516_v61 = vld [vmem:[#allocation347_spill] sm:$0xff]  ;;  %v21529_v53 = vand.u32 4294901760, %v21381_v56  ;;  %v21530_v31 = vand.u32 4294901760, %v21382_v62  ;;  %v21532_v12 = vand.u32 4294901760, %v21384_v50  ;;  %v21535_v56 = vand.u32 4294901760, %v21450_v55 }
 0x39c   :  { %v13484_v1 = vpack.c.bf16 %v21514_v25, %v21513_v8  ;;  %v13296_v25 = vpack.c.bf16 %v21522_v60, %v21521_v14  ;;  %v21525_v8 = vld [vmem:[#allocation286_spill] sm:$0xff]  ;;  %v21536_v62 = vand.u32 4294901760, %v21388_v36  ;;  %v21537_v37 = vand.u32 4294901760, %v21452_v45 }
 0x39d   :  { %v21538_v50 = vand.u32 4294901760, %v21390_v41  ;;  %v21541_v14 = vand.u32 4294901760, %v21393_v59  ;;  %v21542_v60 = vand.u32 4294901760, %v21394_v2  ;;  %v21543_v36 = vand.u32 4294901760, %v21395_v19 }
 0x39e   :  { %13287 = vmatpush1.bf16.msra.mxu0 %v21507_v23  ;;  %13479 = vmatpush1.bf16.msra.mxu1 %v21508_v43  ;;  %v21517_v43 = vand.u32 4294901760, %v21433_v18  ;;  %v13488_v18 = vpack.c.bf16 %v21524_v20, %v21523_v26  ;;  %v21544_v45 = vand.u32 4294901760, %v21356_v38  ;;  %v21546_v26 = vand.u32 4294901760, %v21359_v11 }
 0x39f   :  { %13289 = vmatprep.subr.bf16.mxu0 %v21509_v16  ;;  %13481 = vmatprep.subr.bf16.mxu1 %v21510_v51  ;;  %v21518_v16 = vand.u32 4294901760, %v17558_v28  ;;  %v21519_v51 = vand.u32 4294901760, %v21436_v47  ;;  %v21526_v28 = vand.u32 4294901760, %v21445_v44  ;;  %v13496_v55 = vpack.c.bf16 %v21542_v60, %v21541_v14 }
 0x3a0   :  { %v13306_v41 = vpack.c.bf16 %v21544_v45, %v21543_v36  ;;  %v21548_v59 = vand.u32 4294901760, %v21363_v17  ;;  %v21549_v20 = vand.u32 4294901760, %v21364_v52  ;;  %v21551_v38 = vand.u32 4294901760, %v21396_v22  ;;  %v195_v17 = vld [vmem:[#allocation4 + $0x68] sm:$0xff]  ;;  %v21557_v52 = vld [vmem:[#allocation331_spill] sm:$0xff] }
 0x3a1   :  { %v13294_v23 = vpack.c.bf16 %v21518_v16, %v21517_v43  ;;  %v13486_v58 = vpack.c.bf16 %v21520_v40, %v21519_v51  ;;  %v13490_v43 = vpack.c.bf16 %v21530_v31, %v21529_v53  ;;  %v21534_v16 = vand.u32 4294901760, %v21386_v24  ;;  %v189_v31 = vld [vmem:[#allocation4 + $0x38] sm:$0xff] }
 0x3a2   :  { %13291 = vmatpush1.bf16.msra.mxu0 %v21515_v57  ;;  %13483 = vmatpush1.bf16.msra.mxu1 %v21516_v61  ;;  %v13302_v51 = vpack.c.bf16 %v21536_v62, %v21535_v56  ;;  %v13494_v40 = vpack.c.bf16 %v21538_v50, %v21537_v37  ;;  %v21540_v24 = vand.u32 4294901760, %v21392_v42  ;;  %v21547_v42 = vand.u32 4294901760, %v21361_v5  ;;  %v194_v56 = vld [vmem:[#allocation4 + $0x60] sm:$0xff] }
 0x3a3   :  { %13293 = vmatprep.subr.bf16.mxu0 %v13292_v63  ;;  %13485 = vmatprep.subr.bf16.mxu1 %v13484_v1  ;;  %v21527_v63 = vld [vmem:[#allocation281_spill] sm:$0xff]  ;;  %v13300_v1 = vpack.c.bf16 %v21532_v12, %v21531_v3  ;;  %v21552_v11 = vand.u32 4294901760, %v21397_v35  ;;  %v21559_v3 = vld [vmem:[#allocation332_spill] sm:$0xff]  ;;  %v21561_v22 = vand.u32 4294901760, %v17730_v13  ;;  %v21564_v62 = vand.u32 4294901760, %v17735_v21 }
 0x3a4   :  { %v21528_v49 = vand.u32 4294901760, %v21527_v63  ;;  %v13308_v2 = vpack.c.bf16 %v21548_v59, %v21547_v42  ;;  %v21553_v63 = vld [vmem:[#allocation329_spill] sm:$0xff]  ;;  %v21560_v12 = vand.u32 4294901760, %v21559_v3  ;;  %v21567_v13 = vand.u32 4294901760, %v17741_v9  ;;  %v21573_v9 = vld [vmem:[#allocation338_spill] sm:$0xff]  ;;  %v21589_v3 = vld [vmem:[#allocation348_spill] sm:$0xff] }
 0x3a5   :  { %4374 = vmatmul.mubr.f32.vlgmr.msra.gmra.mrb[24].mxu0 %v21525_v8  ;;  %5229 = vmatmul.mubr.f32.vlgmr.msra.gmra.mrb[24].mxu1 %v21525_v8  ;;  %v21568_v60 = vand.u32 4294901760, %v21466_v29  ;;  %v5513_v45 = vand.u32 4294901760, %v194_v56  ;;  %v21574_v42 = vand.u32 4294901760, %v21573_v9  ;;  %v21575_v29 = vand.u32 4294901760, %v17756_v15  ;;  %v212_v9 = vld [vmem:[#allocation4 + $0xf0] sm:$0xff] }
 0x3a6   :  { %13295 = vmatpush1.bf16.msra.mxu0 %v13294_v23  ;;  %13487 = vmatpush1.bf16.msra.mxu1 %v13486_v58  ;;  %v13298_v47 = vpack.c.bf16 %v21528_v49, %v21526_v28  ;;  %v21533_v23 = vand.u32 4294901760, %v21385_v48  ;;  %v21539_v48 = vand.u32 4294901760, %v21391_v4  ;;  %v187_v28 = vld [vmem:[#allocation4 + $0x28] sm:$0xff]  ;;  %v21554_v49 = vand.u32 4294901760, %v21553_v63 }
 0x3a7   :  { %13297 = vmatprep.subr.bf16.mxu0 %v13296_v25  ;;  %13489 = vmatprep.subr.bf16.mxu1 %v13488_v18  ;;  %v21545_v25 = vand.u32 4294901760, %v21358_v54  ;;  %v21550_v18 = vand.u32 4294901760, %v21366_v39  ;;  %v13310_v54 = vpack.c.bf16 %v21552_v11, %v21551_v38  ;;  %v21558_v39 = vand.u32 4294901760, %v21557_v52  ;;  %v21587_v52 = vld [vmem:[#allocation346_spill] sm:$0xff] }
 0x3a8   :  { %v13492_v44 = vpack.c.bf16 %v21534_v16, %v21533_v23  ;;  %4540 = vmatprep.mubr.f32.mxu0 %v21408_v10  ;;  %5395 = vmatprep.mubr.f32.mxu1 %v21408_v10  ;;  %v13304_v58 = vpack.c.bf16 %v21540_v24, %v21539_v48  ;;  %v21562_v23 = vld [vmem:[#allocation333_spill] sm:$0xff]  ;;  %v5507_v50 = vand.u32 4294901760, %v187_v28  ;;  %v6362_v48 = vand.u32 4294901760, %v189_v31 }
 0x3a9   :  { %v13498_v4 = vpack.c.bf16 %v21546_v26, %v21545_v25  ;;  %v13500_v19 = vpack.c.bf16 %v21550_v18, %v21549_v20  ;;  %v21563_v35 = vand.u32 4294901760, %v21562_v23  ;;  %v21570_v25 = vand.u32 4294901760, %v21469_v6  ;;  %v203_v18 = vld [vmem:[#allocation4 + $0xa8] sm:$0xff] }
 0x3aa   :  { %13299 = vmatpush1.bf16.msra.mxu0 %v13298_v47  ;;  %13491 = vmatpush1.bf16.msra.mxu1 %v13490_v43  ;;  %v21555_v47 = vld [vmem:[#allocation330_spill] sm:$0xff]  ;;  %v197_v43 = vld [vmem:[#allocation4 + $0x78] sm:$0xff]  ;;  %v21571_v26 = vand.u32 4294901760, %v21468_v7  ;;  %v21578_v38 = vand.u32 4294901760, %v17762_v0  ;;  %v21579_v11 = vand.u32 4294901760, %v17764_v32  ;;  %v21580_v7 = vand.u32 4294901760, %v17766_v33 }
 0x3ab   :  { %13301 = vmatprep.subr.bf16.mxu0 %v13300_v1  ;;  %13493 = vmatprep.subr.bf16.mxu1 %v13492_v44  ;;  %v21556_v5 = vand.u32 4294901760, %v21555_v47  ;;  %v13312_v1 = vpack.c.bf16 %v21560_v12, %v21558_v39  ;;  %v13504_v16 = vpack.c.bf16 %v21563_v35, %v21561_v22  ;;  %v186_v44 = vld [vmem:[#allocation4 + $0x20] sm:$0xff]  ;;  %v6366_v24 = vand.u32 4294901760, %v197_v43  ;;  %v205_v33 = vld [vmem:[#allocation4 + $0xb8] sm:$0xff] }
 0x3ac   :  { %v5509_v21 = vand.u32 4294901760, %v186_v44  ;;  %v13320_v6 = vpack.c.bf16 %v21579_v11, %v21578_v38  ;;  %v21588_v39 = vand.u32 4294901760, %v21587_v52  ;;  %v21590_v12 = vand.u32 4294901760, %v21589_v3  ;;  %v213_v35 = vld [vmem:[#allocation4 + $0xf8] sm:$0xff]  ;;  %v21613_v52 = vld [vmem:[#allocation266_spill] sm:$0xff] }
 0x3ad   :  { %v13502_v53 = vpack.c.bf16 %v21556_v5, %v21554_v49  ;;  %v21583_v49 = vld [vmem:[#allocation344_spill] sm:$0xff]  ;;  %v21585_v5 = vld [vmem:[#allocation345_spill] sm:$0xff]  ;;  %v18488_v0 = vpack.c.bf16 %v6366_v24, %v6362_v48 }
 0x3ae   :  { %13303 = vmatpush1.bf16.msra.mxu0 %v13302_v51  ;;  %13495 = vmatpush1.bf16.msra.mxu1 %v13494_v40  ;;  %v21565_v51 = vand.u32 4294901760, %v17737_v34  ;;  %v5511_v40 = vand.u32 4294901760, %v195_v17  ;;  %v188_v34 = vld [vmem:[#allocation4 + $0x30] sm:$0xff]  ;;  %v21584_v47 = vand.u32 4294901760, %v21583_v49 }
 0x3af   :  { %13305 = vmatprep.subr.bf16.mxu0 %v13304_v58  ;;  %13497 = vmatprep.subr.bf16.mxu1 %v13496_v55  ;;  %v21566_v58 = vand.u32 4294901760, %v17739_v46  ;;  %v21569_v55 = vand.u32 4294901760, %v17746_v27  ;;  %v21572_v46 = vand.u32 4294901760, %v21472_v30  ;;  %v21576_v27 = vld [vmem:[#allocation339_spill] sm:$0xff]  ;;  %21592 = vst [vmem:[#allocation290_spill] sm:$0xff] %v18488_v0  ;;  %v6364_v32 = vand.u32 4294901760, %v188_v34 }
 0x3b0   :  { %v13314_v37 = vpack.c.bf16 %v21565_v51, %v21564_v62  ;;  %v18486_v22 = vpack.c.bf16 %v5511_v40, %v5507_v50  ;;  %v18492_v62 = vpack.c.bf16 %v5513_v45, %v5509_v21  ;;  %v5515_v51 = vand.u32 4294901760, %v203_v18 }
 0x3b1   :  { %v13506_v14 = vpack.c.bf16 %v21567_v13, %v21566_v58  ;;  %v13316_v36 = vpack.c.bf16 %v21569_v55, %v21568_v60  ;;  %v13318_v59 = vpack.c.bf16 %v21574_v42, %v21572_v46  ;;  %v202_v13 = vld [vmem:[#allocation4 + $0xa0] sm:$0xff]  ;;  %v18494_v55 = vsub.f32 %v195_v17, %v5511_v40  ;;  %v204_v46 = vld [vmem:[#allocation4 + $0xb0] sm:$0xff]  ;;  %v219_v17 = vld [vmem:[#allocation4 + $0x128] sm:$0xff] }
 0x3b2   :  { %13307 = vmatpush1.bf16.msra.mxu0 %v13306_v41  ;;  %13499 = vmatpush1.bf16.msra.mxu1 %v13498_v4  ;;  %v196_v41 = vld [vmem:[#allocation4 + $0x70] sm:$0xff]  ;;  %v13508_v4 = vpack.c.bf16 %v21571_v26, %v21570_v25  ;;  %21591 = vst [vmem:[#allocation289_spill] sm:$0xff] %v18486_v22  ;;  %21594 = vst [vmem:[#allocation296_spill] sm:$0xff] %v18492_v62  ;;  %v210_v60 = vld [vmem:[#allocation4 + $0xe0] sm:$0xff]  ;;  %v18496_v25 = vsub.f32 %v189_v31, %v6362_v48  ;;  %v6376_v48 = vand.u32 4294901760, %v212_v9 }
 0x3b3   :  { %13309 = vmatprep.subr.bf16.mxu0 %v13308_v2  ;;  %13501 = vmatprep.subr.bf16.mxu1 %v13500_v19  ;;  %v21577_v2 = vand.u32 4294901760, %v21576_v27  ;;  %v211_v19 = vld [vmem:[#allocation4 + $0xe8] sm:$0xff]  ;;  %v6368_v23 = vand.u32 4294901760, %v196_v41  ;;  %21595 = vst [vmem:[#allocation298_spill] sm:$0xff] %v18494_v55  ;;  %v18498_v26 = vsub.f32 %v197_v43, %v6366_v24  ;;  %v229_v24 = vld [vmem:[#allocation4 + $0x178] sm:$0xff]  ;;  %v218_v27 = vld [vmem:[#allocation4 + $0x120] sm:$0xff] }
 0x3b4   :  { %v5519_v58 = vand.u32 4294901760, %v211_v19  ;;  %21596 = vst [vmem:[#allocation299_spill] sm:$0xff] %v18496_v25  ;;  %v227_v40 = vld [vmem:[#allocation4 + $0x168] sm:$0xff]  ;;  %v5525_v49 = vand.u32 4294901760, %v218_v27 }
 0x3b5   :  { %v13510_v20 = vpack.c.bf16 %v21577_v2, %v21575_v29  ;;  %21597 = vst [vmem:[#allocation301_spill] sm:$0xff] %v18498_v26  ;;  %v18504_v42 = vpack.c.bf16 %v6368_v23, %v6364_v32  ;;  %v18506_v29 = vsub.f32 %v188_v34, %v6364_v32  ;;  %v18508_v31 = vsub.f32 %v196_v41, %v6368_v23  ;;  %v226_v2 = vld [vmem:[#allocation4 + $0x160] sm:$0xff] }
 0x3b6   :  { %13311 = vmatpush1.bf16.msra.mxu0 %v13310_v54  ;;  %13503 = vmatpush1.bf16.msra.mxu1 %v13502_v53  ;;  %v21581_v54 = vld [vmem:[#allocation342_spill] sm:$0xff]  ;;  %v21586_v53 = vand.u32 4294901760, %v21585_v5  ;;  %v18510_v43 = vpack.c.bf16 %v5519_v58, %v5515_v51  ;;  %v5527_v38 = vand.u32 4294901760, %v227_v40  ;;  %v235_v5 = vld [vmem:[#allocation4 + $0x1a8] sm:$0xff] }
 0x3b7   :  { %13313 = vmatprep.subr.bf16.mxu0 %v13312_v1  ;;  %13505 = vmatprep.subr.bf16.mxu1 %v13504_v16  ;;  %v21582_v63 = vand.u32 4294901760, %v21581_v54  ;;  %v13514_v1 = vpack.c.bf16 %v21590_v12, %v21588_v39  ;;  %v18490_v16 = vsub.f32 %v187_v28, %v5507_v50  ;;  %v18502_v28 = vsub.f32 %v194_v56, %v5513_v45  ;;  %v221_v56 = vld [vmem:[#allocation4 + $0x138] sm:$0xff] }
 0x3b8   :  { %v13322_v15 = vpack.c.bf16 %v21586_v53, %v21584_v47  ;;  %v6370_v50 = vand.u32 4294901760, %v205_v33  ;;  %21600 = vst [vmem:[#allocation327_spill] sm:$0xff] %v18504_v42  ;;  %21601 = vst [vmem:[#allocation328_spill] sm:$0xff] %v18506_v29  ;;  %v18514_v45 = vsub.f32 %v211_v19, %v5519_v58  ;;  %v6382_v54 = vand.u32 4294901760, %v229_v24  ;;  %v243_v53 = vld [vmem:[#allocation4 + $0x1e8] sm:$0xff]  ;;  %v21614_v39 = vld [vmem:[#allocation267_spill] sm:$0xff] }
 0x3b9   :  { %v13512_v30 = vpack.c.bf16 %v21582_v63, %v21580_v7  ;;  %21593 = vst [vmem:[#allocation293_spill] sm:$0xff] %v18490_v16  ;;  %21599 = vst [vmem:[#allocation303_spill] sm:$0xff] %v18502_v28  ;;  %v228_v63 = vld [vmem:[#allocation4 + $0x170] sm:$0xff]  ;;  %v5529_v47 = vand.u32 4294901760, %v226_v2  ;;  %v18534_v12 = vsub.f32 %v212_v9, %v6376_v48  ;;  %v234_v58 = vld [vmem:[#allocation4 + $0x1a0] sm:$0xff] }
 0x3ba   :  { %13315 = vmatpush1.bf16.msra.mxu0 %v13314_v37  ;;  %13507 = vmatpush1.bf16.msra.mxu1 %v13506_v14  ;;  %v18500_v37 = vsub.f32 %v186_v44, %v5509_v21  ;;  %v6374_v14 = vand.u32 4294901760, %v213_v35  ;;  %21602 = vst [vmem:[#allocation316_spill] sm:$0xff] %v18508_v31  ;;  %21603 = vst [vmem:[#allocation349_spill] sm:$0xff] %v18510_v43  ;;  %v6372_v44 = vand.u32 4294901760, %v204_v46  ;;  %v5533_v8 = vand.u32 4294901760, %v234_v58 }
 0x3bb   :  { %13317 = vmatprep.subr.bf16.mxu0 %v13316_v36  ;;  %13509 = vmatprep.subr.bf16.mxu1 %v13508_v4  ;;  %v5517_v36 = vand.u32 4294901760, %v202_v13  ;;  %v5521_v4 = vand.u32 4294901760, %v210_v60  ;;  %v18512_v21 = vsub.f32 %v203_v18, %v5515_v51  ;;  %21605 = vst [vmem:[#allocation351_spill] sm:$0xff] %v18514_v45  ;;  %v18516_v34 = vsub.f32 %v205_v33, %v6370_v50  ;;  %v220_v18 = vld [vmem:[#allocation4 + $0x130] sm:$0xff] }
 0x3bc   :  { %21598 = vst [vmem:[#allocation302_spill] sm:$0xff] %v18500_v37  ;;  %v18520_v41 = vsub.f32 %v213_v35, %v6374_v14  ;;  %v18532_v3 = vsub.f32 %v204_v46, %v6372_v44  ;;  %21616 = vst [vmem:[#allocation308_spill] sm:$0xff] %v18534_v12  ;;  %v18540_v33 = vsub.f32 %v227_v40, %v5527_v38  ;;  %v6380_v35 = vand.u32 4294901760, %v220_v18  ;;  %v21624_v40 = vld [vmem:[#allocation270_spill] sm:$0xff] }
 0x3bd   :  { %21604 = vst [vmem:[#allocation350_spill] sm:$0xff] %v18512_v21  ;;  %21606 = vst [vmem:[#allocation352_spill] sm:$0xff] %v18516_v34  ;;  %v18522_v11 = vpack.c.bf16 %v5521_v4, %v5517_v36  ;;  %v18524_v7 = vsub.f32 %v202_v13, %v5517_v36  ;;  %v18526_v19 = vsub.f32 %v210_v60, %v5521_v4  ;;  %v6384_v51 = vand.u32 4294901760, %v228_v63  ;;  %v242_v13 = vld [vmem:[#allocation4 + $0x1e0] sm:$0xff]  ;;  %v21620_v60 = vld [vmem:[#allocation282_spill] sm:$0xff] }
 0x3be   :  { %13319 = vmatpush1.bf16.msra.mxu0 %v13318_v59  ;;  %13511 = vmatpush1.bf16.msra.mxu1 %v13510_v20  ;;  %v18518_v59 = vpack.c.bf16 %v6374_v14, %v6370_v50  ;;  %21608 = vst [vmem:[#allocation354_spill] sm:$0xff] %v18520_v41  ;;  %v5523_v20 = vand.u32 4294901760, %v219_v17  ;;  %21615 = vst [vmem:[#allocation307_spill] sm:$0xff] %v18532_v3  ;;  %v5531_v50 = vand.u32 4294901760, %v235_v5  ;;  %v5535_v14 = vand.u32 4294901760, %v243_v53  ;;  %v236_v36 = vld [vmem:[#allocation4 + $0x1b0] sm:$0xff] }
 0x3bf   :  { %13321 = vmatprep.subr.bf16.mxu0 %v13320_v6  ;;  %13513 = vmatprep.subr.bf16.mxu1 %v13512_v30  ;;  %21609 = vst [vmem:[#allocation355_spill] sm:$0xff] %v18522_v11  ;;  %21610 = vst [vmem:[#allocation356_spill] sm:$0xff] %v18524_v7  ;;  %v6378_v6 = vand.u32 4294901760, %v221_v56  ;;  %v18528_v30 = vpack.c.bf16 %v6376_v48, %v6372_v44  ;;  %v244_v4 = vld [vmem:[#allocation4 + $0x1f0] sm:$0xff]  ;;  %v18550_v44 = vsub.f32 %v229_v24, %v6382_v54 }
 0x3c0   :  { %21607 = vst [vmem:[#allocation353_spill] sm:$0xff] %v18518_v59  ;;  %21611 = vst [vmem:[#allocation357_spill] sm:$0xff] %v18526_v19  ;;  %v18536_v32 = vsub.f32 %v219_v17, %v5523_v20  ;;  %v18538_v23 = vpack.c.bf16 %v5527_v38, %v5523_v20  ;;  %v21623_v17 = vld [vmem:[#allocation268_spill] sm:$0xff]  ;;  %v18552_v48 = vpack.c.bf16 %v5529_v47, %v5525_v49 }
 0x3c1   :  { %21612 = vst [vmem:[#allocation305_spill] sm:$0xff] %v18528_v30  ;;  %21619 = vst [vmem:[#allocation312_spill] sm:$0xff] %v18540_v33  ;;  %v18544_v46 = vpack.c.bf16 %v6382_v54, %v6378_v6  ;;  %v18546_v9 = vsub.f32 %v221_v56, %v6378_v6  ;;  %v18556_v56 = vsub.f32 %v218_v27, %v5525_v49  ;;  %v251_v33 = vld [vmem:[#allocation4 + $0x228] sm:$0xff] }
 0x3c2   :  { %13323 = vmatpush1.bf16.msra.mxu0 %v13322_v15  ;;  %13515 = vmatpush1.bf16.msra.mxu1 %v13514_v1  ;;  %21617 = vst [vmem:[#allocation309_spill] sm:$0xff] %v18536_v32  ;;  %v237_v15 = vld [vmem:[#allocation4 + $0x1b8] sm:$0xff]  ;;  %21618 = vst [vmem:[#allocation311_spill] sm:$0xff] %v18538_v23  ;;  %v18558_v6 = vsub.f32 %v226_v2, %v5529_v47  ;;  %v18562_v24 = vpack.c.bf16 %v6384_v51, %v6380_v35  ;;  %v21675_v32 = vld [vmem:[#allocation317_spill] sm:$0xff] }
 0x3c3   :  { %13325 = vmatprep.subr.bf16.mxu0 %v21613_v52  ;;  %13517 = vmatprep.subr.bf16.mxu1 %v21614_v39  ;;  %v245_v1 = vld [vmem:[#allocation4 + $0x1f8] sm:$0xff]  ;;  %21621 = vst [vmem:[#allocation314_spill] sm:$0xff] %v18544_v46  ;;  %21622 = vst [vmem:[#allocation358_spill] sm:$0xff] %v18546_v9  ;;  %v6386_v20 = vand.u32 4294901760, %v237_v15  ;;  %v21627_v52 = vld [vmem:[#allocation274_spill] sm:$0xff]  ;;  %v5537_v9 = vand.u32 4294901760, %v242_v13  ;;  %v18564_v54 = vsub.f32 %v220_v18, %v6380_v35 }
 0x3c4   :  { %21625 = vst [vmem:[#allocation359_spill] sm:$0xff] %v18550_v44  ;;  %21626 = vst [vmem:[#allocation360_spill] sm:$0xff] %v18552_v48  ;;  %v6390_v38 = vand.u32 4294901760, %v245_v1  ;;  %v21628_v39 = vld [vmem:[#allocation276_spill] sm:$0xff]  ;;  %v18566_v48 = vsub.f32 %v228_v63, %v6384_v51  ;;  %v18568_v27 = vpack.c.bf16 %v5535_v14, %v5531_v50  ;;  %v18570_v2 = vsub.f32 %v235_v5, %v5531_v50  ;;  %v253_v47 = vld [vmem:[#allocation4 + $0x238] sm:$0xff] }
 0x3c5   :  { %4542 = vmatmul.mubr.f32.vlgmr.msra.gmra.mrb[24].mxu0 %v21620_v60  ;;  %5397 = vmatmul.mubr.f32.vlgmr.msra.gmra.mrb[24].mxu1 %v21620_v60  ;;  %21629 = vst [vmem:[#allocation361_spill] sm:$0xff] %v18556_v56  ;;  %21630 = vst [vmem:[#allocation362_spill] sm:$0xff] %v18558_v6  ;;  %v18572_v49 = vsub.f32 %v243_v53, %v5535_v14  ;;  %v21637_v6 = vld [vmem:[#allocation280_spill] sm:$0xff]  ;;  %v21638_v56 = vld [vmem:[#allocation283_spill] sm:$0xff]  ;;  %v18578_v18 = vsub.f32 %v237_v15, %v6386_v20  ;;  %v5539_v35 = vand.u32 4294901760, %v251_v33 }
 0x3c6   :  { %13327 = vmatpush1.bf16.msra.mxu0 %v21623_v17  ;;  %13519 = vmatpush1.bf16.msra.mxu1 %v21624_v40  ;;  %v259_v17 = vld [vmem:[#allocation4 + $0x268] sm:$0xff]  ;;  %21631 = vst [vmem:[#allocation363_spill] sm:$0xff] %v18562_v24  ;;  %21632 = vst [vmem:[#allocation364_spill] sm:$0xff] %v18564_v54  ;;  %v6388_v40 = vand.u32 4294901760, %v236_v36  ;;  %v18576_v44 = vpack.c.bf16 %v6390_v38, %v6386_v20  ;;  %v250_v63 = vld [vmem:[#allocation4 + $0x220] sm:$0xff]  ;;  %v18582_v53 = vsub.f32 %v245_v1, %v6390_v38 }
 0x3c7   :  { %13329 = vmatprep.subr.bf16.mxu0 %v21627_v52  ;;  %13521 = vmatprep.subr.bf16.mxu1 %v21628_v39  ;;  %v6392_v52 = vand.u32 4294901760, %v244_v4  ;;  %21633 = vst [vmem:[#allocation365_spill] sm:$0xff] %v18566_v48  ;;  %21634 = vst [vmem:[#allocation366_spill] sm:$0xff] %v18568_v27  ;;  %v261_v39 = vld [vmem:[#allocation4 + $0x278] sm:$0xff]  ;;  %v5543_v54 = vand.u32 4294901760, %v259_v17  ;;  %v258_v51 = vld [vmem:[#allocation4 + $0x260] sm:$0xff]  ;;  %v18584_v50 = vpack.c.bf16 %v5537_v9, %v5533_v8 }
 0x3c8   :  { %4644 = vmatprep.mubr.f32.mxu0 %v21408_v10  ;;  %5499 = vmatprep.mubr.f32.mxu1 %v21408_v10  ;;  %21635 = vst [vmem:[#allocation367_spill] sm:$0xff] %v18570_v2  ;;  %21636 = vst [vmem:[#allocation269_spill] sm:$0xff] %v18572_v49  ;;  %v21641_v48 = vld [vmem:[#allocation285_spill] sm:$0xff]  ;;  %v21642_v5 = vld [vmem:[#allocation288_spill] sm:$0xff]  ;;  %v18586_v14 = vsub.f32 %v234_v58, %v5533_v8  ;;  %v18588_v49 = vsub.f32 %v242_v13, %v5537_v9  ;;  %v6394_v20 = vand.u32 4294901760, %v253_v47 }
 0x3c9   :  { %21639 = vst [vmem:[#allocation272_spill] sm:$0xff] %v18576_v44  ;;  %21640 = vst [vmem:[#allocation271_spill] sm:$0xff] %v18578_v18  ;;  %v18590_v15 = vpack.c.bf16 %v6392_v52, %v6388_v40  ;;  %v6398_v18 = vand.u32 4294901760, %v261_v39  ;;  %v267_v2 = vld [vmem:[#allocation4 + $0x2a8] sm:$0xff]  ;;  %v18592_v27 = vsub.f32 %v236_v36, %v6388_v40  ;;  %v5541_v1 = vand.u32 4294901760, %v250_v63  ;;  %v21650_v8 = vld [vmem:[#allocation291_spill] sm:$0xff] }
 0x3ca   :  { %13331 = vmatpush1.bf16.msra.mxu0 %v21637_v6  ;;  %13523 = vmatpush1.bf16.msra.mxu1 %v21638_v56  ;;  %21643 = vst [vmem:[#allocation275_spill] sm:$0xff] %v18582_v53  ;;  %21644 = vst [vmem:[#allocation273_spill] sm:$0xff] %v18584_v50  ;;  %v252_v6 = vld [vmem:[#allocation4 + $0x230] sm:$0xff]  ;;  %v275_v44 = vld [vmem:[#allocation4 + $0x2e8] sm:$0xff]  ;;  %v5545_v38 = vand.u32 4294901760, %v258_v51  ;;  %v18598_v13 = vpack.c.bf16 %v5543_v54, %v5539_v35  ;;  %v18600_v9 = vsub.f32 %v251_v33, %v5539_v35 }
 0x3cb   :  { %13333 = vmatprep.subr.bf16.mxu0 %v21641_v48  ;;  %13525 = vmatprep.subr.bf16.mxu1 %v21642_v5  ;;  %21645 = vst [vmem:[#allocation278_spill] sm:$0xff] %v18586_v14  ;;  %v260_v56 = vld [vmem:[#allocation4 + $0x270] sm:$0xff]  ;;  %21646 = vst [vmem:[#allocation277_spill] sm:$0xff] %v18588_v49  ;;  %v18594_v48 = vsub.f32 %v244_v4, %v6392_v52  ;;  %v269_v5 = vld [vmem:[#allocation4 + $0x2b8] sm:$0xff]  ;;  %v6396_v49 = vand.u32 4294901760, %v252_v6  ;;  %v18604_v4 = vsub.f32 %v259_v17, %v5543_v54 }
 0x3cc   :  { %21647 = vst [vmem:[#allocation279_spill] sm:$0xff] %v18590_v15  ;;  %21648 = vst [vmem:[#allocation292_spill] sm:$0xff] %v18592_v27  ;;  %v277_v53 = vld [vmem:[#allocation4 + $0x2f8] sm:$0xff]  ;;  %v6400_v14 = vand.u32 4294901760, %v260_v56  ;;  %v21654_v15 = vld [vmem:[#allocation297_spill] sm:$0xff]  ;;  %v18606_v40 = vsub.f32 %v253_v47, %v6394_v20  ;;  %v5547_v52 = vand.u32 4294901760, %v267_v2  ;;  %v18608_v50 = vpack.c.bf16 %v6398_v18, %v6394_v20 }
 0x3cd   :  { %21649 = vst [vmem:[#allocation294_spill] sm:$0xff] %v18594_v48  ;;  %v21651_v58 = vld [vmem:[#allocation295_spill] sm:$0xff]  ;;  %21652 = vst [vmem:[#allocation334_spill] sm:$0xff] %v18598_v13  ;;  %v21655_v36 = vld [vmem:[#allocation300_spill] sm:$0xff]  ;;  %v5551_v48 = vand.u32 4294901760, %v275_v44  ;;  %v6402_v33 = vand.u32 4294901760, %v269_v5  ;;  %v18614_v13 = vsub.f32 %v250_v63, %v5541_v1  ;;  %v18618_v17 = vsub.f32 %v252_v6, %v6396_v49 }
 0x3ce   :  { %13335 = vmatpush1.bf16.msra.mxu0 %v21650_v8  ;;  %13527 = vmatpush1.bf16.msra.mxu1 %v21651_v58  ;;  %21653 = vst [vmem:[#allocation336_spill] sm:$0xff] %v18600_v9  ;;  %21656 = vst [vmem:[#allocation335_spill] sm:$0xff] %v18604_v4  ;;  %v266_v27 = vld [vmem:[#allocation4 + $0x2a0] sm:$0xff]  ;;  %v18610_v58 = vsub.f32 %v261_v39, %v6398_v18  ;;  %v6406_v35 = vand.u32 4294901760, %v277_v53  ;;  %v18612_v9 = vpack.c.bf16 %v5545_v38, %v5541_v1  ;;  %v268_v54 = vld [vmem:[#allocation4 + $0x2b0] sm:$0xff] }
 0x3cf   :  { %13337 = vmatprep.subr.bf16.mxu0 %v21654_v15  ;;  %13529 = vmatprep.subr.bf16.mxu1 %v21655_v36  ;;  %21657 = vst [vmem:[#allocation337_spill] sm:$0xff] %v18606_v40  ;;  %v274_v8 = vld [vmem:[#allocation4 + $0x2e0] sm:$0xff]  ;;  %21658 = vst [vmem:[#allocation343_spill] sm:$0xff] %v18608_v50  ;;  %v18616_v15 = vsub.f32 %v258_v51, %v5545_v38  ;;  %v276_v47 = vld [vmem:[#allocation4 + $0x2f0] sm:$0xff]  ;;  %v18622_v20 = vpack.c.bf16 %v6400_v14, %v6396_v49  ;;  %v5549_v18 = vand.u32 4294901760, %v266_v27 }
 0x3d0   :  { %21659 = vst [vmem:[#allocation347_spill] sm:$0xff] %v18610_v58  ;;  %21660 = vst [vmem:[#allocation281_spill] sm:$0xff] %v18612_v9  ;;  %v283_v36 = vld [vmem:[#allocation4 + $0x328] sm:$0xff]  ;;  %v21664_v40 = vld [vmem:[#allocation304_spill] sm:$0xff]  ;;  %v18624_v39 = vsub.f32 %v260_v56, %v6400_v14  ;;  %v5553_v58 = vand.u32 4294901760, %v274_v8  ;;  %v18628_v38 = vpack.c.bf16 %v5551_v48, %v5547_v52  ;;  %v18636_v49 = vsub.f32 %v269_v5, %v6402_v33 }
 0x3d1   :  { %21661 = vst [vmem:[#allocation329_spill] sm:$0xff] %v18614_v13  ;;  %21662 = vst [vmem:[#allocation330_spill] sm:$0xff] %v18616_v15  ;;  %v21665_v4 = vld [vmem:[#allocation306_spill] sm:$0xff]  ;;  %v291_v9 = vld [vmem:[#allocation4 + $0x368] sm:$0xff]  ;;  %v6404_v14 = vand.u32 4294901760, %v268_v54  ;;  %v6408_v56 = vand.u32 4294901760, %v276_v47  ;;  %v18644_v5 = vsub.f32 %v266_v27, %v5549_v18 }
 0x3d2   :  { %21663 = vst [vmem:[#allocation331_spill] sm:$0xff] %v18618_v17  ;;  %13339 = vmatpush1.bf16.msra.mxu0 %v21664_v40  ;;  %13531 = vmatpush1.bf16.msra.mxu1 %v21665_v4  ;;  %21666 = vst [vmem:[#allocation332_spill] sm:$0xff] %v18622_v20  ;;  %v285_v63 = vld [vmem:[#allocation4 + $0x338] sm:$0xff]  ;;  %v21668_v51 = vld [vmem:[#allocation310_spill] sm:$0xff]  ;;  %v18630_v17 = vsub.f32 %v267_v2, %v5547_v52  ;;  %v18632_v40 = vsub.f32 %v275_v44, %v5551_v48  ;;  %v5555_v13 = vand.u32 4294901760, %v283_v36 }
 0x3d3   :  { %21667 = vst [vmem:[#allocation333_spill] sm:$0xff] %v18624_v39  ;;  %v293_v1 = vld [vmem:[#allocation4 + $0x378] sm:$0xff]  ;;  %13341 = vmatprep.subr.bf16.mxu0 %v21668_v51  ;;  %v21669_v6 = vld [vmem:[#allocation313_spill] sm:$0xff]  ;;  %21670 = vst [vmem:[#allocation338_spill] sm:$0xff] %v18628_v38  ;;  %v18634_v4 = vpack.c.bf16 %v6406_v35, %v6402_v33  ;;  %v5559_v20 = vand.u32 4294901760, %v291_v9  ;;  %v6410_v50 = vand.u32 4294901760, %v285_v63  ;;  %v18640_v44 = vsub.f32 %v277_v53, %v6406_v35 }
 0x3d4   :  { %13533 = vmatprep.subr.bf16.mxu1 %v21669_v6  ;;  %21671 = vst [vmem:[#allocation339_spill] sm:$0xff] %v18630_v17  ;;  %21672 = vst [vmem:[#allocation342_spill] sm:$0xff] %v18632_v40  ;;  %v282_v39 = vld [vmem:[#allocation4 + $0x320] sm:$0xff]  ;;  %v6414_v51 = vand.u32 4294901760, %v293_v1  ;;  %v284_v24 = vld [vmem:[#allocation4 + $0x330] sm:$0xff]  ;;  %v18642_v48 = vpack.c.bf16 %v5553_v58, %v5549_v18  ;;  %v18650_v40 = vsub.f32 %v268_v54, %v6404_v14 }
 0x3d5   :  { %21673 = vst [vmem:[#allocation344_spill] sm:$0xff] %v18634_v4  ;;  %21674 = vst [vmem:[#allocation345_spill] sm:$0xff] %v18636_v49  ;;  %v290_v15 = vld [vmem:[#allocation4 + $0x360] sm:$0xff]  ;;  %v292_v6 = vld [vmem:[#allocation4 + $0x370] sm:$0xff]  ;;  %v18648_v49 = vsub.f32 %v274_v8, %v5553_v58  ;;  %v5557_v17 = vand.u32 4294901760, %v282_v39  ;;  %v18652_v12 = vpack.c.bf16 %v6408_v56, %v6404_v14  ;;  %v18654_v53 = vsub.f32 %v276_v47, %v6408_v56 }
 0x3d6   :  { %13343 = vmatpush1.bf16.msra.mxu0 %v21675_v32  ;;  %v21676_v2 = vld [vmem:[#allocation318_spill] sm:$0xff]  ;;  %21677 = vst [vmem:[#allocation346_spill] sm:$0xff] %v18642_v48  ;;  %v21678_v52 = vld [vmem:[#allocation319_spill] sm:$0xff]  ;;  %v21679_v33 = vld [vmem:[#allocation320_spill] sm:$0xff]  ;;  %v5561_v4 = vand.u32 4294901760, %v290_v15  ;;  %v6412_v35 = vand.u32 4294901760, %v284_v24  ;;  %v18656_v27 = vpack.c.bf16 %v5559_v20, %v5555_v13  ;;  %v18658_v18 = vsub.f32 %v283_v36, %v5555_v13 }
 0x3d7   :  { %13535 = vmatpush1.bf16.msra.mxu1 %v21676_v2  ;;  %13345 = vmatprep.subr.bf16.mxu0 %v21678_v52  ;;  %21680 = vst [vmem:[#allocation348_spill] sm:$0xff] %v18648_v49  ;;  %21681 = vst [vmem:[#allocation266_spill] sm:$0xff] %v18650_v40  ;;  %v299_v38 = vld [vmem:[#allocation4 + $0x3a8] sm:$0xff]  ;;  %v6416_v2 = vand.u32 4294901760, %v292_v6  ;;  %v18660_v52 = vsub.f32 %v291_v9, %v5559_v20  ;;  %v18662_v8 = vpack.c.bf16 %v6414_v51, %v6410_v50  ;;  %v21688_v54 = vld [vmem:[#allocation322_spill] sm:$0xff] }
 0x3d8   :  { %13537 = vmatprep.subr.bf16.mxu1 %v21679_v33  ;;  %v307_v32 = vld [vmem:[#allocation4 + $0x3e8] sm:$0xff]  ;;  %21682 = vst [vmem:[#allocation267_spill] sm:$0xff] %v18652_v12  ;;  %21683 = vst [vmem:[#allocation268_spill] sm:$0xff] %v18654_v53  ;;  %v18666_v33 = vsub.f32 %v285_v63, %v6410_v50  ;;  %v18668_v14 = vsub.f32 %v293_v1, %v6414_v51  ;;  %v5563_v47 = vand.u32 4294901760, %v299_v38  ;;  %v301_v53 = vld [vmem:[#allocation4 + $0x3b8] sm:$0xff]  ;;  %v21707_v51 = vand.u32 4294901760, %v18494_v55 }
 0x3d9   :  { %21684 = vst [vmem:[#allocation270_spill] sm:$0xff] %v18656_v27  ;;  %21685 = vst [vmem:[#allocation274_spill] sm:$0xff] %v18660_v52  ;;  %v21687_v58 = vld [vmem:[#allocation321_spill] sm:$0xff]  ;;  %v5567_v56 = vand.u32 4294901760, %v307_v32  ;;  %v21691_v40 = vld [vmem:[#allocation323_spill] sm:$0xff]  ;;  %v18672_v13 = vpack.c.bf16 %v5561_v4, %v5557_v17  ;;  %v18674_v9 = vsub.f32 %v282_v39, %v5557_v17  ;;  %v18676_v36 = vsub.f32 %v290_v15, %v5561_v4 }
 0x3da   :  { %21686 = vst [vmem:[#allocation276_spill] sm:$0xff] %v18662_v8  ;;  %13347 = vmatpush1.bf16.msra.mxu0 %v21687_v58  ;;  %21689 = vst [vmem:[#allocation280_spill] sm:$0xff] %v18666_v33  ;;  %v21692_v49 = vld [vmem:[#allocation324_spill] sm:$0xff]  ;;  %v309_v20 = vld [vmem:[#allocation4 + $0x3f8] sm:$0xff]  ;;  %v18678_v58 = vpack.c.bf16 %v6416_v2, %v6412_v35  ;;  %v18680_v50 = vsub.f32 %v284_v24, %v6412_v35 }
 0x3db   :  { %13539 = vmatpush1.bf16.msra.mxu1 %v21688_v54  ;;  %21690 = vst [vmem:[#allocation283_spill] sm:$0xff] %v18668_v14  ;;  %13349 = vmatprep.subr.bf16.mxu0 %v21691_v40  ;;  %21693 = vst [vmem:[#allocation285_spill] sm:$0xff] %v18672_v13  ;;  %v298_v63 = vld [vmem:[#allocation4 + $0x3a0] sm:$0xff]  ;;  %v18684_v40 = vsub.f32 %v292_v6, %v6416_v2  ;;  %v300_v14 = vld [vmem:[#allocation4 + $0x3b0] sm:$0xff]  ;;  %v18690_v24 = vpack.c.bf16 %v5567_v56, %v5563_v47  ;;  %v6422_v35 = vand.u32 4294901760, %v309_v20 }
 0x3dc   :  { %13541 = vmatprep.subr.bf16.mxu1 %v21692_v49  ;;  %21694 = vst [vmem:[#allocation288_spill] sm:$0xff] %v18674_v9  ;;  %21695 = vst [vmem:[#allocation291_spill] sm:$0xff] %v18676_v36  ;;  %v306_v1 = vld [vmem:[#allocation4 + $0x3e0] sm:$0xff]  ;;  %v6418_v49 = vand.u32 4294901760, %v301_v53  ;;  %v21699_v39 = vld [vmem:[#allocation325_spill] sm:$0xff]  ;;  %v18696_v2 = vsub.f32 %v299_v38, %v5563_v47  ;;  %v18698_v17 = vsub.f32 %v307_v32, %v5567_v56  ;;  %v5565_v15 = vand.u32 4294901760, %v298_v63 }
 0x3dd   :  { %21696 = vst [vmem:[#allocation295_spill] sm:$0xff] %v18678_v58  ;;  %21697 = vst [vmem:[#allocation297_spill] sm:$0xff] %v18680_v50  ;;  %v21700_v4 = vld [vmem:[#allocation326_spill] sm:$0xff]  ;;  %v21702_v54 = vld [vmem:[#allocation340_spill] sm:$0xff]  ;;  %v6420_v36 = vand.u32 4294901760, %v300_v14  ;;  %v21706_v9 = vand.u32 4294901760, %v18490_v16  ;;  %v18729_v56 = vsub.f32 %v309_v20, %v6422_v35 }
 0x3de   :  { %21698 = vst [vmem:[#allocation300_spill] sm:$0xff] %v18684_v40  ;;  %13351 = vmatpush1.bf16.msra.mxu0 %v21699_v39  ;;  %21701 = vst [vmem:[#allocation304_spill] sm:$0xff] %v18690_v24  ;;  %v21703_v6 = vld [vmem:[#allocation341_spill] sm:$0xff]  ;;  %v5569_v40 = vand.u32 4294901760, %v306_v1  ;;  %v18700_v39 = vsub.f32 %v301_v53, %v6418_v49  ;;  %v21709_v32 = vand.u32 4294901760, %v18498_v26  ;;  %v21716_v20 = vand.u32 4294901760, %v18506_v29 }
 0x3df   :  { %13543 = vmatpush1.bf16.msra.mxu1 %v21700_v4  ;;  %13353 = vmatprep.subr.bf16.mxu0 %v21702_v54  ;;  %21704 = vst [vmem:[#allocation306_spill] sm:$0xff] %v18698_v17  ;;  %v308_v4 = vld [vmem:[#allocation4 + $0x3f0] sm:$0xff]  ;;  %v5618_v50 = vsub.f32 %v18490_v16, %v21706_v9  ;;  %v5630_v54 = vsub.f32 %v18494_v55, %v21707_v51  ;;  %v21711_v51 = vand.u32 4294901760, %v18500_v37  ;;  %v21758_v16 = vld [vmem:[#allocation281_spill] sm:$0xff] }
 0x3e0   :  { %13545 = vmatprep.subr.bf16.mxu1 %v21703_v6  ;;  %21705 = vst [vmem:[#allocation310_spill] sm:$0xff] %v18700_v39  ;;  %v21708_v6 = vand.u32 4294901760, %v18496_v25  ;;  %v6485_v47 = vsub.f32 %v18498_v26, %v21709_v32  ;;  %v18718_v9 = vpack.c.bf16 %v6422_v35, %v6418_v49  ;;  %v6424_v49 = vand.u32 4294901760, %v308_v4 }
 0x3e1   :  { %v5624_v55 = vsub.f32 %v18500_v37, %v21711_v51  ;;  %v18735_v53 = vsub.f32 %v306_v1, %v5569_v40  ;;  %v5619_v51 = vand.u32 4294901760, %v5618_v50  ;;  %v5631_v37 = vand.u32 4294901760, %v5630_v54 }
 0x3e2   :  { %v6473_v38 = vsub.f32 %v18496_v25, %v21708_v6  ;;  %13355 = vmatpush1.bf16.msra.mxu0 %v21515_v57  ;;  %21710 = vst [vmem:[#allocation313_spill] sm:$0xff] %v18718_v9  ;;  %v21712_v6 = vand.u32 4294901760, %v18502_v28  ;;  %v18731_v57 = vpack.c.bf16 %v5569_v40, %v5565_v15  ;;  %v6486_v32 = vand.u32 4294901760, %v6485_v47 }
 0x3e3   :  { %13547 = vmatpush1.bf16.msra.mxu1 %v21516_v61  ;;  %13549 = vmatprep.subr.bf16.mxu0 %v18486_v22  ;;  %v18733_v61 = vsub.f32 %v298_v63, %v5565_v15  ;;  %21715 = vst [vmem:[#allocation319_spill] sm:$0xff] %v18735_v53  ;;  %v6479_v35 = vsub.f32 %v18506_v29, %v21716_v20  ;;  %v21717_v63 = vand.u32 4294901760, %v18508_v31  ;;  %v5625_v50 = vand.u32 4294901760, %v5624_v55  ;;  %v21763_v29 = vld [vmem:[#allocation344_spill] sm:$0xff] }
 0x3e4   :  { %v5636_v25 = vsub.f32 %v18502_v28, %v21712_v6  ;;  %13741 = vmatprep.subr.bf16.mxu1 %v18488_v0  ;;  %21713 = vst [vmem:[#allocation317_spill] sm:$0xff] %v18731_v57  ;;  %v6474_v6 = vand.u32 4294901760, %v6473_v38  ;;  %v21718_v40 = vand.u32 4294901760, %v18512_v21  ;;  %v18754_v47 = vpack.c.bf16 %v6424_v49, %v6420_v36  ;;  %v21730_v0 = vld [vmem:[#allocation362_spill] sm:$0xff] }
 0x3e5   :  { %21714 = vst [vmem:[#allocation318_spill] sm:$0xff] %v18733_v61  ;;  %4646 = vmatmul.mubr.f32.vlgmr.msra.gmra.mrb[24].mxu0 %v21620_v60  ;;  %v6491_v15 = vsub.f32 %v18508_v31, %v21717_v63  ;;  %v18756_v20 = vsub.f32 %v300_v14, %v6420_v36  ;;  %v20569_v26 = vand.u32 4294901760, %v18524_v7  ;;  %v18760_v55 = vsub.f32 %v308_v4, %v6424_v49  ;;  %v21725_v63 = vld [vmem:[#allocation312_spill] sm:$0xff] }
 0x3e6   :  { %5501 = vmatmul.mubr.f32.vlgmr.msra.gmra.mrb[24].mxu1 %v21620_v60  ;;  %13551 = vmatpush1.bf16.msra.mxu0 %v18492_v62  ;;  %v5637_v1 = vand.u32 4294901760, %v5636_v25  ;;  %v5642_v54 = vsub.f32 %v18512_v21, %v21718_v40  ;;  %21719 = vst [vmem:[#allocation320_spill] sm:$0xff] %v18754_v47  ;;  %v18764_v25 = vpack.c.bf16 %v5631_v37, %v5619_v51  ;;  %v21720_v40 = vand.u32 4294901760, %v18514_v45  ;;  %v21729_v62 = vld [vmem:[#allocation361_spill] sm:$0xff]  ;;  %v21736_v60 = vld [vmem:[#allocation366_spill] sm:$0xff] }
 0x3e7   :  { %13743 = vmatpush1.bf16.msra.mxu1 %v18504_v42  ;;  %13553 = vmatprep.subr.bf16.mxu0 %v18510_v43  ;;  %v6480_v14 = vand.u32 4294901760, %v6479_v35  ;;  %v6492_v36 = vand.u32 4294901760, %v6491_v15  ;;  %v21721_v37 = vand.u32 4294901760, %v18516_v34  ;;  %v18790_v35 = vsub.f32 %v18524_v7, %v20569_v26  ;;  %v21723_v15 = vld [vmem:[#allocation308_spill] sm:$0xff] }
 0x3e8   :  { %13745 = vmatprep.subr.bf16.mxu1 %v18518_v59  ;;  %5603 = vmatprep.mubr.f32.mxu0 %v21408_v10  ;;  %v5654_v38 = vsub.f32 %v18514_v45, %v21720_v40  ;;  %v18769_v59 = vpack.c.bf16 %v6486_v32, %v6474_v6  ;;  %v18774_v4 = vpack.c.bf16 %v5637_v1, %v5625_v50  ;;  %v5643_v49 = vand.u32 4294901760, %v5642_v54  ;;  %v21724_v1 = vld [vmem:[#allocation309_spill] sm:$0xff]  ;;  %v21731_v50 = vld [vmem:[#allocation360_spill] sm:$0xff]  ;;  %v21732_v54 = vld [vmem:[#allocation363_spill] sm:$0xff] }
 0x3e9   :  { %6458 = vmatprep.mubr.f32.mxu1 %v21408_v10  ;;  %v18779_v51 = vsub.f32 %v18516_v34, %v21721_v37  ;;  %v21722_v32 = vand.u32 4294901760, %v18520_v41  ;;  %v18797_v43 = vpack.c.bf16 %v6492_v36, %v6480_v14  ;;  %v21734_v14 = vld [vmem:[#allocation364_spill] sm:$0xff]  ;;  %v21735_v40 = vld [vmem:[#allocation365_spill] sm:$0xff]  ;;  %v5649_v22 = vand.u32 4294901760, %v18790_v35  ;;  %v21752_v34 = vld [vmem:[#allocation334_spill] sm:$0xff] }
 0x3ea   :  { %13555 = vmatpush1.bf16.msra.mxu0 %v18522_v11  ;;  %v5655_v37 = vand.u32 4294901760, %v5654_v38  ;;  %v21727_v11 = vld [vmem:[#allocation359_spill] sm:$0xff]  ;;  %v21740_v36 = vand.u32 4294901760, %v21725_v63 }
 0x3eb   :  { %13747 = vmatpush1.bf16.msra.mxu1 %v18528_v30  ;;  %13557 = vmatprep.subr.bf16.mxu0 %v18538_v23  ;;  %v6509_v6 = vsub.f32 %v18520_v41, %v21722_v32  ;;  %v21726_v30 = vld [vmem:[#allocation358_spill] sm:$0xff]  ;;  %v21728_v32 = vand.u32 4294901760, %v18526_v19  ;;  %v6498_v38 = vand.u32 4294901760, %v18779_v51  ;;  %v21733_v23 = vand.u32 4294901760, %v18532_v3 }
 0x3ec   :  { %13749 = vmatprep.subr.bf16.mxu1 %v18544_v46  ;;  %v21739_v51 = vand.u32 4294901760, %v21724_v1  ;;  %v5678_v7 = vsub.f32 %v21725_v63, %v21740_v36  ;;  %v21742_v35 = vand.u32 4294901760, %v21727_v11  ;;  %v21746_v36 = vld [vmem:[#allocation273_spill] sm:$0xff]  ;;  %v21747_v63 = vld [vmem:[#allocation279_spill] sm:$0xff] }
 0x3ed   :  { %v5660_v42 = vsub.f32 %v18526_v19, %v21728_v32  ;;  %v6503_v46 = vsub.f32 %v18532_v3, %v21733_v23  ;;  %v21737_v32 = vld [vmem:[#allocation272_spill] sm:$0xff]  ;;  %v6510_v26 = vand.u32 4294901760, %v6509_v6  ;;  %v18821_v23 = vpack.c.bf16 %v5655_v37, %v5643_v49 }
 0x3ee   :  { %13559 = vmatpush1.bf16.msra.mxu0 %v21731_v50  ;;  %v21738_v50 = vand.u32 4294901760, %v21723_v15  ;;  %v5666_v19 = vsub.f32 %v21724_v1, %v21739_v51  ;;  %v21744_v49 = vand.u32 4294901760, %v21730_v0  ;;  %v21745_v51 = vld [vmem:[#allocation367_spill] sm:$0xff]  ;;  %v5679_v21 = vand.u32 4294901760, %v5678_v7 }
 0x3ef   :  { %13751 = vmatpush1.bf16.msra.mxu1 %v21732_v54  ;;  %13561 = vmatprep.subr.bf16.mxu0 %v21736_v60  ;;  %v21741_v60 = vand.u32 4294901760, %v21726_v30  ;;  %v5661_v3 = vand.u32 4294901760, %v5660_v42  ;;  %v21749_v42 = vand.u32 4294901760, %v21735_v40  ;;  %v6504_v1 = vand.u32 4294901760, %v6503_v46  ;;  %v21759_v46 = vld [vmem:[#allocation332_spill] sm:$0xff] }
 0x3f0   :  { %13753 = vmatprep.subr.bf16.mxu1 %v21737_v32  ;;  %v6515_v54 = vsub.f32 %v21723_v15, %v21738_v50  ;;  %v6533_v32 = vsub.f32 %v21727_v11, %v21742_v35  ;;  %v21743_v50 = vand.u32 4294901760, %v21729_v62  ;;  %v5684_v37 = vsub.f32 %v21730_v0, %v21744_v49  ;;  %v21750_v11 = vld [vmem:[#allocation269_spill] sm:$0xff]  ;;  %v21753_v49 = vld [vmem:[#allocation343_spill] sm:$0xff] }
 0x3f1   :  { %v6521_v6 = vsub.f32 %v21726_v30, %v21741_v60  ;;  %v21748_v60 = vand.u32 4294901760, %v21734_v14  ;;  %v6539_v35 = vsub.f32 %v21735_v40, %v21749_v42  ;;  %v5667_v0 = vand.u32 4294901760, %v5666_v19  ;;  %v21757_v40 = vld [vmem:[#allocation277_spill] sm:$0xff] }
 0x3f2   :  { %v5672_v15 = vsub.f32 %v21729_v62, %v21743_v50  ;;  %13563 = vmatpush1.bf16.msra.mxu0 %v21746_v36  ;;  %v21751_v62 = vld [vmem:[#allocation271_spill] sm:$0xff]  ;;  %v6516_v36 = vand.u32 4294901760, %v6515_v54  ;;  %v5685_v42 = vand.u32 4294901760, %v5684_v37  ;;  %v21756_v50 = vand.u32 4294901760, %v21745_v51  ;;  %v21762_v37 = vld [vmem:[#allocation338_spill] sm:$0xff] }
 0x3f3   :  { %13755 = vmatpush1.bf16.msra.mxu1 %v21747_v63  ;;  %v6527_v30 = vsub.f32 %v21734_v14, %v21748_v60  ;;  %13565 = vmatprep.subr.bf16.mxu0 %v21752_v34  ;;  %v21754_v63 = vld [vmem:[#allocation275_spill] sm:$0xff]  ;;  %v6522_v31 = vand.u32 4294901760, %v6521_v6  ;;  %v6534_v60 = vand.u32 4294901760, %v6533_v32  ;;  %v21755_v14 = vld [vmem:[#allocation278_spill] sm:$0xff]  ;;  %v6540_v54 = vand.u32 4294901760, %v6539_v35 }
 0x3f4   :  { %13757 = vmatprep.subr.bf16.mxu1 %v21753_v49  ;;  %v20607_v45 = vand.u32 4294901760, %v21754_v63  ;;  %v5673_v28 = vand.u32 4294901760, %v5672_v15  ;;  %v5690_v41 = vsub.f32 %v21745_v51, %v21756_v50  ;;  %v21760_v7 = vand.u32 4294901760, %v21750_v11 }
 0x3f5   :  { %v6528_v19 = vand.u32 4294901760, %v6527_v30  ;;  %v21761_v6 = vand.u32 4294901760, %v21751_v62  ;;  %v18867_v50 = vpack.c.bf16 %v6510_v26, %v6498_v38  ;;  %v21764_v30 = vld [vmem:[#allocation292_spill] sm:$0xff]  ;;  %v18874_v49 = vpack.c.bf16 %v5661_v3, %v5649_v22 }
 0x3f6   :  { %13567 = vmatpush1.bf16.msra.mxu0 %v21758_v16  ;;  %v5702_v32 = vsub.f32 %v21750_v11, %v21760_v7  ;;  %v6557_v34 = vsub.f32 %v21754_v63, %v20607_v45  ;;  %v18876_v7 = vpack.c.bf16 %v6516_v36, %v6504_v1  ;;  %v18878_v11 = vpack.c.bf16 %v5679_v21, %v5667_v0  ;;  %v21768_v3 = vld [vmem:[#allocation336_spill] sm:$0xff]  ;;  %v21770_v36 = vld [vmem:[#allocation335_spill] sm:$0xff] }
 0x3f7   :  { %13759 = vmatpush1.bf16.msra.mxu1 %v21759_v46  ;;  %v6545_v15 = vsub.f32 %v21751_v62, %v21761_v6  ;;  %13569 = vmatprep.subr.bf16.mxu0 %v21762_v37  ;;  %v21765_v46 = vld [vmem:[#allocation294_spill] sm:$0xff]  ;;  %v21766_v6 = vand.u32 4294901760, %v21755_v14  ;;  %v18883_v26 = vpack.c.bf16 %v6534_v60, %v6522_v31  ;;  %v18885_v38 = vpack.c.bf16 %v5685_v42, %v5673_v28 }
 0x3f8   :  { %13761 = vmatprep.subr.bf16.mxu1 %v21763_v29  ;;  %v20617_v16 = vand.u32 4294901760, %v21765_v46  ;;  %v5691_v37 = vand.u32 4294901760, %v5690_v41  ;;  %v21767_v45 = vand.u32 4294901760, %v21757_v40  ;;  %v18892_v22 = vpack.c.bf16 %v6540_v54, %v6528_v19  ;;  %v21771_v19 = vld [vmem:[#allocation337_spill] sm:$0xff]  ;;  %v21778_v54 = vld [vmem:[#allocation339_spill] sm:$0xff] }
 0x3f9   :  { %v5696_v29 = vsub.f32 %v21755_v14, %v21766_v6  ;;  %v5703_v0 = vand.u32 4294901760, %v5702_v32  ;;  %v6546_v21 = vand.u32 4294901760, %v6545_v15  ;;  %v6558_v28 = vand.u32 4294901760, %v6557_v34  ;;  %v21772_v32 = vld [vmem:[#allocation347_spill] sm:$0xff]  ;;  %v21773_v6 = vld [vmem:[#allocation329_spill] sm:$0xff] }
 0x3fa   :  { %v5708_v35 = vsub.f32 %v21757_v40, %v21767_v45  ;;  %13571 = vmatpush1.bf16.msra.mxu0 %v18642_v48  ;;  %v21769_v31 = vand.u32 4294901760, %v21764_v30  ;;  %v6563_v45 = vsub.f32 %v21765_v46, %v20617_v16  ;;  %v21776_v40 = vld [vmem:[#allocation333_spill] sm:$0xff]  ;;  %v21777_v16 = vand.u32 4294901760, %v21768_v3 }
 0x3fb   :  { %13763 = vmatpush1.bf16.msra.mxu1 %v18652_v12  ;;  %13573 = vmatprep.subr.bf16.mxu0 %v18656_v27  ;;  %v5697_v42 = vand.u32 4294901760, %v5696_v29  ;;  %v21775_v12 = vld [vmem:[#allocation331_spill] sm:$0xff]  ;;  %v21779_v34 = vand.u32 4294901760, %v21770_v36  ;;  %v21782_v15 = vand.u32 4294901760, %v21772_v32 }
 0x3fc   :  { %13765 = vmatprep.subr.bf16.mxu1 %v18662_v8  ;;  %v6551_v41 = vsub.f32 %v21764_v30, %v21769_v31  ;;  %v5709_v27 = vand.u32 4294901760, %v5708_v35  ;;  %v21774_v8 = vld [vmem:[#allocation330_spill] sm:$0xff]  ;;  %v5714_v29 = vsub.f32 %v21768_v3, %v21777_v16  ;;  %v6564_v31 = vand.u32 4294901760, %v6563_v45 }
 0x3fd   :  { %v5726_v1 = vsub.f32 %v21770_v36, %v21779_v34  ;;  %v21781_v16 = vand.u32 4294901760, %v21771_v19  ;;  %v6581_v35 = vsub.f32 %v21772_v32, %v21782_v15  ;;  %v21785_v45 = vand.u32 4294901760, %v18760_v55 }
 0x3fe   :  { %13575 = vmatpush1.bf16.msra.mxu0 %v18672_v13  ;;  %v6552_v48 = vand.u32 4294901760, %v6551_v41  ;;  %v21784_v41 = vand.u32 4294901760, %v18756_v20  ;;  %v18939_v34 = vpack.c.bf16 %v5703_v0, %v5691_v37  ;;  %v21787_v13 = vand.u32 4294901760, %v21774_v8 }
 0x3ff   :  { %13767 = vmatpush1.bf16.msra.mxu1 %v18678_v58  ;;  %13577 = vmatprep.subr.bf16.mxu0 %v18690_v24  ;;  %v21780_v58 = vld [vmem:[#allocation342_spill] sm:$0xff]  ;;  %v6569_v60 = vsub.f32 %v21771_v19, %v21781_v16  ;;  %v21783_v24 = vand.u32 4294901760, %v21773_v6  ;;  %v21788_v19 = vand.u32 4294901760, %v21775_v12  ;;  %v21789_v32 = vand.u32 4294901760, %v21776_v40 }
 0x400   :  { %13769 = vmatprep.subr.bf16.mxu1 %v18718_v9  ;;  %v18937_v3 = vpack.c.bf16 %v21785_v45, %v21784_v41  ;;  %v5732_v16 = vsub.f32 %v21774_v8, %v21787_v13  ;;  %v18952_v41 = vpack.c.bf16 %v6558_v28, %v6546_v21  ;;  %v18954_v37 = vpack.c.bf16 %v5709_v27, %v5697_v42 }
 0x401   :  { %v5720_v9 = vsub.f32 %v21773_v6, %v21783_v24  ;;  %v6575_v15 = vsub.f32 %v21775_v12, %v21788_v19  ;;  %v6587_v24 = vsub.f32 %v21776_v40, %v21789_v32  ;;  %v5715_v0 = vand.u32 4294901760, %v5714_v29  ;;  %v21793_v40 = vld [vmem:[#allocation287_spill] sm:$0xff] }
 0x402   :  { %21786 = vst [vmem:[#allocation321_spill] sm:$0xff] %v18937_v3  ;;  %13579 = vmatpush1.bf16.msra.mxu0 %v18731_v57  ;;  %v21790_v45 = vand.u32 4294901760, %v21778_v54  ;;  %v18961_v19 = vpack.c.bf16 %v6564_v31, %v6552_v48  ;;  %v21791_v32 = vand.u32 4294901760, %v21780_v58  ;;  %v5727_v28 = vand.u32 4294901760, %v5726_v1  ;;  %v21795_v1 = vld [vmem:[#allocation266_spill] sm:$0xff] }
 0x403   :  { %13771 = vmatpush1.bf16.msra.mxu1 %v18754_v47  ;;  %13581 = vmatprep.subr.bf16.mxu0 %v18764_v25  ;;  %v21792_v47 = vld [vmem:[#allocation345_spill] sm:$0xff]  ;;  %v6570_v42 = vand.u32 4294901760, %v6569_v60  ;;  %v6582_v29 = vand.u32 4294901760, %v6581_v35  ;;  %v5721_v57 = vand.u32 4294901760, %v5720_v9  ;;  %v5733_v25 = vand.u32 4294901760, %v5732_v16  ;;  %v21796_v35 = vld [vmem:[#allocation268_spill] sm:$0xff] }
 0x404   :  { %v5738_v13 = vsub.f32 %v21778_v54, %v21790_v45  ;;  %13773 = vmatprep.subr.bf16.mxu1 %v18769_v59  ;;  %v5750_v3 = vsub.f32 %v21780_v58, %v21791_v32  ;;  %v20634_v21 = vand.u32 4294901760, %v21792_v47  ;;  %v6576_v59 = vand.u32 4294901760, %v6575_v15  ;;  %v21794_v32 = vld [vmem:[#allocation348_spill] sm:$0xff]  ;;  %v21798_v60 = vld [vmem:[#allocation283_spill] sm:$0xff] }
 0x405   :  { %5609 = vmatmul.mubr.f32.vlgmr.msra.gmra.mrb[26].mxu0 %v21793_v40  ;;  %v6588_v48 = vand.u32 4294901760, %v6587_v24  ;;  %v20637_v31 = vand.u32 4294901760, %v18644_v5  ;;  %v20635_v27 = vand.u32 4294901760, %v21794_v32  ;;  %v20636_v15 = vand.u32 4294901760, %v18658_v18 }
 0x406   :  { %6464 = vmatmul.mubr.f32.vlgmr.msra.gmra.mrb[26].mxu1 %v21793_v40  ;;  %13583 = vmatpush1.bf16.msra.mxu0 %v18774_v4  ;;  %v5739_v45 = vand.u32 4294901760, %v5738_v13  ;;  %v5751_v40 = vand.u32 4294901760, %v5750_v3  ;;  %v6593_v16 = vsub.f32 %v21792_v47, %v20634_v21  ;;  %v21797_v4 = vand.u32 4294901760, %v18640_v44 }
 0x407   :  { %13775 = vmatpush1.bf16.msra.mxu1 %v18797_v43  ;;  %13585 = vmatprep.subr.bf16.mxu0 %v18821_v23  ;;  %v13596_v24 = vpack.c.bf16 %v5727_v28, %v5715_v0  ;;  %v20638_v13 = vand.u32 4294901760, %v18660_v52  ;;  %v20641_v9 = vand.u32 4294901760, %v18666_v33  ;;  %v13598_v3 = vpack.c.bf16 %v5733_v25, %v5721_v57 }
 0x408   :  { %13777 = vmatprep.subr.bf16.mxu1 %v18867_v50  ;;  %v6605_v43 = vsub.f32 %v18640_v44, %v21797_v4  ;;  %5839 = vmatprep.mubr.f32.mxu0 %v21408_v10  ;;  %v13788_v50 = vpack.c.bf16 %v6582_v29, %v6570_v42  ;;  %v13790_v21 = vpack.c.bf16 %v6588_v48, %v6576_v59  ;;  %v21799_v28 = vand.u32 4294901760, %v21795_v1 }
 0x409   :  { %6694 = vmatprep.mubr.f32.mxu1 %v21408_v10  ;;  %v5744_v4 = vsub.f32 %v18644_v5, %v20637_v31  ;;  %v5756_v0 = vsub.f32 %v21794_v32, %v20635_v27  ;;  %v21800_v42 = vand.u32 4294901760, %v21796_v35  ;;  %v13600_v29 = vpack.c.bf16 %v5751_v40, %v5739_v45 }
 0x40a   :  { %13587 = vmatpush1.bf16.msra.mxu0 %v18874_v49  ;;  %v6599_v23 = vsub.f32 %v21795_v1, %v21799_v28  ;;  %v6594_v49 = vand.u32 4294901760, %v6593_v16  ;;  %v6606_v25 = vand.u32 4294901760, %v6605_v43  ;;  %v5774_v59 = vsub.f32 %v18660_v52, %v20638_v13  ;;  %v21803_v16 = vld [vmem:[#allocation291_spill] sm:$0xff] }
 0x40b   :  { %13779 = vmatpush1.bf16.msra.mxu1 %v18876_v7  ;;  %v6611_v57 = vsub.f32 %v21796_v35, %v21800_v42  ;;  %13589 = vmatprep.subr.bf16.mxu0 %v18878_v11  ;;  %v5762_v7 = vsub.f32 %v18658_v18, %v20636_v15  ;;  %v6617_v48 = vsub.f32 %v18666_v33, %v20641_v9  ;;  %v21801_v28 = vand.u32 4294901760, %v21798_v60  ;;  %v21804_v42 = vld [vmem:[#allocation297_spill] sm:$0xff]  ;;  %v21805_v15 = vld [vmem:[#allocation300_spill] sm:$0xff] }
 0x40c   :  { %13781 = vmatprep.subr.bf16.mxu1 %v18883_v26  ;;  %v21802_v26 = vld [vmem:[#allocation288_spill] sm:$0xff]  ;;  %v5745_v40 = vand.u32 4294901760, %v5744_v4  ;;  %v5757_v13 = vand.u32 4294901760, %v5756_v0  ;;  %v6600_v52 = vand.u32 4294901760, %v6599_v23  ;;  %v20644_v33 = vand.u32 4294901760, %v18696_v2 }
 0x40d   :  { %v6629_v11 = vsub.f32 %v21798_v60, %v21801_v28  ;;  %v6612_v9 = vand.u32 4294901760, %v6611_v57  ;;  %v5763_v4 = vand.u32 4294901760, %v5762_v7  ;;  %v20645_v28 = vand.u32 4294901760, %v18698_v17 }
 0x40e   :  { %13591 = vmatpush1.bf16.msra.mxu0 %v18885_v38  ;;  %v20649_v31 = vand.u32 4294901760, %v18729_v56  ;;  %v5775_v43 = vand.u32 4294901760, %v5774_v59  ;;  %v6618_v38 = vand.u32 4294901760, %v6617_v48  ;;  %v21807_v0 = vand.u32 4294901760, %v21803_v16 }
 0x40f   :  { %13783 = vmatpush1.bf16.msra.mxu1 %v18892_v22  ;;  %13593 = vmatprep.subr.bf16.mxu0 %v18939_v34  ;;  %v6630_v45 = vand.u32 4294901760, %v6629_v11  ;;  %v21806_v22 = vand.u32 4294901760, %v21802_v26  ;;  %v21809_v7 = vand.u32 4294901760, %v21805_v15  ;;  %v20648_v59 = vand.u32 4294901760, %v18733_v61 }
 0x410   :  { %13785 = vmatprep.subr.bf16.mxu1 %v18952_v41  ;;  %v5780_v34 = vsub.f32 %v21803_v16, %v21807_v0  ;;  %v21808_v41 = vand.u32 4294901760, %v21804_v42  ;;  %v13792_v48 = vpack.c.bf16 %v6606_v25, %v6594_v49  ;;  %v13602_v11 = vpack.c.bf16 %v5757_v13, %v5745_v40 }
 0x411   :  { %v5768_v23 = vsub.f32 %v21802_v26, %v21806_v22  ;;  %v6635_v27 = vsub.f32 %v21805_v15, %v21809_v7  ;;  %v5786_v22 = vsub.f32 %v18696_v2, %v20644_v33  ;;  %v21810_v7 = vand.u32 4294901760, %v18700_v39 }
 0x412   :  { %v6623_v57 = vsub.f32 %v21804_v42, %v21808_v41  ;;  %13595 = vmatpush1.bf16.msra.mxu0 %v18954_v37  ;;  %v5798_v41 = vsub.f32 %v18698_v17, %v20645_v28  ;;  %v13794_v13 = vpack.c.bf16 %v6612_v9, %v6600_v52  ;;  %v13604_v49 = vpack.c.bf16 %v5775_v43, %v5763_v4 }
 0x413   :  { %13787 = vmatpush1.bf16.msra.mxu1 %v18961_v19  ;;  %13597 = vmatprep.subr.bf16.mxu0 %v13596_v24  ;;  %v6641_v37 = vsub.f32 %v18700_v39, %v21810_v7  ;;  %v6653_v19 = vsub.f32 %v18729_v56, %v20649_v31  ;;  %v13796_v25 = vpack.c.bf16 %v6630_v45, %v6618_v38  ;;  %v5769_v40 = vand.u32 4294901760, %v5768_v23  ;;  %v21838_v31 = vld [vmem:[#allocation365_spill] sm:$0xff] }
 0x414   :  { %13789 = vmatprep.subr.bf16.mxu1 %v13788_v50  ;;  %v5781_v33 = vand.u32 4294901760, %v5780_v34  ;;  %v6624_v0 = vand.u32 4294901760, %v6623_v57  ;;  %v6636_v24 = vand.u32 4294901760, %v6635_v27  ;;  %v5792_v50 = vsub.f32 %v18733_v61, %v20648_v59 }
 0x415   :  { %v21811_v28 = vand.u32 4294901760, %v18735_v53  ;;  %v21812_v39 = vand.u32 4294901760, %v18756_v20  ;;  %v21813_v9 = vand.u32 4294901760, %v18760_v55  ;;  %v5787_v27 = vand.u32 4294901760, %v5786_v22  ;;  %v21814_v22 = vld [vmem:[#allocation293_spill] sm:$0xff] }
 0x416   :  { %13599 = vmatpush1.bf16.msra.mxu0 %v13598_v3  ;;  %v5799_v43 = vand.u32 4294901760, %v5798_v41  ;;  %v6642_v4 = vand.u32 4294901760, %v6641_v37  ;;  %v6654_v38 = vand.u32 4294901760, %v6653_v19  ;;  %v13606_v3 = vpack.c.bf16 %v5781_v33, %v5769_v40  ;;  %v21815_v41 = vld [vmem:[#allocation298_spill] sm:$0xff]  ;;  %v21821_v40 = vld [vmem:[#allocation316_spill] sm:$0xff] }
 0x417   :  { %13791 = vmatpush1.bf16.msra.mxu1 %v13790_v21  ;;  %v5804_v7 = vsub.f32 %v18735_v53, %v21811_v28  ;;  %v6647_v52 = vsub.f32 %v18756_v20, %v21812_v39  ;;  %v6659_v45 = vsub.f32 %v18760_v55, %v21813_v9  ;;  %13601 = vmatprep.subr.bf16.mxu0 %v13600_v29  ;;  %v5793_v23 = vand.u32 4294901760, %v5792_v50  ;;  %v21818_v19 = vld [vmem:[#allocation302_spill] sm:$0xff] }
 0x418   :  { %13793 = vmatprep.subr.bf16.mxu1 %v13792_v48  ;;  %v13798_v21 = vpack.c.bf16 %v6636_v24, %v6624_v0  ;;  %v13608_v39 = vpack.c.bf16 %v5799_v43, %v5787_v27  ;;  %v13800_v59 = vpack.c.bf16 %v6654_v38, %v6642_v4  ;;  %v13612_v33 = vpack.c.bf16 %v21815_v41, %v21814_v22  ;;  %v21816_v0 = vld [vmem:[#allocation299_spill] sm:$0xff]  ;;  %v21822_v50 = vld [vmem:[#allocation350_spill] sm:$0xff]  ;;  %v21827_v43 = vld [vmem:[#allocation356_spill] sm:$0xff] }
 0x419   :  { %v5805_v28 = vand.u32 4294901760, %v5804_v7  ;;  %v6648_v34 = vand.u32 4294901760, %v6647_v52  ;;  %v6660_v57 = vand.u32 4294901760, %v6659_v45  ;;  %v21823_v7 = vld [vmem:[#allocation351_spill] sm:$0xff]  ;;  %v21825_v9 = vld [vmem:[#allocation354_spill] sm:$0xff]  ;;  %v21828_v4 = vld [vmem:[#allocation357_spill] sm:$0xff] }
 0x41a   :  { %13603 = vmatpush1.bf16.msra.mxu0 %v13602_v11  ;;  %v21817_v11 = vld [vmem:[#allocation301_spill] sm:$0xff]  ;;  %v13616_v52 = vpack.c.bf16 %v21823_v7, %v21822_v50  ;;  %v21826_v27 = vld [vmem:[#allocation282_spill] sm:$0xff]  ;;  %v13618_v38 = vpack.c.bf16 %v21828_v4, %v21827_v43 }
 0x41b   :  { %13795 = vmatpush1.bf16.msra.mxu1 %v13794_v13  ;;  %13605 = vmatprep.subr.bf16.mxu0 %v13604_v49  ;;  %v13610_v29 = vpack.c.bf16 %v5805_v28, %v5793_v23  ;;  %v13802_v48 = vpack.c.bf16 %v6660_v57, %v6648_v34  ;;  %v13804_v37 = vpack.c.bf16 %v21817_v11, %v21816_v0  ;;  %v21819_v13 = vld [vmem:[#allocation303_spill] sm:$0xff]  ;;  %v21831_v28 = vld [vmem:[#allocation309_spill] sm:$0xff]  ;;  %v21832_v34 = vld [vmem:[#allocation312_spill] sm:$0xff] }
 0x41c   :  { %13797 = vmatprep.subr.bf16.mxu1 %v13796_v25  ;;  %v13614_v49 = vpack.c.bf16 %v21819_v13, %v21818_v19  ;;  %v21820_v25 = vld [vmem:[#allocation328_spill] sm:$0xff]  ;;  %v13620_v57 = vpack.c.bf16 %v21832_v34, %v21831_v28 }
 0x41d   :  { %v13806_v24 = vpack.c.bf16 %v21821_v40, %v21820_v25 }
 0x41e   :  { %13607 = vmatpush1.bf16.msra.mxu0 %v13606_v3  ;;  %v21829_v3 = vld [vmem:[#allocation307_spill] sm:$0xff] }
 0x41f   :  { %13799 = vmatpush1.bf16.msra.mxu1 %v13798_v21  ;;  %13609 = vmatprep.subr.bf16.mxu0 %v13608_v39  ;;  %v21830_v21 = vld [vmem:[#allocation308_spill] sm:$0xff]  ;;  %v21833_v39 = vld [vmem:[#allocation358_spill] sm:$0xff] }
 0x420   :  { %13801 = vmatprep.subr.bf16.mxu1 %v13800_v59  ;;  %v21824_v59 = vld [vmem:[#allocation352_spill] sm:$0xff]  ;;  %v13810_v23 = vpack.c.bf16 %v21830_v21, %v21829_v3 }
 0x421   :  { %v13808_v45 = vpack.c.bf16 %v21825_v9, %v21824_v59 }
 0x422   :  { %13611 = vmatpush1.bf16.msra.mxu0 %v13610_v29  ;;  %v21834_v29 = vld [vmem:[#allocation359_spill] sm:$0xff] }
 0x423   :  { %13803 = vmatpush1.bf16.msra.mxu1 %v13802_v48  ;;  %13613 = vmatprep.subr.bf16.mxu0 %v13612_v33  ;;  %v13812_v48 = vpack.c.bf16 %v21834_v29, %v21833_v39  ;;  %v21835_v33 = vld [vmem:[#allocation361_spill] sm:$0xff]  ;;  %v13816_v29 = vpack.c.bf16 %v21754_v63, %v21751_v62 }
 0x424   :  { %13805 = vmatprep.subr.bf16.mxu1 %v13804_v37  ;;  %v21836_v37 = vld [vmem:[#allocation362_spill] sm:$0xff]  ;;  %v21840_v39 = vld [vmem:[#allocation277_spill] sm:$0xff] }
 0x425   :  { %5841 = vmatmul.mubr.f32.vlgmr.msra.gmra.mrb[26].mxu0 %v21826_v27 }
 0x426   :  { %6696 = vmatmul.mubr.f32.vlgmr.msra.gmra.mrb[26].mxu1 %v21826_v27  ;;  %13615 = vmatpush1.bf16.msra.mxu0 %v13614_v49  ;;  %v13622_v49 = vpack.c.bf16 %v21836_v37, %v21835_v33  ;;  %v21841_v37 = vld [vmem:[#allocation336_spill] sm:$0xff] }
 0x427   :  { %13807 = vmatpush1.bf16.msra.mxu1 %v13806_v24  ;;  %13617 = vmatprep.subr.bf16.mxu0 %v13616_v52  ;;  %v21837_v24 = vld [vmem:[#allocation364_spill] sm:$0xff]  ;;  %v21839_v52 = vld [vmem:[#allocation269_spill] sm:$0xff] }
 0x428   :  { %13809 = vmatprep.subr.bf16.mxu1 %v13808_v45  ;;  %5975 = vmatprep.mubr.f32.mxu0 %v21408_v10  ;;  %v13814_v27 = vpack.c.bf16 %v21838_v31, %v21837_v24  ;;  %v13624_v45 = vpack.c.bf16 %v21839_v52, %v21745_v51  ;;  %v21843_v31 = vld [vmem:[#allocation347_spill] sm:$0xff] }
 0x429   :  { %6830 = vmatprep.mubr.f32.mxu1 %v21408_v10 }
 0x42a   :  { %13619 = vmatpush1.bf16.msra.mxu0 %v13618_v38  ;;  %v13626_v38 = vpack.c.bf16 %v21840_v39, %v21755_v14 }
 0x42b   :  { %13811 = vmatpush1.bf16.msra.mxu1 %v13810_v23  ;;  %13621 = vmatprep.subr.bf16.mxu0 %v13620_v57  ;;  %v13818_v23 = vpack.c.bf16 %v21765_v46, %v21764_v30  ;;  %v13628_v57 = vpack.c.bf16 %v21770_v36, %v21841_v37 }
 0x42c   :  { %13813 = vmatprep.subr.bf16.mxu1 %v13812_v48  ;;  %v21842_v48 = vld [vmem:[#allocation337_spill] sm:$0xff] }
 0x42d   :  { %v13820_v24 = vpack.c.bf16 %v21843_v31, %v21842_v48 }
 0x42e   :  { %13623 = vmatpush1.bf16.msra.mxu0 %v13622_v49  ;;  %v13630_v49 = vpack.c.bf16 %v21774_v8, %v21773_v6 }
 0x42f   :  { %13815 = vmatpush1.bf16.msra.mxu1 %v13814_v27  ;;  %13625 = vmatprep.subr.bf16.mxu0 %v13624_v45  ;;  %v21844_v27 = vld [vmem:[#allocation333_spill] sm:$0xff]  ;;  %v13632_v45 = vpack.c.bf16 %v21780_v58, %v21778_v54 }
 0x430   :  { %13817 = vmatprep.subr.bf16.mxu1 %v13816_v29  ;;  %v13822_v63 = vpack.c.bf16 %v21844_v27, %v21775_v12  ;;  %v13824_v29 = vpack.c.bf16 %v18640_v44, %v21792_v47  ;;  %v21845_v27 = vld [vmem:[#allocation274_spill] sm:$0xff] }
 0x432   :  { %13627 = vmatpush1.bf16.msra.mxu0 %v13626_v38  ;;  %v13634_v38 = vpack.c.bf16 %v21794_v32, %v18644_v5 }
 0x433   :  { %13819 = vmatpush1.bf16.msra.mxu1 %v13818_v23  ;;  %13629 = vmatprep.subr.bf16.mxu0 %v13628_v57  ;;  %v13826_v23 = vpack.c.bf16 %v21796_v35, %v21795_v1  ;;  %v13636_v57 = vpack.c.bf16 %v21845_v27, %v18658_v18 }
 0x434   :  { %13821 = vmatprep.subr.bf16.mxu1 %v13820_v24  ;;  %v21846_v24 = vld [vmem:[#allocation280_spill] sm:$0xff] }
 0x435   :  { %v13828_v12 = vpack.c.bf16 %v21798_v60, %v21846_v24 }
 0x436   :  { %13631 = vmatpush1.bf16.msra.mxu0 %v13630_v49  ;;  %v13638_v49 = vpack.c.bf16 %v21803_v16, %v21802_v26 }
 0x437   :  { %13823 = vmatpush1.bf16.msra.mxu1 %v13822_v63  ;;  %13633 = vmatprep.subr.bf16.mxu0 %v13632_v45  ;;  %v13830_v63 = vpack.c.bf16 %v21805_v15, %v21804_v42  ;;  %v13640_v45 = vpack.c.bf16 %v18698_v17, %v18696_v2  ;;  %v21850_v17 = vld [vmem:[#allocation284_spill] sm:$0xff] }
 0x438   :  { %13825 = vmatprep.subr.bf16.mxu1 %v13824_v29  ;;  %v21847_v29 = vld [vmem:[#allocation310_spill] sm:$0xff] }
 0x439   :  { %v13832_v35 = vpack.c.bf16 %v18729_v56, %v21847_v29 }
 0x43a   :  { %13635 = vmatpush1.bf16.msra.mxu0 %v13634_v38  ;;  %v13642_v38 = vpack.c.bf16 %v18735_v53, %v18733_v61  ;;  %v21853_v53 = vld [vmem:[#allocation349_spill] sm:$0xff] }
 0x43b   :  { %13827 = vmatpush1.bf16.msra.mxu1 %v13826_v23  ;;  %13637 = vmatprep.subr.bf16.mxu0 %v13636_v57  ;;  %v13834_v23 = vpack.c.bf16 %v18760_v55, %v18756_v20  ;;  %v21848_v57 = vld [vmem:[#allocation289_spill] sm:$0xff]  ;;  %v21855_v20 = vld [vmem:[#allocation355_spill] sm:$0xff] }
 0x43c   :  { %13829 = vmatprep.subr.bf16.mxu1 %v13828_v12  ;;  %v21849_v12 = vld [vmem:[#allocation290_spill] sm:$0xff]  ;;  %v21854_v61 = vld [vmem:[#allocation353_spill] sm:$0xff] }
 0x43d   :  { %v21856_v55 = vld [vmem:[#allocation305_spill] sm:$0xff] }
 0x43e   :  { %13639 = vmatpush1.bf16.msra.mxu0 %v13638_v49  ;;  %v21851_v49 = vld [vmem:[#allocation296_spill] sm:$0xff] }
 0x43f   :  { %13831 = vmatpush1.bf16.msra.mxu1 %v13830_v63  ;;  %13641 = vmatprep.subr.bf16.mxu0 %v13640_v45  ;;  %v21852_v63 = vld [vmem:[#allocation327_spill] sm:$0xff]  ;;  %v21858_v45 = vld [vmem:[#allocation314_spill] sm:$0xff] }
 0x440   :  { %13833 = vmatprep.subr.bf16.mxu1 %v13832_v35  ;;  %v21857_v35 = vld [vmem:[#allocation311_spill] sm:$0xff] }
 0x442   :  { %13643 = vmatpush1.bf16.msra.mxu0 %v13642_v38  ;;  %v21860_v38 = vld [vmem:[#allocation363_spill] sm:$0xff] }
 0x443   :  { %13835 = vmatpush1.bf16.msra.mxu1 %v13834_v23  ;;  %13645 = vmatprep.subr.bf16.mxu0 %v21848_v57  ;;  %v21861_v23 = vld [vmem:[#allocation366_spill] sm:$0xff] }
 0x444   :  { %13837 = vmatprep.subr.bf16.mxu1 %v21849_v12  ;;  %v21883_v12 = vld [vmem:[#allocation317_spill] sm:$0xff] }
 0x445   :  { %5978 = vmatmul.mubr.f32.vlgmr.msra.gmra.mrb[26].mxu0 %v21850_v17 }
 0x446   :  { %6833 = vmatmul.mubr.f32.vlgmr.msra.gmra.mrb[26].mxu1 %v21850_v17  ;;  %13647 = vmatpush1.bf16.msra.mxu0 %v21851_v49  ;;  %v21859_v17 = vld [vmem:[#allocation360_spill] sm:$0xff]  ;;  %v21865_v49 = vld [vmem:[#allocation334_spill] sm:$0xff] }
 0x447   :  { %13839 = vmatpush1.bf16.msra.mxu1 %v21852_v63  ;;  %13649 = vmatprep.subr.bf16.mxu0 %v21853_v53  ;;  %v21862_v53 = vld [vmem:[#allocation272_spill] sm:$0xff]  ;;  %v21864_v63 = vld [vmem:[#allocation279_spill] sm:$0xff] }
 0x448   :  { %13841 = vmatprep.subr.bf16.mxu1 %v21854_v61  ;;  %6080 = vmatprep.mubr.f32.mxu0 %v21408_v10  ;;  %v21863_v61 = vld [vmem:[#allocation273_spill] sm:$0xff] }
 0x449   :  { %6935 = vmatprep.mubr.f32.mxu1 %v21408_v10 }
 0x44a   :  { %13651 = vmatpush1.bf16.msra.mxu0 %v21855_v20  ;;  %v21866_v20 = vld [vmem:[#allocation343_spill] sm:$0xff] }
 0x44b   :  { %13843 = vmatpush1.bf16.msra.mxu1 %v21856_v55  ;;  %13653 = vmatprep.subr.bf16.mxu0 %v21857_v35  ;;  %v21867_v55 = vld [vmem:[#allocation281_spill] sm:$0xff]  ;;  %v21868_v35 = vld [vmem:[#allocation332_spill] sm:$0xff] }
 0x44c   :  { %13845 = vmatprep.subr.bf16.mxu1 %v21858_v45  ;;  %v21869_v45 = vld [vmem:[#allocation338_spill] sm:$0xff] }
 0x44e   :  { %13655 = vmatpush1.bf16.msra.mxu0 %v21859_v17  ;;  %v21870_v17 = vld [vmem:[#allocation344_spill] sm:$0xff] }
 0x44f   :  { %13847 = vmatpush1.bf16.msra.mxu1 %v21860_v38  ;;  %13657 = vmatprep.subr.bf16.mxu0 %v21861_v23  ;;  %v21871_v38 = vld [vmem:[#allocation346_spill] sm:$0xff]  ;;  %v21872_v23 = vld [vmem:[#allocation267_spill] sm:$0xff] }
 0x450   :  { %13849 = vmatprep.subr.bf16.mxu1 %v21862_v53  ;;  %v21873_v53 = vld [vmem:[#allocation270_spill] sm:$0xff] }
 0x452   :  { %13659 = vmatpush1.bf16.msra.mxu0 %v21863_v61  ;;  %v21874_v61 = vld [vmem:[#allocation276_spill] sm:$0xff] }
 0x453   :  { %13851 = vmatpush1.bf16.msra.mxu1 %v21864_v63  ;;  %13661 = vmatprep.subr.bf16.mxu0 %v21865_v49  ;;  %v21875_v63 = vld [vmem:[#allocation285_spill] sm:$0xff]  ;;  %v21876_v49 = vld [vmem:[#allocation295_spill] sm:$0xff] }
 0x454   :  { %13853 = vmatprep.subr.bf16.mxu1 %v21866_v20  ;;  %v21877_v20 = vld [vmem:[#allocation304_spill] sm:$0xff] }
 0x456   :  { %13663 = vmatpush1.bf16.msra.mxu0 %v21867_v55  ;;  %v21878_v55 = vld [vmem:[#allocation313_spill] sm:$0xff] }
 0x457   :  { %13855 = vmatpush1.bf16.msra.mxu1 %v21868_v35  ;;  %13665 = vmatprep.subr.bf16.mxu0 %v21869_v45  ;;  %v21879_v45 = vand.u32 4294901760, %v21814_v22  ;;  %v21888_v22 = vand.u32 4294901760, %v21821_v40  ;;  %v21896_v40 = vand.u32 4294901760, %v21829_v3  ;;  %v21905_v3 = vld [vmem:[#allocation362_spill] sm:$0xff] }
 0x458   :  { %13857 = vmatprep.subr.bf16.mxu1 %v21870_v17  ;;  %v21880_v17 = vand.u32 4294901760, %v21815_v41 }
 0x45a   :  { %13667 = vmatpush1.bf16.msra.mxu0 %v21871_v38  ;;  %v13676_v35 = vpack.c.bf16 %v21880_v17, %v21879_v45  ;;  %v21881_v38 = vand.u32 4294901760, %v21816_v0  ;;  %v21889_v0 = vand.u32 4294901760, %v21822_v50  ;;  %v21891_v17 = vand.u32 4294901760, %v21824_v59 }
 0x45b   :  { %13859 = vmatpush1.bf16.msra.mxu1 %v21872_v23  ;;  %13669 = vmatprep.subr.bf16.mxu0 %v21873_v53  ;;  %v21882_v23 = vand.u32 4294901760, %v21817_v11  ;;  %v21890_v11 = vand.u32 4294901760, %v21823_v7  ;;  %v21897_v50 = vand.u32 4294901760, %v21830_v21  ;;  %v21898_v59 = vand.u32 4294901760, %v21831_v28  ;;  %v21907_v28 = vld [vmem:[#allocation364_spill] sm:$0xff] }
 0x45c   :  { %13861 = vmatprep.subr.bf16.mxu1 %v21874_v61  ;;  %v21884_v61 = vld [vmem:[#allocation320_spill] sm:$0xff]  ;;  %v21906_v21 = vand.u32 4294901760, %v21905_v3  ;;  %v21935_v3 = vand.u32 4294901760, %v21794_v32  ;;  %v21943_v32 = vand.u32 4294901760, %v21802_v26 }
 0x45d   :  { %v13868_v53 = vpack.c.bf16 %v21882_v23, %v21881_v38  ;;  %v13680_v45 = vpack.c.bf16 %v21890_v11, %v21889_v0  ;;  %v21892_v38 = vand.u32 4294901760, %v21825_v9  ;;  %v21893_v23 = vld [vmem:[#allocation286_spill] sm:$0xff]  ;;  %v13874_v7 = vpack.c.bf16 %v21897_v50, %v21896_v40 }
 0x45e   :  { %13671 = vmatpush1.bf16.msra.mxu0 %v21875_v63  ;;  %v21899_v9 = vand.u32 4294901760, %v21832_v34  ;;  %v21909_v34 = vld [vmem:[#allocation365_spill] sm:$0xff]  ;;  %v21918_v50 = vand.u32 4294901760, %v21764_v30  ;;  %v21925_v30 = vand.u32 4294901760, %v21774_v8  ;;  %v21934_v8 = vand.u32 4294901760, %v18644_v5 }
 0x45f   :  { %13863 = vmatpush1.bf16.msra.mxu1 %v21876_v49  ;;  %13673 = vmatprep.subr.bf16.mxu0 %v21877_v20  ;;  %v21885_v49 = vand.u32 4294901760, %v21818_v19  ;;  %v21886_v20 = vand.u32 4294901760, %v21819_v13  ;;  %v13872_v19 = vpack.c.bf16 %v21892_v38, %v21891_v17  ;;  %v21894_v13 = vand.u32 4294901760, %v21827_v43 }
 0x460   :  { %13865 = vmatprep.subr.bf16.mxu1 %v21878_v55  ;;  %v21887_v55 = vand.u32 4294901760, %v21820_v25  ;;  %v21910_v0 = vand.u32 4294901760, %v21909_v34  ;;  %v21912_v17 = vand.u32 4294901760, %v21839_v52  ;;  %v21920_v52 = vand.u32 4294901760, %v21841_v37 }
 0x461   :  { %v13678_v63 = vpack.c.bf16 %v21886_v20, %v21885_v49  ;;  %v13684_v49 = vpack.c.bf16 %v21899_v9, %v21898_v59  ;;  %v21900_v20 = vld [vmem:[#allocation358_spill] sm:$0xff]  ;;  %v21922_v9 = vand.u32 4294901760, %v21842_v48  ;;  %v21931_v48 = vand.u32 4294901760, %v21780_v58 }
 0x462   :  { %13675 = vmatpush1.bf16.msra.mxu0 %v21883_v12  ;;  %v13870_v41 = vpack.c.bf16 %v21888_v22, %v21887_v55  ;;  %v21902_v55 = vld [vmem:[#allocation359_spill] sm:$0xff]  ;;  %v21939_v58 = vand.u32 4294901760, %v18658_v18  ;;  %v21941_v34 = vand.u32 4294901760, %v21846_v24  ;;  %v21948_v24 = vld [vmem:[#allocation306_spill] sm:$0xff] }
 0x463   :  { %13867 = vmatpush1.bf16.msra.mxu1 %v21884_v61  ;;  %13677 = vmatprep.subr.bf16.mxu0 %v13676_v35  ;;  %v21903_v35 = vand.u32 4294901760, %v21902_v55  ;;  %v21928_v55 = vld [vmem:[#allocation333_spill] sm:$0xff] }
 0x464   :  { %13869 = vmatprep.subr.bf16.mxu1 %v13868_v53  ;;  %v21895_v53 = vand.u32 4294901760, %v21828_v4  ;;  %v21904_v4 = vand.u32 4294901760, %v21835_v33 }
 0x465   :  { %6084 = vmatmul.mubr.f32.vlgmr.msra.gmra.mrb[26].mxu0 %v21893_v23 }
 0x466   :  { %6939 = vmatmul.mubr.f32.vlgmr.msra.gmra.mrb[26].mxu1 %v21893_v23  ;;  %13679 = vmatpush1.bf16.msra.mxu0 %v13678_v63  ;;  %v13682_v25 = vpack.c.bf16 %v21895_v53, %v21894_v13  ;;  %v21901_v63 = vand.u32 4294901760, %v21900_v20  ;;  %v13686_v22 = vpack.c.bf16 %v21906_v21, %v21904_v4  ;;  %v21914_v23 = vld [vmem:[#allocation275_spill] sm:$0xff]  ;;  %v21916_v53 = vand.u32 4294901760, %v21755_v14 }
 0x467   :  { %13871 = vmatpush1.bf16.msra.mxu1 %v13870_v41  ;;  %13681 = vmatprep.subr.bf16.mxu0 %v13680_v45  ;;  %v21908_v41 = vand.u32 4294901760, %v21907_v28  ;;  %v21911_v45 = vand.u32 4294901760, %v21745_v51  ;;  %v21915_v13 = vand.u32 4294901760, %v21914_v23  ;;  %v21926_v20 = vld [vmem:[#allocation331_spill] sm:$0xff]  ;;  %v21933_v4 = vand.u32 4294901760, %v18640_v44  ;;  %v21937_v28 = vld [vmem:[#allocation268_spill] sm:$0xff] }
 0x468   :  { %13873 = vmatprep.subr.bf16.mxu1 %v13872_v19  ;;  %v13876_v43 = vpack.c.bf16 %v21903_v35, %v21901_v63  ;;  %6250 = vmatprep.mubr.f32.mxu0 %v21408_v10  ;;  %v21913_v19 = vand.u32 4294901760, %v21751_v62  ;;  %v21921_v62 = vand.u32 4294901760, %v21770_v36  ;;  %v21927_v63 = vand.u32 4294901760, %v21926_v20  ;;  %v21976_v20 = vld [vmem:[#allocation332_spill] sm:$0xff] }
 0x469   :  { %7105 = vmatprep.mubr.f32.mxu1 %v21408_v10  ;;  %v13878_v11 = vpack.c.bf16 %v21910_v0, %v21908_v41  ;;  %v13688_v38 = vpack.c.bf16 %v21912_v17, %v21911_v45  ;;  %v21929_v35 = vand.u32 4294901760, %v21928_v55  ;;  %v21930_v36 = vand.u32 4294901760, %v21778_v54  ;;  %v21978_v55 = vld [vmem:[#allocation344_spill] sm:$0xff] }
 0x46a   :  { %13683 = vmatpush1.bf16.msra.mxu0 %v13682_v25  ;;  %v13880_v33 = vpack.c.bf16 %v21915_v13, %v21913_v19  ;;  %v21917_v25 = vand.u32 4294901760, %v21840_v39  ;;  %v13692_v59 = vpack.c.bf16 %v21921_v62, %v21920_v52  ;;  %v21924_v39 = vand.u32 4294901760, %v21773_v6  ;;  %v21966_v52 = vld [vmem:[#allocation314_spill] sm:$0xff]  ;;  %v21967_v62 = vld [vmem:[#allocation360_spill] sm:$0xff] }
 0x46b   :  { %13875 = vmatpush1.bf16.msra.mxu1 %v13874_v7  ;;  %13685 = vmatprep.subr.bf16.mxu0 %v13684_v49  ;;  %v21919_v7 = vand.u32 4294901760, %v21765_v46  ;;  %v21923_v49 = vand.u32 4294901760, %v21843_v31  ;;  %v13886_v37 = vpack.c.bf16 %v21929_v35, %v21927_v63  ;;  %v13696_v31 = vpack.c.bf16 %v21931_v48, %v21930_v36  ;;  %v21977_v63 = vld [vmem:[#allocation338_spill] sm:$0xff]  ;;  %v21982_v48 = vld [vmem:[#allocation276_spill] sm:$0xff] }
 0x46c   :  { %13877 = vmatprep.subr.bf16.mxu1 %v13876_v43  ;;  %v13690_v40 = vpack.c.bf16 %v21917_v25, %v21916_v53  ;;  %v13694_v46 = vpack.c.bf16 %v21925_v30, %v21924_v39  ;;  %v21932_v43 = vand.u32 4294901760, %v21792_v47  ;;  %v13698_v21 = vpack.c.bf16 %v21935_v3, %v21934_v8  ;;  %v21956_v53 = vld [vmem:[#allocation321_spill] sm:$0xff]  ;;  %v21960_v25 = vld [vmem:[#allocation327_spill] sm:$0xff]  ;;  %v21979_v35 = vld [vmem:[#allocation346_spill] sm:$0xff] }
 0x46d   :  { %v13882_v51 = vpack.c.bf16 %v21919_v7, %v21918_v50  ;;  %v13884_v14 = vpack.c.bf16 %v21923_v49, %v21922_v9  ;;  %v21938_v41 = vand.u32 4294901760, %v21937_v28  ;;  %v21940_v47 = vand.u32 4294901760, %v21845_v27  ;;  %v21962_v50 = vld [vmem:[#allocation353_spill] sm:$0xff]  ;;  %v21963_v7 = vld [vmem:[#allocation355_spill] sm:$0xff]  ;;  %v21969_v9 = vld [vmem:[#allocation366_spill] sm:$0xff] }
 0x46e   :  { %13687 = vmatpush1.bf16.msra.mxu0 %v13686_v22  ;;  %v13888_v6 = vpack.c.bf16 %v21933_v4, %v21932_v43  ;;  %v21936_v22 = vand.u32 4294901760, %v21795_v1  ;;  %v21942_v0 = vand.u32 4294901760, %v21798_v60  ;;  %v21944_v1 = vand.u32 4294901760, %v21803_v16  ;;  %v21952_v16 = vld [vmem:[#allocation318_spill] sm:$0xff]  ;;  %v21970_v49 = vld [vmem:[#allocation272_spill] sm:$0xff]  ;;  %v21972_v39 = vld [vmem:[#allocation279_spill] sm:$0xff] }
 0x46f   :  { %13879 = vmatpush1.bf16.msra.mxu1 %v13878_v11  ;;  %13689 = vmatprep.subr.bf16.mxu0 %v13688_v38  ;;  %v13700_v44 = vpack.c.bf16 %v21940_v47, %v21939_v58  ;;  %v21945_v45 = vand.u32 4294901760, %v21804_v42  ;;  %v21946_v17 = vand.u32 4294901760, %v21805_v15  ;;  %v21947_v27 = vand.u32 4294901760, %v18696_v2  ;;  %v21954_v42 = vld [vmem:[#allocation319_spill] sm:$0xff]  ;;  %v21957_v2 = vld [vmem:[#allocation290_spill] sm:$0xff]  ;;  %v21985_v4 = vld [vmem:[#allocation304_spill] sm:$0xff] }
 0x470   :  { %13881 = vmatprep.subr.bf16.mxu1 %v13880_v33  ;;  %v13890_v54 = vpack.c.bf16 %v21938_v41, %v21936_v22  ;;  %v13892_v5 = vpack.c.bf16 %v21942_v0, %v21941_v34  ;;  %v13702_v11 = vpack.c.bf16 %v21944_v1, %v21943_v32  ;;  %v21949_v38 = vand.u32 4294901760, %v21948_v24  ;;  %v21974_v30 = vld [vmem:[#allocation343_spill] sm:$0xff]  ;;  %v21981_v36 = vld [vmem:[#allocation270_spill] sm:$0xff]  ;;  %v21987_v8 = vld [vmem:[#allocation8_spill] sm:$0xff] }
 0x471   :  { %v13894_v18 = vpack.c.bf16 %v21946_v17, %v21945_v45  ;;  %v21950_v19 = vand.u32 4294901760, %v21847_v29  ;;  %v21951_v23 = vand.u32 4294901760, %v18729_v56  ;;  %v21953_v13 = vand.u32 4294901760, %v21952_v16  ;;  %v21958_v29 = vld [vmem:[#allocation282_spill] sm:$0xff]  ;;  %v21959_v56 = vld [vmem:[#allocation296_spill] sm:$0xff]  ;;  %v21984_v43 = vld [vmem:[#allocation295_spill] sm:$0xff] }
 0x472   :  { %13691 = vmatpush1.bf16.msra.mxu0 %v13690_v40  ;;  %v13704_v60 = vpack.c.bf16 %v21949_v38, %v21947_v27  ;;  %v21955_v33 = vand.u32 4294901760, %v21954_v42  ;;  %v21961_v40 = vld [vmem:[#allocation349_spill] sm:$0xff]  ;;  %v21988_v3 = vld [vmem:[#allocation15_spill] sm:$0xff]  ;;  %v21991_v28 = vld [vmem:[#allocation10_spill] sm:$0xff] }
 0x473   :  { %13883 = vmatpush1.bf16.msra.mxu1 %v13882_v51  ;;  %13693 = vmatprep.subr.bf16.mxu0 %v13692_v59  ;;  %v13896_v26 = vpack.c.bf16 %v21951_v23, %v21950_v19  ;;  %v21965_v51 = vld [vmem:[#allocation311_spill] sm:$0xff]  ;;  %v21990_v22 = vld [vmem:[#allocation17_spill] sm:$0xff]  ;;  %v21992_v41 = vld [vmem:[#allocation18_spill] sm:$0xff] }
 0x474   :  { %13885 = vmatprep.subr.bf16.mxu1 %v13884_v14  ;;  %v13706_v15 = vpack.c.bf16 %v21955_v33, %v21953_v13  ;;  %v21968_v59 = vld [vmem:[#allocation363_spill] sm:$0xff]  ;;  %v21971_v14 = vld [vmem:[#allocation273_spill] sm:$0xff]  ;;  %v21999_v34 = vld [vmem:[#allocation14_spill] sm:$0xff] }
 0x475   :  { %v21996_v58 = vld [vmem:[#allocation23_spill] sm:$0xff]  ;;  %v21997_v47 = vld [vmem:[#allocation13_spill] sm:$0xff]  ;;  %v22005_v45 = vld [vmem:[#allocation20_spill] sm:$0xff] }
 0x476   :  { %13695 = vmatpush1.bf16.msra.mxu0 %v13694_v46  ;;  %v21975_v46 = vld [vmem:[#allocation281_spill] sm:$0xff]  ;;  %v22000_v0 = vld [vmem:[#allocation27_spill] sm:$0xff]  ;;  %v22008_v27 = vld [vmem:[#allocation36_spill] sm:$0xff] }
 0x477   :  { %13887 = vmatpush1.bf16.msra.mxu1 %v13886_v37  ;;  %13697 = vmatprep.subr.bf16.mxu0 %v13696_v31  ;;  %v21980_v37 = vld [vmem:[#allocation267_spill] sm:$0xff]  ;;  %v21983_v31 = vld [vmem:[#allocation285_spill] sm:$0xff]  ;;  %v22009_v42 = vld [vmem:[#allocation24_spill] sm:$0xff] }
 0x478   :  { %13889 = vmatprep.subr.bf16.mxu1 %v13888_v6  ;;  %v21986_v6 = vld [vmem:[#allocation313_spill] sm:$0xff]  ;;  %v22003_v1 = vld [vmem:[#allocation19_spill] sm:$0xff]  ;;  %v22010_v33 = vld [vmem:[#allocation38_spill] sm:$0xff] }
 0x479   :  { %v22002_v32 = vld [vmem:[#allocation29_spill] sm:$0xff] }
 0x47a   :  { %13699 = vmatpush1.bf16.msra.mxu0 %v13698_v21  ;;  %v21989_v21 = vld [vmem:[#allocation9_spill] sm:$0xff] }
 0x47b   :  { %13891 = vmatpush1.bf16.msra.mxu1 %v13890_v54  ;;  %13701 = vmatprep.subr.bf16.mxu0 %v13700_v44  ;;  %v21993_v54 = vld [vmem:[#allocation11_spill] sm:$0xff]  ;;  %v21998_v44 = vld [vmem:[#allocation25_spill] sm:$0xff] }
 0x47c   :  { %13893 = vmatprep.subr.bf16.mxu1 %v13892_v5  ;;  %v22001_v5 = vld [vmem:[#allocation16_spill] sm:$0xff]  ;;  %v22006_v17 = vld [vmem:[#allocation33_spill] sm:$0xff] }
 0x47e   :  { %13703 = vmatpush1.bf16.msra.mxu0 %v13702_v11  ;;  %v22004_v11 = vld [vmem:[#allocation31_spill] sm:$0xff] }
 0x47f   :  { %13895 = vmatpush1.bf16.msra.mxu1 %v13894_v18  ;;  %13705 = vmatprep.subr.bf16.mxu0 %v13704_v60  ;;  %v22007_v18 = vld [vmem:[#allocation22_spill] sm:$0xff] }
 0x480   :  { %13897 = vmatprep.subr.bf16.mxu1 %v13896_v26 }
 0x482   :  { %13707 = vmatpush1.bf16.msra.mxu0 %v13706_v15 }
 0x483   :  { %13899 = vmatpush1.bf16.msra.mxu1 %v21956_v53  ;;  %13709 = vmatprep.subr.bf16.mxu0 %v21848_v57  ;;  %v21964_v57 = vld [vmem:[#allocation305_spill] sm:$0xff]  ;;  %v22011_v53 = vld [vmem:[#allocation26_spill] sm:$0xff] }
 0x484   :  { %13901 = vmatprep.subr.bf16.mxu1 %v21957_v2  ;;  %v22012_v2 = vld [vmem:[#allocation41_spill] sm:$0xff] }
 0x485   :  { %6252 = vmatmul.mubr.f32.vlgmr.msra.gmra.mrb[26].mxu0 %v21958_v29 }
 0x486   :  { %7107 = vmatmul.mubr.f32.vlgmr.msra.gmra.mrb[26].mxu1 %v21958_v29  ;;  %13711 = vmatpush1.bf16.msra.mxu0 %v21959_v56 }
 0x487   :  { %13903 = vmatpush1.bf16.msra.mxu1 %v21960_v25  ;;  %13713 = vmatprep.subr.bf16.mxu0 %v21961_v40 }
 0x488   :  { %13905 = vmatprep.subr.bf16.mxu1 %v21962_v50  ;;  %6354 = vmatprep.mubr.f32.mxu0 %v21408_v10 }
 0x489   :  { %7209 = vmatprep.mubr.f32.mxu1 %v21408_v10  ;;  %v21973_v10 = vld [vmem:[#allocation334_spill] sm:$0xff] }
 0x48a   :  { %13715 = vmatpush1.bf16.msra.mxu0 %v21963_v7 }
 0x48b   :  { %13907 = vmatpush1.bf16.msra.mxu1 %v21964_v57  ;;  %13717 = vmatprep.subr.bf16.mxu0 %v21965_v51  ;;  %v22013_v57 = vld [vmem:[#allocation28_spill] sm:$0xff]  ;;  %v22014_v51 = vld [vmem:[#allocation42_spill] sm:$0xff] }
 0x48c   :  { %13909 = vmatprep.subr.bf16.mxu1 %v21966_v52 }
 0x48e   :  { %13719 = vmatpush1.bf16.msra.mxu0 %v21967_v62  ;;  %v22015_v62 = vld [vmem:[#allocation30_spill] sm:$0xff] }
 0x48f   :  { %13911 = vmatpush1.bf16.msra.mxu1 %v21968_v59  ;;  %13721 = vmatprep.subr.bf16.mxu0 %v21969_v9  ;;  %v22016_v59 = vld [vmem:[#allocation45_spill] sm:$0xff] }
 0x490   :  { %13913 = vmatprep.subr.bf16.mxu1 %v21970_v49 }
 0x492   :  { %13723 = vmatpush1.bf16.msra.mxu0 %v21971_v14 }
 0x493   :  { %13915 = vmatpush1.bf16.msra.mxu1 %v21972_v39  ;;  %13725 = vmatprep.subr.bf16.mxu0 %v21973_v10  ;;  %v22017_v39 = vld [vmem:[#allocation32_spill] sm:$0xff]  ;;  %v22018_v10 = vld [vmem:[#allocation49_spill] sm:$0xff] }
 0x494   :  { %13917 = vmatprep.subr.bf16.mxu1 %v21974_v30 }
 0x496   :  { %13727 = vmatpush1.bf16.msra.mxu0 %v21975_v46 }
 0x497   :  { %13919 = vmatpush1.bf16.msra.mxu1 %v21976_v20  ;;  %13729 = vmatprep.subr.bf16.mxu0 %v21977_v63  ;;  %v22019_v20 = vld [vmem:[#allocation35_spill] sm:$0xff] }
 0x498   :  { %13921 = vmatprep.subr.bf16.mxu1 %v21978_v55  ;;  %v22020_v63 = vld [vmem:[#allocation39_spill] sm:$0xff]  ;;  %v22021_v55 = vld [vmem:[#allocation40_spill] sm:$0xff] }
 0x49a   :  { %13731 = vmatpush1.bf16.msra.mxu0 %v21979_v35  ;;  %v22022_v35 = vld [vmem:[#allocation43_spill] sm:$0xff] }
 0x49b   :  { %13923 = vmatpush1.bf16.msra.mxu1 %v21980_v37  ;;  %13733 = vmatprep.subr.bf16.mxu0 %v21981_v36  ;;  %v22023_v37 = vld [vmem:[#allocation44_spill] sm:$0xff]  ;;  %v22024_v36 = vld [vmem:[#allocation46_spill] sm:$0xff] }
 0x49c   :  { %13925 = vmatprep.subr.bf16.mxu1 %v21982_v48  ;;  %v22025_v48 = vld [vmem:[#allocation47_spill] sm:$0xff] }
 0x49e   :  { %13735 = vmatpush1.bf16.msra.mxu0 %v21983_v31  ;;  %v22026_v31 = vld [vmem:[#allocation59_spill] sm:$0xff] }
 0x49f   :  { %13927 = vmatpush1.bf16.msra.mxu1 %v21984_v43  ;;  %13737 = vmatprep.subr.bf16.mxu0 %v21985_v4  ;;  %v22027_v43 = vld [vmem:[#allocation60_spill] sm:$0xff]  ;;  %v22028_v4 = vld [vmem:[#allocation61_spill] sm:$0xff] }
 0x4a0   :  { %13929 = vmatprep.subr.bf16.mxu1 %v21986_v6  ;;  %v22029_v6 = vld [vmem:[#allocation62_spill] sm:$0xff] }
 0x4a2   :  { %13739 = vmatpush1.bf16.msra.mxu0 %v21883_v12  ;;  %v21994_v12 = vld [vmem:[#allocation21_spill] sm:$0xff] }
 0x4a3   :  { %13931 = vmatpush1.bf16.msra.mxu1 %v21884_v61  ;;  %13933 = vmatprep.subr.bf16.mxu0 %v21987_v8  ;;  %v21995_v61 = vld [vmem:[#allocation12_spill] sm:$0xff] }
 0x4a4   :  { %13965 = vmatprep.subr.bf16.mxu1 %v21988_v3  ;;  %v22030_v3 = vld [vmem:[#allocation63_spill] sm:$0xff] }
 0x4a5   :  { %6356 = vmatmul.mubr.f32.vlgmr.msra.gmra.mrb[26].mxu0 %v21958_v29 }
 0x4a6   :  { %7211 = vmatmul.mubr.f32.vlgmr.msra.gmra.mrb[26].mxu1 %v21958_v29  ;;  %13935 = vmatpush3.bf16.msra.mxu0 %v21989_v21 }
 0x4a7   :  { %13967 = vmatpush3.bf16.msra.mxu1 %v21990_v22  ;;  %13937 = vmatprep.subr.bf16.mxu0 %v21991_v28  ;;  %v22031_v22 = vld [vmem:[#allocation64_spill] sm:$0xff] }
 0x4a8   :  { %13969 = vmatprep.subr.bf16.mxu1 %v21992_v41  ;;  %v22032_v41 = vld [vmem:[#allocation65_spill] sm:$0xff] }
 0x4aa   :  { %13939 = vmatpush3.bf16.msra.mxu0 %v21993_v54 }
 0x4ab   :  { %13971 = vmatpush3.bf16.msra.mxu1 %v21994_v12  ;;  %13941 = vmatprep.subr.bf16.mxu0 %v21995_v61  ;;  %v22033_v12 = vld [vmem:[#allocation66_spill] sm:$0xff] }
 0x4ac   :  { %13973 = vmatprep.subr.bf16.mxu1 %v21996_v58  ;;  %v22034_v58 = vld [vmem:[#allocation67_spill] sm:$0xff] }
 0x4ae   :  { %13943 = vmatpush3.bf16.msra.mxu0 %v21997_v47 }
 0x4af   :  { %13975 = vmatpush3.bf16.msra.mxu1 %v21998_v44  ;;  %13945 = vmatprep.subr.bf16.mxu0 %v21999_v34  ;;  %v22035_v44 = vld [vmem:[#allocation48_spill] sm:$0xff] }
 0x4b0   :  { %13977 = vmatprep.subr.bf16.mxu1 %v22000_v0  ;;  %v22036_v0 = vld [vmem:[#allocation50_spill] sm:$0xff] }
 0x4b2   :  { %13947 = vmatpush3.bf16.msra.mxu0 %v22001_v5 }
 0x4b3   :  { %13979 = vmatpush3.bf16.msra.mxu1 %v22002_v32  ;;  %13949 = vmatprep.subr.bf16.mxu0 %v22003_v1  ;;  %v22037_v32 = vld [vmem:[#allocation51_spill] sm:$0xff] }
 0x4b4   :  { %13981 = vmatprep.subr.bf16.mxu1 %v22004_v11  ;;  %v22038_v11 = vld [vmem:[#allocation52_spill] sm:$0xff] }
 0x4b6   :  { %13951 = vmatpush3.bf16.msra.mxu0 %v22005_v45 }
 0x4b7   :  { %13983 = vmatpush3.bf16.msra.mxu1 %v22006_v17  ;;  %13953 = vmatprep.subr.bf16.mxu0 %v22007_v18  ;;  %v22039_v17 = vld [vmem:[#allocation53_spill] sm:$0xff] }
 0x4b8   :  { %13985 = vmatprep.subr.bf16.mxu1 %v22008_v27  ;;  %v4647_v24 = vpop.f32.mrb[24].mxu0  ;;  %v22041_v27 = vld [vmem:[#allocation55_spill] sm:$0xff] }
 0x4b9   :  { %v19363_v38 = vpop.f32.mrb[24].mxu1  ;;  %v19365_v60 = vand.u32 4294901760, %v4647_v24  ;;  %v10665_v19 = vmul.f32 %v4647_v24, %v4647_v24  ;;  %v4649_v23 = vpop.f32.mrb[25].mxu0 }
 0x4ba   :  { %v19367_v26 = vpop.f32.mrb[25].mxu1  ;;  %v19369_v16 = vand.u32 4294901760, %v4649_v23  ;;  %v10666_v13 = vmul.f32 %v4649_v23, %v4649_v23  ;;  %13955 = vmatpush3.bf16.msra.mxu0 %v22009_v42  ;;  %v10667_v29 = vmul.f32 %v19363_v38, %v19363_v38 }
 0x4bb   :  { %13987 = vmatpush3.bf16.msra.mxu1 %v22010_v33  ;;  %v7320_v15 = vsub.f32 %v4647_v24, %v19365_v60  ;;  %13957 = vmatprep.subr.bf16.mxu0 %v22011_v53  ;;  %v10668_v50 = vmul.f32 %v19367_v26, %v19367_v26  ;;  %v22046_v24 = vld [vmem:[#allocation34_spill] sm:$0xff]  ;;  %v22054_v33 = vld [vmem:[#allocation83_spill] sm:$0xff] }
 0x4bc   :  { %13989 = vmatprep.subr.bf16.mxu1 %v22012_v2  ;;  %v7314_v56 = vsub.f32 %v4649_v23, %v19369_v16  ;;  %v10673_v25 = vadd.f32 %v10666_v13, %v10665_v19  ;;  %7554 = vmatprep.mubr.f32.mxu1 %v19369_v16  ;;  %v22048_v19 = vld [vmem:[#allocation69_spill] sm:$0xff]  ;;  %v22050_v23 = vld [vmem:[#allocation71_spill] sm:$0xff]  ;;  %v22057_v2 = vld [vmem:[#allocation76_spill] sm:$0xff] }
 0x4bd   :  { %v7321_v40 = vand.u32 4294901760, %v7320_v15 }
 0x4be   :  { %v10674_v7 = vadd.f32 %v10673_v25, %v10667_v29  ;;  %13959 = vmatpush3.bf16.msra.mxu0 %v22013_v57  ;;  %v7315_v52 = vand.u32 4294901760, %v7314_v56  ;;  %v22058_v29 = vld [vmem:[#allocation90_spill] sm:$0xff]  ;;  %v22060_v25 = vld [vmem:[#allocation92_spill] sm:$0xff] }
 0x4bf   :  { %13991 = vmatpush3.bf16.msra.mxu1 %v22014_v51  ;;  %13961 = vmatprep.subr.bf16.mxu0 %v22015_v62  ;;  %v7322_v9 = vsub.f32 %v7320_v15, %v7321_v40  ;;  %v19481_v51 = vand.u32 4294901760, %v19363_v38 }
 0x4c0   :  { %13993 = vmatprep.subr.bf16.mxu1 %v22016_v59  ;;  %v19386_v49 = vadd.f32 %v10674_v7, %v10668_v50  ;;  %v7316_v14 = vsub.f32 %v7314_v56, %v7315_v52  ;;  %v22063_v50 = vld [vmem:[#allocation81_spill] sm:$0xff]  ;;  %v22064_v7 = vld [vmem:[#allocation96_spill] sm:$0xff]  ;;  %v22068_v59 = vld [vmem:[#allocation99_spill] sm:$0xff] }
 0x4c1   :  { %v7323_v46 = vand.u32 4294901760, %v7322_v9  ;;  %v22069_v9 = vld [vmem:[#allocation89_spill] sm:$0xff] }
 0x4c2   :  { %13963 = vmatpush3.bf16.msra.mxu0 %v22017_v39  ;;  %v7317_v30 = vand.u32 4294901760, %v7316_v14  ;;  %v8182_v14 = vsub.f32 %v19363_v38, %v19481_v51  ;;  %v22079_v38 = vld [vmem:[#allocation101_spill] sm:$0xff] }
 0x4c3   :  { %13995 = vmatpush3.bf16.msra.mxu1 %v22018_v10  ;;  %13997 = vmatprep.subr.bf16.mxu0 %v22019_v20  ;;  %v22071_v10 = vld [vmem:[#allocation91_spill] sm:$0xff] }
 0x4c4   :  { %14029 = vmatprep.subr.bf16.mxu1 %v21987_v8  ;;  %7318 = vmatprep.mubr.f32.mxu0 %v7317_v30  ;;  %v22072_v30 = vld [vmem:[#allocation103_spill] sm:$0xff]  ;;  %v8183_v20 = vand.u32 4294901760, %v8182_v14 }
 0x4c5   :  { %7324 = vmatmul.mubr.f32.vlgmr.msra.gmra.mrb[28].mxu0 %v7323_v46  ;;  %v22073_v46 = vld [vmem:[#allocation94_spill] sm:$0xff] }
 0x4c6   :  { %7556 = vmatmul.mubr.f32.vlgmr.msra.gmra.mrb[28].mxu1 %v19365_v60  ;;  %13999 = vmatpush3.bf16.msra.mxu0 %v22020_v63  ;;  %v22074_v63 = vld [vmem:[#allocation105_spill] sm:$0xff] }
 0x4c7   :  { %7691 = vmatprep.mubr.f32.mxu0 %v7314_v56  ;;  %14031 = vmatpush3.bf16.msra.mxu1 %v21989_v21  ;;  %v22059_v56 = vld [vmem:[#allocation77_spill] sm:$0xff] }
 0x4c8   :  { %7798 = vmatprep.mubr.f32.mxu1 %v7315_v52  ;;  %14001 = vmatprep.subr.bf16.mxu0 %v22021_v55  ;;  %v22066_v52 = vld [vmem:[#allocation98_spill] sm:$0xff]  ;;  %v22075_v55 = vld [vmem:[#allocation95_spill] sm:$0xff] }
 0x4c9   :  { %14033 = vmatprep.subr.bf16.mxu1 %v21991_v28 }
 0x4ca   :  { %14003 = vmatpush3.bf16.msra.mxu0 %v22022_v35  ;;  %v22076_v35 = vld [vmem:[#allocation106_spill] sm:$0xff] }
 0x4cb   :  { %14035 = vmatpush3.bf16.msra.mxu1 %v21993_v54  ;;  %14005 = vmatprep.subr.bf16.mxu0 %v22023_v37  ;;  %v22077_v37 = vld [vmem:[#allocation97_spill] sm:$0xff] }
 0x4cc   :  { %14037 = vmatprep.subr.bf16.mxu1 %v21995_v61 }
 0x4ce   :  { %14007 = vmatpush3.bf16.msra.mxu0 %v22024_v36  ;;  %v22078_v36 = vld [vmem:[#allocation109_spill] sm:$0xff] }
 0x4cf   :  { %14039 = vmatpush3.bf16.msra.mxu1 %v21997_v47  ;;  %14009 = vmatprep.subr.bf16.mxu0 %v22025_v48  ;;  %v8184_v48 = vsub.f32 %v8182_v14, %v8183_v20 }
 0x4d0   :  { %14041 = vmatprep.subr.bf16.mxu1 %v21999_v34 }
 0x4d2   :  { %14011 = vmatpush3.bf16.msra.mxu0 %v22026_v31  ;;  %v22080_v31 = vld [vmem:[#allocation110_spill] sm:$0xff] }
 0x4d3   :  { %14043 = vmatpush3.bf16.msra.mxu1 %v22001_v5  ;;  %14013 = vmatprep.subr.bf16.mxu0 %v22027_v43  ;;  %v22081_v43 = vld [vmem:[#allocation102_spill] sm:$0xff] }
 0x4d4   :  { %14045 = vmatprep.subr.bf16.mxu1 %v22003_v1 }
 0x4d6   :  { %14015 = vmatpush3.bf16.msra.mxu0 %v22028_v4  ;;  %v22082_v4 = vld [vmem:[#allocation113_spill] sm:$0xff] }
 0x4d7   :  { %14047 = vmatpush3.bf16.msra.mxu1 %v22005_v45  ;;  %14017 = vmatprep.subr.bf16.mxu0 %v22029_v6  ;;  %v8185_v6 = vand.u32 4294901760, %v8184_v48 }
 0x4d8   :  { %14049 = vmatprep.subr.bf16.mxu1 %v22007_v18 }
 0x4da   :  { %14019 = vmatpush3.bf16.msra.mxu0 %v22030_v3  ;;  %v22083_v3 = vld [vmem:[#allocation104_spill] sm:$0xff] }
 0x4db   :  { %14051 = vmatpush3.bf16.msra.mxu1 %v22009_v42  ;;  %14021 = vmatprep.subr.bf16.mxu0 %v22031_v22  ;;  %v22084_v22 = vld [vmem:[#allocation107_spill] sm:$0xff] }
 0x4dc   :  { %14053 = vmatprep.subr.bf16.mxu1 %v22011_v53 }
 0x4de   :  { %14023 = vmatpush3.bf16.msra.mxu0 %v22032_v41  ;;  %v22085_v41 = vld [vmem:[#allocation108_spill] sm:$0xff] }
 0x4df   :  { %14055 = vmatpush3.bf16.msra.mxu1 %v22013_v57  ;;  %14025 = vmatprep.subr.bf16.mxu0 %v22033_v12  ;;  %v22086_v12 = vld [vmem:[#allocation111_spill] sm:$0xff] }
 0x4e0   :  { %14057 = vmatprep.subr.bf16.mxu1 %v22015_v62 }
 0x4e2   :  { %14027 = vmatpush3.bf16.msra.mxu0 %v22034_v58  ;;  %v22087_v58 = vld [vmem:[#allocation112_spill] sm:$0xff] }
 0x4e3   :  { %14059 = vmatpush3.bf16.msra.mxu1 %v22017_v39  ;;  %14061 = vmatprep.subr.bf16.mxu0 %v22035_v44  ;;  %v22088_v44 = vld [vmem:[#allocation79_spill] sm:$0xff] }
 0x4e4   :  { %14093 = vmatprep.subr.bf16.mxu1 %v21987_v8  ;;  %v22040_v8 = vld [vmem:[#allocation54_spill] sm:$0xff] }
 0x4e5   :  { %7694 = vmatmul.mubr.f32.vlgmr.msra.gmra.mrb[30].mxu0 %v7320_v15  ;;  %v22055_v15 = vld [vmem:[#allocation75_spill] sm:$0xff] }
 0x4e6   :  { %7802 = vmatmul.mubr.f32.vlgmr.msra.gmra.mrb[30].mxu1 %v7321_v40  ;;  %14063 = vmatpush3.bf16.msra.mxu0 %v22036_v0  ;;  %v22062_v40 = vld [vmem:[#allocation93_spill] sm:$0xff]  ;;  %v22089_v0 = vld [vmem:[#allocation84_spill] sm:$0xff] }
 0x4e7   :  { %7968 = vmatprep.mubr.f32.mxu0 %v19369_v16  ;;  %14095 = vmatpush3.bf16.msra.mxu1 %v21989_v21  ;;  %v22042_v21 = vld [vmem:[#allocation56_spill] sm:$0xff] }
 0x4e8   :  { %8072 = vmatprep.mubr.f32.mxu1 %v19369_v16  ;;  %14065 = vmatprep.subr.bf16.mxu0 %v22037_v32  ;;  %v22052_v16 = vld [vmem:[#allocation80_spill] sm:$0xff]  ;;  %v22090_v32 = vld [vmem:[#allocation85_spill] sm:$0xff] }
 0x4e9   :  { %14097 = vmatprep.subr.bf16.mxu1 %v21991_v28  ;;  %v22043_v28 = vld [vmem:[#allocation57_spill] sm:$0xff] }
 0x4ea   :  { %14067 = vmatpush3.bf16.msra.mxu0 %v22038_v11  ;;  %v22091_v11 = vld [vmem:[#allocation86_spill] sm:$0xff] }
 0x4eb   :  { %14099 = vmatpush3.bf16.msra.mxu1 %v21993_v54  ;;  %14069 = vmatprep.subr.bf16.mxu0 %v22039_v17  ;;  %v19444_v54 = vand.u32 4294901760, %v19367_v26  ;;  %v22092_v17 = vld [vmem:[#allocation114_spill] sm:$0xff] }
 0x4ec   :  { %14101 = vmatprep.subr.bf16.mxu1 %v21995_v61  ;;  %v22044_v61 = vld [vmem:[#allocation58_spill] sm:$0xff] }
 0x4ee   :  { %14071 = vmatpush3.bf16.msra.mxu0 %v22040_v8  ;;  %v22093_v8 = vld [vmem:[#allocation115_spill] sm:$0xff] }
 0x4ef   :  { %14103 = vmatpush3.bf16.msra.mxu1 %v21997_v47  ;;  %14073 = vmatprep.subr.bf16.mxu0 %v22041_v27  ;;  %v22045_v47 = vld [vmem:[#allocation37_spill] sm:$0xff]  ;;  %v22094_v27 = vld [vmem:[#allocation116_spill] sm:$0xff] }
 0x4f0   :  { %14105 = vmatprep.subr.bf16.mxu1 %v21999_v34  ;;  %v8176_v34 = vsub.f32 %v19367_v26, %v19444_v54  ;;  %v22051_v26 = vld [vmem:[#allocation72_spill] sm:$0xff] }
 0x4f2   :  { %14075 = vmatpush3.bf16.msra.mxu0 %v22042_v21  ;;  %v22095_v21 = vld [vmem:[#allocation117_spill] sm:$0xff] }
 0x4f3   :  { %14107 = vmatpush3.bf16.msra.mxu1 %v22001_v5  ;;  %14077 = vmatprep.subr.bf16.mxu0 %v22043_v28  ;;  %v22047_v5 = vld [vmem:[#allocation68_spill] sm:$0xff]  ;;  %v22096_v28 = vld [vmem:[#allocation118_spill] sm:$0xff] }
 0x4f4   :  { %14109 = vmatprep.subr.bf16.mxu1 %v22003_v1  ;;  %v8177_v1 = vand.u32 4294901760, %v8176_v34 }
 0x4f6   :  { %14079 = vmatpush3.bf16.msra.mxu0 %v22044_v61  ;;  %v22097_v61 = vld [vmem:[#allocation119_spill] sm:$0xff] }
 0x4f7   :  { %14111 = vmatpush3.bf16.msra.mxu1 %v22005_v45  ;;  %14081 = vmatprep.subr.bf16.mxu0 %v22045_v47  ;;  %v22049_v45 = vld [vmem:[#allocation70_spill] sm:$0xff]  ;;  %v22098_v47 = vld [vmem:[#allocation120_spill] sm:$0xff] }
 0x4f8   :  { %14113 = vmatprep.subr.bf16.mxu1 %v22007_v18  ;;  %v8178_v18 = vsub.f32 %v8176_v34, %v8177_v1 }
 0x4fa   :  { %14083 = vmatpush3.bf16.msra.mxu0 %v22046_v24  ;;  %v8179_v13 = vand.u32 4294901760, %v8178_v18  ;;  %v22100_v24 = vld [vmem:[#allocation122_spill] sm:$0xff]  ;;  %v22105_v18 = vld [vmem:[#allocation127_spill] sm:$0xff] }
 0x4fb   :  { %14115 = vmatpush3.bf16.msra.mxu1 %v22009_v42  ;;  %14085 = vmatprep.subr.bf16.mxu0 %v22047_v5  ;;  %v22053_v42 = vld [vmem:[#allocation74_spill] sm:$0xff]  ;;  %v22101_v5 = vld [vmem:[#allocation124_spill] sm:$0xff] }
 0x4fc   :  { %14117 = vmatprep.subr.bf16.mxu1 %v22011_v53  ;;  %v22056_v53 = vld [vmem:[#allocation87_spill] sm:$0xff] }
 0x4fe   :  { %14087 = vmatpush3.bf16.msra.mxu0 %v22048_v19  ;;  %v22103_v19 = vld [vmem:[#allocation126_spill] sm:$0xff] }
 0x4ff   :  { %14119 = vmatpush3.bf16.msra.mxu1 %v22013_v57  ;;  %14089 = vmatprep.subr.bf16.mxu0 %v22049_v45  ;;  %v22065_v57 = vld [vmem:[#allocation82_spill] sm:$0xff]  ;;  %v22104_v45 = vld [vmem:[#allocation73_spill] sm:$0xff] }
 0x500   :  { %14121 = vmatprep.subr.bf16.mxu1 %v22015_v62  ;;  %v22067_v62 = vld [vmem:[#allocation88_spill] sm:$0xff] }
 0x502   :  { %14091 = vmatpush3.bf16.msra.mxu0 %v22050_v23  ;;  %v22107_v23 = vld [vmem:[#allocation129_spill] sm:$0xff] }
 0x503   :  { %14123 = vmatpush3.bf16.msra.mxu1 %v22017_v39  ;;  %14125 = vmatprep.subr.bf16.mxu0 %v22051_v26  ;;  %v22070_v39 = vld [vmem:[#allocation100_spill] sm:$0xff] }
 0x504   :  { %14157 = vmatprep.subr.bf16.mxu1 %v22052_v16  ;;  %v22109_v16 = vld [vmem:[#allocation132_spill] sm:$0xff] }
 0x505   :  { %7970 = vmatmul.mubr.f32.vlgmr.msra.gmra.mrb[32].mxu0 %v19365_v60 }
 0x506   :  { %8074 = vmatmul.mubr.f32.vlgmr.msra.gmra.mrb[32].mxu1 %v19365_v60  ;;  %14127 = vmatpush3.bf16.msra.mxu0 %v22053_v42  ;;  %v22061_v60 = vld [vmem:[#allocation78_spill] sm:$0xff] }
 0x507   :  { %8180 = vmatprep.mubr.f32.mxu0 %v8179_v13  ;;  %14159 = vmatpush3.bf16.msra.mxu1 %v22054_v33  ;;  %v22110_v13 = vld [vmem:[#allocation133_spill] sm:$0xff]  ;;  %v22112_v33 = vld [vmem:[#allocation135_spill] sm:$0xff] }
 0x508   :  { %8416 = vmatprep.mubr.f32.mxu1 %v19444_v54  ;;  %14129 = vmatprep.subr.bf16.mxu0 %v22055_v15 }
 0x509   :  { %14161 = vmatprep.subr.bf16.mxu1 %v22056_v53  ;;  %v22114_v53 = vld [vmem:[#allocation138_spill] sm:$0xff] }
 0x50a   :  { %14131 = vmatpush3.bf16.msra.mxu0 %v22057_v2 }
 0x50b   :  { %14163 = vmatpush3.bf16.msra.mxu1 %v22058_v29  ;;  %14133 = vmatprep.subr.bf16.mxu0 %v22059_v56  ;;  %v22116_v29 = vld [vmem:[#allocation146_spill] sm:$0xff] }
 0x50c   :  { %14165 = vmatprep.subr.bf16.mxu1 %v22060_v25  ;;  %v22118_v25 = vld [vmem:[#allocation149_spill] sm:$0xff] }
 0x50e   :  { %14135 = vmatpush3.bf16.msra.mxu0 %v22061_v60 }
 0x50f   :  { %14167 = vmatpush3.bf16.msra.mxu1 %v22062_v40  ;;  %14137 = vmatprep.subr.bf16.mxu0 %v22063_v50  ;;  %v22120_v40 = vld [vmem:[#allocation153_spill] sm:$0xff] }
 0x510   :  { %14169 = vmatprep.subr.bf16.mxu1 %v22064_v7  ;;  %v22122_v7 = vld [vmem:[#allocation156_spill] sm:$0xff] }
 0x512   :  { %14139 = vmatpush3.bf16.msra.mxu0 %v22065_v57 }
 0x513   :  { %14171 = vmatpush3.bf16.msra.mxu1 %v22066_v52  ;;  %14141 = vmatprep.subr.bf16.mxu0 %v22067_v62  ;;  %v22124_v52 = vld [vmem:[#allocation158_spill] sm:$0xff] }
 0x514   :  { %14173 = vmatprep.subr.bf16.mxu1 %v22068_v59  ;;  %v22126_v59 = vld [vmem:[#allocation159_spill] sm:$0xff] }
 0x516   :  { %14143 = vmatpush3.bf16.msra.mxu0 %v22069_v9 }
 0x517   :  { %14175 = vmatpush3.bf16.msra.mxu1 %v22070_v39  ;;  %14145 = vmatprep.subr.bf16.mxu0 %v22071_v10  ;;  %v22130_v39 = vld [vmem:[#allocation165_spill] sm:$0xff] }
 0x518   :  { %14177 = vmatprep.subr.bf16.mxu1 %v22072_v30  ;;  %v22132_v30 = vld [vmem:[#allocation166_spill] sm:$0xff] }
 0x51a   :  { %14147 = vmatpush3.bf16.msra.mxu0 %v22073_v46 }
 0x51b   :  { %14179 = vmatpush3.bf16.msra.mxu1 %v22074_v63  ;;  %14149 = vmatprep.subr.bf16.mxu0 %v22075_v55  ;;  %v22135_v63 = vld [vmem:[#allocation157_spill] sm:$0xff] }
 0x51c   :  { %14181 = vmatprep.subr.bf16.mxu1 %v22076_v35 }
 0x51e   :  { %14151 = vmatpush3.bf16.msra.mxu0 %v22077_v37 }
 0x51f   :  { %14183 = vmatpush3.bf16.msra.mxu1 %v22078_v36  ;;  %14153 = vmatprep.subr.bf16.mxu0 %v22079_v38 }
 0x520   :  { %14185 = vmatprep.subr.bf16.mxu1 %v22080_v31 }
 0x522   :  { %14155 = vmatpush3.bf16.msra.mxu0 %v22081_v43 }
 0x523   :  { %14187 = vmatpush3.bf16.msra.mxu1 %v22082_v4  ;;  %14189 = vmatprep.subr.bf16.mxu0 %v22083_v3 }
 0x524   :  { %14221 = vmatprep.subr.bf16.mxu1 %v22051_v26 }
 0x525   :  { %8186 = vmatmul.mubr.f32.vlgmr.msra.gmra.mrb[34].mxu0 %v8185_v6  ;;  %v22137_v6 = vld [vmem:[#allocation160_spill] sm:$0xff] }
 0x526   :  { %8418 = vmatmul.mubr.f32.vlgmr.msra.gmra.mrb[34].mxu1 %v19481_v51  ;;  %14191 = vmatpush3.bf16.msra.mxu0 %v22084_v22 }
 0x527   :  { %8553 = vmatprep.mubr.f32.mxu0 %v8176_v34  ;;  %14223 = vmatpush3.bf16.msra.mxu1 %v22053_v42  ;;  %v22099_v34 = vld [vmem:[#allocation121_spill] sm:$0xff] }
 0x528   :  { %8660 = vmatprep.mubr.f32.mxu1 %v8177_v1  ;;  %14193 = vmatprep.subr.bf16.mxu0 %v22085_v41  ;;  %v22102_v1 = vld [vmem:[#allocation125_spill] sm:$0xff]  ;;  %v22138_v41 = vld [vmem:[#allocation172_spill] sm:$0xff] }
 0x529   :  { %14225 = vmatprep.subr.bf16.mxu1 %v22055_v15 }
 0x52a   :  { %14195 = vmatpush3.bf16.msra.mxu0 %v22086_v12  ;;  %v22139_v12 = vld [vmem:[#allocation162_spill] sm:$0xff] }
 0x52b   :  { %14227 = vmatpush3.bf16.msra.mxu1 %v22057_v2  ;;  %14197 = vmatprep.subr.bf16.mxu0 %v22087_v58 }
 0x52c   :  { %14229 = vmatprep.subr.bf16.mxu1 %v22059_v56 }
 0x52e   :  { %14199 = vmatpush3.bf16.msra.mxu0 %v22088_v44  ;;  %v22140_v44 = vld [vmem:[#allocation173_spill] sm:$0xff] }
 0x52f   :  { %14231 = vmatpush3.bf16.msra.mxu1 %v22061_v60  ;;  %14201 = vmatprep.subr.bf16.mxu0 %v22089_v0 }
 0x530   :  { %14233 = vmatprep.subr.bf16.mxu1 %v22063_v50 }
 0x532   :  { %14203 = vmatpush3.bf16.msra.mxu0 %v22090_v32 }
 0x533   :  { %14235 = vmatpush3.bf16.msra.mxu1 %v22065_v57  ;;  %14205 = vmatprep.subr.bf16.mxu0 %v22091_v11 }
 0x534   :  { %14237 = vmatprep.subr.bf16.mxu1 %v22067_v62 }
 0x536   :  { %14207 = vmatpush3.bf16.msra.mxu0 %v22092_v17  ;;  %v22141_v17 = vld [vmem:[#allocation164_spill] sm:$0xff] }
 0x537   :  { %14239 = vmatpush3.bf16.msra.mxu1 %v22069_v9  ;;  %14209 = vmatprep.subr.bf16.mxu0 %v22093_v8 }
 0x538   :  { %14241 = vmatprep.subr.bf16.mxu1 %v22071_v10 }
 0x53a   :  { %14211 = vmatpush3.bf16.msra.mxu0 %v22094_v27  ;;  %v22143_v27 = vld [vmem:[#allocation168_spill] sm:$0xff] }
 0x53b   :  { %14243 = vmatpush3.bf16.msra.mxu1 %v22073_v46  ;;  %14213 = vmatprep.subr.bf16.mxu0 %v22095_v21 }
 0x53c   :  { %14245 = vmatprep.subr.bf16.mxu1 %v22075_v55 }
 0x53e   :  { %14215 = vmatpush3.bf16.msra.mxu0 %v22096_v28 }
 0x53f   :  { %14247 = vmatpush3.bf16.msra.mxu1 %v22077_v37  ;;  %14217 = vmatprep.subr.bf16.mxu0 %v22097_v61 }
 0x540   :  { %14249 = vmatprep.subr.bf16.mxu1 %v22079_v38 }
 0x542   :  { %14219 = vmatpush3.bf16.msra.mxu0 %v22098_v47  ;;  %v22144_v47 = vld [vmem:[#allocation177_spill] sm:$0xff] }
 0x543   :  { %14251 = vmatpush3.bf16.msra.mxu1 %v22081_v43  ;;  %14253 = vmatprep.subr.bf16.mxu0 %v22099_v34 }
 0x544   :  { %14285 = vmatprep.subr.bf16.mxu1 %v22051_v26  ;;  %v22108_v26 = vld [vmem:[#allocation130_spill] sm:$0xff] }
 0x545   :  { %8556 = vmatmul.mubr.f32.vlgmr.msra.gmra.mrb[36].mxu0 %v8182_v14  ;;  %v22129_v14 = vld [vmem:[#allocation148_spill] sm:$0xff] }
 0x546   :  { %8664 = vmatmul.mubr.f32.vlgmr.msra.gmra.mrb[36].mxu1 %v8183_v20  ;;  %14255 = vmatpush3.bf16.msra.mxu0 %v22100_v24  ;;  %v22134_v20 = vld [vmem:[#allocation167_spill] sm:$0xff] }
 0x547   :  { %8830 = vmatprep.mubr.f32.mxu0 %v19444_v54  ;;  %14287 = vmatpush3.bf16.msra.mxu1 %v22053_v42  ;;  %v22111_v42 = vld [vmem:[#allocation134_spill] sm:$0xff] }
 0x548   :  { %8934 = vmatprep.mubr.f32.mxu1 %v19444_v54  ;;  %14257 = vmatprep.subr.bf16.mxu0 %v22101_v5  ;;  %v22106_v54 = vld [vmem:[#allocation128_spill] sm:$0xff]  ;;  %v22145_v5 = vld [vmem:[#allocation169_spill] sm:$0xff] }
 0x549   :  { %14289 = vmatprep.subr.bf16.mxu1 %v22055_v15  ;;  %v22113_v15 = vld [vmem:[#allocation136_spill] sm:$0xff] }
 0x54a   :  { %14259 = vmatpush3.bf16.msra.mxu0 %v22102_v1 }
 0x54b   :  { %14291 = vmatpush3.bf16.msra.mxu1 %v22057_v2  ;;  %14261 = vmatprep.subr.bf16.mxu0 %v22103_v19  ;;  %v22115_v2 = vld [vmem:[#allocation139_spill] sm:$0xff]  ;;  %v22146_v19 = vld [vmem:[#allocation180_spill] sm:$0xff] }
 0x54c   :  { %14293 = vmatprep.subr.bf16.mxu1 %v22059_v56  ;;  %v22117_v56 = vld [vmem:[#allocation140_spill] sm:$0xff] }
 0x54e   :  { %14263 = vmatpush3.bf16.msra.mxu0 %v22104_v45 }
 0x54f   :  { %14295 = vmatpush3.bf16.msra.mxu1 %v22061_v60  ;;  %14265 = vmatprep.subr.bf16.mxu0 %v22105_v18  ;;  %v22119_v60 = vld [vmem:[#allocation141_spill] sm:$0xff]  ;;  %v22147_v18 = vld [vmem:[#allocation171_spill] sm:$0xff] }
 0x550   :  { %14297 = vmatprep.subr.bf16.mxu1 %v22063_v50  ;;  %v22121_v50 = vld [vmem:[#allocation142_spill] sm:$0xff] }
 0x552   :  { %14267 = vmatpush3.bf16.msra.mxu0 %v22106_v54  ;;  %v22148_v54 = vld [vmem:[#allocation174_spill] sm:$0xff] }
 0x553   :  { %14299 = vmatpush3.bf16.msra.mxu1 %v22065_v57  ;;  %14269 = vmatprep.subr.bf16.mxu0 %v22107_v23  ;;  %v22123_v57 = vld [vmem:[#allocation143_spill] sm:$0xff] }
 0x554   :  { %14301 = vmatprep.subr.bf16.mxu1 %v22067_v62  ;;  %v22125_v62 = vld [vmem:[#allocation144_spill] sm:$0xff]  ;;  %v22149_v23 = vld [vmem:[#allocation175_spill] sm:$0xff] }
 0x556   :  { %14271 = vmatpush3.bf16.msra.mxu0 %v22108_v26  ;;  %v22150_v26 = vld [vmem:[#allocation178_spill] sm:$0xff] }
 0x557   :  { %14303 = vmatpush3.bf16.msra.mxu1 %v22069_v9  ;;  %14273 = vmatprep.subr.bf16.mxu0 %v22109_v16  ;;  %v22128_v9 = vld [vmem:[#allocation163_spill] sm:$0xff] }
 0x558   :  { %14305 = vmatprep.subr.bf16.mxu1 %v22071_v10  ;;  %v22131_v10 = vld [vmem:[#allocation154_spill] sm:$0xff]  ;;  %v22151_v16 = vld [vmem:[#allocation179_spill] sm:$0xff] }
 0x55a   :  { %14275 = vmatpush3.bf16.msra.mxu0 %v22110_v13  ;;  %v22152_v13 = vld [vmem:[#allocation145_spill] sm:$0xff] }
 0x55b   :  { %14307 = vmatpush3.bf16.msra.mxu1 %v22073_v46  ;;  %14277 = vmatprep.subr.bf16.mxu0 %v22111_v42  ;;  %v22133_v46 = vld [vmem:[#allocation155_spill] sm:$0xff]  ;;  %v22153_v42 = vld [vmem:[#allocation150_spill] sm:$0xff] }
 0x55c   :  { %14309 = vmatprep.subr.bf16.mxu1 %v22075_v55 }
 0x55e   :  { %14279 = vmatpush3.bf16.msra.mxu0 %v22112_v33  ;;  %v22154_v33 = vld [vmem:[#allocation151_spill] sm:$0xff] }
 0x55f   :  { %14311 = vmatpush3.bf16.msra.mxu1 %v22077_v37  ;;  %14281 = vmatprep.subr.bf16.mxu0 %v22113_v15  ;;  %v22136_v37 = vld [vmem:[#allocation170_spill] sm:$0xff]  ;;  %v22155_v15 = vld [vmem:[#allocation152_spill] sm:$0xff] }
 0x560   :  { %14313 = vmatprep.subr.bf16.mxu1 %v22079_v38 }
 0x562   :  { %14283 = vmatpush3.bf16.msra.mxu0 %v22114_v53  ;;  %v22156_v53 = vld [vmem:[#allocation181_spill] sm:$0xff] }
 0x563   :  { %14315 = vmatpush3.bf16.msra.mxu1 %v22081_v43  ;;  %14317 = vmatprep.subr.bf16.mxu0 %v22115_v2 }
 0x564   :  { %14349 = vmatprep.subr.bf16.mxu1 %v22116_v29  ;;  %v22157_v29 = vld [vmem:[#allocation182_spill] sm:$0xff] }
 0x565   :  { %8832 = vmatmul.mubr.f32.vlgmr.msra.gmra.mrb[38].mxu0 %v19481_v51 }
 0x566   :  { %8936 = vmatmul.mubr.f32.vlgmr.msra.gmra.mrb[38].mxu1 %v19481_v51  ;;  %14319 = vmatpush3.bf16.msra.mxu0 %v22117_v56  ;;  %v22127_v51 = vld [vmem:[#allocation147_spill] sm:$0xff] }
 0x567   :  { %14351 = vmatpush3.bf16.msra.mxu1 %v22118_v25  ;;  %14321 = vmatprep.subr.bf16.mxu0 %v22119_v60 }
 0x568   :  { %14353 = vmatprep.subr.bf16.mxu1 %v22120_v40 }
 0x56a   :  { %14323 = vmatpush3.bf16.msra.mxu0 %v22121_v50 }
 0x56b   :  { %14355 = vmatpush3.bf16.msra.mxu1 %v22122_v7  ;;  %14325 = vmatprep.subr.bf16.mxu0 %v22123_v57 }
 0x56c   :  { %14357 = vmatprep.subr.bf16.mxu1 %v22124_v52 }
 0x56e   :  { %14327 = vmatpush3.bf16.msra.mxu0 %v22125_v62 }
 0x56f   :  { %14359 = vmatpush3.bf16.msra.mxu1 %v22126_v59  ;;  %14329 = vmatprep.subr.bf16.mxu0 %v22127_v51 }
 0x570   :  { %14361 = vmatprep.subr.bf16.mxu1 %v22128_v9 }
 0x572   :  { %14331 = vmatpush3.bf16.msra.mxu0 %v22129_v14 }
 0x573   :  { %14363 = vmatpush3.bf16.msra.mxu1 %v22130_v39  ;;  %14333 = vmatprep.subr.bf16.mxu0 %v22131_v10  ;;  %v22158_v39 = vld [vmem:[#allocation183_spill] sm:$0xff] }
 0x574   :  { %14365 = vmatprep.subr.bf16.mxu1 %v22132_v30  ;;  %v22159_v30 = vld [vmem:[#allocation184_spill] sm:$0xff] }
 0x576   :  { %14335 = vmatpush3.bf16.msra.mxu0 %v22133_v46 }
 0x577   :  { %14367 = vmatpush3.bf16.msra.mxu1 %v22134_v20  ;;  %14337 = vmatprep.subr.bf16.mxu0 %v22135_v63 }
 0x578   :  { %v6357_v55 = vpop.f32.mrb[26].mxu0  ;;  %14369 = vmatprep.subr.bf16.mxu1 %v22136_v37  ;;  %v22161_v37 = vld [vmem:[#allocation186_spill] sm:$0xff] }
 0x579   :  { %v19592_v35 = vpop.f32.mrb[26].mxu1  ;;  %v19595_v36 = vand.u32 4294901760, %v6357_v55  ;;  %v10669_v38 = vmul.f32 %v6357_v55, %v6357_v55  ;;  %v6359_v48 = vpop.f32.mrb[27].mxu0 }
 0x57a   :  { %v19597_v31 = vpop.f32.mrb[27].mxu1  ;;  %v19599_v43 = vand.u32 4294901760, %v6359_v48  ;;  %v10670_v4 = vmul.f32 %v6359_v48, %v6359_v48  ;;  %14339 = vmatpush3.bf16.msra.mxu0 %v22137_v6  ;;  %v10671_v32 = vmul.f32 %v19592_v35, %v19592_v35 }
 0x57b   :  { %v19603_v3 = vsub.f32 %v6357_v55, %v19595_v36  ;;  %v10676_v22 = vadd.f32 %v19386_v49, %v10669_v38  ;;  %14371 = vmatpush3.bf16.msra.mxu1 %v22138_v41  ;;  %14341 = vmatprep.subr.bf16.mxu0 %v22139_v12  ;;  %v22142_v49 = vld [vmem:[#allocation176_spill] sm:$0xff]  ;;  %v10672_v21 = vmul.f32 %v19597_v31, %v19597_v31  ;;  %v22160_v55 = vld [vmem:[#allocation185_spill] sm:$0xff]  ;;  %v22162_v38 = vld [vmem:[#allocation187_spill] sm:$0xff] }
 0x57c   :  { %v9038_v58 = vsub.f32 %v6359_v48, %v19599_v43  ;;  %9278 = vmatprep.mubr.f32.mxu1 %v19599_v43  ;;  %14373 = vmatprep.subr.bf16.mxu1 %v22140_v44  ;;  %v22163_v48 = vld [vmem:[#allocation188_spill] sm:$0xff]  ;;  %v22166_v41 = vld [vmem:[#allocation191_spill] sm:$0xff] }
 0x57d   :  { %v9045_v0 = vand.u32 4294901760, %v19603_v3  ;;  %v10677_v11 = vadd.f32 %v10676_v22, %v10670_v4  ;;  %v22164_v4 = vld [vmem:[#allocation189_spill] sm:$0xff]  ;;  %v22165_v22 = vld [vmem:[#allocation190_spill] sm:$0xff] }
 0x57e   :  { %14343 = vmatpush3.bf16.msra.mxu0 %v22141_v17  ;;  %v9039_v8 = vand.u32 4294901760, %v9038_v58 }
 0x57f   :  { %14375 = vmatpush3.bf16.msra.mxu1 %v22142_v49  ;;  %14345 = vmatprep.subr.bf16.mxu0 %v22143_v27  ;;  %v10678_v28 = vadd.f32 %v10677_v11, %v10671_v32  ;;  %v9046_v61 = vsub.f32 %v19603_v3, %v9045_v0  ;;  %v22174_v32 = vld [vmem:[#allocation198_spill] sm:$0xff] }
 0x580   :  { %14377 = vmatprep.subr.bf16.mxu1 %v22144_v47  ;;  %v9040_v34 = vsub.f32 %v9038_v58, %v9039_v8 }
 0x581   :  { %v10679_v24 = vadd.f32 %v10678_v28, %v10672_v21  ;;  %v9047_v45 = vand.u32 4294901760, %v9046_v61  ;;  %v22176_v21 = vld [vmem:[#allocation201_spill] sm:$0xff]  ;;  %v22178_v28 = vld [vmem:[#allocation204_spill] sm:$0xff]  ;;  %v22180_v61 = vld [vmem:[#allocation211_spill] sm:$0xff] }
 0x582   :  { %14347 = vmatpush3.bf16.msra.mxu0 %v22145_v5  ;;  %v9041_v1 = vand.u32 4294901760, %v9040_v34  ;;  %v22183_v34 = vld [vmem:[#allocation207_spill] sm:$0xff] }
 0x583   :  { %14379 = vmatpush3.bf16.msra.mxu1 %v22146_v19  ;;  %10680 = vadd.xlane.f32.xlu0 %v10679_v24  ;;  %v22184_v24 = vld [vmem:[#allocation219_spill] sm:$0xff]  ;;  %v22187_v19 = vld [vmem:[#allocation209_spill] sm:$0xff] }
 0x584   :  { %9042 = vmatprep.mubr.f32.mxu0 %v9041_v1  ;;  %14381 = vmatprep.subr.bf16.mxu0 %v22147_v18  ;;  %v22186_v1 = vld [vmem:[#allocation224_spill] sm:$0xff] }
 0x585   :  { %9048 = vmatmul.mubr.f32.vlgmr.msra.gmra.mrb[40].mxu0 %v9047_v45  ;;  %14413 = vmatprep.subr.bf16.mxu1 %v22115_v2  ;;  %v22188_v45 = vld [vmem:[#allocation226_spill] sm:$0xff]  ;;  %v22190_v18 = vld [vmem:[#allocation228_spill] sm:$0xff] }
 0x586   :  { %9280 = vmatmul.mubr.f32.vlgmr.msra.gmra.mrb[40].mxu1 %v19595_v36  ;;  %14383 = vmatpush3.bf16.msra.mxu0 %v22148_v54  ;;  %v22191_v54 = vld [vmem:[#allocation216_spill] sm:$0xff] }
 0x587   :  { %9415 = vmatprep.mubr.f32.mxu0 %v9038_v58  ;;  %14415 = vmatpush3.bf16.msra.mxu1 %v22117_v56  ;;  %v22169_v58 = vld [vmem:[#allocation193_spill] sm:$0xff] }
 0x588   :  { %9522 = vmatprep.mubr.f32.mxu1 %v9039_v8  ;;  %14385 = vmatprep.subr.bf16.mxu0 %v22149_v23  ;;  %v22175_v8 = vld [vmem:[#allocation200_spill] sm:$0xff]  ;;  %v22192_v23 = vld [vmem:[#allocation230_spill] sm:$0xff] }
 0x589   :  { %14417 = vmatprep.subr.bf16.mxu1 %v22119_v60 }
 0x58a   :  { %14387 = vmatpush3.bf16.msra.mxu0 %v22150_v26  ;;  %v22193_v26 = vld [vmem:[#allocation217_spill] sm:$0xff] }
 0x58b   :  { %14419 = vmatpush3.bf16.msra.mxu1 %v22121_v50  ;;  %14389 = vmatprep.subr.bf16.mxu0 %v22151_v16  ;;  %v19725_v16 = vand.u32 4294901760, %v19592_v35 }
 0x58c   :  { %14421 = vmatprep.subr.bf16.mxu1 %v22123_v57 }
 0x58e   :  { %14391 = vmatpush3.bf16.msra.mxu0 %v22152_v13  ;;  %v22194_v13 = vld [vmem:[#allocation231_spill] sm:$0xff] }
 0x58f   :  { %14423 = vmatpush3.bf16.msra.mxu1 %v22125_v62  ;;  %14393 = vmatprep.subr.bf16.mxu0 %v22153_v42  ;;  %v22195_v42 = vld [vmem:[#allocation222_spill] sm:$0xff] }
 0x590   :  { %14425 = vmatprep.subr.bf16.mxu1 %v22127_v51 }
 0x592   :  { %14395 = vmatpush3.bf16.msra.mxu0 %v22154_v33  ;;  %v22196_v33 = vld [vmem:[#allocation234_spill] sm:$0xff] }
 0x593   :  { %14427 = vmatpush3.bf16.msra.mxu1 %v22129_v14  ;;  %14397 = vmatprep.subr.bf16.mxu0 %v22155_v15  ;;  %v22197_v15 = vld [vmem:[#allocation223_spill] sm:$0xff] }
 0x594   :  { %14429 = vmatprep.subr.bf16.mxu1 %v22131_v10 }
 0x596   :  { %14399 = vmatpush3.bf16.msra.mxu0 %v22156_v53  ;;  %v19733_v53 = vsub.f32 %v19592_v35, %v19725_v16  ;;  %v22203_v35 = vld [vmem:[#allocation229_spill] sm:$0xff] }
 0x597   :  { %14431 = vmatpush3.bf16.msra.mxu1 %v22133_v46  ;;  %14401 = vmatprep.subr.bf16.mxu0 %v22157_v29  ;;  %v22198_v29 = vld [vmem:[#allocation235_spill] sm:$0xff] }
 0x598   :  { %v11588_v25 = vpop.f32.mrb[28].mxu0  ;;  %14433 = vmatprep.subr.bf16.mxu1 %v22135_v63 }
 0x599   :  { %v11623_v40 = vpop.f32.mrb[28].mxu1  ;;  %v11589_v7 = vpop.f32.mrb[29].mxu0 }
 0x59a   :  { %v11624_v52 = vpop.f32.mrb[29].mxu1  ;;  %v11590_v59 = vadd.f32 %v11589_v7, %v11588_v25  ;;  %14403 = vmatpush3.bf16.msra.mxu0 %v22158_v39  ;;  %v22199_v25 = vld [vmem:[#allocation225_spill] sm:$0xff] }
 0x59b   :  { %v11625_v9 = vadd.f32 %v11624_v52, %v11623_v40  ;;  %14435 = vmatpush3.bf16.msra.mxu1 %v22137_v6  ;;  %14405 = vmatprep.subr.bf16.mxu0 %v22159_v30  ;;  %v22200_v7 = vld [vmem:[#allocation237_spill] sm:$0xff]  ;;  %v22201_v30 = vld [vmem:[#allocation227_spill] sm:$0xff] }
 0x59c   :  { %14437 = vmatprep.subr.bf16.mxu1 %v22139_v12 }
 0x59d   :  { %v7558_v20 = vadd.f32 %v11625_v9, %v11590_v59 }
 0x59e   :  { %14407 = vmatpush3.bf16.msra.mxu0 %v22160_v55 }
 0x59f   :  { %14439 = vmatpush3.bf16.msra.mxu1 %v22141_v17  ;;  %14409 = vmatprep.subr.bf16.mxu0 %v22161_v37  ;;  %v22202_v37 = vld [vmem:[#allocation238_spill] sm:$0xff] }
 0x5a0   :  { %14441 = vmatprep.subr.bf16.mxu1 %v22143_v27 }
 0x5a2   :  { %14411 = vmatpush3.bf16.msra.mxu0 %v22162_v38 }
 0x5a3   :  { %14443 = vmatpush3.bf16.msra.mxu1 %v22145_v5  ;;  %14445 = vmatprep.subr.bf16.mxu0 %v22163_v48  ;;  %v22204_v48 = vld [vmem:[#allocation241_spill] sm:$0xff] }
 0x5a4   :  { %14477 = vmatprep.subr.bf16.mxu1 %v22115_v2  ;;  %v22167_v2 = vld [vmem:[#allocation192_spill] sm:$0xff] }
 0x5a5   :  { %9418 = vmatmul.mubr.f32.vlgmr.msra.gmra.mrb[42].mxu0 %v19603_v3  ;;  %v22168_v3 = vld [vmem:[#allocation137_spill] sm:$0xff] }
 0x5a6   :  { %9526 = vmatmul.mubr.f32.vlgmr.msra.gmra.mrb[42].mxu1 %v9045_v0  ;;  %14447 = vmatpush3.bf16.msra.mxu0 %v22164_v4 }
 0x5a7   :  { %9692 = vmatprep.mubr.f32.mxu0 %v19599_v43  ;;  %14479 = vmatpush3.bf16.msra.mxu1 %v22117_v56  ;;  %v22170_v56 = vld [vmem:[#allocation194_spill] sm:$0xff] }
 0x5a8   :  { %9796 = vmatprep.mubr.f32.mxu1 %v19599_v43  ;;  %14449 = vmatprep.subr.bf16.mxu0 %v22165_v22  ;;  %v22205_v22 = vld [vmem:[#allocation232_spill] sm:$0xff] }
 0x5a9   :  { %14481 = vmatprep.subr.bf16.mxu1 %v22119_v60  ;;  %v22171_v60 = vld [vmem:[#allocation195_spill] sm:$0xff] }
 0x5aa   :  { %14451 = vmatpush3.bf16.msra.mxu0 %v22166_v41  ;;  %v22206_v41 = vld [vmem:[#allocation243_spill] sm:$0xff] }
 0x5ab   :  { %14483 = vmatpush3.bf16.msra.mxu1 %v22121_v50  ;;  %14453 = vmatprep.subr.bf16.mxu0 %v22167_v2  ;;  %v19682_v50 = vand.u32 4294901760, %v19597_v31  ;;  %v22207_v2 = vld [vmem:[#allocation233_spill] sm:$0xff] }
 0x5ac   :  { %14485 = vmatprep.subr.bf16.mxu1 %v22123_v57  ;;  %v22172_v57 = vld [vmem:[#allocation196_spill] sm:$0xff] }
 0x5ae   :  { %14455 = vmatpush3.bf16.msra.mxu0 %v22168_v3 }
 0x5af   :  { %14487 = vmatpush3.bf16.msra.mxu1 %v22125_v62  ;;  %14457 = vmatprep.subr.bf16.mxu0 %v22169_v58  ;;  %v22173_v62 = vld [vmem:[#allocation197_spill] sm:$0xff]  ;;  %v22208_v58 = vld [vmem:[#allocation244_spill] sm:$0xff] }
 0x5b0   :  { %14489 = vmatprep.subr.bf16.mxu1 %v22127_v51  ;;  %v19690_v51 = vsub.f32 %v19597_v31, %v19682_v50  ;;  %v22177_v31 = vld [vmem:[#allocation202_spill] sm:$0xff] }
 0x5b2   :  { %14459 = vmatpush3.bf16.msra.mxu0 %v22170_v56  ;;  %v22209_v56 = vld [vmem:[#allocation236_spill] sm:$0xff] }
 0x5b3   :  { %14491 = vmatpush3.bf16.msra.mxu1 %v22129_v14  ;;  %14461 = vmatprep.subr.bf16.mxu0 %v22171_v60  ;;  %v22210_v60 = vld [vmem:[#allocation210_spill] sm:$0xff] }
 0x5b4   :  { %14493 = vmatprep.subr.bf16.mxu1 %v22131_v10 }
 0x5b6   :  { %14463 = vmatpush3.bf16.msra.mxu0 %v22172_v57 }
 0x5b7   :  { %14495 = vmatpush3.bf16.msra.mxu1 %v22133_v46  ;;  %14465 = vmatprep.subr.bf16.mxu0 %v22173_v62  ;;  %v22211_v62 = vld [vmem:[#allocation239_spill] sm:$0xff] }
 0x5b8   :  { %v11658_v43 = vpop.f32.mrb[30].mxu0  ;;  %14497 = vmatprep.subr.bf16.mxu1 %v22135_v63  ;;  %v9901_v63 = vand.u32 4294901760, %v19690_v51 }
 0x5b9   :  { %v11693_v14 = vpop.f32.mrb[30].mxu1  ;;  %v11659_v44 = vpop.f32.mrb[31].mxu0 }
 0x5ba   :  { %v11660_v0 = vadd.f32 %v11659_v44, %v11658_v43  ;;  %v11694_v10 = vpop.f32.mrb[31].mxu1  ;;  %14467 = vmatpush3.bf16.msra.mxu0 %v22174_v32  ;;  %v22212_v43 = vld [vmem:[#allocation240_spill] sm:$0xff]  ;;  %v22214_v44 = vld [vmem:[#allocation242_spill] sm:$0xff]  ;;  %v22217_v32 = vld [vmem:[#allocation215_spill] sm:$0xff] }
 0x5bb   :  { %v11695_v11 = vadd.f32 %v11694_v10, %v11693_v14  ;;  %14499 = vmatpush3.bf16.msra.mxu1 %v22137_v6  ;;  %14469 = vmatprep.subr.bf16.mxu0 %v22175_v8  ;;  %v9902_v6 = vsub.f32 %v19690_v51, %v9901_v63  ;;  %v22213_v14 = vld [vmem:[#allocation161_spill] sm:$0xff]  ;;  %v22216_v10 = vld [vmem:[#allocation199_spill] sm:$0xff] }
 0x5bc   :  { %v7696_v46 = vadd.f32 %v11660_v0, %v7558_v20  ;;  %14501 = vmatprep.subr.bf16.mxu1 %v22139_v12  ;;  %v22179_v12 = vld [vmem:[#allocation205_spill] sm:$0xff]  ;;  %v9907_v20 = vand.u32 4294901760, %v19733_v53  ;;  %v22215_v0 = vld [vmem:[#allocation214_spill] sm:$0xff] }
 0x5bd   :  { %v9903_v47 = vand.u32 4294901760, %v9902_v6  ;;  %v22220_v8 = vld [vmem:[#allocation221_spill] sm:$0xff] }
 0x5be   :  { %v7804_v49 = vadd.f32 %v11695_v11, %v7696_v46  ;;  %14471 = vmatpush3.bf16.msra.mxu0 %v22176_v21  ;;  %v9908_v3 = vsub.f32 %v19733_v53, %v9907_v20  ;;  %v22219_v11 = vld [vmem:[#allocation220_spill] sm:$0xff]  ;;  %v22221_v46 = vld [vmem:[#allocation245_spill] sm:$0xff] }
 0x5bf   :  { %14503 = vmatpush3.bf16.msra.mxu1 %v22141_v17  ;;  %14473 = vmatprep.subr.bf16.mxu0 %v22177_v31  ;;  %v22181_v17 = vld [vmem:[#allocation206_spill] sm:$0xff] }
 0x5c0   :  { %14505 = vmatprep.subr.bf16.mxu1 %v22143_v27  ;;  %v22182_v27 = vld [vmem:[#allocation213_spill] sm:$0xff]  ;;  %v9909_v57 = vand.u32 4294901760, %v9908_v3 }
 0x5c2   :  { %14475 = vmatpush3.bf16.msra.mxu0 %v22178_v28  ;;  %v22222_v28 = vld [vmem:[#allocation246_spill] sm:$0xff] }
 0x5c3   :  { %14507 = vmatpush3.bf16.msra.mxu1 %v22145_v5  ;;  %14509 = vmatprep.subr.bf16.mxu0 %v22179_v12  ;;  %v22185_v5 = vld [vmem:[#allocation208_spill] sm:$0xff] }
 0x5c4   :  { %14541 = vmatprep.subr.bf16.mxu1 %v22180_v61 }
 0x5c5   :  { %9694 = vmatmul.mubr.f32.vlgmr.msra.gmra.mrb[44].mxu0 %v19595_v36 }
 0x5c6   :  { %9798 = vmatmul.mubr.f32.vlgmr.msra.gmra.mrb[44].mxu1 %v19595_v36  ;;  %14511 = vmatpush3.bf16.msra.mxu0 %v22181_v17  ;;  %v22189_v36 = vld [vmem:[#allocation212_spill] sm:$0xff] }
 0x5c7   :  { %9904 = vmatprep.mubr.f32.mxu0 %v9903_v47  ;;  %14543 = vmatpush3.bf16.msra.mxu1 %v22182_v27  ;;  %v22223_v47 = vld [vmem:[#allocation247_spill] sm:$0xff] }
 0x5c8   :  { %10140 = vmatprep.mubr.f32.mxu1 %v19682_v50  ;;  %14513 = vmatprep.subr.bf16.mxu0 %v22183_v34 }
 0x5c9   :  { %14545 = vmatprep.subr.bf16.mxu1 %v22184_v24 }
 0x5ca   :  { %14515 = vmatpush3.bf16.msra.mxu0 %v22185_v5 }
 0x5cb   :  { %14547 = vmatpush3.bf16.msra.mxu1 %v22186_v1  ;;  %14517 = vmatprep.subr.bf16.mxu0 %v22187_v19  ;;  %v22224_v1 = vld [vmem:[#allocation248_spill] sm:$0xff] }
 0x5cc   :  { %14549 = vmatprep.subr.bf16.mxu1 %v22188_v45  ;;  %v22225_v45 = vld [vmem:[#allocation249_spill] sm:$0xff] }
 0x5ce   :  { %14519 = vmatpush3.bf16.msra.mxu0 %v22189_v36 }
 0x5cf   :  { %14551 = vmatpush3.bf16.msra.mxu1 %v22190_v18  ;;  %14521 = vmatprep.subr.bf16.mxu0 %v22191_v54  ;;  %v22226_v18 = vld [vmem:[#allocation250_spill] sm:$0xff] }
 0x5d0   :  { %14553 = vmatprep.subr.bf16.mxu1 %v22192_v23  ;;  %v22227_v23 = vld [vmem:[#allocation251_spill] sm:$0xff] }
 0x5d2   :  { %14523 = vmatpush3.bf16.msra.mxu0 %v22193_v26 }
 0x5d3   :  { %14555 = vmatpush3.bf16.msra.mxu1 %v22194_v13  ;;  %14525 = vmatprep.subr.bf16.mxu0 %v22195_v42  ;;  %v22228_v13 = vld [vmem:[#allocation252_spill] sm:$0xff] }
 0x5d4   :  { %14557 = vmatprep.subr.bf16.mxu1 %v22196_v33  ;;  %v22229_v33 = vld [vmem:[#allocation253_spill] sm:$0xff] }
 0x5d6   :  { %14527 = vmatpush3.bf16.msra.mxu0 %v22197_v15 }
 0x5d7   :  { %14559 = vmatpush3.bf16.msra.mxu1 %v22198_v29  ;;  %14529 = vmatprep.subr.bf16.mxu0 %v22199_v25  ;;  %v22230_v29 = vld [vmem:[#allocation254_spill] sm:$0xff] }
 0x5d8   :  { %v11728_v40 = vpop.f32.mrb[32].mxu0  ;;  %14561 = vmatprep.subr.bf16.mxu1 %v22200_v7 }
 0x5d9   :  { %v11763_v52 = vpop.f32.mrb[32].mxu1  ;;  %v11729_v59 = vpop.f32.mrb[33].mxu0 }
 0x5da   :  { %v11730_v9 = vadd.f32 %v11729_v59, %v11728_v40  ;;  %v11764_v39 = vpop.f32.mrb[33].mxu1  ;;  %14531 = vmatpush3.bf16.msra.mxu0 %v22201_v30  ;;  %v22233_v40 = vld [vmem:[#allocation256_spill] sm:$0xff]  ;;  %v22238_v59 = vld [vmem:[#allocation261_spill] sm:$0xff] }
 0x5db   :  { %v11765_v55 = vadd.f32 %v11764_v39, %v11763_v52  ;;  %14563 = vmatpush3.bf16.msra.mxu1 %v22202_v37  ;;  %14533 = vmatprep.subr.bf16.mxu0 %v22203_v35  ;;  %v22240_v39 = vld [vmem:[#allocation263_spill] sm:$0xff] }
 0x5dc   :  { %v7972_v38 = vadd.f32 %v11730_v9, %v7804_v49  ;;  %14565 = vmatprep.subr.bf16.mxu1 %v22204_v48  ;;  %v22239_v9 = vld [vmem:[#allocation262_spill] sm:$0xff] }
 0x5de   :  { %v8076_v4 = vadd.f32 %v11765_v55, %v7972_v38  ;;  %14535 = vmatpush3.bf16.msra.mxu0 %v22205_v22 }
 0x5df   :  { %14567 = vmatpush3.bf16.msra.mxu1 %v22206_v41  ;;  %14537 = vmatprep.subr.bf16.mxu0 %v22207_v2 }
 0x5e0   :  { %14569 = vmatprep.subr.bf16.mxu1 %v22208_v58 }
 0x5e2   :  { %14539 = vmatpush3.bf16.msra.mxu0 %v22209_v56 }
 0x5e3   :  { %14571 = vmatpush3.bf16.msra.mxu1 %v22210_v60  ;;  %14573 = vmatprep.subr.bf16.mxu0 %v22211_v62 }
 0x5e4   :  { %14605 = vmatprep.subr.bf16.mxu1 %v22179_v12 }
 0x5e5   :  { %9910 = vmatmul.mubr.f32.vlgmr.msra.gmra.mrb[46].mxu0 %v9909_v57 }
 0x5e6   :  { %10142 = vmatmul.mubr.f32.vlgmr.msra.gmra.mrb[46].mxu1 %v19725_v16  ;;  %14575 = vmatpush3.bf16.msra.mxu0 %v22212_v43 }
 0x5e7   :  { %10277 = vmatprep.mubr.f32.mxu0 %v19690_v51  ;;  %14607 = vmatpush3.bf16.msra.mxu1 %v22181_v17  ;;  %v22218_v51 = vld [vmem:[#allocation218_spill] sm:$0xff] }
 0x5e8   :  { %10384 = vmatprep.mubr.f32.mxu1 %v9901_v63  ;;  %14577 = vmatprep.subr.bf16.mxu0 %v22213_v14 }
 0x5e9   :  { %14609 = vmatprep.subr.bf16.mxu1 %v22183_v34 }
 0x5ea   :  { %14579 = vmatpush3.bf16.msra.mxu0 %v22214_v44 }
 0x5eb   :  { %14611 = vmatpush3.bf16.msra.mxu1 %v22185_v5  ;;  %14581 = vmatprep.subr.bf16.mxu0 %v22215_v0 }
 0x5ec   :  { %14613 = vmatprep.subr.bf16.mxu1 %v22187_v19 }
 0x5ee   :  { %14583 = vmatpush3.bf16.msra.mxu0 %v22216_v10 }
 0x5ef   :  { %14615 = vmatpush3.bf16.msra.mxu1 %v22189_v36  ;;  %14585 = vmatprep.subr.bf16.mxu0 %v22217_v32 }
 0x5f0   :  { %14617 = vmatprep.subr.bf16.mxu1 %v22191_v54 }
 0x5f2   :  { %14587 = vmatpush3.bf16.msra.mxu0 %v22218_v51 }
 0x5f3   :  { %14619 = vmatpush3.bf16.msra.mxu1 %v22193_v26  ;;  %14589 = vmatprep.subr.bf16.mxu0 %v22219_v11 }
 0x5f4   :  { %14621 = vmatprep.subr.bf16.mxu1 %v22195_v42 }
 0x5f6   :  { %14591 = vmatpush3.bf16.msra.mxu0 %v22220_v8 }
 0x5f7   :  { %14623 = vmatpush3.bf16.msra.mxu1 %v22197_v15  ;;  %14593 = vmatprep.subr.bf16.mxu0 %v22221_v46 }
 0x5f8   :  { %v11798_v63 = vpop.f32.mrb[34].mxu0  ;;  %14625 = vmatprep.subr.bf16.mxu1 %v22199_v25 }
 0x5f9   :  { %v11833_v49 = vpop.f32.mrb[34].mxu1  ;;  %v11799_v21 = vpop.f32.mrb[35].mxu0 }
 0x5fa   :  { %v11800_v31 = vadd.f32 %v11799_v21, %v11798_v63  ;;  %v11834_v6 = vpop.f32.mrb[35].mxu1  ;;  %14595 = vmatpush3.bf16.msra.mxu0 %v22222_v28 }
 0x5fb   :  { %v11835_v61 = vadd.f32 %v11834_v6, %v11833_v49  ;;  %14627 = vmatpush3.bf16.msra.mxu1 %v22201_v30  ;;  %14597 = vmatprep.subr.bf16.mxu0 %v22223_v47 }
 0x5fc   :  { %v8188_v27 = vadd.f32 %v11800_v31, %v8076_v4  ;;  %14629 = vmatprep.subr.bf16.mxu1 %v22203_v35 }
 0x5fe   :  { %v8420_v24 = vadd.f32 %v11835_v61, %v8188_v27  ;;  %14599 = vmatpush3.bf16.msra.mxu0 %v22224_v1 }
 0x5ff   :  { %14631 = vmatpush3.bf16.msra.mxu1 %v22205_v22  ;;  %14601 = vmatprep.subr.bf16.mxu0 %v22225_v45 }
 0x600   :  { %14633 = vmatprep.subr.bf16.mxu1 %v22207_v2 }
 0x602   :  { %14603 = vmatpush3.bf16.msra.mxu0 %v22226_v18 }
 0x603   :  { %14635 = vmatpush3.bf16.msra.mxu1 %v22209_v56  ;;  %14637 = vmatprep.subr.bf16.mxu0 %v22227_v23 }
 0x604   :  { %14669 = vmatprep.subr.bf16.mxu1 %v22179_v12  ;;  %v22231_v12 = vld [vmem:[#allocation255_spill] sm:$0xff] }
 0x605   :  { %10280 = vmatmul.mubr.f32.vlgmr.msra.gmra.mrb[48].mxu0 %v19733_v53  ;;  %v22232_v53 = vld [vmem:[#allocation203_spill] sm:$0xff] }
 0x606   :  { %10388 = vmatmul.mubr.f32.vlgmr.msra.gmra.mrb[48].mxu1 %v9907_v20  ;;  %14639 = vmatpush3.bf16.msra.mxu0 %v22228_v13  ;;  %v22242_v20 = vld [vmem:[#allocation265_spill] sm:$0xff] }
 0x607   :  { %10554 = vmatprep.mubr.f32.mxu0 %v19682_v50  ;;  %14671 = vmatpush3.bf16.msra.mxu1 %v22181_v17  ;;  %v22235_v17 = vld [vmem:[#allocation258_spill] sm:$0xff] }
 0x608   :  { %10658 = vmatprep.mubr.f32.mxu1 %v19682_v50  ;;  %14641 = vmatprep.subr.bf16.mxu0 %v22229_v33  ;;  %v22234_v50 = vld [vmem:[#allocation257_spill] sm:$0xff] }
 0x609   :  { %14673 = vmatprep.subr.bf16.mxu1 %v22183_v34  ;;  %v22236_v34 = vld [vmem:[#allocation259_spill] sm:$0xff] }
 0x60a   :  { %14643 = vmatpush3.bf16.msra.mxu0 %v22230_v29 }
 0x60b   :  { %14675 = vmatpush3.bf16.msra.mxu1 %v22185_v5  ;;  %14645 = vmatprep.subr.bf16.mxu0 %v22231_v12  ;;  %v22237_v5 = vld [vmem:[#allocation260_spill] sm:$0xff] }
 0x60c   :  { %14677 = vmatprep.subr.bf16.mxu1 %v22187_v19 }
 0x60e   :  { %14647 = vmatpush3.bf16.msra.mxu0 %v22232_v53 }
 0x60f   :  { %14679 = vmatpush3.bf16.msra.mxu1 %v22189_v36  ;;  %14649 = vmatprep.subr.bf16.mxu0 %v22233_v40 }
 0x610   :  { %14681 = vmatprep.subr.bf16.mxu1 %v22191_v54 }
 0x612   :  { %14651 = vmatpush3.bf16.msra.mxu0 %v22234_v50 }
 0x613   :  { %14683 = vmatpush3.bf16.msra.mxu1 %v22193_v26  ;;  %14653 = vmatprep.subr.bf16.mxu0 %v22235_v17  ;;  %v10681_v17 = vpop.xlane.xlu0 %10680 }
 0x614   :  { %14685 = vmatprep.subr.bf16.mxu1 %v22195_v42 }
 0x616   :  { %14655 = vmatpush3.bf16.msra.mxu0 %v22236_v34  ;;  %v10682_v34 = vmax.f32 %v10681_v17, 1e-24 }
 0x617   :  { %14687 = vmatpush3.bf16.msra.mxu1 %v22197_v15  ;;  %14657 = vmatprep.subr.bf16.mxu0 %v22237_v5 }
 0x618   :  { %v11868_v19 = vpop.f32.mrb[36].mxu0  ;;  %14689 = vmatprep.subr.bf16.mxu1 %v22199_v25  ;;  %v22241_v25 = vld [vmem:[#allocation264_spill] sm:$0xff]  ;;  %14753 = vrsqrt.f32 %v10682_v34 }
 0x619   :  { %v11903_v36 = vpop.f32.mrb[36].mxu1  ;;  %v11869_v7 = vpop.f32.mrb[37].mxu0 }
 0x61a   :  { %v11870_v54 = vadd.f32 %v11869_v7, %v11868_v19  ;;  %v11904_v52 = vpop.f32.mrb[37].mxu1  ;;  %14659 = vmatpush3.bf16.msra.mxu0 %v22238_v59 }
 0x61b   :  { %v11905_v26 = vadd.f32 %v11904_v52, %v11903_v36  ;;  %14691 = vmatpush3.bf16.msra.mxu1 %v22201_v30  ;;  %14661 = vmatprep.subr.bf16.mxu0 %v22239_v9 }
 0x61c   :  { %v8558_v42 = vadd.f32 %v11870_v54, %v8420_v24  ;;  %14693 = vmatprep.subr.bf16.mxu1 %v22203_v35 }
 0x61e   :  { %v8666_v15 = vadd.f32 %v11905_v26, %v8558_v42  ;;  %14663 = vmatpush3.bf16.msra.mxu0 %v22240_v39  ;;  %v14767_v39 = vld [vmem:[%s19833_s1] sm:$0xff] }
 0x61f   :  { %14695 = vmatpush3.bf16.msra.mxu1 %v22205_v22  ;;  %14665 = vmatprep.subr.bf16.mxu0 %v22241_v25 }
 0x620   :  { %14697 = vmatprep.subr.bf16.mxu1 %v22207_v2 }
 0x622   :  { %14667 = vmatpush3.bf16.msra.mxu0 %v22242_v20  ;;  %v14754_v52 = vpop.eup %14753 }
 0x623   :  { %14699 = vmatpush3.bf16.msra.mxu1 %v22209_v56  ;;  %v10684_v9 = vmul.f32 3.5, %v14754_v52 }
 0x625   :  { %10556 = vmatmul.mubr.f32.vlgmr.msra.gmra.mrb[50].mxu0 %v19725_v16 }
 0x626   :  { %10660 = vmatmul.mubr.f32.vlgmr.msra.gmra.mrb[50].mxu1 %v19725_v16 }
 0x638   :  { %v11938_v30 = vpop.f32.mrb[38].mxu0 }
 0x639   :  { %v11973_v55 = vpop.f32.mrb[38].mxu1  ;;  %v11939_v37 = vpop.f32.mrb[39].mxu0 }
 0x63a   :  { %v11940_v35 = vadd.f32 %v11939_v37, %v11938_v30  ;;  %v11974_v38 = vpop.f32.mrb[39].mxu1 }
 0x63b   :  { %v11975_v48 = vadd.f32 %v11974_v38, %v11973_v55 }
 0x63c   :  { %v8834_v4 = vadd.f32 %v11940_v35, %v8666_v15  ;;  %v22243_v35 = vld [vmem:[#allocation315_spill] sm:$0xff] }
 0x63e   :  { %v8938_v22 = vadd.f32 %v11975_v48, %v8834_v4 }
 0x658   :  { %v12008_v41 = vpop.f32.mrb[40].mxu0 }
 0x659   :  { %v12043_v3 = vpop.f32.mrb[40].mxu1  ;;  %v12009_v58 = vpop.f32.mrb[41].mxu0 }
 0x65a   :  { %v12010_v2 = vadd.f32 %v12009_v58, %v12008_v41  ;;  %v12044_v60 = vpop.f32.mrb[41].mxu1 }
 0x65b   :  { %v12045_v57 = vadd.f32 %v12044_v60, %v12043_v3  ;;  %v22244_v3 = vld [vmem:[#allocation123_spill] sm:$0xff] }
 0x65c   :  { %v9050_v62 = vadd.f32 %v12010_v2, %v8938_v22 }
 0x65e   :  { %v9282_v56 = vadd.f32 %v12045_v57, %v9050_v62  ;;  %v22245_v57 = vld [vmem:[#allocation131_spill] sm:$0xff] }
 0x678   :  { %v12078_v43 = vpop.f32.mrb[42].mxu0 }
 0x679   :  { %v12113_v14 = vpop.f32.mrb[42].mxu1  ;;  %v12079_v44 = vpop.f32.mrb[43].mxu0 }
 0x67a   :  { %v12080_v16 = vadd.f32 %v12079_v44, %v12078_v43  ;;  %v12114_v0 = vpop.f32.mrb[43].mxu1  ;;  %v10705_v43 = vlaneseq }
 0x67b   :  { %v12115_v10 = vadd.f32 %v12114_v0, %v12113_v14 }
 0x67c   :  { %v9420_v32 = vadd.f32 %v12080_v16, %v9282_v56  ;;  %v10706_v16 = vshrl.u32 %v10705_v43, 7 }
 0x67e   :  { %v9528_v51 = vadd.f32 %v12115_v10, %v9420_v32  ;;  %vm10707_vm0 = vcmp.eq.s32.totalorder %v10706_v16, 0 }
 0x698   :  { %v12148_v11 = vpop.f32.mrb[44].mxu0 }
 0x699   :  { %v12183_v8 = vpop.f32.mrb[44].mxu1  ;;  %v12149_v46 = vpop.f32.mrb[45].mxu0 }
 0x69a   :  { %v12150_v63 = vadd.f32 %v12149_v46, %v12148_v11  ;;  %v12184_v49 = vpop.f32.mrb[45].mxu1 }
 0x69b   :  { %v12185_v21 = vadd.f32 %v12184_v49, %v12183_v8 }
 0x69c   :  { %v9696_v31 = vadd.f32 %v12150_v63, %v9528_v51 }
 0x69e   :  { %v9800_v6 = vadd.f32 %v12185_v21, %v9696_v31 }
 0x6b8   :  { %v12218_v28 = vpop.f32.mrb[46].mxu0 }
 0x6b9   :  { %v12253_v61 = vpop.f32.mrb[46].mxu1  ;;  %v12219_v47 = vpop.f32.mrb[47].mxu0 }
 0x6ba   :  { %v12220_v27 = vadd.f32 %v12219_v47, %v12218_v28  ;;  %v12254_v24 = vpop.f32.mrb[47].mxu1 }
 0x6bb   :  { %v12255_v1 = vadd.f32 %v12254_v24, %v12253_v61 }
 0x6bc   :  { %v9912_v45 = vadd.f32 %v12220_v27, %v9800_v6 }
 0x6be   :  { %v10144_v18 = vadd.f32 %v12255_v1, %v9912_v45 }
 0x6d8   :  { %v12288_v23 = vpop.f32.mrb[48].mxu0 }
 0x6d9   :  { %v12323_v13 = vpop.f32.mrb[48].mxu1  ;;  %v12289_v33 = vpop.f32.mrb[49].mxu0 }
 0x6da   :  { %v12290_v29 = vadd.f32 %v12289_v33, %v12288_v23  ;;  %v12324_v12 = vpop.f32.mrb[49].mxu1 }
 0x6db   :  { %v12325_v53 = vadd.f32 %v12324_v12, %v12323_v13 }
 0x6dc   :  { %v10282_v40 = vadd.f32 %v12290_v29, %v10144_v18 }
 0x6de   :  { %v10390_v50 = vadd.f32 %v12325_v53, %v10282_v40 }
 0x6f8   :  { %v12358_v5 = vpop.f32.mrb[50].mxu0 }
 0x6f9   :  { %v12393_v19 = vpop.f32.mrb[50].mxu1  ;;  %v12359_v36 = vpop.f32.mrb[51].mxu0 }
 0x6fa   :  { %v12360_v7 = vadd.f32 %v12359_v36, %v12358_v5  ;;  %v12394_v54 = vpop.f32.mrb[51].mxu1 }
 0x6fb   :  { %v12395_v59 = vadd.f32 %v12394_v54, %v12393_v19 }
 0x6fc   :  { %v10558_v26 = vadd.f32 %v12360_v7, %v10390_v50 }
 0x6fe   :  { %v10662_v42 = vadd.f32 %v12395_v59, %v10558_v26 }
 0x700   :  { %v10685_v15 = vmul.f32 %v10684_v9, %v10662_v42 }
 0x702   :  { %v10686_v25 = vadd.f32 %v14767_v39, %v10685_v15 }
 0x704   :  { %10687 = vmax.xlane.f32.xlu1 %v10686_v25 }
 0x791   :  { %v10688_v20 = vpop.xlane.xlu1 %10687 }
 0x792   :  { %v10689_v30 = vsub.f32 %v10686_v25, %v10688_v20 }
 0x794   :  { %v10690_v55 = vmul.f32 1.442695, %v10689_v30 }
 0x796   :  { %14755 = vpow2.f32 %v10690_v55 }
 0x797   :  { %14757 = vlog2.f32 %v22243_v35 }
 0x7a0   :  { %v14756_v37 = vpop.eup %14755 }
 0x7a1   :  { %10692 = vadd.xlane.f32.xlu0 %v14756_v37  ;;  %v14758_v48 = vpop.eup %14757 }
 0x7a2   :  { %v320_v4 = vmul.f32 0.6931472, %v14758_v48 }
 0x7a4   :  { %v321_v58 = vsub.f32 %v22244_v3, %v320_v4 }
 0x82e   :  { %v10693_v38 = vpop.xlane.xlu0 %10692 }
 0x82f   :  { %14759 = vlog2.f32 %v10693_v38 }
 0x839   :  { %v14760_v22 = vpop.eup %14759 }
 0x83a   :  { %v10695_v41 = vmul.f32 0.6931472, %v14760_v22 }
 0x83c   :  { %v10696_v2 = vsub.f32 %v10689_v30, %v10695_v41 }
 0x83e   :  { %v10697_v60 = vsub.f32 %v321_v58, %v10696_v2 }
 0x840   :  { %v10698_v62 = vmul.f32 %v10697_v60, %v22245_v57 }
 0x842   :  { %v10699_v56 = vrot.slane %v10698_v62, 4 }
 0x844   :  { %v10700_v14 = vadd.f32 %v10699_v56, %v10698_v62 }
 0x846   :  { %v10701_v44 = vrot.slane %v10700_v14, 2 }
 0x848   :  { %v10702_v0 = vadd.f32 %v10701_v44, %v10700_v14 }
 0x84a   :  { %v10703_v10 = vrot.slane %v10702_v0, 1 }
 0x84c   :  { %v10704_v32 = vadd.f32 %v10703_v10, %v10702_v0 }
 0x84e   :  { %v10708_v51 = vsel %vm10707_vm0, %v10704_v32, 0.0 }
 0x84f   :  { %10709 = vst [vmem:[%s19836_s4] sm:$0xff] %v10708_v51 }
 0x850   :  { %10714 = vsyncpa [#allocation3], 1 }
 0x851   :  { %10715 = vsyncpa [#allocation5], 1 }

</bundles_post_ra>
